<compile_context>
chip_gen: v7x
topology: tpu7x:2x2x1
jax: 0.10.0
libtpu: 0.0.40
codegen_flags: <defaults>
</compile_context>

<pallas_src>
import numpy as np

import jax
import jax.numpy as jnp
from jax.experimental import pallas as pl
from jax.experimental.pallas import tpu as pltpu


# ----------------------------------------------------------------------------
# Host-side constant builders
# ----------------------------------------------------------------------------
def _upsample2x_matrix_T(h, w):
  """(h*w, 4*h*w) operator: x_flat @ U_T == flat(2x bilinear upsample of x),
  matching nn.Upsample(scale_factor=2, mode='bilinear', align_corners=False)."""
  def u1d(n):
    U = np.zeros((2 * n, n), np.float32)
    for o in range(2 * n):
      src = max((o + 0.5) * 0.5 - 0.5, 0.0)
      i0 = int(np.floor(src))
      frac = src - i0
      i1 = min(i0 + 1, n - 1)
      U[o, i0] += 1.0 - frac
      U[o, i1] += frac
    return U
  U2d = np.kron(u1d(h), u1d(w))            # (4hw, hw), row-major flattening
  return np.ascontiguousarray(U2d.T)       # (hw, 4hw)


def _edge_masks(h, w, ksize, n_rep):
  """(ksize*ksize, n_rep*h*w) 0/1 masks: tap t valid where the (zero-padded)
  source pixel is inside the image. Tiled over the images folded into lanes
  (also prevents cross-image leakage of the circular lane roll)."""
  pad = (ksize - 1) // 2
  hh, ww = np.meshgrid(np.arange(h), np.arange(w), indexing="ij")
  hh = hh.reshape(-1)
  ww = ww.reshape(-1)
  masks = np.zeros((ksize * ksize, h * w), np.float32)
  for ky in range(ksize):
    for kx in range(ksize):
      dy, dx = ky - pad, kx - pad
      valid = ((hh + dy >= 0) & (hh + dy < h) &
               (ww + dx >= 0) & (ww + dx < w))
      masks[ky * ksize + kx] = valid.astype(np.float32)
  return np.tile(masks, (1, n_rep))


# ----------------------------------------------------------------------------
# Wrapper: PyTorch-style NCHW in / NCHW out, one fused pallas_call
# ----------------------------------------------------------------------------
def fpn_decoder_pallas(features, params):
  c1, c2, c3, c4 = features                 # c1 = finest scale, c4 = coarsest
  N, _, H, W = c1.shape
  co = params["final_b"].shape[0]
  hw = H * W
  nhw = N * hw
  f32 = jnp.float32

  # Fold batch into lanes: (N, C, H, W) -> (C, N*H*W). Channels on sublanes,
  # per-image pixels contiguous on lanes.
  def fold(c):
    n, ch, h_, w_ = c.shape
    return jnp.transpose(c.astype(f32), (1, 0, 2, 3)).reshape(ch, n * h_ * w_)

  c1f, c2f, c3f, c4f = (fold(c) for c in (c1, c2, c3, c4))

  # 1x1 lateral convs -> (Co, Cin) matrices.
  wl = [params["lateral_w"][i][:, :, 0, 0].astype(f32) for i in range(4)]

  # All biases packed into one (Co, 6) array: [bl0, bl1, bl2, bl3, bf0, bfin].
  bias_pack = jnp.stack(
      [params["lateral_b"][0], params["lateral_b"][1],
       params["lateral_b"][2], params["lateral_b"][3],
       params["fpn_b"][0], params["final_b"]], axis=1).astype(f32)

  # 2x bilinear upsample as flat matmul operators, block-diag over the batch.
  def up_op(hs, ws):
    return jnp.asarray(np.kron(np.eye(N, dtype=np.float32),
                               _upsample2x_matrix_T(hs, ws)))
  up43 = up_op(c4.shape[2], c4.shape[3])     # (N*hw4, N*hw3)
  up32 = up_op(c3.shape[2], c3.shape[3])     # (N*hw3, N*hw2)
  up21 = up_op(c2.shape[2], c2.shape[3])     # (N*hw2, N*hw1)

  # 3x3 convs: stack the 9 taps along K -> (Co, 9*Co), both convs in one array.
  def cat3x3(w_oihw):
    return jnp.transpose(w_oihw, (0, 2, 3, 1)).reshape(co, 9 * co).astype(f32)
  wcat = jnp.stack([cat3x3(params["fpn_w"][0]), cat3x3(params["final_w"])],
                   axis=0)                                       # (2, Co, 9Co)

  # CBAM weights.
  wca1 = params["ca_w1"][:, :, 0, 0].astype(f32)                 # (Ch, Co)
  wca2 = params["ca_w2"][:, :, 0, 0].astype(f32)                 # (Co, Ch)
  w7 = params["sa_w"][0].reshape(2, 49).astype(f32)              # (2, 49)

  # Edge masks for the roll-based stencils: rows 0..8 -> 3x3, rows 9..57 -> 7x7.
  mask_pack = jnp.asarray(np.concatenate(
      [_edge_masks(H, W, 3, N), _edge_masks(H, W, 7, N)], axis=0))  # (58, nhw)

  # --------------------------------------------------------------------------
  def kernel(c1_ref, c2_ref, c3_ref, c4_ref,
             wl0_ref, wl1_ref, wl2_ref, wl3_ref, bias_ref,
             up43_ref, up32_ref, up21_ref,
             wcat_ref, wca1_ref, wca2_ref, w7_ref, mask_ref,
             o_ref):

    def mm(a, b):
      return jnp.dot(a, b, preferred_element_type=f32)

    def sigmoid(v):                    # numerically stable, no inf intermediate
      e = jnp.exp(-jnp.abs(v))
      return jnp.where(v >= 0, 1.0 / (1.0 + e), e / (1.0 + e))

    def shift(x, dy, dx):
      # y[:, p] = x[:, p + dy*W + dx] (circular; out-of-image sources masked).
      s = (-(dy * W + dx)) % nhw
      return x if s == 0 else pltpu.roll(x, shift=s, axis=1)

    def conv3x3(x, widx, bias):
      # im2col: 9 rolled+masked copies -> one K = 9*Co MXU contraction.
      parts = []
      for ky in range(3):
        for kx in range(3):
          t = ky * 3 + kx
          parts.append(shift(x, ky - 1, kx - 1) * mask_ref[t:t + 1, :])
      x_cat = jnp.concatenate(parts, axis=0)           # (9*Co, nhw)
      return mm(wcat_ref[widx], x_cat) + bias

    bl0 = bias_ref[:, 0:1]
    bl1 = bias_ref[:, 1:2]
    bl2 = bias_ref[:, 2:3]
    bl3 = bias_ref[:, 3:4]
    bf0 = bias_ref[:, 4:5]
    bfin = bias_ref[:, 5:6]

    # ---- top-down pathway: lateral 1x1 convs + 2x bilinear upsample ---------
    p4 = mm(wl3_ref[...], c4_ref[...]) + bl3                          # (Co, N*hw4)
    p3 = mm(wl2_ref[...], c3_ref[...]) + bl2 + mm(p4, up43_ref[...])  # (Co, N*hw3)
    p2 = mm(wl1_ref[...], c2_ref[...]) + bl1 + mm(p3, up32_ref[...])  # (Co, N*hw2)
    p1 = mm(wl0_ref[...], c1_ref[...]) + bl0 + mm(p2, up21_ref[...])  # (Co, nhw)

    # ---- fpn_convs[0]: 3x3 conv ---------------------------------------------
    q1 = conv3x3(p1, 0, bf0)                                          # (Co, nhw)

    # ---- CBAM channel attention (per-image global avg/max pooling) ----------
    wca1_v = wca1_ref[...]
    wca2_v = wca2_ref[...]
    ca_parts = []
    for n in range(N):
      blk = q1[:, n * hw:(n + 1) * hw]                 # lane-aligned slice
      avg_n = jnp.mean(blk, axis=1, keepdims=True)     # (Co, 1)
      max_n = jnp.max(blk, axis=1, keepdims=True)      # (Co, 1)
      y_n = (mm(wca2_v, jnp.maximum(mm(wca1_v, avg_n), 0.0)) +
             mm(wca2_v, jnp.maximum(mm(wca1_v, max_n), 0.0)))
      ca_parts.append(blk * sigmoid(y_n))
    x_ca = ca_parts[0] if N == 1 else jnp.concatenate(ca_parts, axis=1)

    # ---- CBAM spatial attention: 7x7 stencil as 49 roll+FMA taps (VPU) ------
    avg_c = jnp.mean(x_ca, axis=0, keepdims=True)      # (1, nhw)
    max_c = jnp.max(x_ca, axis=0, keepdims=True)       # (1, nhw)
    cat2 = jnp.concatenate([avg_c, max_c], axis=0)     # (2, nhw)
    acc2 = jnp.zeros((2, nhw), f32)
    for ky in range(7):
      for kx in range(7):
        t = ky * 7 + kx
        acc2 = acc2 + (shift(cat2, ky - 3, kx - 3)
                       * mask_ref[9 + t:10 + t, :]
                       * w7_ref[:, t:t + 1])
    sa = sigmoid(acc2[0:1, :] + acc2[1:2, :])          # (1, nhw)
    x_sa = x_ca * sa

    # ---- final 3x3 conv ------------------------------------------------------
    o_ref[...] = conv3x3(x_sa, 1, bfin)

  # --------------------------------------------------------------------------
  # Rough cost estimate (scheduler hint).
  flops = 2 * co * (9 * co) * nhw * 2                      # the two 3x3 convs
  flops += 2 * co * sum(w.shape[1] * cf.shape[1]
                        for w, cf in zip(wl, (c1f, c2f, c3f, c4f)))
  flops += 2 * co * (up43.shape[0] * up43.shape[1] +
                     up32.shape[0] * up32.shape[1] +
                     up21.shape[0] * up21.shape[1])
  bytes_accessed = 4 * (c1f.size + c2f.size + c3f.size + c4f.size +
                        sum(w.size for w in wl) + bias_pack.size +
                        up43.size + up32.size + up21.size + wcat.size +
                        wca1.size + wca2.size + w7.size + mask_pack.size +
                        co * nhw)

  out = pl.pallas_call(
      kernel,
      out_shape=jax.ShapeDtypeStruct((co, nhw), f32),
      cost_estimate=pl.CostEstimate(
          flops=int(flops),
          transcendentals=int(2 * co * N + nhw),
          bytes_accessed=int(bytes_accessed)),
  )(c1f, c2f, c3f, c4f,
    wl[0], wl[1], wl[2], wl[3], bias_pack,
    up43, up32, up21,
    wcat, wca1, wca2, w7, mask_pack)

  return jnp.transpose(out.reshape(co, N, H, W), (1, 0, 2, 3))


# ----------------------------------------------------------------------------
# Pure-JAX reference (NCHW, mirrors the PyTorch forward)
# ----------------------------------------------------------------------------
def _upsample2x_bilinear_ref(x):
  n, c, h, w = x.shape
  def idx(out_size, in_size):
    o = jnp.arange(out_size, dtype=jnp.float32)
    src = jnp.maximum((o + 0.5) * 0.5 - 0.5, 0.0)
    i0 = jnp.floor(src).astype(jnp.int32)
    i1 = jnp.minimum(i0 + 1, in_size - 1)
    frac = src - i0.astype(jnp.float32)
    return i0, i1, frac
  h0, h1, fh = idx(2 * h, h)
  w0, w1, fw = idx(2 * w, w)
  xh = (x[:, :, h0, :] * (1.0 - fh)[None, None, :, None] +
        x[:, :, h1, :] * fh[None, None, :, None])
  return (xh[:, :, :, w0] * (1.0 - fw)[None, None, None, :] +
          xh[:, :, :, w1] * fw[None, None, None, :])


def fpn_decoder_reference(features, params):
  c1, c2, c3, c4 = features

  def conv(x, w, b=None, pad=0):
    y = jax.lax.conv_general_dilated(
        x, w, (1, 1), [(pad, pad), (pad, pad)],
        dimension_numbers=("NCHW", "OIHW", "NCHW"),
        precision=jax.lax.Precision.HIGHEST)
    if b is not None:
      y = y + b[None, :, None, None]
    return y

  up = _upsample2x_bilinear_ref
  lw, lb = params["lateral_w"], params["lateral_b"]
  p4 = conv(c4, lw[3], lb[3])
  p3 = conv(c3, lw[2], lb[2]) + up(p4)
  p2 = conv(c2, lw[1], lb[1]) + up(p3)
  p1 = conv(c1, lw[0], lb[0]) + up(p2)
  # fpn_convs[1..3](p2/p3/p4) are dead w.r.t. the returned tensor.
  p1 = conv(p1, params["fpn_w"][0], params["fpn_b"][0], pad=1)

  # CBAM: channel attention
  avg = jnp.mean(p1, axis=(2, 3), keepdims=True)
  mx = jnp.max(p1, axis=(2, 3), keepdims=True)
  def fc(z):
    return conv(jnp.maximum(conv(z, params["ca_w1"]), 0.0), params["ca_w2"])
  x_ca = jax.nn.sigmoid(fc(avg) + fc(mx)) * p1

  # CBAM: spatial attention
  avg_c = jnp.mean(x_ca, axis=1, keepdims=True)
  max_c = jnp.max(x_ca, axis=1, keepdims=True)
  sa_in = jnp.concatenate([avg_c, max_c], axis=1)
  sa_pad = (params["sa_w"].shape[-1] - 1) // 2
  x_sa = jax.nn.sigmoid(conv(sa_in, params["sa_w"], pad=sa_pad)) * x_ca

  return conv(x_sa, params["final_w"], params["final_b"], pad=1)


# ----------------------------------------------------------------------------
# Deterministic parameter init (PyTorch layouts)
# ----------------------------------------------------------------------------
def make_params(key, in_channels_list, out_channels, reduction=16, sa_kernel=7):
  keys = jax.random.split(key, 32)
  it = iter(keys)

  def nrm(k, shape, scale=0.05):
    return scale * jax.random.normal(k, shape, jnp.float32)

  params = {"lateral_w": [], "lateral_b": [], "fpn_w": [], "fpn_b": []}
  for cin in in_channels_list:
    params["lateral_w"].append(nrm(next(it), (out_channels, cin, 1, 1)))
    params["lateral_b"].append(nrm(next(it), (out_channels,)))
    params["fpn_w"].append(nrm(next(it), (out_channels, out_channels, 3, 3)))
    params["fpn_b"].append(nrm(next(it), (out_channels,)))
  ch = max(out_channels // reduction, 1)
  params["ca_w1"] = nrm(next(it), (ch, out_channels, 1, 1))
  params["ca_w2"] = nrm(next(it), (out_channels, ch, 1, 1))
  params["sa_w"] = nrm(next(it), (1, 2, sa_kernel, sa_kernel))
  params["final_w"] = nrm(next(it), (out_channels, out_channels, 3, 3))
  params["final_b"] = nrm(next(it), (out_channels,))
  return params


# ----------------------------------------------------------------------------
if __name__ == "__main__":
  N = 2
  OUT_CH = 32                        # reduction=16 -> CBAM hidden channels = 2
  IN_CHANNELS = [16, 32, 64, 128]    # c1 (finest) .. c4 (coarsest)
  H1 = W1 = 16

  key = jax.random.PRNGKey(0)
  kp, k1, k2, k3, k4 = jax.random.split(key, 5)
  params = make_params(kp, IN_CHANNELS, OUT_CH)
  features = (
      jax.random.normal(k1, (N, IN_CHANNELS[0], H1, W1), jnp.float32),
      jax.random.normal(k2, (N, IN_CHANNELS[1], H1 // 2, W1 // 2), jnp.float32),
      jax.random.normal(k3, (N, IN_CHANNELS[2], H1 // 4, W1 // 4), jnp.float32),
      jax.random.normal(k4, (N, IN_CHANNELS[3], H1 // 8, W1 // 8), jnp.float32),
  )

  out = fpn_decoder_pallas(features, params)
  out = jax.block_until_ready(out)
  assert out.shape == (N, OUT_CH, H1, W1), out.shape

  ref = fpn_decoder_reference(features, params)
  max_err = float(jnp.max(jnp.abs(out - ref)))
  assert max_err < 1e-3, f"mismatch vs reference: {max_err}"

  print("KERNEL_OK")
</pallas_src>

<mosaic_0001>
module attributes {stable_mosaic.version = 11 : i64} {
  func.func @kernel(%arg0: memref<16x512xf32, #tpu.memory_space<vmem>>, %arg1: memref<32x128xf32, #tpu.memory_space<vmem>>, %arg2: memref<64x32xf32, #tpu.memory_space<vmem>>, %arg3: memref<128x8xf32, #tpu.memory_space<vmem>>, %arg4: memref<32x16xf32, #tpu.memory_space<vmem>>, %arg5: memref<32x32xf32, #tpu.memory_space<vmem>>, %arg6: memref<32x64xf32, #tpu.memory_space<vmem>>, %arg7: memref<32x128xf32, #tpu.memory_space<vmem>>, %arg8: memref<32x6xf32, #tpu.memory_space<vmem>>, %arg9: memref<8x32xf32, #tpu.memory_space<vmem>>, %arg10: memref<32x128xf32, #tpu.memory_space<vmem>>, %arg11: memref<128x512xf32, #tpu.memory_space<vmem>>, %arg12: memref<2x32x288xf32, #tpu.memory_space<vmem>>, %arg13: memref<2x32xf32, #tpu.memory_space<vmem>>, %arg14: memref<32x2xf32, #tpu.memory_space<vmem>>, %arg15: memref<2x49xf32, #tpu.memory_space<vmem>>, %arg16: memref<58x512xf32, #tpu.memory_space<vmem>>, %arg17: memref<32x512xf32, #tpu.memory_space<vmem>>) attributes {dimension_semantics = [], scalar_prefetch = 0 : i64, scratch_operands = 0 : i64, tpu.core_type = #tpu.core_type<tc>} {
    %c0 = arith.constant 0 : index
    %c0_0 = arith.constant 0 : index
    %0 = vector.load %arg8[%c0, %c0_0] : memref<32x6xf32, #tpu.memory_space<vmem>>, vector<32x1xf32>
    %c0_1 = arith.constant 0 : index
    %c1 = arith.constant 1 : index
    %1 = vector.load %arg8[%c0_1, %c1] : memref<32x6xf32, #tpu.memory_space<vmem>>, vector<32x1xf32>
    %c0_2 = arith.constant 0 : index
    %c2 = arith.constant 2 : index
    %2 = vector.load %arg8[%c0_2, %c2] : memref<32x6xf32, #tpu.memory_space<vmem>>, vector<32x1xf32>
    %c0_3 = arith.constant 0 : index
    %c3 = arith.constant 3 : index
    %3 = vector.load %arg8[%c0_3, %c3] : memref<32x6xf32, #tpu.memory_space<vmem>>, vector<32x1xf32>
    %c0_4 = arith.constant 0 : index
    %c4 = arith.constant 4 : index
    %4 = vector.load %arg8[%c0_4, %c4] : memref<32x6xf32, #tpu.memory_space<vmem>>, vector<32x1xf32>
    %c0_5 = arith.constant 0 : index
    %c5 = arith.constant 5 : index
    %5 = vector.load %arg8[%c0_5, %c5] : memref<32x6xf32, #tpu.memory_space<vmem>>, vector<32x1xf32>
    %c0_6 = arith.constant 0 : index
    %c0_7 = arith.constant 0 : index
    %6 = vector.load %arg7[%c0_6, %c0_7] : memref<32x128xf32, #tpu.memory_space<vmem>>, vector<32x128xf32>
    %c0_8 = arith.constant 0 : index
    %c0_9 = arith.constant 0 : index
    %7 = vector.load %arg3[%c0_8, %c0_9] : memref<128x8xf32, #tpu.memory_space<vmem>>, vector<128x8xf32>
    %cst = arith.constant dense<0.000000e+00> : vector<32x8xf32>
    %8 = tpu.matmul %6, %7, %cst {dimension_numbers = #tpu.dot_dimension_numbers<[1], [0], [0], [1], [0, 0, 1, 1], [], []>} : vector<32x128xf32>, vector<128x8xf32>, vector<32x8xf32> -> vector<32x8xf32>
    %9 = vector.broadcast %3 : vector<32x1xf32> to vector<32x8xf32>
    %10 = arith.addf %8, %9 : vector<32x8xf32>
    %c0_10 = arith.constant 0 : index
    %c0_11 = arith.constant 0 : index
    %11 = vector.load %arg6[%c0_10, %c0_11] : memref<32x64xf32, #tpu.memory_space<vmem>>, vector<32x64xf32>
    %c0_12 = arith.constant 0 : index
    %c0_13 = arith.constant 0 : index
    %12 = vector.load %arg2[%c0_12, %c0_13] : memref<64x32xf32, #tpu.memory_space<vmem>>, vector<64x32xf32>
    %cst_14 = arith.constant dense<0.000000e+00> : vector<32x32xf32>
    %13 = tpu.matmul %11, %12, %cst_14 {dimension_numbers = #tpu.dot_dimension_numbers<[1], [0], [0], [1], [0, 0, 1, 1], [], []>} : vector<32x64xf32>, vector<64x32xf32>, vector<32x32xf32> -> vector<32x32xf32>
    %14 = vector.broadcast %2 : vector<32x1xf32> to vector<32x32xf32>
    %15 = arith.addf %13, %14 : vector<32x32xf32>
    %c0_15 = arith.constant 0 : index
    %c0_16 = arith.constant 0 : index
    %16 = vector.load %arg9[%c0_15, %c0_16] : memref<8x32xf32, #tpu.memory_space<vmem>>, vector<8x32xf32>
    %cst_17 = arith.constant dense<0.000000e+00> : vector<32x32xf32>
    %17 = tpu.matmul %10, %16, %cst_17 {dimension_numbers = #tpu.dot_dimension_numbers<[1], [0], [0], [1], [0, 0, 1, 1], [], []>} : vector<32x8xf32>, vector<8x32xf32>, vector<32x32xf32> -> vector<32x32xf32>
    %18 = arith.addf %15, %17 : vector<32x32xf32>
    %c0_18 = arith.constant 0 : index
    %c0_19 = arith.constant 0 : index
    %19 = vector.load %arg5[%c0_18, %c0_19] : memref<32x32xf32, #tpu.memory_space<vmem>>, vector<32x32xf32>
    %c0_20 = arith.constant 0 : index
    %c0_21 = arith.constant 0 : index
    %20 = vector.load %arg1[%c0_20, %c0_21] : memref<32x128xf32, #tpu.memory_space<vmem>>, vector<32x128xf32>
    %cst_22 = arith.constant dense<0.000000e+00> : vector<32x128xf32>
    %21 = tpu.matmul %19, %20, %cst_22 {dimension_numbers = #tpu.dot_dimension_numbers<[1], [0], [0], [1], [0, 0, 1, 1], [], []>} : vector<32x32xf32>, vector<32x128xf32>, vector<32x128xf32> -> vector<32x128xf32>
    %22 = vector.broadcast %1 : vector<32x1xf32> to vector<32x128xf32>
    %23 = arith.addf %21, %22 : vector<32x128xf32>
    %c0_23 = arith.constant 0 : index
    %c0_24 = arith.constant 0 : index
    %24 = vector.load %arg10[%c0_23, %c0_24] : memref<32x128xf32, #tpu.memory_space<vmem>>, vector<32x128xf32>
    %cst_25 = arith.constant dense<0.000000e+00> : vector<32x128xf32>
    %25 = tpu.matmul %18, %24, %cst_25 {dimension_numbers = #tpu.dot_dimension_numbers<[1], [0], [0], [1], [0, 0, 1, 1], [], []>} : vector<32x32xf32>, vector<32x128xf32>, vector<32x128xf32> -> vector<32x128xf32>
    %26 = arith.addf %23, %25 : vector<32x128xf32>
    %c0_26 = arith.constant 0 : index
    %c0_27 = arith.constant 0 : index
    %27 = vector.load %arg4[%c0_26, %c0_27] : memref<32x16xf32, #tpu.memory_space<vmem>>, vector<32x16xf32>
    %c0_28 = arith.constant 0 : index
    %c0_29 = arith.constant 0 : index
    %28 = vector.load %arg0[%c0_28, %c0_29] : memref<16x512xf32, #tpu.memory_space<vmem>>, vector<16x512xf32>
    %cst_30 = arith.constant dense<0.000000e+00> : vector<32x512xf32>
    %29 = tpu.matmul %27, %28, %cst_30 {dimension_numbers = #tpu.dot_dimension_numbers<[1], [0], [0], [1], [0, 0, 1, 1], [], []>} : vector<32x16xf32>, vector<16x512xf32>, vector<32x512xf32> -> vector<32x512xf32>
    %30 = vector.broadcast %0 : vector<32x1xf32> to vector<32x512xf32>
    %31 = arith.addf %29, %30 : vector<32x512xf32>
    %c0_31 = arith.constant 0 : index
    %c0_32 = arith.constant 0 : index
    %32 = vector.load %arg11[%c0_31, %c0_32] : memref<128x512xf32, #tpu.memory_space<vmem>>, vector<128x512xf32>
    %cst_33 = arith.constant dense<0.000000e+00> : vector<32x512xf32>
    %33 = tpu.matmul %26, %32, %cst_33 {dimension_numbers = #tpu.dot_dimension_numbers<[1], [0], [0], [1], [0, 0, 1, 1], [], []>} : vector<32x128xf32>, vector<128x512xf32>, vector<32x512xf32> -> vector<32x512xf32>
    %34 = arith.addf %31, %33 : vector<32x512xf32>
    %c17_i32 = arith.constant 17 : i32
    %35 = tpu.dynamic_rotate %34 by %c17_i32 dim 1 : vector<32x512xf32>, i32 -> vector<32x512xf32>
    %c0_34 = arith.constant 0 : index
    %c0_35 = arith.constant 0 : index
    %36 = vector.load %arg16[%c0_34, %c0_35] : memref<58x512xf32, #tpu.memory_space<vmem>>, vector<1x512xf32>
    %37 = vector.broadcast %36 : vector<1x512xf32> to vector<32x512xf32>
    %38 = arith.mulf %35, %37 : vector<32x512xf32>
    %c16_i32 = arith.constant 16 : i32
    %39 = tpu.dynamic_rotate %34 by %c16_i32 dim 1 : vector<32x512xf32>, i32 -> vector<32x512xf32>
    %c1_36 = arith.constant 1 : index
    %c0_37 = arith.constant 0 : index
    %40 = vector.load %arg16[%c1_36, %c0_37] : memref<58x512xf32, #tpu.memory_space<vmem>>, vector<1x512xf32>
    %41 = vector.broadcast %40 : vector<1x512xf32> to vector<32x512xf32>
    %42 = arith.mulf %39, %41 : vector<32x512xf32>
    %c15_i32 = arith.constant 15 : i32
    %43 = tpu.dynamic_rotate %34 by %c15_i32 dim 1 : vector<32x512xf32>, i32 -> vector<32x512xf32>
    %c2_38 = arith.constant 2 : index
    %c0_39 = arith.constant 0 : index
    %44 = vector.load %arg16[%c2_38, %c0_39] : memref<58x512xf32, #tpu.memory_space<vmem>>, vector<1x512xf32>
    %45 = vector.broadcast %44 : vector<1x512xf32> to vector<32x512xf32>
    %46 = arith.mulf %43, %45 : vector<32x512xf32>
    %c1_i32 = arith.constant 1 : i32
    %47 = tpu.dynamic_rotate %34 by %c1_i32 dim 1 : vector<32x512xf32>, i32 -> vector<32x512xf32>
    %c3_40 = arith.constant 3 : index
    %c0_41 = arith.constant 0 : index
    %48 = vector.load %arg16[%c3_40, %c0_41] : memref<58x512xf32, #tpu.memory_space<vmem>>, vector<1x512xf32>
    %49 = vector.broadcast %48 : vector<1x512xf32> to vector<32x512xf32>
    %50 = arith.mulf %47, %49 : vector<32x512xf32>
    %c4_42 = arith.constant 4 : index
    %c0_43 = arith.constant 0 : index
    %51 = vector.load %arg16[%c4_42, %c0_43] : memref<58x512xf32, #tpu.memory_space<vmem>>, vector<1x512xf32>
    %52 = vector.broadcast %51 : vector<1x512xf32> to vector<32x512xf32>
    %53 = arith.mulf %34, %52 : vector<32x512xf32>
    %c511_i32 = arith.constant 511 : i32
    %54 = tpu.dynamic_rotate %34 by %c511_i32 dim 1 : vector<32x512xf32>, i32 -> vector<32x512xf32>
    %c5_44 = arith.constant 5 : index
    %c0_45 = arith.constant 0 : index
    %55 = vector.load %arg16[%c5_44, %c0_45] : memref<58x512xf32, #tpu.memory_space<vmem>>, vector<1x512xf32>
    %56 = vector.broadcast %55 : vector<1x512xf32> to vector<32x512xf32>
    %57 = arith.mulf %54, %56 : vector<32x512xf32>
    %c497_i32 = arith.constant 497 : i32
    %58 = tpu.dynamic_rotate %34 by %c497_i32 dim 1 : vector<32x512xf32>, i32 -> vector<32x512xf32>
    %c6 = arith.constant 6 : index
    %c0_46 = arith.constant 0 : index
    %59 = vector.load %arg16[%c6, %c0_46] : memref<58x512xf32, #tpu.memory_space<vmem>>, vector<1x512xf32>
    %60 = vector.broadcast %59 : vector<1x512xf32> to vector<32x512xf32>
    %61 = arith.mulf %58, %60 : vector<32x512xf32>
    %c496_i32 = arith.constant 496 : i32
    %62 = tpu.dynamic_rotate %34 by %c496_i32 dim 1 : vector<32x512xf32>, i32 -> vector<32x512xf32>
    %c7 = arith.constant 7 : index
    %c0_47 = arith.constant 0 : index
    %63 = vector.load %arg16[%c7, %c0_47] : memref<58x512xf32, #tpu.memory_space<vmem>>, vector<1x512xf32>
    %64 = vector.broadcast %63 : vector<1x512xf32> to vector<32x512xf32>
    %65 = arith.mulf %62, %64 : vector<32x512xf32>
    %c495_i32 = arith.constant 495 : i32
    %66 = tpu.dynamic_rotate %34 by %c495_i32 dim 1 : vector<32x512xf32>, i32 -> vector<32x512xf32>
    %c8 = arith.constant 8 : index
    %c0_48 = arith.constant 0 : index
    %67 = vector.load %arg16[%c8, %c0_48] : memref<58x512xf32, #tpu.memory_space<vmem>>, vector<1x512xf32>
    %68 = vector.broadcast %67 : vector<1x512xf32> to vector<32x512xf32>
    %69 = arith.mulf %66, %68 : vector<32x512xf32>
    %70 = tpu.concatenate %38, %42, %46, %50, %53, %57, %61, %65, %69 in 0 : vector<32x512xf32>, vector<32x512xf32>, vector<32x512xf32>, vector<32x512xf32>, vector<32x512xf32>, vector<32x512xf32>, vector<32x512xf32>, vector<32x512xf32>, vector<32x512xf32> -> vector<288x512xf32>
    %c0_49 = arith.constant 0 : index
    %c0_50 = arith.constant 0 : index
    %c0_51 = arith.constant 0 : index
    %71 = vector.load %arg12[%c0_49, %c0_50, %c0_51] : memref<2x32x288xf32, #tpu.memory_space<vmem>>, vector<1x32x288xf32>
    %72 = vector.shape_cast %71 : vector<1x32x288xf32> to vector<32x288xf32>
    %cst_52 = arith.constant dense<0.000000e+00> : vector<32x512xf32>
    %73 = tpu.matmul %72, %70, %cst_52 {dimension_numbers = #tpu.dot_dimension_numbers<[1], [0], [0], [1], [0, 0, 1, 1], [], []>} : vector<32x288xf32>, vector<288x512xf32>, vector<32x512xf32> -> vector<32x512xf32>
    %74 = vector.broadcast %4 : vector<32x1xf32> to vector<32x512xf32>
    %75 = arith.addf %73, %74 : vector<32x512xf32>
    %c0_53 = arith.constant 0 : index
    %c0_54 = arith.constant 0 : index
    %76 = vector.load %arg13[%c0_53, %c0_54] : memref<2x32xf32, #tpu.memory_space<vmem>>, vector<2x32xf32>
    %c0_55 = arith.constant 0 : index
    %c0_56 = arith.constant 0 : index
    %77 = vector.load %arg14[%c0_55, %c0_56] : memref<32x2xf32, #tpu.memory_space<vmem>>, vector<32x2xf32>
    %78 = vector.extract_strided_slice %75 {offsets = [0, 0], sizes = [32, 256], strides = [1, 1]} : vector<32x512xf32> to vector<32x256xf32>
    %cst_57 = arith.constant dense<0.000000e+00> : vector<32xf32>
    %79 = vector.multi_reduction <add>, %78, %cst_57 [1] : vector<32x256xf32> to vector<32xf32>
    %80 = vector.shape_cast %79 : vector<32xf32> to vector<32x1xf32>
    %cst_58 = arith.constant 2.560000e+02 : f32
    %81 = vector.broadcast %cst_58 : f32 to vector<32x1xf32>
    %82 = arith.divf %80, %81 : vector<32x1xf32>
    %cst_59 = arith.constant dense<0xFF800000> : vector<32xf32>
    %83 = vector.multi_reduction <maximumf>, %78, %cst_59 [1] : vector<32x256xf32> to vector<32xf32>
    %84 = vector.shape_cast %83 : vector<32xf32> to vector<32x1xf32>
    %cst_60 = arith.constant dense<0.000000e+00> : vector<2x1xf32>
    %85 = tpu.matmul %76, %82, %cst_60 {dimension_numbers = #tpu.dot_dimension_numbers<[1], [0], [0], [1], [0, 0, 1, 1], [], []>} : vector<2x32xf32>, vector<32x1xf32>, vector<2x1xf32> -> vector<2x1xf32>
    %cst_61 = arith.constant 0.000000e+00 : f32
    %86 = vector.broadcast %cst_61 : f32 to vector<2x1xf32>
    %87 = arith.maximumf %85, %86 : vector<2x1xf32>
    %cst_62 = arith.constant dense<0.000000e+00> : vector<32x1xf32>
    %88 = tpu.matmul %77, %87, %cst_62 {dimension_numbers = #tpu.dot_dimension_numbers<[1], [0], [0], [1], [0, 0, 1, 1], [], []>} : vector<32x2xf32>, vector<2x1xf32>, vector<32x1xf32> -> vector<32x1xf32>
    %cst_63 = arith.constant dense<0.000000e+00> : vector<2x1xf32>
    %89 = tpu.matmul %76, %84, %cst_63 {dimension_numbers = #tpu.dot_dimension_numbers<[1], [0], [0], [1], [0, 0, 1, 1], [], []>} : vector<2x32xf32>, vector<32x1xf32>, vector<2x1xf32> -> vector<2x1xf32>
    %cst_64 = arith.constant 0.000000e+00 : f32
    %90 = vector.broadcast %cst_64 : f32 to vector<2x1xf32>
    %91 = arith.maximumf %89, %90 : vector<2x1xf32>
    %cst_65 = arith.constant dense<0.000000e+00> : vector<32x1xf32>
    %92 = tpu.matmul %77, %91, %cst_65 {dimension_numbers = #tpu.dot_dimension_numbers<[1], [0], [0], [1], [0, 0, 1, 1], [], []>} : vector<32x2xf32>, vector<2x1xf32>, vector<32x1xf32> -> vector<32x1xf32>
    %93 = arith.addf %88, %92 : vector<32x1xf32>
    %94 = math.absf %93 : vector<32x1xf32>
    %cst_66 = arith.constant 0.000000e+00 : f32
    %95 = vector.broadcast %cst_66 : f32 to vector<32x1xf32>
    %96 = arith.subf %95, %94 : vector<32x1xf32>
    %97 = math.exp %96 : vector<32x1xf32>
    %cst_67 = arith.constant 0.000000e+00 : f32
    %98 = vector.broadcast %cst_67 : f32 to vector<32x1xf32>
    %99 = arith.cmpf oge, %93, %98 : vector<32x1xf32>
    %cst_68 = arith.constant 1.000000e+00 : f32
    %100 = vector.broadcast %cst_68 : f32 to vector<32x1xf32>
    %101 = arith.addf %100, %97 : vector<32x1xf32>
    %cst_69 = arith.constant 1.000000e+00 : f32
    %102 = vector.broadcast %cst_69 : f32 to vector<32x1xf32>
    %103 = arith.divf %102, %101 : vector<32x1xf32>
    %cst_70 = arith.constant 1.000000e+00 : f32
    %104 = vector.broadcast %cst_70 : f32 to vector<32x1xf32>
    %105 = arith.addf %104, %97 : vector<32x1xf32>
    %106 = arith.divf %97, %105 : vector<32x1xf32>
    %107 = arith.select %99, %103, %106 : vector<32x1xi1>, vector<32x1xf32>
    %108 = vector.broadcast %107 : vector<32x1xf32> to vector<32x256xf32>
    %109 = arith.mulf %78, %108 : vector<32x256xf32>
    %110 = vector.extract_strided_slice %75 {offsets = [0, 256], sizes = [32, 256], strides = [1, 1]} : vector<32x512xf32> to vector<32x256xf32>
    %cst_71 = arith.constant dense<0.000000e+00> : vector<32xf32>
    %111 = vector.multi_reduction <add>, %110, %cst_71 [1] : vector<32x256xf32> to vector<32xf32>
    %112 = vector.shape_cast %111 : vector<32xf32> to vector<32x1xf32>
    %cst_72 = arith.constant 2.560000e+02 : f32
    %113 = vector.broadcast %cst_72 : f32 to vector<32x1xf32>
    %114 = arith.divf %112, %113 : vector<32x1xf32>
    %cst_73 = arith.constant dense<0xFF800000> : vector<32xf32>
    %115 = vector.multi_reduction <maximumf>, %110, %cst_73 [1] : vector<32x256xf32> to vector<32xf32>
    %116 = vector.shape_cast %115 : vector<32xf32> to vector<32x1xf32>
    %cst_74 = arith.constant dense<0.000000e+00> : vector<2x1xf32>
    %117 = tpu.matmul %76, %114, %cst_74 {dimension_numbers = #tpu.dot_dimension_numbers<[1], [0], [0], [1], [0, 0, 1, 1], [], []>} : vector<2x32xf32>, vector<32x1xf32>, vector<2x1xf32> -> vector<2x1xf32>
    %cst_75 = arith.constant 0.000000e+00 : f32
    %118 = vector.broadcast %cst_75 : f32 to vector<2x1xf32>
    %119 = arith.maximumf %117, %118 : vector<2x1xf32>
    %cst_76 = arith.constant dense<0.000000e+00> : vector<32x1xf32>
    %120 = tpu.matmul %77, %119, %cst_76 {dimension_numbers = #tpu.dot_dimension_numbers<[1], [0], [0], [1], [0, 0, 1, 1], [], []>} : vector<32x2xf32>, vector<2x1xf32>, vector<32x1xf32> -> vector<32x1xf32>
    %cst_77 = arith.constant dense<0.000000e+00> : vector<2x1xf32>
    %121 = tpu.matmul %76, %116, %cst_77 {dimension_numbers = #tpu.dot_dimension_numbers<[1], [0], [0], [1], [0, 0, 1, 1], [], []>} : vector<2x32xf32>, vector<32x1xf32>, vector<2x1xf32> -> vector<2x1xf32>
    %cst_78 = arith.constant 0.000000e+00 : f32
    %122 = vector.broadcast %cst_78 : f32 to vector<2x1xf32>
    %123 = arith.maximumf %121, %122 : vector<2x1xf32>
    %cst_79 = arith.constant dense<0.000000e+00> : vector<32x1xf32>
    %124 = tpu.matmul %77, %123, %cst_79 {dimension_numbers = #tpu.dot_dimension_numbers<[1], [0], [0], [1], [0, 0, 1, 1], [], []>} : vector<32x2xf32>, vector<2x1xf32>, vector<32x1xf32> -> vector<32x1xf32>
    %125 = arith.addf %120, %124 : vector<32x1xf32>
    %126 = math.absf %125 : vector<32x1xf32>
    %cst_80 = arith.constant 0.000000e+00 : f32
    %127 = vector.broadcast %cst_80 : f32 to vector<32x1xf32>
    %128 = arith.subf %127, %126 : vector<32x1xf32>
    %129 = math.exp %128 : vector<32x1xf32>
    %cst_81 = arith.constant 0.000000e+00 : f32
    %130 = vector.broadcast %cst_81 : f32 to vector<32x1xf32>
    %131 = arith.cmpf oge, %125, %130 : vector<32x1xf32>
    %cst_82 = arith.constant 1.000000e+00 : f32
    %132 = vector.broadcast %cst_82 : f32 to vector<32x1xf32>
    %133 = arith.addf %132, %129 : vector<32x1xf32>
    %cst_83 = arith.constant 1.000000e+00 : f32
    %134 = vector.broadcast %cst_83 : f32 to vector<32x1xf32>
    %135 = arith.divf %134, %133 : vector<32x1xf32>
    %cst_84 = arith.constant 1.000000e+00 : f32
    %136 = vector.broadcast %cst_84 : f32 to vector<32x1xf32>
    %137 = arith.addf %136, %129 : vector<32x1xf32>
    %138 = arith.divf %129, %137 : vector<32x1xf32>
    %139 = arith.select %131, %135, %138 : vector<32x1xi1>, vector<32x1xf32>
    %140 = vector.broadcast %139 : vector<32x1xf32> to vector<32x256xf32>
    %141 = arith.mulf %110, %140 : vector<32x256xf32>
    %142 = tpu.concatenate %109, %141 in 1 : vector<32x256xf32>, vector<32x256xf32> -> vector<32x512xf32>
    %cst_85 = arith.constant dense<0.000000e+00> : vector<512xf32>
    %143 = vector.multi_reduction <add>, %142, %cst_85 [0] : vector<32x512xf32> to vector<512xf32>
    %144 = vector.shape_cast %143 : vector<512xf32> to vector<1x512xf32>
    %cst_86 = arith.constant 3.200000e+01 : f32
    %145 = vector.broadcast %cst_86 : f32 to vector<1x512xf32>
    %146 = arith.divf %144, %145 : vector<1x512xf32>
    %cst_87 = arith.constant dense<0xFF800000> : vector<512xf32>
    %147 = vector.multi_reduction <maximumf>, %142, %cst_87 [0] : vector<32x512xf32> to vector<512xf32>
    %148 = vector.shape_cast %147 : vector<512xf32> to vector<1x512xf32>
    %149 = tpu.concatenate %146, %148 in 0 : vector<1x512xf32>, vector<1x512xf32> -> vector<2x512xf32>
    %cst_88 = arith.constant 0.000000e+00 : f32
    %150 = vector.broadcast %cst_88 : f32 to vector<2x512xf32>
    %c51_i32 = arith.constant 51 : i32
    %151 = tpu.dynamic_rotate %149 by %c51_i32 dim 1 : vector<2x512xf32>, i32 -> vector<2x512xf32>
    %c9 = arith.constant 9 : index
    %c0_89 = arith.constant 0 : index
    %152 = vector.load %arg16[%c9, %c0_89] : memref<58x512xf32, #tpu.memory_space<vmem>>, vector<1x512xf32>
    %153 = vector.broadcast %152 : vector<1x512xf32> to vector<2x512xf32>
    %154 = arith.mulf %151, %153 : vector<2x512xf32>
    %c0_90 = arith.constant 0 : index
    %c0_91 = arith.constant 0 : index
    %155 = vector.load %arg15[%c0_90, %c0_91] : memref<2x49xf32, #tpu.memory_space<vmem>>, vector<2x1xf32>
    %156 = vector.broadcast %155 : vector<2x1xf32> to vector<2x512xf32>
    %157 = arith.mulf %154, %156 : vector<2x512xf32>
    %158 = arith.addf %150, %157 : vector<2x512xf32>
    %c50_i32 = arith.constant 50 : i32
    %159 = tpu.dynamic_rotate %149 by %c50_i32 dim 1 : vector<2x512xf32>, i32 -> vector<2x512xf32>
    %c10 = arith.constant 10 : index
    %c0_92 = arith.constant 0 : index
    %160 = vector.load %arg16[%c10, %c0_92] : memref<58x512xf32, #tpu.memory_space<vmem>>, vector<1x512xf32>
    %161 = vector.broadcast %160 : vector<1x512xf32> to vector<2x512xf32>
    %162 = arith.mulf %159, %161 : vector<2x512xf32>
    %c0_93 = arith.constant 0 : index
    %c1_94 = arith.constant 1 : index
    %163 = vector.load %arg15[%c0_93, %c1_94] : memref<2x49xf32, #tpu.memory_space<vmem>>, vector<2x1xf32>
    %164 = vector.broadcast %163 : vector<2x1xf32> to vector<2x512xf32>
    %165 = arith.mulf %162, %164 : vector<2x512xf32>
    %166 = arith.addf %158, %165 : vector<2x512xf32>
    %c49_i32 = arith.constant 49 : i32
    %167 = tpu.dynamic_rotate %149 by %c49_i32 dim 1 : vector<2x512xf32>, i32 -> vector<2x512xf32>
    %c11 = arith.constant 11 : index
    %c0_95 = arith.constant 0 : index
    %168 = vector.load %arg16[%c11, %c0_95] : memref<58x512xf32, #tpu.memory_space<vmem>>, vector<1x512xf32>
    %169 = vector.broadcast %168 : vector<1x512xf32> to vector<2x512xf32>
    %170 = arith.mulf %167, %169 : vector<2x512xf32>
    %c0_96 = arith.constant 0 : index
    %c2_97 = arith.constant 2 : index
    %171 = vector.load %arg15[%c0_96, %c2_97] : memref<2x49xf32, #tpu.memory_space<vmem>>, vector<2x1xf32>
    %172 = vector.broadcast %171 : vector<2x1xf32> to vector<2x512xf32>
    %173 = arith.mulf %170, %172 : vector<2x512xf32>
    %174 = arith.addf %166, %173 : vector<2x512xf32>
    %c48_i32 = arith.constant 48 : i32
    %175 = tpu.dynamic_rotate %149 by %c48_i32 dim 1 : vector<2x512xf32>, i32 -> vector<2x512xf32>
    %c12 = arith.constant 12 : index
    %c0_98 = arith.constant 0 : index
    %176 = vector.load %arg16[%c12, %c0_98] : memref<58x512xf32, #tpu.memory_space<vmem>>, vector<1x512xf32>
    %177 = vector.broadcast %176 : vector<1x512xf32> to vector<2x512xf32>
    %178 = arith.mulf %175, %177 : vector<2x512xf32>
    %c0_99 = arith.constant 0 : index
    %c3_100 = arith.constant 3 : index
    %179 = vector.load %arg15[%c0_99, %c3_100] : memref<2x49xf32, #tpu.memory_space<vmem>>, vector<2x1xf32>
    %180 = vector.broadcast %179 : vector<2x1xf32> to vector<2x512xf32>
    %181 = arith.mulf %178, %180 : vector<2x512xf32>
    %182 = arith.addf %174, %181 : vector<2x512xf32>
    %c47_i32 = arith.constant 47 : i32
    %183 = tpu.dynamic_rotate %149 by %c47_i32 dim 1 : vector<2x512xf32>, i32 -> vector<2x512xf32>
    %c13 = arith.constant 13 : index
    %c0_101 = arith.constant 0 : index
    %184 = vector.load %arg16[%c13, %c0_101] : memref<58x512xf32, #tpu.memory_space<vmem>>, vector<1x512xf32>
    %185 = vector.broadcast %184 : vector<1x512xf32> to vector<2x512xf32>
    %186 = arith.mulf %183, %185 : vector<2x512xf32>
    %c0_102 = arith.constant 0 : index
    %c4_103 = arith.constant 4 : index
    %187 = vector.load %arg15[%c0_102, %c4_103] : memref<2x49xf32, #tpu.memory_space<vmem>>, vector<2x1xf32>
    %188 = vector.broadcast %187 : vector<2x1xf32> to vector<2x512xf32>
    %189 = arith.mulf %186, %188 : vector<2x512xf32>
    %190 = arith.addf %182, %189 : vector<2x512xf32>
    %c46_i32 = arith.constant 46 : i32
    %191 = tpu.dynamic_rotate %149 by %c46_i32 dim 1 : vector<2x512xf32>, i32 -> vector<2x512xf32>
    %c14 = arith.constant 14 : index
    %c0_104 = arith.constant 0 : index
    %192 = vector.load %arg16[%c14, %c0_104] : memref<58x512xf32, #tpu.memory_space<vmem>>, vector<1x512xf32>
    %193 = vector.broadcast %192 : vector<1x512xf32> to vector<2x512xf32>
    %194 = arith.mulf %191, %193 : vector<2x512xf32>
    %c0_105 = arith.constant 0 : index
    %c5_106 = arith.constant 5 : index
    %195 = vector.load %arg15[%c0_105, %c5_106] : memref<2x49xf32, #tpu.memory_space<vmem>>, vector<2x1xf32>
    %196 = vector.broadcast %195 : vector<2x1xf32> to vector<2x512xf32>
    %197 = arith.mulf %194, %196 : vector<2x512xf32>
    %198 = arith.addf %190, %197 : vector<2x512xf32>
    %c45_i32 = arith.constant 45 : i32
    %199 = tpu.dynamic_rotate %149 by %c45_i32 dim 1 : vector<2x512xf32>, i32 -> vector<2x512xf32>
    %c15 = arith.constant 15 : index
    %c0_107 = arith.constant 0 : index
    %200 = vector.load %arg16[%c15, %c0_107] : memref<58x512xf32, #tpu.memory_space<vmem>>, vector<1x512xf32>
    %201 = vector.broadcast %200 : vector<1x512xf32> to vector<2x512xf32>
    %202 = arith.mulf %199, %201 : vector<2x512xf32>
    %c0_108 = arith.constant 0 : index
    %c6_109 = arith.constant 6 : index
    %203 = vector.load %arg15[%c0_108, %c6_109] : memref<2x49xf32, #tpu.memory_space<vmem>>, vector<2x1xf32>
    %204 = vector.broadcast %203 : vector<2x1xf32> to vector<2x512xf32>
    %205 = arith.mulf %202, %204 : vector<2x512xf32>
    %206 = arith.addf %198, %205 : vector<2x512xf32>
    %c35_i32 = arith.constant 35 : i32
    %207 = tpu.dynamic_rotate %149 by %c35_i32 dim 1 : vector<2x512xf32>, i32 -> vector<2x512xf32>
    %c16 = arith.constant 16 : index
    %c0_110 = arith.constant 0 : index
    %208 = vector.load %arg16[%c16, %c0_110] : memref<58x512xf32, #tpu.memory_space<vmem>>, vector<1x512xf32>
    %209 = vector.broadcast %208 : vector<1x512xf32> to vector<2x512xf32>
    %210 = arith.mulf %207, %209 : vector<2x512xf32>
    %c0_111 = arith.constant 0 : index
    %c7_112 = arith.constant 7 : index
    %211 = vector.load %arg15[%c0_111, %c7_112] : memref<2x49xf32, #tpu.memory_space<vmem>>, vector<2x1xf32>
    %212 = vector.broadcast %211 : vector<2x1xf32> to vector<2x512xf32>
    %213 = arith.mulf %210, %212 : vector<2x512xf32>
    %214 = arith.addf %206, %213 : vector<2x512xf32>
    %c34_i32 = arith.constant 34 : i32
    %215 = tpu.dynamic_rotate %149 by %c34_i32 dim 1 : vector<2x512xf32>, i32 -> vector<2x512xf32>
    %c17 = arith.constant 17 : index
    %c0_113 = arith.constant 0 : index
    %216 = vector.load %arg16[%c17, %c0_113] : memref<58x512xf32, #tpu.memory_space<vmem>>, vector<1x512xf32>
    %217 = vector.broadcast %216 : vector<1x512xf32> to vector<2x512xf32>
    %218 = arith.mulf %215, %217 : vector<2x512xf32>
    %c0_114 = arith.constant 0 : index
    %c8_115 = arith.constant 8 : index
    %219 = vector.load %arg15[%c0_114, %c8_115] : memref<2x49xf32, #tpu.memory_space<vmem>>, vector<2x1xf32>
    %220 = vector.broadcast %219 : vector<2x1xf32> to vector<2x512xf32>
    %221 = arith.mulf %218, %220 : vector<2x512xf32>
    %222 = arith.addf %214, %221 : vector<2x512xf32>
    %c33_i32 = arith.constant 33 : i32
    %223 = tpu.dynamic_rotate %149 by %c33_i32 dim 1 : vector<2x512xf32>, i32 -> vector<2x512xf32>
    %c18 = arith.constant 18 : index
    %c0_116 = arith.constant 0 : index
    %224 = vector.load %arg16[%c18, %c0_116] : memref<58x512xf32, #tpu.memory_space<vmem>>, vector<1x512xf32>
    %225 = vector.broadcast %224 : vector<1x512xf32> to vector<2x512xf32>
    %226 = arith.mulf %223, %225 : vector<2x512xf32>
    %c0_117 = arith.constant 0 : index
    %c9_118 = arith.constant 9 : index
    %227 = vector.load %arg15[%c0_117, %c9_118] : memref<2x49xf32, #tpu.memory_space<vmem>>, vector<2x1xf32>
    %228 = vector.broadcast %227 : vector<2x1xf32> to vector<2x512xf32>
    %229 = arith.mulf %226, %228 : vector<2x512xf32>
    %230 = arith.addf %222, %229 : vector<2x512xf32>
    %c32_i32 = arith.constant 32 : i32
    %231 = tpu.dynamic_rotate %149 by %c32_i32 dim 1 : vector<2x512xf32>, i32 -> vector<2x512xf32>
    %c19 = arith.constant 19 : index
    %c0_119 = arith.constant 0 : index
    %232 = vector.load %arg16[%c19, %c0_119] : memref<58x512xf32, #tpu.memory_space<vmem>>, vector<1x512xf32>
    %233 = vector.broadcast %232 : vector<1x512xf32> to vector<2x512xf32>
    %234 = arith.mulf %231, %233 : vector<2x512xf32>
    %c0_120 = arith.constant 0 : index
    %c10_121 = arith.constant 10 : index
    %235 = vector.load %arg15[%c0_120, %c10_121] : memref<2x49xf32, #tpu.memory_space<vmem>>, vector<2x1xf32>
    %236 = vector.broadcast %235 : vector<2x1xf32> to vector<2x512xf32>
    %237 = arith.mulf %234, %236 : vector<2x512xf32>
    %238 = arith.addf %230, %237 : vector<2x512xf32>
    %c31_i32 = arith.constant 31 : i32
    %239 = tpu.dynamic_rotate %149 by %c31_i32 dim 1 : vector<2x512xf32>, i32 -> vector<2x512xf32>
    %c20 = arith.constant 20 : index
    %c0_122 = arith.constant 0 : index
    %240 = vector.load %arg16[%c20, %c0_122] : memref<58x512xf32, #tpu.memory_space<vmem>>, vector<1x512xf32>
    %241 = vector.broadcast %240 : vector<1x512xf32> to vector<2x512xf32>
    %242 = arith.mulf %239, %241 : vector<2x512xf32>
    %c0_123 = arith.constant 0 : index
    %c11_124 = arith.constant 11 : index
    %243 = vector.load %arg15[%c0_123, %c11_124] : memref<2x49xf32, #tpu.memory_space<vmem>>, vector<2x1xf32>
    %244 = vector.broadcast %243 : vector<2x1xf32> to vector<2x512xf32>
    %245 = arith.mulf %242, %244 : vector<2x512xf32>
    %246 = arith.addf %238, %245 : vector<2x512xf32>
    %c30_i32 = arith.constant 30 : i32
    %247 = tpu.dynamic_rotate %149 by %c30_i32 dim 1 : vector<2x512xf32>, i32 -> vector<2x512xf32>
    %c21 = arith.constant 21 : index
    %c0_125 = arith.constant 0 : index
    %248 = vector.load %arg16[%c21, %c0_125] : memref<58x512xf32, #tpu.memory_space<vmem>>, vector<1x512xf32>
    %249 = vector.broadcast %248 : vector<1x512xf32> to vector<2x512xf32>
    %250 = arith.mulf %247, %249 : vector<2x512xf32>
    %c0_126 = arith.constant 0 : index
    %c12_127 = arith.constant 12 : index
    %251 = vector.load %arg15[%c0_126, %c12_127] : memref<2x49xf32, #tpu.memory_space<vmem>>, vector<2x1xf32>
    %252 = vector.broadcast %251 : vector<2x1xf32> to vector<2x512xf32>
    %253 = arith.mulf %250, %252 : vector<2x512xf32>
    %254 = arith.addf %246, %253 : vector<2x512xf32>
    %c29_i32 = arith.constant 29 : i32
    %255 = tpu.dynamic_rotate %149 by %c29_i32 dim 1 : vector<2x512xf32>, i32 -> vector<2x512xf32>
    %c22 = arith.constant 22 : index
    %c0_128 = arith.constant 0 : index
    %256 = vector.load %arg16[%c22, %c0_128] : memref<58x512xf32, #tpu.memory_space<vmem>>, vector<1x512xf32>
    %257 = vector.broadcast %256 : vector<1x512xf32> to vector<2x512xf32>
    %258 = arith.mulf %255, %257 : vector<2x512xf32>
    %c0_129 = arith.constant 0 : index
    %c13_130 = arith.constant 13 : index
    %259 = vector.load %arg15[%c0_129, %c13_130] : memref<2x49xf32, #tpu.memory_space<vmem>>, vector<2x1xf32>
    %260 = vector.broadcast %259 : vector<2x1xf32> to vector<2x512xf32>
    %261 = arith.mulf %258, %260 : vector<2x512xf32>
    %262 = arith.addf %254, %261 : vector<2x512xf32>
    %c19_i32 = arith.constant 19 : i32
    %263 = tpu.dynamic_rotate %149 by %c19_i32 dim 1 : vector<2x512xf32>, i32 -> vector<2x512xf32>
    %c23 = arith.constant 23 : index
    %c0_131 = arith.constant 0 : index
    %264 = vector.load %arg16[%c23, %c0_131] : memref<58x512xf32, #tpu.memory_space<vmem>>, vector<1x512xf32>
    %265 = vector.broadcast %264 : vector<1x512xf32> to vector<2x512xf32>
    %266 = arith.mulf %263, %265 : vector<2x512xf32>
    %c0_132 = arith.constant 0 : index
    %c14_133 = arith.constant 14 : index
    %267 = vector.load %arg15[%c0_132, %c14_133] : memref<2x49xf32, #tpu.memory_space<vmem>>, vector<2x1xf32>
    %268 = vector.broadcast %267 : vector<2x1xf32> to vector<2x512xf32>
    %269 = arith.mulf %266, %268 : vector<2x512xf32>
    %270 = arith.addf %262, %269 : vector<2x512xf32>
    %c18_i32 = arith.constant 18 : i32
    %271 = tpu.dynamic_rotate %149 by %c18_i32 dim 1 : vector<2x512xf32>, i32 -> vector<2x512xf32>
    %c24 = arith.constant 24 : index
    %c0_134 = arith.constant 0 : index
    %272 = vector.load %arg16[%c24, %c0_134] : memref<58x512xf32, #tpu.memory_space<vmem>>, vector<1x512xf32>
    %273 = vector.broadcast %272 : vector<1x512xf32> to vector<2x512xf32>
    %274 = arith.mulf %271, %273 : vector<2x512xf32>
    %c0_135 = arith.constant 0 : index
    %c15_136 = arith.constant 15 : index
    %275 = vector.load %arg15[%c0_135, %c15_136] : memref<2x49xf32, #tpu.memory_space<vmem>>, vector<2x1xf32>
    %276 = vector.broadcast %275 : vector<2x1xf32> to vector<2x512xf32>
    %277 = arith.mulf %274, %276 : vector<2x512xf32>
    %278 = arith.addf %270, %277 : vector<2x512xf32>
    %c17_i32_137 = arith.constant 17 : i32
    %279 = tpu.dynamic_rotate %149 by %c17_i32_137 dim 1 : vector<2x512xf32>, i32 -> vector<2x512xf32>
    %c25 = arith.constant 25 : index
    %c0_138 = arith.constant 0 : index
    %280 = vector.load %arg16[%c25, %c0_138] : memref<58x512xf32, #tpu.memory_space<vmem>>, vector<1x512xf32>
    %281 = vector.broadcast %280 : vector<1x512xf32> to vector<2x512xf32>
    %282 = arith.mulf %279, %281 : vector<2x512xf32>
    %c0_139 = arith.constant 0 : index
    %c16_140 = arith.constant 16 : index
    %283 = vector.load %arg15[%c0_139, %c16_140] : memref<2x49xf32, #tpu.memory_space<vmem>>, vector<2x1xf32>
    %284 = vector.broadcast %283 : vector<2x1xf32> to vector<2x512xf32>
    %285 = arith.mulf %282, %284 : vector<2x512xf32>
    %286 = arith.addf %278, %285 : vector<2x512xf32>
    %c16_i32_141 = arith.constant 16 : i32
    %287 = tpu.dynamic_rotate %149 by %c16_i32_141 dim 1 : vector<2x512xf32>, i32 -> vector<2x512xf32>
    %c26 = arith.constant 26 : index
    %c0_142 = arith.constant 0 : index
    %288 = vector.load %arg16[%c26, %c0_142] : memref<58x512xf32, #tpu.memory_space<vmem>>, vector<1x512xf32>
    %289 = vector.broadcast %288 : vector<1x512xf32> to vector<2x512xf32>
    %290 = arith.mulf %287, %289 : vector<2x512xf32>
    %c0_143 = arith.constant 0 : index
    %c17_144 = arith.constant 17 : index
    %291 = vector.load %arg15[%c0_143, %c17_144] : memref<2x49xf32, #tpu.memory_space<vmem>>, vector<2x1xf32>
    %292 = vector.broadcast %291 : vector<2x1xf32> to vector<2x512xf32>
    %293 = arith.mulf %290, %292 : vector<2x512xf32>
    %294 = arith.addf %286, %293 : vector<2x512xf32>
    %c15_i32_145 = arith.constant 15 : i32
    %295 = tpu.dynamic_rotate %149 by %c15_i32_145 dim 1 : vector<2x512xf32>, i32 -> vector<2x512xf32>
    %c27 = arith.constant 27 : index
    %c0_146 = arith.constant 0 : index
    %296 = vector.load %arg16[%c27, %c0_146] : memref<58x512xf32, #tpu.memory_space<vmem>>, vector<1x512xf32>
    %297 = vector.broadcast %296 : vector<1x512xf32> to vector<2x512xf32>
    %298 = arith.mulf %295, %297 : vector<2x512xf32>
    %c0_147 = arith.constant 0 : index
    %c18_148 = arith.constant 18 : index
    %299 = vector.load %arg15[%c0_147, %c18_148] : memref<2x49xf32, #tpu.memory_space<vmem>>, vector<2x1xf32>
    %300 = vector.broadcast %299 : vector<2x1xf32> to vector<2x512xf32>
    %301 = arith.mulf %298, %300 : vector<2x512xf32>
    %302 = arith.addf %294, %301 : vector<2x512xf32>
    %c14_i32 = arith.constant 14 : i32
    %303 = tpu.dynamic_rotate %149 by %c14_i32 dim 1 : vector<2x512xf32>, i32 -> vector<2x512xf32>
    %c28 = arith.constant 28 : index
    %c0_149 = arith.constant 0 : index
    %304 = vector.load %arg16[%c28, %c0_149] : memref<58x512xf32, #tpu.memory_space<vmem>>, vector<1x512xf32>
    %305 = vector.broadcast %304 : vector<1x512xf32> to vector<2x512xf32>
    %306 = arith.mulf %303, %305 : vector<2x512xf32>
    %c0_150 = arith.constant 0 : index
    %c19_151 = arith.constant 19 : index
    %307 = vector.load %arg15[%c0_150, %c19_151] : memref<2x49xf32, #tpu.memory_space<vmem>>, vector<2x1xf32>
    %308 = vector.broadcast %307 : vector<2x1xf32> to vector<2x512xf32>
    %309 = arith.mulf %306, %308 : vector<2x512xf32>
    %310 = arith.addf %302, %309 : vector<2x512xf32>
    %c13_i32 = arith.constant 13 : i32
    %311 = tpu.dynamic_rotate %149 by %c13_i32 dim 1 : vector<2x512xf32>, i32 -> vector<2x512xf32>
    %c29 = arith.constant 29 : index
    %c0_152 = arith.constant 0 : index
    %312 = vector.load %arg16[%c29, %c0_152] : memref<58x512xf32, #tpu.memory_space<vmem>>, vector<1x512xf32>
    %313 = vector.broadcast %312 : vector<1x512xf32> to vector<2x512xf32>
    %314 = arith.mulf %311, %313 : vector<2x512xf32>
    %c0_153 = arith.constant 0 : index
    %c20_154 = arith.constant 20 : index
    %315 = vector.load %arg15[%c0_153, %c20_154] : memref<2x49xf32, #tpu.memory_space<vmem>>, vector<2x1xf32>
    %316 = vector.broadcast %315 : vector<2x1xf32> to vector<2x512xf32>
    %317 = arith.mulf %314, %316 : vector<2x512xf32>
    %318 = arith.addf %310, %317 : vector<2x512xf32>
    %c3_i32 = arith.constant 3 : i32
    %319 = tpu.dynamic_rotate %149 by %c3_i32 dim 1 : vector<2x512xf32>, i32 -> vector<2x512xf32>
    %c30 = arith.constant 30 : index
    %c0_155 = arith.constant 0 : index
    %320 = vector.load %arg16[%c30, %c0_155] : memref<58x512xf32, #tpu.memory_space<vmem>>, vector<1x512xf32>
    %321 = vector.broadcast %320 : vector<1x512xf32> to vector<2x512xf32>
    %322 = arith.mulf %319, %321 : vector<2x512xf32>
    %c0_156 = arith.constant 0 : index
    %c21_157 = arith.constant 21 : index
    %323 = vector.load %arg15[%c0_156, %c21_157] : memref<2x49xf32, #tpu.memory_space<vmem>>, vector<2x1xf32>
    %324 = vector.broadcast %323 : vector<2x1xf32> to vector<2x512xf32>
    %325 = arith.mulf %322, %324 : vector<2x512xf32>
    %326 = arith.addf %318, %325 : vector<2x512xf32>
    %c2_i32 = arith.constant 2 : i32
    %327 = tpu.dynamic_rotate %149 by %c2_i32 dim 1 : vector<2x512xf32>, i32 -> vector<2x512xf32>
    %c31 = arith.constant 31 : index
    %c0_158 = arith.constant 0 : index
    %328 = vector.load %arg16[%c31, %c0_158] : memref<58x512xf32, #tpu.memory_space<vmem>>, vector<1x512xf32>
    %329 = vector.broadcast %328 : vector<1x512xf32> to vector<2x512xf32>
    %330 = arith.mulf %327, %329 : vector<2x512xf32>
    %c0_159 = arith.constant 0 : index
    %c22_160 = arith.constant 22 : index
    %331 = vector.load %arg15[%c0_159, %c22_160] : memref<2x49xf32, #tpu.memory_space<vmem>>, vector<2x1xf32>
    %332 = vector.broadcast %331 : vector<2x1xf32> to vector<2x512xf32>
    %333 = arith.mulf %330, %332 : vector<2x512xf32>
    %334 = arith.addf %326, %333 : vector<2x512xf32>
    %c1_i32_161 = arith.constant 1 : i32
    %335 = tpu.dynamic_rotate %149 by %c1_i32_161 dim 1 : vector<2x512xf32>, i32 -> vector<2x512xf32>
    %c32 = arith.constant 32 : index
    %c0_162 = arith.constant 0 : index
    %336 = vector.load %arg16[%c32, %c0_162] : memref<58x512xf32, #tpu.memory_space<vmem>>, vector<1x512xf32>
    %337 = vector.broadcast %336 : vector<1x512xf32> to vector<2x512xf32>
    %338 = arith.mulf %335, %337 : vector<2x512xf32>
    %c0_163 = arith.constant 0 : index
    %c23_164 = arith.constant 23 : index
    %339 = vector.load %arg15[%c0_163, %c23_164] : memref<2x49xf32, #tpu.memory_space<vmem>>, vector<2x1xf32>
    %340 = vector.broadcast %339 : vector<2x1xf32> to vector<2x512xf32>
    %341 = arith.mulf %338, %340 : vector<2x512xf32>
    %342 = arith.addf %334, %341 : vector<2x512xf32>
    %c33 = arith.constant 33 : index
    %c0_165 = arith.constant 0 : index
    %343 = vector.load %arg16[%c33, %c0_165] : memref<58x512xf32, #tpu.memory_space<vmem>>, vector<1x512xf32>
    %344 = vector.broadcast %343 : vector<1x512xf32> to vector<2x512xf32>
    %345 = arith.mulf %149, %344 : vector<2x512xf32>
    %c0_166 = arith.constant 0 : index
    %c24_167 = arith.constant 24 : index
    %346 = vector.load %arg15[%c0_166, %c24_167] : memref<2x49xf32, #tpu.memory_space<vmem>>, vector<2x1xf32>
    %347 = vector.broadcast %346 : vector<2x1xf32> to vector<2x512xf32>
    %348 = arith.mulf %345, %347 : vector<2x512xf32>
    %349 = arith.addf %342, %348 : vector<2x512xf32>
    %c511_i32_168 = arith.constant 511 : i32
    %350 = tpu.dynamic_rotate %149 by %c511_i32_168 dim 1 : vector<2x512xf32>, i32 -> vector<2x512xf32>
    %c34 = arith.constant 34 : index
    %c0_169 = arith.constant 0 : index
    %351 = vector.load %arg16[%c34, %c0_169] : memref<58x512xf32, #tpu.memory_space<vmem>>, vector<1x512xf32>
    %352 = vector.broadcast %351 : vector<1x512xf32> to vector<2x512xf32>
    %353 = arith.mulf %350, %352 : vector<2x512xf32>
    %c0_170 = arith.constant 0 : index
    %c25_171 = arith.constant 25 : index
    %354 = vector.load %arg15[%c0_170, %c25_171] : memref<2x49xf32, #tpu.memory_space<vmem>>, vector<2x1xf32>
    %355 = vector.broadcast %354 : vector<2x1xf32> to vector<2x512xf32>
    %356 = arith.mulf %353, %355 : vector<2x512xf32>
    %357 = arith.addf %349, %356 : vector<2x512xf32>
    %c510_i32 = arith.constant 510 : i32
    %358 = tpu.dynamic_rotate %149 by %c510_i32 dim 1 : vector<2x512xf32>, i32 -> vector<2x512xf32>
    %c35 = arith.constant 35 : index
    %c0_172 = arith.constant 0 : index
    %359 = vector.load %arg16[%c35, %c0_172] : memref<58x512xf32, #tpu.memory_space<vmem>>, vector<1x512xf32>
    %360 = vector.broadcast %359 : vector<1x512xf32> to vector<2x512xf32>
    %361 = arith.mulf %358, %360 : vector<2x512xf32>
    %c0_173 = arith.constant 0 : index
    %c26_174 = arith.constant 26 : index
    %362 = vector.load %arg15[%c0_173, %c26_174] : memref<2x49xf32, #tpu.memory_space<vmem>>, vector<2x1xf32>
    %363 = vector.broadcast %362 : vector<2x1xf32> to vector<2x512xf32>
    %364 = arith.mulf %361, %363 : vector<2x512xf32>
    %365 = arith.addf %357, %364 : vector<2x512xf32>
    %c509_i32 = arith.constant 509 : i32
    %366 = tpu.dynamic_rotate %149 by %c509_i32 dim 1 : vector<2x512xf32>, i32 -> vector<2x512xf32>
    %c36 = arith.constant 36 : index
    %c0_175 = arith.constant 0 : index
    %367 = vector.load %arg16[%c36, %c0_175] : memref<58x512xf32, #tpu.memory_space<vmem>>, vector<1x512xf32>
    %368 = vector.broadcast %367 : vector<1x512xf32> to vector<2x512xf32>
    %369 = arith.mulf %366, %368 : vector<2x512xf32>
    %c0_176 = arith.constant 0 : index
    %c27_177 = arith.constant 27 : index
    %370 = vector.load %arg15[%c0_176, %c27_177] : memref<2x49xf32, #tpu.memory_space<vmem>>, vector<2x1xf32>
    %371 = vector.broadcast %370 : vector<2x1xf32> to vector<2x512xf32>
    %372 = arith.mulf %369, %371 : vector<2x512xf32>
    %373 = arith.addf %365, %372 : vector<2x512xf32>
    %c499_i32 = arith.constant 499 : i32
    %374 = tpu.dynamic_rotate %149 by %c499_i32 dim 1 : vector<2x512xf32>, i32 -> vector<2x512xf32>
    %c37 = arith.constant 37 : index
    %c0_178 = arith.constant 0 : index
    %375 = vector.load %arg16[%c37, %c0_178] : memref<58x512xf32, #tpu.memory_space<vmem>>, vector<1x512xf32>
    %376 = vector.broadcast %375 : vector<1x512xf32> to vector<2x512xf32>
    %377 = arith.mulf %374, %376 : vector<2x512xf32>
    %c0_179 = arith.constant 0 : index
    %c28_180 = arith.constant 28 : index
    %378 = vector.load %arg15[%c0_179, %c28_180] : memref<2x49xf32, #tpu.memory_space<vmem>>, vector<2x1xf32>
    %379 = vector.broadcast %378 : vector<2x1xf32> to vector<2x512xf32>
    %380 = arith.mulf %377, %379 : vector<2x512xf32>
    %381 = arith.addf %373, %380 : vector<2x512xf32>
    %c498_i32 = arith.constant 498 : i32
    %382 = tpu.dynamic_rotate %149 by %c498_i32 dim 1 : vector<2x512xf32>, i32 -> vector<2x512xf32>
    %c38 = arith.constant 38 : index
    %c0_181 = arith.constant 0 : index
    %383 = vector.load %arg16[%c38, %c0_181] : memref<58x512xf32, #tpu.memory_space<vmem>>, vector<1x512xf32>
    %384 = vector.broadcast %383 : vector<1x512xf32> to vector<2x512xf32>
    %385 = arith.mulf %382, %384 : vector<2x512xf32>
    %c0_182 = arith.constant 0 : index
    %c29_183 = arith.constant 29 : index
    %386 = vector.load %arg15[%c0_182, %c29_183] : memref<2x49xf32, #tpu.memory_space<vmem>>, vector<2x1xf32>
    %387 = vector.broadcast %386 : vector<2x1xf32> to vector<2x512xf32>
    %388 = arith.mulf %385, %387 : vector<2x512xf32>
    %389 = arith.addf %381, %388 : vector<2x512xf32>
    %c497_i32_184 = arith.constant 497 : i32
    %390 = tpu.dynamic_rotate %149 by %c497_i32_184 dim 1 : vector<2x512xf32>, i32 -> vector<2x512xf32>
    %c39 = arith.constant 39 : index
    %c0_185 = arith.constant 0 : index
    %391 = vector.load %arg16[%c39, %c0_185] : memref<58x512xf32, #tpu.memory_space<vmem>>, vector<1x512xf32>
    %392 = vector.broadcast %391 : vector<1x512xf32> to vector<2x512xf32>
    %393 = arith.mulf %390, %392 : vector<2x512xf32>
    %c0_186 = arith.constant 0 : index
    %c30_187 = arith.constant 30 : index
    %394 = vector.load %arg15[%c0_186, %c30_187] : memref<2x49xf32, #tpu.memory_space<vmem>>, vector<2x1xf32>
    %395 = vector.broadcast %394 : vector<2x1xf32> to vector<2x512xf32>
    %396 = arith.mulf %393, %395 : vector<2x512xf32>
    %397 = arith.addf %389, %396 : vector<2x512xf32>
    %c496_i32_188 = arith.constant 496 : i32
    %398 = tpu.dynamic_rotate %149 by %c496_i32_188 dim 1 : vector<2x512xf32>, i32 -> vector<2x512xf32>
    %c40 = arith.constant 40 : index
    %c0_189 = arith.constant 0 : index
    %399 = vector.load %arg16[%c40, %c0_189] : memref<58x512xf32, #tpu.memory_space<vmem>>, vector<1x512xf32>
    %400 = vector.broadcast %399 : vector<1x512xf32> to vector<2x512xf32>
    %401 = arith.mulf %398, %400 : vector<2x512xf32>
    %c0_190 = arith.constant 0 : index
    %c31_191 = arith.constant 31 : index
    %402 = vector.load %arg15[%c0_190, %c31_191] : memref<2x49xf32, #tpu.memory_space<vmem>>, vector<2x1xf32>
    %403 = vector.broadcast %402 : vector<2x1xf32> to vector<2x512xf32>
    %404 = arith.mulf %401, %403 : vector<2x512xf32>
    %405 = arith.addf %397, %404 : vector<2x512xf32>
    %c495_i32_192 = arith.constant 495 : i32
    %406 = tpu.dynamic_rotate %149 by %c495_i32_192 dim 1 : vector<2x512xf32>, i32 -> vector<2x512xf32>
    %c41 = arith.constant 41 : index
    %c0_193 = arith.constant 0 : index
    %407 = vector.load %arg16[%c41, %c0_193] : memref<58x512xf32, #tpu.memory_space<vmem>>, vector<1x512xf32>
    %408 = vector.broadcast %407 : vector<1x512xf32> to vector<2x512xf32>
    %409 = arith.mulf %406, %408 : vector<2x512xf32>
    %c0_194 = arith.constant 0 : index
    %c32_195 = arith.constant 32 : index
    %410 = vector.load %arg15[%c0_194, %c32_195] : memref<2x49xf32, #tpu.memory_space<vmem>>, vector<2x1xf32>
    %411 = vector.broadcast %410 : vector<2x1xf32> to vector<2x512xf32>
    %412 = arith.mulf %409, %411 : vector<2x512xf32>
    %413 = arith.addf %405, %412 : vector<2x512xf32>
    %c494_i32 = arith.constant 494 : i32
    %414 = tpu.dynamic_rotate %149 by %c494_i32 dim 1 : vector<2x512xf32>, i32 -> vector<2x512xf32>
    %c42 = arith.constant 42 : index
    %c0_196 = arith.constant 0 : index
    %415 = vector.load %arg16[%c42, %c0_196] : memref<58x512xf32, #tpu.memory_space<vmem>>, vector<1x512xf32>
    %416 = vector.broadcast %415 : vector<1x512xf32> to vector<2x512xf32>
    %417 = arith.mulf %414, %416 : vector<2x512xf32>
    %c0_197 = arith.constant 0 : index
    %c33_198 = arith.constant 33 : index
    %418 = vector.load %arg15[%c0_197, %c33_198] : memref<2x49xf32, #tpu.memory_space<vmem>>, vector<2x1xf32>
    %419 = vector.broadcast %418 : vector<2x1xf32> to vector<2x512xf32>
    %420 = arith.mulf %417, %419 : vector<2x512xf32>
    %421 = arith.addf %413, %420 : vector<2x512xf32>
    %c493_i32 = arith.constant 493 : i32
    %422 = tpu.dynamic_rotate %149 by %c493_i32 dim 1 : vector<2x512xf32>, i32 -> vector<2x512xf32>
    %c43 = arith.constant 43 : index
    %c0_199 = arith.constant 0 : index
    %423 = vector.load %arg16[%c43, %c0_199] : memref<58x512xf32, #tpu.memory_space<vmem>>, vector<1x512xf32>
    %424 = vector.broadcast %423 : vector<1x512xf32> to vector<2x512xf32>
    %425 = arith.mulf %422, %424 : vector<2x512xf32>
    %c0_200 = arith.constant 0 : index
    %c34_201 = arith.constant 34 : index
    %426 = vector.load %arg15[%c0_200, %c34_201] : memref<2x49xf32, #tpu.memory_space<vmem>>, vector<2x1xf32>
    %427 = vector.broadcast %426 : vector<2x1xf32> to vector<2x512xf32>
    %428 = arith.mulf %425, %427 : vector<2x512xf32>
    %429 = arith.addf %421, %428 : vector<2x512xf32>
    %c483_i32 = arith.constant 483 : i32
    %430 = tpu.dynamic_rotate %149 by %c483_i32 dim 1 : vector<2x512xf32>, i32 -> vector<2x512xf32>
    %c44 = arith.constant 44 : index
    %c0_202 = arith.constant 0 : index
    %431 = vector.load %arg16[%c44, %c0_202] : memref<58x512xf32, #tpu.memory_space<vmem>>, vector<1x512xf32>
    %432 = vector.broadcast %431 : vector<1x512xf32> to vector<2x512xf32>
    %433 = arith.mulf %430, %432 : vector<2x512xf32>
    %c0_203 = arith.constant 0 : index
    %c35_204 = arith.constant 35 : index
    %434 = vector.load %arg15[%c0_203, %c35_204] : memref<2x49xf32, #tpu.memory_space<vmem>>, vector<2x1xf32>
    %435 = vector.broadcast %434 : vector<2x1xf32> to vector<2x512xf32>
    %436 = arith.mulf %433, %435 : vector<2x512xf32>
    %437 = arith.addf %429, %436 : vector<2x512xf32>
    %c482_i32 = arith.constant 482 : i32
    %438 = tpu.dynamic_rotate %149 by %c482_i32 dim 1 : vector<2x512xf32>, i32 -> vector<2x512xf32>
    %c45 = arith.constant 45 : index
    %c0_205 = arith.constant 0 : index
    %439 = vector.load %arg16[%c45, %c0_205] : memref<58x512xf32, #tpu.memory_space<vmem>>, vector<1x512xf32>
    %440 = vector.broadcast %439 : vector<1x512xf32> to vector<2x512xf32>
    %441 = arith.mulf %438, %440 : vector<2x512xf32>
    %c0_206 = arith.constant 0 : index
    %c36_207 = arith.constant 36 : index
    %442 = vector.load %arg15[%c0_206, %c36_207] : memref<2x49xf32, #tpu.memory_space<vmem>>, vector<2x1xf32>
    %443 = vector.broadcast %442 : vector<2x1xf32> to vector<2x512xf32>
    %444 = arith.mulf %441, %443 : vector<2x512xf32>
    %445 = arith.addf %437, %444 : vector<2x512xf32>
    %c481_i32 = arith.constant 481 : i32
    %446 = tpu.dynamic_rotate %149 by %c481_i32 dim 1 : vector<2x512xf32>, i32 -> vector<2x512xf32>
    %c46 = arith.constant 46 : index
    %c0_208 = arith.constant 0 : index
    %447 = vector.load %arg16[%c46, %c0_208] : memref<58x512xf32, #tpu.memory_space<vmem>>, vector<1x512xf32>
    %448 = vector.broadcast %447 : vector<1x512xf32> to vector<2x512xf32>
    %449 = arith.mulf %446, %448 : vector<2x512xf32>
    %c0_209 = arith.constant 0 : index
    %c37_210 = arith.constant 37 : index
    %450 = vector.load %arg15[%c0_209, %c37_210] : memref<2x49xf32, #tpu.memory_space<vmem>>, vector<2x1xf32>
    %451 = vector.broadcast %450 : vector<2x1xf32> to vector<2x512xf32>
    %452 = arith.mulf %449, %451 : vector<2x512xf32>
    %453 = arith.addf %445, %452 : vector<2x512xf32>
    %c480_i32 = arith.constant 480 : i32
    %454 = tpu.dynamic_rotate %149 by %c480_i32 dim 1 : vector<2x512xf32>, i32 -> vector<2x512xf32>
    %c47 = arith.constant 47 : index
    %c0_211 = arith.constant 0 : index
    %455 = vector.load %arg16[%c47, %c0_211] : memref<58x512xf32, #tpu.memory_space<vmem>>, vector<1x512xf32>
    %456 = vector.broadcast %455 : vector<1x512xf32> to vector<2x512xf32>
    %457 = arith.mulf %454, %456 : vector<2x512xf32>
    %c0_212 = arith.constant 0 : index
    %c38_213 = arith.constant 38 : index
    %458 = vector.load %arg15[%c0_212, %c38_213] : memref<2x49xf32, #tpu.memory_space<vmem>>, vector<2x1xf32>
    %459 = vector.broadcast %458 : vector<2x1xf32> to vector<2x512xf32>
    %460 = arith.mulf %457, %459 : vector<2x512xf32>
    %461 = arith.addf %453, %460 : vector<2x512xf32>
    %c479_i32 = arith.constant 479 : i32
    %462 = tpu.dynamic_rotate %149 by %c479_i32 dim 1 : vector<2x512xf32>, i32 -> vector<2x512xf32>
    %c48 = arith.constant 48 : index
    %c0_214 = arith.constant 0 : index
    %463 = vector.load %arg16[%c48, %c0_214] : memref<58x512xf32, #tpu.memory_space<vmem>>, vector<1x512xf32>
    %464 = vector.broadcast %463 : vector<1x512xf32> to vector<2x512xf32>
    %465 = arith.mulf %462, %464 : vector<2x512xf32>
    %c0_215 = arith.constant 0 : index
    %c39_216 = arith.constant 39 : index
    %466 = vector.load %arg15[%c0_215, %c39_216] : memref<2x49xf32, #tpu.memory_space<vmem>>, vector<2x1xf32>
    %467 = vector.broadcast %466 : vector<2x1xf32> to vector<2x512xf32>
    %468 = arith.mulf %465, %467 : vector<2x512xf32>
    %469 = arith.addf %461, %468 : vector<2x512xf32>
    %c478_i32 = arith.constant 478 : i32
    %470 = tpu.dynamic_rotate %149 by %c478_i32 dim 1 : vector<2x512xf32>, i32 -> vector<2x512xf32>
    %c49 = arith.constant 49 : index
    %c0_217 = arith.constant 0 : index
    %471 = vector.load %arg16[%c49, %c0_217] : memref<58x512xf32, #tpu.memory_space<vmem>>, vector<1x512xf32>
    %472 = vector.broadcast %471 : vector<1x512xf32> to vector<2x512xf32>
    %473 = arith.mulf %470, %472 : vector<2x512xf32>
    %c0_218 = arith.constant 0 : index
    %c40_219 = arith.constant 40 : index
    %474 = vector.load %arg15[%c0_218, %c40_219] : memref<2x49xf32, #tpu.memory_space<vmem>>, vector<2x1xf32>
    %475 = vector.broadcast %474 : vector<2x1xf32> to vector<2x512xf32>
    %476 = arith.mulf %473, %475 : vector<2x512xf32>
    %477 = arith.addf %469, %476 : vector<2x512xf32>
    %c477_i32 = arith.constant 477 : i32
    %478 = tpu.dynamic_rotate %149 by %c477_i32 dim 1 : vector<2x512xf32>, i32 -> vector<2x512xf32>
    %c50 = arith.constant 50 : index
    %c0_220 = arith.constant 0 : index
    %479 = vector.load %arg16[%c50, %c0_220] : memref<58x512xf32, #tpu.memory_space<vmem>>, vector<1x512xf32>
    %480 = vector.broadcast %479 : vector<1x512xf32> to vector<2x512xf32>
    %481 = arith.mulf %478, %480 : vector<2x512xf32>
    %c0_221 = arith.constant 0 : index
    %c41_222 = arith.constant 41 : index
    %482 = vector.load %arg15[%c0_221, %c41_222] : memref<2x49xf32, #tpu.memory_space<vmem>>, vector<2x1xf32>
    %483 = vector.broadcast %482 : vector<2x1xf32> to vector<2x512xf32>
    %484 = arith.mulf %481, %483 : vector<2x512xf32>
    %485 = arith.addf %477, %484 : vector<2x512xf32>
    %c467_i32 = arith.constant 467 : i32
    %486 = tpu.dynamic_rotate %149 by %c467_i32 dim 1 : vector<2x512xf32>, i32 -> vector<2x512xf32>
    %c51 = arith.constant 51 : index
    %c0_223 = arith.constant 0 : index
    %487 = vector.load %arg16[%c51, %c0_223] : memref<58x512xf32, #tpu.memory_space<vmem>>, vector<1x512xf32>
    %488 = vector.broadcast %487 : vector<1x512xf32> to vector<2x512xf32>
    %489 = arith.mulf %486, %488 : vector<2x512xf32>
    %c0_224 = arith.constant 0 : index
    %c42_225 = arith.constant 42 : index
    %490 = vector.load %arg15[%c0_224, %c42_225] : memref<2x49xf32, #tpu.memory_space<vmem>>, vector<2x1xf32>
    %491 = vector.broadcast %490 : vector<2x1xf32> to vector<2x512xf32>
    %492 = arith.mulf %489, %491 : vector<2x512xf32>
    %493 = arith.addf %485, %492 : vector<2x512xf32>
    %c466_i32 = arith.constant 466 : i32
    %494 = tpu.dynamic_rotate %149 by %c466_i32 dim 1 : vector<2x512xf32>, i32 -> vector<2x512xf32>
    %c52 = arith.constant 52 : index
    %c0_226 = arith.constant 0 : index
    %495 = vector.load %arg16[%c52, %c0_226] : memref<58x512xf32, #tpu.memory_space<vmem>>, vector<1x512xf32>
    %496 = vector.broadcast %495 : vector<1x512xf32> to vector<2x512xf32>
    %497 = arith.mulf %494, %496 : vector<2x512xf32>
    %c0_227 = arith.constant 0 : index
    %c43_228 = arith.constant 43 : index
    %498 = vector.load %arg15[%c0_227, %c43_228] : memref<2x49xf32, #tpu.memory_space<vmem>>, vector<2x1xf32>
    %499 = vector.broadcast %498 : vector<2x1xf32> to vector<2x512xf32>
    %500 = arith.mulf %497, %499 : vector<2x512xf32>
    %501 = arith.addf %493, %500 : vector<2x512xf32>
    %c465_i32 = arith.constant 465 : i32
    %502 = tpu.dynamic_rotate %149 by %c465_i32 dim 1 : vector<2x512xf32>, i32 -> vector<2x512xf32>
    %c53 = arith.constant 53 : index
    %c0_229 = arith.constant 0 : index
    %503 = vector.load %arg16[%c53, %c0_229] : memref<58x512xf32, #tpu.memory_space<vmem>>, vector<1x512xf32>
    %504 = vector.broadcast %503 : vector<1x512xf32> to vector<2x512xf32>
    %505 = arith.mulf %502, %504 : vector<2x512xf32>
    %c0_230 = arith.constant 0 : index
    %c44_231 = arith.constant 44 : index
    %506 = vector.load %arg15[%c0_230, %c44_231] : memref<2x49xf32, #tpu.memory_space<vmem>>, vector<2x1xf32>
    %507 = vector.broadcast %506 : vector<2x1xf32> to vector<2x512xf32>
    %508 = arith.mulf %505, %507 : vector<2x512xf32>
    %509 = arith.addf %501, %508 : vector<2x512xf32>
    %c464_i32 = arith.constant 464 : i32
    %510 = tpu.dynamic_rotate %149 by %c464_i32 dim 1 : vector<2x512xf32>, i32 -> vector<2x512xf32>
    %c54 = arith.constant 54 : index
    %c0_232 = arith.constant 0 : index
    %511 = vector.load %arg16[%c54, %c0_232] : memref<58x512xf32, #tpu.memory_space<vmem>>, vector<1x512xf32>
    %512 = vector.broadcast %511 : vector<1x512xf32> to vector<2x512xf32>
    %513 = arith.mulf %510, %512 : vector<2x512xf32>
    %c0_233 = arith.constant 0 : index
    %c45_234 = arith.constant 45 : index
    %514 = vector.load %arg15[%c0_233, %c45_234] : memref<2x49xf32, #tpu.memory_space<vmem>>, vector<2x1xf32>
    %515 = vector.broadcast %514 : vector<2x1xf32> to vector<2x512xf32>
    %516 = arith.mulf %513, %515 : vector<2x512xf32>
    %517 = arith.addf %509, %516 : vector<2x512xf32>
    %c463_i32 = arith.constant 463 : i32
    %518 = tpu.dynamic_rotate %149 by %c463_i32 dim 1 : vector<2x512xf32>, i32 -> vector<2x512xf32>
    %c55 = arith.constant 55 : index
    %c0_235 = arith.constant 0 : index
    %519 = vector.load %arg16[%c55, %c0_235] : memref<58x512xf32, #tpu.memory_space<vmem>>, vector<1x512xf32>
    %520 = vector.broadcast %519 : vector<1x512xf32> to vector<2x512xf32>
    %521 = arith.mulf %518, %520 : vector<2x512xf32>
    %c0_236 = arith.constant 0 : index
    %c46_237 = arith.constant 46 : index
    %522 = vector.load %arg15[%c0_236, %c46_237] : memref<2x49xf32, #tpu.memory_space<vmem>>, vector<2x1xf32>
    %523 = vector.broadcast %522 : vector<2x1xf32> to vector<2x512xf32>
    %524 = arith.mulf %521, %523 : vector<2x512xf32>
    %525 = arith.addf %517, %524 : vector<2x512xf32>
    %c462_i32 = arith.constant 462 : i32
    %526 = tpu.dynamic_rotate %149 by %c462_i32 dim 1 : vector<2x512xf32>, i32 -> vector<2x512xf32>
    %c56 = arith.constant 56 : index
    %c0_238 = arith.constant 0 : index
    %527 = vector.load %arg16[%c56, %c0_238] : memref<58x512xf32, #tpu.memory_space<vmem>>, vector<1x512xf32>
    %528 = vector.broadcast %527 : vector<1x512xf32> to vector<2x512xf32>
    %529 = arith.mulf %526, %528 : vector<2x512xf32>
    %c0_239 = arith.constant 0 : index
    %c47_240 = arith.constant 47 : index
    %530 = vector.load %arg15[%c0_239, %c47_240] : memref<2x49xf32, #tpu.memory_space<vmem>>, vector<2x1xf32>
    %531 = vector.broadcast %530 : vector<2x1xf32> to vector<2x512xf32>
    %532 = arith.mulf %529, %531 : vector<2x512xf32>
    %533 = arith.addf %525, %532 : vector<2x512xf32>
    %c461_i32 = arith.constant 461 : i32
    %534 = tpu.dynamic_rotate %149 by %c461_i32 dim 1 : vector<2x512xf32>, i32 -> vector<2x512xf32>
    %c57 = arith.constant 57 : index
    %c0_241 = arith.constant 0 : index
    %535 = vector.load %arg16[%c57, %c0_241] : memref<58x512xf32, #tpu.memory_space<vmem>>, vector<1x512xf32>
    %536 = vector.broadcast %535 : vector<1x512xf32> to vector<2x512xf32>
    %537 = arith.mulf %534, %536 : vector<2x512xf32>
    %c0_242 = arith.constant 0 : index
    %c48_243 = arith.constant 48 : index
    %538 = vector.load %arg15[%c0_242, %c48_243] : memref<2x49xf32, #tpu.memory_space<vmem>>, vector<2x1xf32>
    %539 = vector.broadcast %538 : vector<2x1xf32> to vector<2x512xf32>
    %540 = arith.mulf %537, %539 : vector<2x512xf32>
    %541 = arith.addf %533, %540 : vector<2x512xf32>
    %542 = vector.extract_strided_slice %541 {offsets = [0, 0], sizes = [1, 512], strides = [1, 1]} : vector<2x512xf32> to vector<1x512xf32>
    %543 = vector.extract_strided_slice %541 {offsets = [1, 0], sizes = [1, 512], strides = [1, 1]} : vector<2x512xf32> to vector<1x512xf32>
    %544 = arith.addf %542, %543 : vector<1x512xf32>
    %545 = math.absf %544 : vector<1x512xf32>
    %cst_244 = arith.constant 0.000000e+00 : f32
    %546 = vector.broadcast %cst_244 : f32 to vector<1x512xf32>
    %547 = arith.subf %546, %545 : vector<1x512xf32>
    %548 = math.exp %547 : vector<1x512xf32>
    %cst_245 = arith.constant 0.000000e+00 : f32
    %549 = vector.broadcast %cst_245 : f32 to vector<1x512xf32>
    %550 = arith.cmpf oge, %544, %549 : vector<1x512xf32>
    %cst_246 = arith.constant 1.000000e+00 : f32
    %551 = vector.broadcast %cst_246 : f32 to vector<1x512xf32>
    %552 = arith.addf %551, %548 : vector<1x512xf32>
    %cst_247 = arith.constant 1.000000e+00 : f32
    %553 = vector.broadcast %cst_247 : f32 to vector<1x512xf32>
    %554 = arith.divf %553, %552 : vector<1x512xf32>
    %cst_248 = arith.constant 1.000000e+00 : f32
    %555 = vector.broadcast %cst_248 : f32 to vector<1x512xf32>
    %556 = arith.addf %555, %548 : vector<1x512xf32>
    %557 = arith.divf %548, %556 : vector<1x512xf32>
    %558 = arith.select %550, %554, %557 : vector<1x512xi1>, vector<1x512xf32>
    %559 = vector.broadcast %558 : vector<1x512xf32> to vector<32x512xf32>
    %560 = arith.mulf %142, %559 : vector<32x512xf32>
    %c17_i32_249 = arith.constant 17 : i32
    %561 = tpu.dynamic_rotate %560 by %c17_i32_249 dim 1 : vector<32x512xf32>, i32 -> vector<32x512xf32>
    %c0_250 = arith.constant 0 : index
    %c0_251 = arith.constant 0 : index
    %562 = vector.load %arg16[%c0_250, %c0_251] : memref<58x512xf32, #tpu.memory_space<vmem>>, vector<1x512xf32>
    %563 = vector.broadcast %562 : vector<1x512xf32> to vector<32x512xf32>
    %564 = arith.mulf %561, %563 : vector<32x512xf32>
    %c16_i32_252 = arith.constant 16 : i32
    %565 = tpu.dynamic_rotate %560 by %c16_i32_252 dim 1 : vector<32x512xf32>, i32 -> vector<32x512xf32>
    %c1_253 = arith.constant 1 : index
    %c0_254 = arith.constant 0 : index
    %566 = vector.load %arg16[%c1_253, %c0_254] : memref<58x512xf32, #tpu.memory_space<vmem>>, vector<1x512xf32>
    %567 = vector.broadcast %566 : vector<1x512xf32> to vector<32x512xf32>
    %568 = arith.mulf %565, %567 : vector<32x512xf32>
    %c15_i32_255 = arith.constant 15 : i32
    %569 = tpu.dynamic_rotate %560 by %c15_i32_255 dim 1 : vector<32x512xf32>, i32 -> vector<32x512xf32>
    %c2_256 = arith.constant 2 : index
    %c0_257 = arith.constant 0 : index
    %570 = vector.load %arg16[%c2_256, %c0_257] : memref<58x512xf32, #tpu.memory_space<vmem>>, vector<1x512xf32>
    %571 = vector.broadcast %570 : vector<1x512xf32> to vector<32x512xf32>
    %572 = arith.mulf %569, %571 : vector<32x512xf32>
    %c1_i32_258 = arith.constant 1 : i32
    %573 = tpu.dynamic_rotate %560 by %c1_i32_258 dim 1 : vector<32x512xf32>, i32 -> vector<32x512xf32>
    %c3_259 = arith.constant 3 : index
    %c0_260 = arith.constant 0 : index
    %574 = vector.load %arg16[%c3_259, %c0_260] : memref<58x512xf32, #tpu.memory_space<vmem>>, vector<1x512xf32>
    %575 = vector.broadcast %574 : vector<1x512xf32> to vector<32x512xf32>
    %576 = arith.mulf %573, %575 : vector<32x512xf32>
    %c4_261 = arith.constant 4 : index
    %c0_262 = arith.constant 0 : index
    %577 = vector.load %arg16[%c4_261, %c0_262] : memref<58x512xf32, #tpu.memory_space<vmem>>, vector<1x512xf32>
    %578 = vector.broadcast %577 : vector<1x512xf32> to vector<32x512xf32>
    %579 = arith.mulf %560, %578 : vector<32x512xf32>
    %c511_i32_263 = arith.constant 511 : i32
    %580 = tpu.dynamic_rotate %560 by %c511_i32_263 dim 1 : vector<32x512xf32>, i32 -> vector<32x512xf32>
    %c5_264 = arith.constant 5 : index
    %c0_265 = arith.constant 0 : index
    %581 = vector.load %arg16[%c5_264, %c0_265] : memref<58x512xf32, #tpu.memory_space<vmem>>, vector<1x512xf32>
    %582 = vector.broadcast %581 : vector<1x512xf32> to vector<32x512xf32>
    %583 = arith.mulf %580, %582 : vector<32x512xf32>
    %c497_i32_266 = arith.constant 497 : i32
    %584 = tpu.dynamic_rotate %560 by %c497_i32_266 dim 1 : vector<32x512xf32>, i32 -> vector<32x512xf32>
    %c6_267 = arith.constant 6 : index
    %c0_268 = arith.constant 0 : index
    %585 = vector.load %arg16[%c6_267, %c0_268] : memref<58x512xf32, #tpu.memory_space<vmem>>, vector<1x512xf32>
    %586 = vector.broadcast %585 : vector<1x512xf32> to vector<32x512xf32>
    %587 = arith.mulf %584, %586 : vector<32x512xf32>
    %c496_i32_269 = arith.constant 496 : i32
    %588 = tpu.dynamic_rotate %560 by %c496_i32_269 dim 1 : vector<32x512xf32>, i32 -> vector<32x512xf32>
    %c7_270 = arith.constant 7 : index
    %c0_271 = arith.constant 0 : index
    %589 = vector.load %arg16[%c7_270, %c0_271] : memref<58x512xf32, #tpu.memory_space<vmem>>, vector<1x512xf32>
    %590 = vector.broadcast %589 : vector<1x512xf32> to vector<32x512xf32>
    %591 = arith.mulf %588, %590 : vector<32x512xf32>
    %c495_i32_272 = arith.constant 495 : i32
    %592 = tpu.dynamic_rotate %560 by %c495_i32_272 dim 1 : vector<32x512xf32>, i32 -> vector<32x512xf32>
    %c8_273 = arith.constant 8 : index
    %c0_274 = arith.constant 0 : index
    %593 = vector.load %arg16[%c8_273, %c0_274] : memref<58x512xf32, #tpu.memory_space<vmem>>, vector<1x512xf32>
    %594 = vector.broadcast %593 : vector<1x512xf32> to vector<32x512xf32>
    %595 = arith.mulf %592, %594 : vector<32x512xf32>
    %596 = tpu.concatenate %564, %568, %572, %576, %579, %583, %587, %591, %595 in 0 : vector<32x512xf32>, vector<32x512xf32>, vector<32x512xf32>, vector<32x512xf32>, vector<32x512xf32>, vector<32x512xf32>, vector<32x512xf32>, vector<32x512xf32>, vector<32x512xf32> -> vector<288x512xf32>
    %c1_275 = arith.constant 1 : index
    %c0_276 = arith.constant 0 : index
    %c0_277 = arith.constant 0 : index
    %597 = vector.load %arg12[%c1_275, %c0_276, %c0_277] : memref<2x32x288xf32, #tpu.memory_space<vmem>>, vector<1x32x288xf32>
    %598 = vector.shape_cast %597 : vector<1x32x288xf32> to vector<32x288xf32>
    %cst_278 = arith.constant dense<0.000000e+00> : vector<32x512xf32>
    %599 = tpu.matmul %598, %596, %cst_278 {dimension_numbers = #tpu.dot_dimension_numbers<[1], [0], [0], [1], [0, 0, 1, 1], [], []>} : vector<32x288xf32>, vector<288x512xf32>, vector<32x512xf32> -> vector<32x512xf32>
    %600 = vector.broadcast %5 : vector<32x1xf32> to vector<32x512xf32>
    %601 = arith.addf %599, %600 : vector<32x512xf32>
    %c0_279 = arith.constant 0 : index
    %c0_280 = arith.constant 0 : index
    %602 = vector.load %arg17[%c0_279, %c0_280] : memref<32x512xf32, #tpu.memory_space<vmem>>, vector<32x512xf32>
    tpu.vector_store %arg17[%c0_279, %c0_280], %601 {strides = array<i32>} : memref<32x512xf32, #tpu.memory_space<vmem>>, vector<32x512xf32>,
    return
  }
}

</mosaic_0001>

<bundles_post_ra>
// kernel: tpu_custom_call.1
= control target key start
LH: loop header
LB: loop body
LE: loop exit
PB: predicated region body
PF: predicated region fallthrough
CT: control target
= control target key end

     0   :  { %s14766_s0 = inlined_call_operand.vmem [shape: f32[16,512], index: 0, kind: input, shape index: {}]   ;;  %s14767_s1 = inlined_call_operand.vmem [shape: f32[32,128], index: 1, kind: input, shape index: {}]   ;;  %s14768_s2 = inlined_call_operand.vmem [shape: f32[64,32], index: 2, kind: input, shape index: {}]   ;;  %s14769_s3 = inlined_call_operand.vmem [shape: f32[128,8], index: 3, kind: input, shape index: {}]   ;;  %s14770_s4 = inlined_call_operand.vmem [shape: f32[32,16], index: 4, kind: input, shape index: {}]   ;;  %s14771_s5 = inlined_call_operand.vmem [shape: f32[32,32], index: 5, kind: input, shape index: {}]   ;;  %s14772_s6 = inlined_call_operand.hbm [shape: f32[32,64], index: 6, kind: input, shape index: {}]   ;;  %s14773_s7 = inlined_call_operand.hbm [shape: f32[32,128], index: 7, kind: input, shape index: {}]   ;;  %s14774_s8 = inlined_call_operand.vmem [shape: f32[32,6], index: 8, kind: input, shape index: {}]   ;;  %s14775_s9 = inlined_call_operand.vmem [shape: f32[8,32], index: 9, kind: input, shape index: {}]   ;;  %s14776_s10 = inlined_call_operand.hbm [shape: f32[32,128], index: 10, kind: input, shape index: {}]   ;;  %s14777_s11 = inlined_call_operand.hbm [shape: f32[128,512], index: 11, kind: input, shape index: {}]   ;;  %s14778_s12 = inlined_call_operand.hbm [shape: f32[2,32,288], index: 12, kind: input, shape index: {}]   ;;  %s14779_s13 = inlined_call_operand.vmem [shape: f32[2,32], index: 13, kind: input, shape index: {}]   ;;  %s14780_s14 = inlined_call_operand.vmem [shape: f32[32,2], index: 14, kind: input, shape index: {}]   ;;  %s14781_s15 = inlined_call_operand.vmem [shape: f32[2,49], index: 15, kind: input, shape index: {}]   ;;  %s14782_s16 = inlined_call_operand.vmem [shape: f32[58,512], index: 16, kind: input, shape index: {}]   ;;  %s14783_s17 = inlined_call_operand.hbm [shape: f32[32,512], index: 17, kind: output, shape index: {}]  }
   0x1   :  { %15319 = sst [smem:[#allocation292_spill]] %s14766_s0 }
   0x2   :  { %15320 = sst [smem:[#allocation293_spill]] %s14767_s1 }
   0x3   :  { %22 = vsyncpa [#allocation3], 0 }
   0x4   :  { %23 = vsyncpa [#allocation6], 0 }
   0x5   :  { %24 = vsyncpa [#allocation9], 0 }
   0x6   :  { %25 = vsyncpa [#allocation4], 0  ;;  %s8192_s24 = smov [#allocation5]   ;;  %s8193_s26 = smov [#allocation8]  }
   0x7   :  { %s55_s25 = sshll.u32 %s8192_s24, 4  ;;  %s83_s27 = sshll.u32 %s8193_s26, 4  ;;  %s56_s25 = int_to_ptr.vmem [resolvable:$true] %s55_s25  ;;  %s8393_s27 = int_to_ptr.vmem [resolvable:$true] %s83_s27 }
   0x8   :  { %s8052_s0 = scalar_lea.hbm %s14773_s7, 512 }
   0x9   :  { %p8053_p0 = scmp.ne.s32.totalorder %s14773_s7, %s8052_s0  ;;  %p8056_p1 = scmp.lt.u32.totalorder %s8052_s0, %s14773_s7 }
   0xb   :  { %p8058_p2 = pnand %p8056_p1, %p8053_p0 }
   0xd   :  { %8061 = shalt.err (!%p8058_p2)
}
   0xe   :  { %s8062_s20 = scalar_lea.vmem %s56_s25, 512  ;;  %p8067_p4 = scmp.lt.s32.totalorder %s56_s25, %s56_s25 }
   0xf   :  { %p8063_p3 = scmp.ne.s32.totalorder %s56_s25, %s8062_s20  ;;  %p8068_p5 = scmp.lt.s32.totalorder %s8062_s20, %s8062_s20 }
  0x11   :  { %p8069_p6 = por %p8068_p5, %p8067_p4 }
  0x13   :  { %p8070_p7 = pnand %p8069_p6, %p8063_p3 }
  0x15   :  { %8073 = shalt.err (!%p8070_p7)
}
  0x16   :  { %s14786_s21 = smov 128   ;;  %s14788_s22 = smov 8  }
  0x17   :  { %61 = dma.hbm_to_vmem [thread:$0]  %s14773_s7, 512, %s56_s25, [#allocation6], %s14786_s21, %s14786_s21, %s14788_s22  }
  0x18   :  { %s8074_s29 = scalar_lea.hbm %s14777_s11, 8192 }
  0x19   :  { %p8075_p8 = scmp.ne.s32.totalorder %s14777_s11, %s8074_s29  ;;  %p8078_p9 = scmp.lt.u32.totalorder %s8074_s29, %s14777_s11 }
  0x1b   :  { %p8080_p10 = pnand %p8078_p9, %p8075_p8 }
  0x1d   :  { %8083 = shalt.err (!%p8080_p10)
}
  0x1e   :  { %s8084_s1 = scalar_lea.vmem %s8393_s27, 8192  ;;  %p8089_p12 = scmp.lt.s32.totalorder %s8393_s27, %s8393_s27 }
  0x1f   :  { %p8085_p11 = scmp.ne.s32.totalorder %s8393_s27, %s8084_s1  ;;  %p8090_p13 = scmp.lt.s32.totalorder %s8084_s1, %s8084_s1 }
  0x21   :  { %p8091_p0 = por %p8090_p13, %p8089_p12 }
  0x23   :  { %p8092_p1 = pnand %p8091_p0, %p8085_p11 }
  0x25   :  { %8095 = shalt.err (!%p8092_p1)
}
  0x26   :  { %s14972_s7 = smov 512   ;;  %s14986_s25 = smov 32  }
  0x27   :  { %89 = dma.hbm_to_vmem [thread:$0]  %s14777_s11, 8192, %s8393_s27, [#allocation9], %s14972_s7, %s14972_s7, %s14986_s25  }
  0x28   :  { %s8198_s24 = smov [#allocation2]   ;;  %s8199_s28 = smov [#allocation7]  }
  0x29   :  { %s43_s26 = sshll.u32 %s8198_s24, 4  ;;  %s71_s29 = sshll.u32 %s8199_s28, 4  ;;  %s44_s26 = int_to_ptr.vmem [resolvable:$true] %s43_s26  ;;  %s8430_s29 = int_to_ptr.vmem [resolvable:$true] %s71_s29 }
  0x2a   :  { %s8096_s18 = scalar_lea.hbm %s14772_s6, 512 }
  0x2b   :  { %p8097_p2 = scmp.ne.s32.totalorder %s14772_s6, %s8096_s18  ;;  %p8100_p3 = scmp.lt.u32.totalorder %s8096_s18, %s14772_s6 }
  0x2d   :  { %p8102_p4 = pnand %p8100_p3, %p8097_p2 }
  0x2f   :  { %8105 = shalt.err (!%p8102_p4)
}
  0x30   :  { %s8106_s11 = scalar_lea.vmem %s44_s26, 512  ;;  %p8111_p6 = scmp.lt.s32.totalorder %s44_s26, %s44_s26 }
  0x31   :  { %p8107_p5 = scmp.ne.s32.totalorder %s44_s26, %s8106_s11  ;;  %p8112_p7 = scmp.lt.s32.totalorder %s8106_s11, %s8106_s11 }
  0x33   :  { %p8113_p8 = por %p8112_p7, %p8111_p6 }
  0x35   :  { %p8114_p9 = pnand %p8113_p8, %p8107_p5 }
  0x37   :  { %8117 = shalt.err (!%p8114_p9)
}
  0x38   :  { %s15321_s27 = smov 8   ;;  %s15322_s20 = smov 128  }
  0x39   :  { %49 = dma.hbm_to_vmem [thread:$0]  %s14772_s6, 512, %s44_s26, [#allocation3], %s15322_s20, %s15322_s20, %s15321_s27  }
  0x3a   :  { %s8118_s21 = scalar_lea.hbm %s14776_s10, 512 }
  0x3b   :  { %p8119_p10 = scmp.ne.s32.totalorder %s14776_s10, %s8118_s21  ;;  %p8122_p11 = scmp.lt.u32.totalorder %s8118_s21, %s14776_s10 }
  0x3d   :  { %p8124_p12 = pnand %p8122_p11, %p8119_p10 }
  0x3f   :  { %8127 = shalt.err (!%p8124_p12)
}
  0x40   :  { %s8128_s1 = scalar_lea.vmem %s8430_s29, 512  ;;  %p8133_p0 = scmp.lt.s32.totalorder %s8430_s29, %s8430_s29 }
  0x41   :  { %p8129_p13 = scmp.ne.s32.totalorder %s8430_s29, %s8128_s1  ;;  %p8134_p1 = scmp.lt.s32.totalorder %s8128_s1, %s8128_s1 }
  0x43   :  { %p8135_p2 = por %p8134_p1, %p8133_p0 }
  0x45   :  { %p8136_p3 = pnand %p8135_p2, %p8129_p13 }
  0x47   :  { %8139 = shalt.err (!%p8136_p3)
}
  0x48   :  { %77 = dma.hbm_to_vmem [thread:$0]  %s14776_s10, 512, %s8430_s29, [#allocation6], %s15322_s20, %s15322_s20, %s15321_s27  }
  0x49   :  { %s8200_s11 = smov [#allocation10]   ;;  %s8140_s0 = scalar_lea.hbm %s14778_s12, 3072 }
  0x4a   :  { %s95_s23 = sshll.u32 %s8200_s11, 4  ;;  %p8141_p4 = scmp.ne.s32.totalorder %s14778_s12, %s8140_s0  ;;  %s96_s23 = int_to_ptr.vmem [resolvable:$true] %s95_s23 }
  0x4b   :  { %p8144_p5 = scmp.lt.u32.totalorder %s8140_s0, %s14778_s12 }
  0x4d   :  { %p8146_p6 = pnand %p8144_p5, %p8141_p4 }
  0x4f   :  { %8149 = shalt.err (!%p8146_p6)
}
  0x50   :  { %s8150_s19 = scalar_lea.vmem %s96_s23, 3072  ;;  %p8155_p8 = scmp.lt.s32.totalorder %s96_s23, %s96_s23 }
  0x51   :  { %p8151_p7 = scmp.ne.s32.totalorder %s96_s23, %s8150_s19  ;;  %p8156_p9 = scmp.lt.s32.totalorder %s8150_s19, %s8150_s19 }
  0x53   :  { %p8157_p10 = por %p8156_p9, %p8155_p8 }
  0x55   :  { %p8158_p11 = pnand %p8157_p10, %p8151_p7 }
  0x57   :  { %8161 = shalt.err (!%p8158_p11)
}
  0x58   :  { %s8201_s10 = smov 384   ;;  %s8202_s29 = smov 24  }
  0x59   :  { %101 = dma.hbm_to_vmem [thread:$0]  %s14778_s12, 3072, %s96_s23, [#allocation9], %s8201_s10, %s8201_s10, %s8202_s29  }
  0x5a   :  { %8184 = dma.done.wait [#allocation3], 512  }
  0x5b   :  { %8185 = vsyncadd [#allocation3], 4294966784 }
  0x5c   :  { %8186 = dma.done.wait [#allocation6], 1024  }
  0x5d   :  { %8187 = vsyncadd [#allocation6], 4294966272 }
  0x5e   :  { %8188 = dma.done.wait [#allocation9], 11264  }
  0x5f   :  { %8189 = vsyncadd [#allocation9], 4294956032  ;;  %v14792_v0 = vmov 3   ;;  %v133_v1 = vld [vmem:[%s14769_s3] sm:$0xff]  ;;  %v134_v2 = vld [vmem:[%s14769_s3 + $0x8] sm:$0xff]  ;;  %vm282_vm0 = vcmask 523264  }
  0x60   :  { %7906 = vset.pattern.permute.xlu0 %v14792_v0  ;;  %7907 = vset.pattern.permute.xlu1 %v14792_v0  ;;  %v135_v3 = vld [vmem:[%s14769_s3 + $0x10] sm:$0xff]  ;;  %v7223_v4 = vpack.c.bf16 %v134_v2, %v133_v1  ;;  %v136_v5 = vld [vmem:[%s14769_s3 + $0x18] sm:$0xff]  ;;  %v137_v7 = vld [vmem:[%s14769_s3 + $0x20] sm:$0xff]  ;;  %s15323_s12 = sld [smem:[#allocation293_spill]]  ;;  %v14796_v52 = vmov 2   ;;  %vm381_vm1 = vcmask 64512  }
  0x61   :  { %v7227_v6 = vpack.c.bf16 %v136_v5, %v135_v3  ;;  %v138_v8 = vld [vmem:[%s14769_s3 + $0x28] sm:$0xff]  ;;  %v129_v10 = vld [vmem:[#allocation5] sm:$0xff]  ;;  %v139_v11 = vld [vmem:[%s14769_s3 + $0x30] sm:$0xff]  ;;  %vm15111_vm2 = vcmask 261120   ;;  %vm738_vm3 = vcmask 130048   ;;  %s14979_s6 = smov 16  }
  0x62   :  { %7224 = vmatprep.subr.bf16.mxu0 %v7223_v4  ;;  %v7231_v9 = vpack.c.bf16 %v138_v8, %v137_v7  ;;  %v140_v12 = vld [vmem:[%s14769_s3 + $0x38] sm:$0xff]  ;;  %7083 = vmatprep.mubr.f32.mxu0 %v129_v10  ;;  %v8508_v13 = vld [vmem:[%s14774_s8] sm:$0xff]  ;;  %v8514_v14 = vld [vmem:[%s14774_s8 + $0x8] sm:$0xff]  ;;  %s14981_s26 = smov 15   ;;  %s14992_s11 = smov 1   ;;  %vm8218_vm12 = vmmov 0  }
  0x63   :  { %7226 = vmatpush3.bf16.msra.mxu0 %v7223_v4  ;;  %151 = vperm.xlu0 %7906, %v8508_v13   ;;  %v8519_v15 = vld [vmem:[%s14774_s8 + $0x10] sm:$0xff]  ;;  %v258_v16 = vld [vmem:[%s14768_s2] sm:$0xff]  ;;  %v259_v17 = vld [vmem:[%s14768_s2 + $0x8] sm:$0xff]  ;;  %v7235_v19 = vpack.c.bf16 %v140_v12, %v139_v11  ;;  %s8214_s23 = smov 112   ;;  %s8215_s28 = smov 111   ;;  %vm2506_vm13 = vcmask 15360  }
  0x64   :  { %7228 = vmatprep.subr.bf16.mxu0 %v7227_v6  ;;  %161 = vperm.xlu1 %7907, %v8519_v15   ;;  %v260_v18 = vld [vmem:[%s14768_s2 + $0x10] sm:$0xff]  ;;  %v8534_v20 = vld [vmem:[%s14774_s8 + $0x18] sm:$0xff]  ;;  %v7255_v21 = vpack.c.bf16 %v259_v17, %v258_v16  ;;  %v141_v23 = vld [vmem:[%s14769_s3 + $0x40] sm:$0xff]  ;;  %vm2519_vm14 = vcmask 1041408   ;;  %s8264_s18 = smov 51   ;;  %s8265_s19 = smov 49  }
  0x65   :  { %v261_v22 = vld [vmem:[%s14768_s2 + $0x18] sm:$0xff]  ;;  %v142_v24 = vld [vmem:[%s14769_s3 + $0x48] sm:$0xff]  ;;  %v262_v26 = vld [vmem:[%s14768_s2 + $0x20] sm:$0xff]  ;;  %s14997_s10 = smov 126   ;;  %s8267_s29 = smov 48  }
  0x66   :  { %v7259_v25 = vpack.c.bf16 %v261_v22, %v260_v18  ;;  %7256 = vmatprep.subr.bf16.mxu1 %v7255_v21  ;;  %v263_v27 = vld [vmem:[%s14768_s2 + $0x28] sm:$0xff]  ;;  %v254_v28 = vld [vmem:[#allocation2] sm:$0xff]  ;;  %v7239_v29 = vpack.c.bf16 %v142_v24, %v141_v23  ;;  %v143_v30 = vld [vmem:[%s14769_s3 + $0x50] sm:$0xff]  ;;  %v14795_v23 = vmov 1   ;;  %s15090_s27 = smov 77   ;;  %s8270_s20 = smov 46  }
  0x67   :  { %7230 = vmatpush3.bf16.msra.mxu0 %v7227_v6  ;;  %156 = vperm.xlu0 %7906, %v8514_v14   ;;  %v144_v31 = vld [vmem:[%s14769_s3 + $0x58] sm:$0xff]  ;;  %v7263_v32 = vpack.c.bf16 %v263_v27, %v262_v26  ;;  %v264_v33 = vld [vmem:[%s14768_s2 + $0x30] sm:$0xff]  ;;  %v145_v36 = vld [vmem:[%s14769_s3 + $0x60] sm:$0xff]  ;;  %s14999_s1 = smov 35   ;;  %s14989_s24 = smov 33  }
  0x68   :  { %7232 = vmatprep.subr.bf16.mxu0 %v7231_v9  ;;  %166 = vperm.xlu1 %7907, %v8534_v20   ;;  %v265_v34 = vld [vmem:[%s14768_s2 + $0x38] sm:$0xff]  ;;  %v7243_v35 = vpack.c.bf16 %v144_v31, %v143_v30  ;;  %v146_v37 = vld [vmem:[%s14769_s3 + $0x68] sm:$0xff]  ;;  %v147_v40 = vld [vmem:[%s14769_s3 + $0x70] sm:$0xff]  ;;  %s8269_s2 = smov 47   ;;  %s14984_s0 = smov 29  }
  0x69   :  { %7258 = vmatpush3.bf16.msra.mxu1 %v7255_v21  ;;  %7105 = vmatprep.mubr.msk.f32.mxu1 %vm282_vm0, %v254_v28  ;;  %v7267_v38 = vpack.c.bf16 %v265_v34, %v264_v33  ;;  %v7247_v39 = vpack.c.bf16 %v146_v37, %v145_v36  ;;  %v148_v41 = vld [vmem:[%s14769_s3 + $0x78] sm:$0xff]  ;;  %v255_v43 = vld [vmem:[#allocation2 + $0x8] sm:$0xff]  ;;  %v131_v45 = vld [vmem:[#allocation5 + $0x10] sm:$0xff]  ;;  %s15324_s3 = sld [smem:[#allocation292_spill]]  ;;  %s14975_s21 = smov 19  }
  0x6a   :  { %7260 = vmatprep.subr.bf16.mxu1 %v7259_v25  ;;  %v7251_v42 = vpack.c.bf16 %v148_v41, %v147_v40  ;;  %v130_v44 = vld [vmem:[#allocation5 + $0x8] sm:$0xff]  ;;  %v132_v46 = vld [vmem:[#allocation5 + $0x18] sm:$0xff]  ;;  %v256_v47 = vld [vmem:[#allocation2 + $0x10] sm:$0xff]  ;;  %s14976_s22 = smov 18   ;;  %s14983_s30 = smov 14  }
  0x6b   :  { %7234 = vmatpush3.bf16.msra.mxu0 %v7231_v9  ;;  %v257_v48 = vld [vmem:[#allocation2 + $0x18] sm:$0xff]  ;;  %v380_v49 = vld [vmem:[%s14775_s9] sm:$0xff]  ;;  %v488_v51 = vld [vmem:[%s15323_s12 + $0x8] sm:$0xff]  ;;  %7908 = vset.pattern.permute.xlu0 %v14796_v52  ;;  %s14973_s9 = smov 30   ;;  %s14985_s7 = smov 13  }
  0x6c   :  { %7236 = vmatprep.subr.bf16.mxu0 %v7235_v19  ;;  %v487_v50 = vld [vmem:[%s15323_s12] sm:$0xff]  ;;  %7909 = vset.pattern.permute.xlu1 %v14796_v52  ;;  %v606_v55 = vld [vmem:[#allocation7 + $0x8] sm:$0xff]  ;;  %v489_v60 = vld [vmem:[%s15323_s12 + $0x10] sm:$0xff] }
  0x6d   :  { %7262 = vmatpush3.bf16.msra.mxu1 %v7259_v25  ;;  %v7271_v53 = vpack.c.bf16 %v488_v51, %v487_v50  ;;  %267 = vperm.xlu0 %7908, %v8508_v13   ;;  %v605_v54 = vld [vmem:[#allocation7] sm:$0xff]  ;;  %v490_v61 = vld [vmem:[%s15323_s12 + $0x18] sm:$0xff]  ;;  %v484_v10 = vld [vmem:[%s14771_s5 + $0x8] sm:$0xff]  ;;  %s14994_s12 = smov 127  }
  0x6e   :  { %7264 = vmatprep.subr.bf16.mxu1 %v7263_v32  ;;  %271 = vperm.xlu1 %7909, %v8514_v14   ;;  %v7279_v56 = vpack.c.bf16 %v606_v55, %v605_v54  ;;  %v7275_v4 = vpack.c.bf16 %v490_v61, %v489_v60  ;;  %v483_v9 = vld [vmem:[%s14771_s5] sm:$0xff]  ;;  %v607_v11 = vld [vmem:[#allocation7 + $0x10] sm:$0xff]  ;;  %v608_v12 = vld [vmem:[#allocation7 + $0x18] sm:$0xff]  ;;  %v14793_v54 = vmov 0.0  }
  0x6f   :  { %7238 = vmatpush3.bf16.msra.mxu0 %v7235_v19  ;;  %v485_v16 = vld [vmem:[%s14771_s5 + $0x10] sm:$0xff]  ;;  %v7283_v17 = vpack.c.bf16 %v608_v12, %v607_v11  ;;  %v486_v18 = vld [vmem:[%s14771_s5 + $0x18] sm:$0xff]  ;;  %v715_v19 = vld [vmem:[%s15324_s3 + $0x8] sm:$0xff]  ;;  %s8213_s5 = smov 113  }
  0x70   :  { %7240 = vmatprep.subr.bf16.mxu0 %v7239_v29  ;;  %v719_v21 = vld [vmem:[%s15324_s3 + $0x28] sm:$0xff]  ;;  %v717_v22 = vld [vmem:[%s15324_s3 + $0x18] sm:$0xff]  ;;  %v714_v28 = vld [vmem:[%s15324_s3] sm:$0xff] }
  0x71   :  { %7266 = vmatpush3.bf16.msra.mxu1 %v7263_v32  ;;  %279 = vperm.xlu0 %7908, %v8534_v20   ;;  %v7287_v24 = vpack.c.bf16 %v719_v21, %v715_v19  ;;  %v721_v25 = vld [vmem:[%s15324_s3 + $0x38] sm:$0xff]  ;;  %v930_v32 = vld [vmem:[#allocation8 + $0x8] sm:$0xff]  ;;  %v710_v55 = vld [vmem:[%s14770_s4] sm:$0xff] }
  0x72   :  { %7268 = vmatprep.subr.bf16.mxu1 %v7267_v38  ;;  %275 = vperm.xlu1 %7909, %v8519_v15   ;;  %v7291_v26 = vpack.c.bf16 %v721_v25, %v717_v22  ;;  %v934_v33 = vld [vmem:[#allocation8 + $0x28] sm:$0xff]  ;;  %v932_v41 = vld [vmem:[#allocation8 + $0x18] sm:$0xff]  ;;  %v935_v60 = vld [vmem:[#allocation8 + $0x30] sm:$0xff] }
  0x73   :  { %7242 = vmatpush3.bf16.msra.mxu0 %v7239_v29  ;;  %v718_v29 = vld [vmem:[%s15324_s3 + $0x20] sm:$0xff]  ;;  %v7295_v40 = vpack.c.bf16 %v934_v33, %v930_v32  ;;  %v940_v61 = vld [vmem:[#allocation8 + $0x58] sm:$0xff]  ;;  %v939_v11 = vld [vmem:[#allocation8 + $0x50] sm:$0xff] }
  0x74   :  { %7244 = vmatprep.subr.bf16.mxu0 %v7243_v35  ;;  %v7289_v36 = vpack.c.bf16 %v718_v29, %v714_v28  ;;  %v943_v12 = vld [vmem:[#allocation8 + $0x70] sm:$0xff]  ;;  %v945_v19 = vld [vmem:[#allocation8 + $0x80] sm:$0xff]  ;;  %v954_v22 = vld [vmem:[#allocation8 + $0xc8] sm:$0xff] }
  0x75   :  { %7270 = vmatpush3.bf16.msra.mxu1 %v7267_v38  ;;  %7911 = vset.pattern.permute.xlu0 %v14795_v23  ;;  %v716_v38 = vld [vmem:[%s15324_s3 + $0x10] sm:$0xff]  ;;  %v949_v21 = vld [vmem:[#allocation8 + $0xa0] sm:$0xff]  ;;  %v7333_v25 = vpack.c.bf16 %v943_v12, %v939_v11  ;;  %v960_v33 = vld [vmem:[#allocation8 + $0xf8] sm:$0xff] }
  0x76   :  { %7111 = vmatprep.subr.mxu1 %v380_v49  ;;  %7910 = vset.pattern.permute.xlu1 %v14795_v23  ;;  %v7305_v28 = vpack.c.bf16 %v949_v21, %v945_v19  ;;  %v947_v29 = vld [vmem:[#allocation8 + $0x90] sm:$0xff]  ;;  %v977_v11 = vld [vmem:[#allocation8 + $0x180] sm:$0xff] }
  0x77   :  { %7246 = vmatpush3.bf16.msra.mxu0 %v7243_v35  ;;  %492 = vperm.xlu1 %7910, %v8508_v13   ;;  %v981_v12 = vld [vmem:[#allocation8 + $0x1a0] sm:$0xff]  ;;  %v979_v19 = vld [vmem:[#allocation8 + $0x190] sm:$0xff] }
  0x78   :  { %7248 = vmatprep.subr.bf16.mxu0 %v7247_v39  ;;  %7106 = vmatmul.mubr.msk.f32.vlgmr.msra.gmra.mrb[0].mxu1 %vm282_vm0, %v255_v43  ;;  %v936_v43 = vld [vmem:[#allocation8 + $0x38] sm:$0xff]  ;;  %v983_v21 = vld [vmem:[#allocation8 + $0x1b0] sm:$0xff] }
  0x79   :  { %7108 = vmatprep.mubr.msk.f32.mxu1 %vm282_vm0, %v256_v47  ;;  %7112 = vmatpush3.msra.mxu1 %v380_v49  ;;  %v942_v49 = vld [vmem:[#allocation8 + $0x68] sm:$0xff] }
  0x7a   :  { %7272 = vmatprep.subr.bf16.mxu1 %v7271_v53  ;;  %496 = vperm.xlu0 %7911, %v8514_v14  }
  0x7b   :  { %7250 = vmatpush3.bf16.msra.mxu0 %v7247_v39  ;;  %500 = vperm.xlu1 %7910, %v8519_v15   ;;  %v720_v39 = vld [vmem:[%s15324_s3 + $0x30] sm:$0xff]  ;;  %s14991_s3 = smov 34  }
  0x7c   :  { %7252 = vmatprep.subr.bf16.mxu0 %v7251_v42  ;;  %7109 = vmatmul.mubr.msk.f32.gmra.mrb[2].mxu1 %vm282_vm0, %v257_v48  ;;  %v938_v48 = vld [vmem:[#allocation8 + $0x48] sm:$0xff] }
  0x7f   :  { %7254 = vmatpush3.bf16.msra.mxu0 %v7251_v42  ;;  %504 = vperm.xlu1 %7910, %v8534_v20  }
  0x80   :  { %7280 = vmatprep.subr.bf16.mxu0 %v7279_v56 }
  0x82   :  { %7084 = vmatmul.mubr.f32.vlgmr.msra.gmra.mrb[0].mxu0 %v130_v44  ;;  %v929_v44 = vld [vmem:[#allocation8] sm:$0xff] }
  0x83   :  { %7086 = vmatprep.mubr.f32.mxu0 %v131_v45  ;;  %7282 = vmatpush3.bf16.msra.mxu0 %v7279_v56  ;;  %v933_v45 = vld [vmem:[#allocation8 + $0x20] sm:$0xff] }
  0x84   :  { %7284 = vmatprep.subr.bf16.mxu0 %v7283_v17 }
  0x86   :  { %7087 = vmatmul.mubr.f32.gmra.mrb[2].mxu0 %v132_v46 }
  0x87   :  { %7286 = vmatpush3.bf16.msra.mxu0 %v7283_v17 }
  0x88   :  { %7288 = vmatprep.subr.bf16.mxu0 %v7287_v24  ;;  %v958_v24 = vld [vmem:[#allocation8 + $0xe8] sm:$0xff] }
  0x89   :  { %v7307_v32 = vpack.c.bf16 %v958_v24, %v954_v22  ;;  %v7353_v22 = vpack.c.bf16 %v983_v21, %v979_v19  ;;  %v986_v24 = vld [vmem:[#allocation8 + $0x1c8] sm:$0xff] }
  0xe2   :  { %v152_v57 = vpop.permute.xlu0 %151 }
  0xe3   :  { %v162_v58 = vpop.permute.xlu1 %161 }
  0xe6   :  { %v157_v63 = vpop.permute.xlu0 %156 }
  0xe7   :  { %v167_v2 = vpop.permute.xlu1 %166 }
  0xec   :  { %v268_v30 = vpop.permute.xlu0 %267 }
  0xed   :  { %v272_v27 = vpop.permute.xlu1 %271 }
  0xf0   :  { %v280_v50 = vpop.permute.xlu0 %279 }
  0xf1   :  { %v276_v46 = vpop.permute.xlu1 %275 }
 0x155   :  { %v7085_v59 = vpop.f32.mrb[0].mxu0 }
 0x156   :  { %v235_v62 = vpop.f32.mrb[1].mxu0  ;;  %v241_v3 = vadd.f32 %v7085_v59, %v157_v63  ;;  %v931_v59 = vld [vmem:[#allocation8 + $0x10] sm:$0xff]  ;;  %v944_v63 = vld [vmem:[#allocation8 + $0x78] sm:$0xff] }
 0x157   :  { %v236_v1 = vadd.f32 %v235_v62, %v152_v57  ;;  %v7327_v57 = vpack.c.bf16 %v936_v43, %v932_v41  ;;  %v7299_v62 = vpack.c.bf16 %v942_v49, %v938_v48  ;;  %v955_v41 = vld [vmem:[#allocation8 + $0xd0] sm:$0xff]  ;;  %v964_v43 = vld [vmem:[#allocation8 + $0x118] sm:$0xff]  ;;  %v970_v48 = vld [vmem:[#allocation8 + $0x148] sm:$0xff] }
 0x158   :  { %v974_v49 = vld [vmem:[#allocation8 + $0x168] sm:$0xff] }
 0x159   :  { %v7088_v5 = vpop.f32.mrb[2].mxu0  ;;  %7113 = vmatprep.mubr.msk.f32.mxu1 %vm381_vm1, %v236_v1  ;;  %v937_v1 = vld [vmem:[#allocation8 + $0x40] sm:$0xff] }
 0x15a   :  { %v245_v6 = vpop.f32.mrb[3].mxu0  ;;  %7114 = vmatmul.mubr.msk.f32.vlgmr.msra.gmra.mrb[0].mxu1 %vm381_vm1, %v241_v3  ;;  %v251_v7 = vadd.f32 %v7088_v5, %v167_v2  ;;  %v941_v2 = vld [vmem:[#allocation8 + $0x60] sm:$0xff]  ;;  %v950_v5 = vld [vmem:[#allocation8 + $0xa8] sm:$0xff] }
 0x15b   :  { %v246_v8 = vadd.f32 %v245_v6, %v162_v58  ;;  %7274 = vmatpush3.bf16.msra.mxu1 %v7271_v53  ;;  %v7293_v53 = vpack.c.bf16 %v720_v39, %v716_v38  ;;  %v7297_v58 = vpack.c.bf16 %v933_v45, %v929_v44  ;;  %v968_v45 = vld [vmem:[#allocation8 + $0x138] sm:$0xff] }
 0x15c   :  { %7276 = vmatprep.subr.bf16.mxu1 %v7275_v4 }
 0x15d   :  { %7116 = vmatprep.mubr.msk.f32.mxu1 %vm381_vm1, %v246_v8  ;;  %v711_v8 = vld [vmem:[%s14770_s4 + $0x8] sm:$0xff] }
 0x15e   :  { %7117 = vmatmul.mubr.msk.f32.gmra.mrb[2].mxu1 %vm381_vm1, %v251_v7  ;;  %v7329_v7 = vpack.c.bf16 %v935_v60, %v931_v59  ;;  %v976_v59 = vld [vmem:[#allocation8 + $0x178] sm:$0xff]  ;;  %v969_v60 = vld [vmem:[#allocation8 + $0x140] sm:$0xff] }
 0x15f   :  { %7278 = vmatpush3.bf16.msra.mxu1 %v7275_v4  ;;  %7127 = vmatprep.mubr.msk.f32.mxu1 %vm15111_vm2, %v483_v9  ;;  %v946_v4 = vld [vmem:[#allocation8 + $0x88] sm:$0xff]  ;;  %v7331_v9 = vpack.c.bf16 %v944_v63, %v940_v61  ;;  %v973_v61 = vld [vmem:[#allocation8 + $0x160] sm:$0xff] }
 0x160   :  { %7671 = vmatprep.subr.bf16.mxu1 %v7279_v56  ;;  %v982_v63 = vld [vmem:[#allocation8 + $0x1a8] sm:$0xff] }
 0x162   :  { %7128 = vmatmul.mubr.msk.f32.vlgmr.msra.gmra.mrb[4].mxu1 %vm15111_vm2, %v484_v10  ;;  %v7301_v10 = vpack.c.bf16 %v941_v2, %v937_v1 }
 0x163   :  { %7673 = vmatpush3.bf16.msra.mxu1 %v7279_v56  ;;  %7130 = vmatprep.mubr.msk.f32.mxu1 %vm15111_vm2, %v485_v16  ;;  %v948_v16 = vld [vmem:[#allocation8 + $0x98] sm:$0xff] }
 0x164   :  { %7672 = vmatprep.subr.bf16.mxu1 %v7283_v17 }
 0x166   :  { %7131 = vmatmul.mubr.msk.f32.gmra.mrb[6].mxu1 %vm15111_vm2, %v486_v18  ;;  %v952_v18 = vld [vmem:[#allocation8 + $0xb8] sm:$0xff] }
 0x167   :  { %7674 = vmatpush3.bf16.msra.mxu1 %v7283_v17  ;;  %v7303_v17 = vpack.c.bf16 %v950_v5, %v946_v4  ;;  %v7317_v4 = vpack.c.bf16 %v973_v61, %v969_v60  ;;  %v971_v5 = vld [vmem:[#allocation8 + $0x150] sm:$0xff] }
 0x168   :  { %7292 = vmatprep.subr.bf16.mxu1 %v7291_v26  ;;  %v712_v26 = vld [vmem:[%s14770_s4 + $0x10] sm:$0xff] }
 0x22d   :  { %v7115_v31 = vpop.f32.mrb[0].mxu1 }
 0x22e   :  { %v460_v34 = vpop.f32.mrb[1].mxu1  ;;  %v7675_v37 = vadd.f32 %v7115_v31, %v272_v27  ;;  %v7335_v27 = vpack.c.bf16 %v952_v18, %v948_v16  ;;  %v956_v31 = vld [vmem:[#allocation8 + $0xd8] sm:$0xff]  ;;  %v7321_v18 = vpack.c.bf16 %v981_v12, %v977_v11 }
 0x22f   :  { %v7676_v35 = vadd.f32 %v460_v34, %v268_v30  ;;  %v951_v30 = vld [vmem:[#allocation8 + $0xb0] sm:$0xff]  ;;  %v953_v34 = vld [vmem:[#allocation8 + $0xc0] sm:$0xff]  ;;  %v7339_v39 = vpack.c.bf16 %v960_v33, %v956_v31  ;;  %v713_v31 = vld [vmem:[%s14770_s4 + $0x18] sm:$0xff]  ;;  %s14977_s4 = smov 17  }
 0x230   :  { %v7337_v38 = vpack.c.bf16 %v951_v30, %v947_v29  ;;  %v985_v29 = vld [vmem:[#allocation8 + $0x1c0] sm:$0xff] }
 0x231   :  { %v7118_v42 = vpop.f32.mrb[2].mxu1  ;;  %7141 = vmatprep.mubr.msk.f32.mxu0 %vm15111_vm2, %v7676_v35  ;;  %v957_v35 = vld [vmem:[#allocation8 + $0xe0] sm:$0xff] }
 0x232   :  { %v470_v47 = vpop.f32.mrb[3].mxu1  ;;  %7142 = vmatmul.mubr.msk.f32.vlgmr.msra.gmra.mrb[4].mxu0 %vm15111_vm2, %v7675_v37  ;;  %v7677_v56 = vadd.f32 %v7118_v42, %v280_v50  ;;  %v966_v37 = vld [vmem:[#allocation8 + $0x128] sm:$0xff]  ;;  %v959_v42 = vld [vmem:[#allocation8 + $0xf0] sm:$0xff]  ;;  %v989_v30 = vld [vmem:[#allocation8 + $0x1e0] sm:$0xff] }
 0x233   :  { %v7678_v51 = vadd.f32 %v470_v47, %v276_v46  ;;  %7290 = vmatpush1.bf16.msra.mxu0 %v7289_v36  ;;  %815 = vmatprep.mubr.f32.mxu0 %v14793_v54  ;;  %v962_v36 = vld [vmem:[#allocation8 + $0x108] sm:$0xff]  ;;  %v961_v46 = vld [vmem:[#allocation8 + $0x100] sm:$0xff]  ;;  %v7341_v50 = vpack.c.bf16 %v959_v42, %v955_v41  ;;  %v7325_v33 = vpack.c.bf16 %v989_v30, %v985_v29 }
 0x234   :  { %7296 = vmatprep.subr.bf16.mxu0 %v7295_v40  ;;  %v7309_v40 = vpack.c.bf16 %v957_v35, %v953_v34  ;;  %v7311_v44 = vpack.c.bf16 %v966_v37, %v962_v36  ;;  %v965_v47 = vld [vmem:[#allocation8 + $0x120] sm:$0xff]  ;;  %v987_v34 = vld [vmem:[#allocation8 + $0x1d0] sm:$0xff]  ;;  %v14790_v37 = vmov 0  }
 0x235   :  { %7144 = vmatprep.mubr.msk.f32.mxu1 %vm15111_vm2, %v7678_v51  ;;  %v8659_v3 = vpop.f32.mrb[4].mxu1  ;;  %v7343_v51 = vpack.c.bf16 %v968_v45, %v964_v43  ;;  %v991_v35 = vld [vmem:[#allocation8 + $0x1f0] sm:$0xff]  ;;  %7913 = vset.pattern.permute.xlu1 %v14790_v37 }
 0x236   :  { %7145 = vmatmul.mubr.msk.f32.vlgmr.msra.gmra.mrb[6].mxu1 %vm15111_vm2, %v7677_v56  ;;  %6853 = vmatmul.mubr.msk.f32.vlgmr.msra.gmra.mrb[6].mxu0 %vm738_vm3, %v710_v55  ;;  %v8663_v6 = vpop.f32.mrb[5].mxu1  ;;  %v967_v56 = vld [vmem:[#allocation8 + $0x130] sm:$0xff]  ;;  %v7357_v36 = vpack.c.bf16 %v991_v35, %v987_v34 }
 0x237   :  { %7294 = vmatpush1.bf16.msra.mxu1 %v7293_v53  ;;  %904 = vmatprep.mubr.f32.mxu1 %v14793_v54  ;;  %v7313_v53 = vpack.c.bf16 %v965_v47, %v961_v46 }
 0x238   :  { %7328 = vmatprep.subr.bf16.mxu1 %v7327_v57  ;;  %7298 = vmatpush1.bf16.msra.mxu0 %v7297_v58  ;;  %v972_v57 = vld [vmem:[#allocation8 + $0x158] sm:$0xff]  ;;  %v7315_v58 = vpack.c.bf16 %v974_v49, %v970_v48 }
 0x239   :  { %7300 = vmatprep.subr.bf16.mxu0 %v7299_v62  ;;  %821 = vmatprep.mubr.f32.mxu0 %v14793_v54  ;;  %v978_v62 = vld [vmem:[#allocation8 + $0x188] sm:$0xff]  ;;  %v7347_v2 = vpack.c.bf16 %v976_v59, %v972_v57 }
 0x23a   :  { %6857 = vmatmul.mubr.msk.f32.vlgmr.msra.gmra.mrb[8].mxu1 %vm738_vm3, %v710_v55  ;;  %6854 = vmatmul.mubr.msk.f32.gmra.mrb[8].mxu0 %vm738_vm3, %v711_v8  ;;  %v963_v55 = vld [vmem:[#allocation8 + $0x110] sm:$0xff] }
 0x23b   :  { %7330 = vmatpush1.bf16.msra.mxu1 %v7329_v7  ;;  %910 = vmatprep.mubr.f32.mxu1 %v14793_v54  ;;  %v7345_v1 = vpack.c.bf16 %v967_v56, %v963_v55  ;;  %v975_v7 = vld [vmem:[#allocation8 + $0x170] sm:$0xff] }
 0x23c   :  { %7332 = vmatprep.subr.bf16.mxu1 %v7331_v9  ;;  %7302 = vmatpush1.bf16.msra.mxu0 %v7301_v10  ;;  %v7319_v9 = vpack.c.bf16 %v982_v63, %v978_v62  ;;  %v984_v10 = vld [vmem:[#allocation8 + $0x1b8] sm:$0xff]  ;;  %v7349_v16 = vpack.c.bf16 %v975_v7, %v971_v5 }
 0x23d   :  { %7304 = vmatprep.subr.bf16.mxu0 %v7303_v17  ;;  %827 = vmatprep.mubr.f32.mxu0 %v14793_v54 }
 0x23e   :  { %6858 = vmatmul.mubr.msk.f32.gmra.mrb[10].mxu1 %vm738_vm3, %v711_v8  ;;  %6855 = vmatmul.mubr.msk.f32.gmra.mrb[10].mxu0 %vm738_vm3, %v712_v26  ;;  %v980_v8 = vld [vmem:[#allocation8 + $0x198] sm:$0xff] }
 0x23f   :  { %7334 = vmatpush1.bf16.msra.mxu1 %v7333_v25  ;;  %916 = vmatprep.mubr.f32.mxu1 %v14793_v54  ;;  %v7351_v17 = vpack.c.bf16 %v984_v10, %v980_v8  ;;  %v990_v25 = vld [vmem:[#allocation8 + $0x1e8] sm:$0xff] }
 0x240   :  { %7336 = vmatprep.subr.bf16.mxu1 %v7335_v27  ;;  %7306 = vmatpush1.bf16.msra.mxu0 %v7305_v28  ;;  %v7323_v27 = vpack.c.bf16 %v990_v25, %v986_v24  ;;  %v992_v28 = vld [vmem:[#allocation8 + $0x1f8] sm:$0xff] }
 0x241   :  { %7308 = vmatprep.subr.bf16.mxu0 %v7307_v32  ;;  %833 = vmatprep.mubr.f32.mxu0 %v14793_v54 }
 0x242   :  { %6859 = vmatmul.mubr.msk.f32.gmra.mrb[12].mxu1 %vm738_vm3, %v712_v26  ;;  %v988_v26 = vld [vmem:[#allocation8 + $0x1d8] sm:$0xff]  ;;  %6856 = vmatmul.mubr.msk.f32.gmra.mrb[12].mxu0 %vm738_vm3, %v713_v31 }
 0x243   :  { %7338 = vmatpush1.bf16.msra.mxu1 %v7337_v38  ;;  %922 = vmatprep.mubr.f32.mxu1 %v14793_v54  ;;  %v7355_v32 = vpack.c.bf16 %v992_v28, %v988_v26  ;;  %v497_v38 = vpop.permute.xlu0 %496 }
 0x244   :  { %7340 = vmatprep.subr.bf16.mxu1 %v7339_v39  ;;  %7310 = vmatpush1.bf16.msra.mxu0 %v7309_v40  ;;  %v493_v39 = vpop.permute.xlu1 %492  ;;  %v592_v40 = vadd.f32 %v8659_v3, %v497_v38 }
 0x245   :  { %7312 = vmatprep.subr.bf16.mxu0 %v7311_v44  ;;  %1057 = vmatprep.mubr.f32.mxu0 %v14793_v54  ;;  %v587_v41 = vadd.f32 %v8663_v6, %v493_v39 }
 0x246   :  { %6860 = vmatmul.mubr.msk.f32.gmra.mrb[14].mxu1 %vm738_vm3, %v713_v31  ;;  %7912 = vset.pattern.permute.xlu0 %v14790_v37 }
 0x247   :  { %7342 = vmatpush1.bf16.msra.mxu1 %v7341_v50  ;;  %1146 = vmatprep.mubr.f32.mxu1 %v14793_v54 }
 0x248   :  { %7344 = vmatprep.subr.bf16.mxu1 %v7343_v51  ;;  %7314 = vmatpush1.bf16.msra.mxu0 %v7313_v53 }
 0x249   :  { %7316 = vmatprep.subr.bf16.mxu0 %v7315_v58  ;;  %727 = vperm.xlu1 %7913, %v8514_v14  }
 0x24a   :  { %723 = vperm.xlu0 %7912, %v8508_v13   ;;  %v501_v13 = vpop.permute.xlu1 %500 }
 0x24b   :  { %7346 = vmatpush1.bf16.msra.mxu1 %v7345_v1 }
 0x24c   :  { %7348 = vmatprep.subr.bf16.mxu1 %v7347_v2  ;;  %7318 = vmatpush1.bf16.msra.mxu0 %v7317_v4 }
 0x24d   :  { %7320 = vmatprep.subr.bf16.mxu0 %v7319_v9  ;;  %731 = vperm.xlu1 %7913, %v8519_v15  }
 0x24e   :  { %735 = vperm.xlu0 %7912, %v8534_v20   ;;  %v505_v20 = vpop.permute.xlu1 %504 }
 0x24f   :  { %7350 = vmatpush1.bf16.msra.mxu1 %v7349_v16 }
 0x250   :  { %7352 = vmatprep.subr.bf16.mxu1 %v7351_v17  ;;  %7322 = vmatpush1.bf16.msra.mxu0 %v7321_v18 }
 0x251   :  { %7324 = vmatprep.subr.bf16.mxu0 %v7323_v27 }
 0x253   :  { %7354 = vmatpush1.bf16.msra.mxu1 %v7353_v22 }
 0x254   :  { %7356 = vmatprep.subr.bf16.mxu1 %v7355_v32  ;;  %7326 = vmatpush1.bf16.msra.mxu0 %v7325_v33 }
 0x257   :  { %7358 = vmatpush1.bf16.msra.mxu1 %v7357_v36 }
 0x2c8   :  { %v728_v53 = vpop.permute.xlu1 %727 }
 0x2c9   :  { %v724_v6 = vpop.permute.xlu0 %723 }
 0x2cc   :  { %v8846_v16 = vpop.permute.xlu1 %731 }
 0x2cd   :  { %v8856_v18 = vpop.permute.xlu0 %735 }
 0x305   :  { %v7143_v42 = vpop.f32.mrb[4].mxu0 }
 0x306   :  { %v707_v43 = vadd.f32 %v7143_v42, %v592_v40  ;;  %v687_v44 = vpop.f32.mrb[5].mxu0 }
 0x307   :  { %v706_v45 = vadd.f32 %v687_v44, %v587_v41 }
 0x309   :  { %v7146_v46 = vpop.f32.mrb[6].mxu1  ;;  %1058 = vmatmul.mubr.f32.vlgmr.msra.gmra.mrb[6].mxu0 %v706_v45  ;;  %1147 = vmatmul.mubr.f32.vlgmr.msra.gmra.mrb[8].mxu1 %v706_v45 }
 0x30a   :  { %v697_v14 = vpop.f32.mrb[7].mxu1  ;;  %1063 = vmatprep.mubr.f32.mxu0 %v14793_v54  ;;  %1152 = vmatprep.mubr.f32.mxu1 %v14793_v54  ;;  %v7683_v3 = vadd.f32 %v7146_v46, %v505_v20  ;;  %v1219_v20 = vlaneseq }
 0x30b   :  { %v7684_v15 = vadd.f32 %v697_v14, %v501_v13 }
 0x30d   :  { %1064 = vmatmul.mubr.f32.gmra.mrb[8].mxu0 %v707_v43  ;;  %1153 = vmatmul.mubr.f32.gmra.mrb[10].mxu1 %v707_v43 }
 0x30e   :  { %1069 = vmatprep.mubr.f32.mxu0 %v14793_v54  ;;  %1158 = vmatprep.mubr.f32.mxu1 %v14793_v54 }
 0x311   :  { %1070 = vmatmul.mubr.f32.gmra.mrb[10].mxu0 %v7684_v15  ;;  %1159 = vmatmul.mubr.f32.gmra.mrb[12].mxu1 %v7684_v15 }
 0x312   :  { %1075 = vmatprep.mubr.f32.mxu0 %v14793_v54  ;;  %1164 = vmatprep.mubr.f32.mxu1 %v14793_v54 }
 0x315   :  { %1076 = vmatmul.mubr.f32.gmra.mrb[12].mxu0 %v7683_v3  ;;  %1165 = vmatmul.mubr.f32.gmra.mrb[14].mxu1 %v7683_v3 }
 0x3dc   :  { %v1059_v47 = vpop.f32.mrb[6].mxu0  ;;  %v1148_v48 = vpop.f32.mrb[8].mxu1 }
 0x3dd   :  { %v8704_v49 = vadd.f32 %v1059_v47, %v724_v6  ;;  %v1061_v50 = vpop.f32.mrb[7].mxu0  ;;  %v1150_v51 = vpop.f32.mrb[9].mxu1  ;;  %v8718_v62 = vadd.f32 %v1148_v48, %v724_v6  ;;  %v8980_v48 = vand.u32 127, %v1219_v20 }
 0x3de   :  { %v8782_v9 = vadd.f32 %v1061_v50, %v724_v6  ;;  %v8788_v10 = vadd.f32 %v1150_v51, %v724_v6  ;;  %v1241_v50 = vshrl.u32 %v1219_v20, 7  ;;  %v1238_v51 = vld [vmem:[%s14782_s16] ss:$8 sm:$0xf] }
 0x3df   :  { %1187 = vrot.lane.b32.xlu1 %v8704_v49, %s14977_s4  ;;  %vm1221_vm4 = vcmp.lt.s32.totalorder %v8980_v48, 17  ;;  %vm15204_vm5 = vcmp.lt.s32.totalorder %v8980_v48, 16  ;;  %vm15207_vm6 = vcmp.lt.s32.totalorder %v8980_v48, 15  ;;  %vm1484_vm7 = vcmp.lt.s32.totalorder %v8980_v48, 1 }
 0x3e0   :  { %v1065_v55 = vpop.f32.mrb[8].mxu0  ;;  %v1154_v56 = vpop.f32.mrb[10].mxu1  ;;  %v9033_v23 = vsub.s32 2, %v1241_v50  ;;  %vm15228_vm8 = vcmp.lt.s32.totalorder %v8980_v48, 127  ;;  %vm15226_vm9 = vcmp.lt.s32.totalorder %v8980_v48, 113  ;;  %vm15120_vm10 = vcmp.lt.s32.totalorder %v8980_v48, 112 }
 0x3e1   :  { %v8708_v57 = vadd.f32 %v1065_v55, %v728_v53  ;;  %v1067_v58 = vpop.f32.mrb[9].mxu0  ;;  %v1156_v59 = vpop.f32.mrb[11].mxu1  ;;  %v8732_v5 = vadd.f32 %v1154_v56, %v728_v53  ;;  %v8998_v56 = vsub.s32 1, %v1241_v50  ;;  %vm15113_vm11 = vcmp.lt.s32.totalorder %v8980_v48, 111 }
 0x3e2   :  { %v8790_v11 = vadd.f32 %v1067_v58, %v728_v53  ;;  %v8796_v12 = vadd.f32 %v1156_v59, %v728_v53  ;;  %15347 = vst [vmem:[#allocation38_spill] sm:$0xff] %v9033_v23 }
 0x3e3   :  { %1189 = vrot.lane.b32.xlu0 %v8708_v57, %s14977_s4  ;;  %1276 = vrot.lane.b32.xlu1 %v8704_v49, %s14979_s6  ;;  %15339 = vst [vmem:[#allocation30_spill] sm:$0xff] %v8998_v56 }
 0x3e4   :  { %v8714_v60 = vpop.f32.mrb[10].mxu0  ;;  %v8716_v61 = vpop.f32.mrb[12].mxu1 }
 0x3e5   :  { %v8720_v63 = vpop.f32.mrb[11].mxu0  ;;  %v8722_v1 = vpop.f32.mrb[13].mxu1  ;;  %v8850_v17 = vadd.f32 %v8714_v60, %v8846_v16  ;;  %v8870_v22 = vadd.f32 %v8716_v61, %v8846_v16  ;;  %v9003_v60 = vrot.slane %v1238_v51, %v8998_v56 }
 0x3e6   :  { %v8974_v3 = vadd.f32 %v8720_v63, %v8846_v16  ;;  %v8991_v53 = vadd.f32 %v8722_v1, %v8846_v16  ;;  %v9012_v63 = vsub.s32 0, %v1241_v50  ;;  %v9014_v1 = vsub.s32 3, %v1241_v50 }
 0x3e7   :  { %1278 = vrot.lane.b32.xlu0 %v8708_v57, %s14979_s6  ;;  %1203 = vrot.lane.b32.xlu1 %v8718_v62, %s14977_s4  ;;  %15341 = vst [vmem:[#allocation32_spill] sm:$0xff] %v9003_v60 }
 0x3e8   :  { %v8728_v2 = vpop.f32.mrb[12].mxu0  ;;  %v8730_v4 = vpop.f32.mrb[14].mxu1  ;;  %15335 = vst [vmem:[#allocation26_spill] sm:$0xff] %v8974_v3  ;;  %15338 = vst [vmem:[#allocation29_spill] sm:$0xff] %v8991_v53  ;;  %v9025_v37 = vrot.slane %v1238_v51, %v9012_v63  ;;  %v9028_v0 = vrot.slane %v1238_v51, %v9014_v1 }
 0x3e9   :  { %v8734_v7 = vpop.f32.mrb[13].mxu0  ;;  %v8736_v8 = vpop.f32.mrb[15].mxu1  ;;  %v8860_v19 = vadd.f32 %v8728_v2, %v8856_v18  ;;  %v8882_v26 = vadd.f32 %v8730_v4, %v8856_v18  ;;  %15342 = vst [vmem:[#allocation33_spill] sm:$0xff] %v9012_v63  ;;  %15343 = vst [vmem:[#allocation34_spill] sm:$0xff] %v9014_v1 }
 0x3ea   :  { %v8995_v55 = vadd.f32 %v8734_v7, %v8856_v18  ;;  %v9018_v7 = vadd.f32 %v8736_v8, %v8856_v18  ;;  %15345 = vst [vmem:[#allocation36_spill] sm:$0xff] %v9025_v37  ;;  %15346 = vst [vmem:[#allocation37_spill] sm:$0xff] %v9028_v0 }
 0x3eb   :  { %1205 = vrot.lane.b32.xlu0 %v8732_v5, %s14977_s4  ;;  %1364 = vrot.lane.b32.xlu1 %v8704_v49, %s14981_s26 }
 0x3ec   :  { %15344 = vst [vmem:[#allocation35_spill] sm:$0xff] %v9018_v7 }
 0x3ef   :  { %1366 = vrot.lane.b32.xlu0 %v8708_v57, %s14981_s26  ;;  %1292 = vrot.lane.b32.xlu1 %v8718_v62, %s14979_s6 }
 0x3f3   :  { %1294 = vrot.lane.b32.xlu0 %v8732_v5, %s14979_s6  ;;  %1452 = vrot.lane.b32.xlu1 %v8704_v49, %s14992_s11 }
 0x3f7   :  { %1454 = vrot.lane.b32.xlu0 %v8708_v57, %s14992_s11  ;;  %1380 = vrot.lane.b32.xlu1 %v8718_v62, %s14981_s26 }
 0x3fb   :  { %1382 = vrot.lane.b32.xlu0 %v8732_v5, %s14981_s26  ;;  %1468 = vrot.lane.b32.xlu1 %v8718_v62, %s14992_s11 }
 0x3ff   :  { %1470 = vrot.lane.b32.xlu0 %v8732_v5, %s14992_s11  ;;  %1595 = vrot.lane.b32.xlu1 %v8718_v62, %s14994_s12 }
 0x403   :  { %1597 = vrot.lane.b32.xlu0 %v8732_v5, %s14994_s12  ;;  %1579 = vrot.lane.b32.xlu1 %v8704_v49, %s14994_s12 }
 0x407   :  { %1581 = vrot.lane.b32.xlu0 %v8708_v57, %s14994_s12  ;;  %1683 = vrot.lane.b32.xlu1 %v8718_v62, %s8213_s5 }
 0x40b   :  { %1685 = vrot.lane.b32.xlu0 %v8732_v5, %s8213_s5  ;;  %1667 = vrot.lane.b32.xlu1 %v8704_v49, %s8213_s5 }
 0x40f   :  { %1669 = vrot.lane.b32.xlu0 %v8708_v57, %s8213_s5  ;;  %1771 = vrot.lane.b32.xlu1 %v8718_v62, %s8214_s23 }
 0x413   :  { %1773 = vrot.lane.b32.xlu0 %v8732_v5, %s8214_s23  ;;  %1755 = vrot.lane.b32.xlu1 %v8704_v49, %s8214_s23 }
 0x417   :  { %1757 = vrot.lane.b32.xlu0 %v8708_v57, %s8214_s23  ;;  %1195 = vrot.lane.b32.xlu1 %v8782_v9, %s14977_s4 }
 0x41b   :  { %1197 = vrot.lane.b32.xlu0 %v8790_v11, %s14977_s4  ;;  %1211 = vrot.lane.b32.xlu1 %v8788_v10, %s14977_s4 }
 0x41f   :  { %1213 = vrot.lane.b32.xlu0 %v8796_v12, %s14977_s4  ;;  %1284 = vrot.lane.b32.xlu1 %v8782_v9, %s14979_s6 }
 0x423   :  { %1286 = vrot.lane.b32.xlu0 %v8790_v11, %s14979_s6  ;;  %1300 = vrot.lane.b32.xlu1 %v8788_v10, %s14979_s6 }
 0x427   :  { %1302 = vrot.lane.b32.xlu0 %v8796_v12, %s14979_s6  ;;  %1372 = vrot.lane.b32.xlu1 %v8782_v9, %s14981_s26 }
 0x42b   :  { %1374 = vrot.lane.b32.xlu0 %v8790_v11, %s14981_s26  ;;  %1388 = vrot.lane.b32.xlu1 %v8788_v10, %s14981_s26 }
 0x42f   :  { %1390 = vrot.lane.b32.xlu0 %v8796_v12, %s14981_s26  ;;  %1460 = vrot.lane.b32.xlu1 %v8782_v9, %s14992_s11 }
 0x433   :  { %1462 = vrot.lane.b32.xlu0 %v8790_v11, %s14992_s11  ;;  %1476 = vrot.lane.b32.xlu1 %v8788_v10, %s14992_s11 }
 0x437   :  { %1478 = vrot.lane.b32.xlu0 %v8796_v12, %s14992_s11  ;;  %1587 = vrot.lane.b32.xlu1 %v8782_v9, %s14994_s12 }
 0x43b   :  { %1589 = vrot.lane.b32.xlu0 %v8790_v11, %s14994_s12  ;;  %1675 = vrot.lane.b32.xlu1 %v8782_v9, %s8213_s5 }
 0x43f   :  { %1677 = vrot.lane.b32.xlu0 %v8790_v11, %s8213_s5  ;;  %1603 = vrot.lane.b32.xlu1 %v8788_v10, %s14994_s12 }
 0x443   :  { %1605 = vrot.lane.b32.xlu0 %v8796_v12, %s14994_s12  ;;  %1763 = vrot.lane.b32.xlu1 %v8782_v9, %s8214_s23 }
 0x447   :  { %1765 = vrot.lane.b32.xlu0 %v8790_v11, %s8214_s23  ;;  %1691 = vrot.lane.b32.xlu1 %v8788_v10, %s8213_s5 }
 0x44b   :  { %1693 = vrot.lane.b32.xlu0 %v8796_v12, %s8213_s5  ;;  %1779 = vrot.lane.b32.xlu1 %v8788_v10, %s8214_s23 }
 0x44f   :  { %1781 = vrot.lane.b32.xlu0 %v8796_v12, %s8214_s23  ;;  %1191 = vrot.lane.b32.xlu1 %v8850_v17, %s14977_s4 }
 0x451   :  { %v8862_v21 = vpop.permute.xlu1 %1187 }
 0x453   :  { %1280 = vrot.lane.b32.xlu1 %v8850_v17, %s14979_s6  ;;  %1193 = vrot.lane.b32.xlu0 %v8860_v19, %s14977_s4 }
 0x455   :  { %v8872_v24 = vpop.permute.xlu1 %1276  ;;  %v8874_v25 = vpop.permute.xlu0 %1189 }
 0x457   :  { %1207 = vrot.lane.b32.xlu1 %v8870_v22, %s14977_s4  ;;  %1282 = vrot.lane.b32.xlu0 %v8860_v19, %s14979_s6 }
 0x459   :  { %v8884_v27 = vpop.permute.xlu1 %1203  ;;  %v8886_v28 = vpop.permute.xlu0 %1278 }
 0x45b   :  { %1368 = vrot.lane.b32.xlu1 %v8850_v17, %s14981_s26  ;;  %1209 = vrot.lane.b32.xlu0 %v8882_v26, %s14977_s4 }
 0x45d   :  { %v8892_v29 = vpop.permute.xlu1 %1364  ;;  %v8894_v30 = vpop.permute.xlu0 %1205 }
 0x45f   :  { %1296 = vrot.lane.b32.xlu1 %v8870_v22, %s14979_s6  ;;  %1370 = vrot.lane.b32.xlu0 %v8860_v19, %s14981_s26 }
 0x461   :  { %v8900_v31 = vpop.permute.xlu1 %1292  ;;  %v8902_v32 = vpop.permute.xlu0 %1366 }
 0x463   :  { %1456 = vrot.lane.b32.xlu1 %v8850_v17, %s14992_s11  ;;  %1298 = vrot.lane.b32.xlu0 %v8882_v26, %s14979_s6 }
 0x465   :  { %v8908_v33 = vpop.permute.xlu1 %1452  ;;  %v8910_v34 = vpop.permute.xlu0 %1294 }
 0x467   :  { %1384 = vrot.lane.b32.xlu1 %v8870_v22, %s14981_s26  ;;  %1458 = vrot.lane.b32.xlu0 %v8860_v19, %s14992_s11 }
 0x469   :  { %v8916_v35 = vpop.permute.xlu1 %1380  ;;  %v8918_v36 = vpop.permute.xlu0 %1454 }
 0x46a   :  { %15325 = vst [vmem:[#allocation16_spill] sm:$0xff] %v8918_v36 }
 0x46b   :  { %1472 = vrot.lane.b32.xlu1 %v8870_v22, %s14992_s11  ;;  %1386 = vrot.lane.b32.xlu0 %v8882_v26, %s14981_s26 }
 0x46d   :  { %v8924_v38 = vpop.permute.xlu1 %1468  ;;  %v8926_v39 = vpop.permute.xlu0 %1382 }
 0x46f   :  { %1599 = vrot.lane.b32.xlu1 %v8870_v22, %s14994_s12  ;;  %1474 = vrot.lane.b32.xlu0 %v8882_v26, %s14992_s11 }
 0x471   :  { %v8932_v40 = vpop.permute.xlu1 %1595  ;;  %v8934_v41 = vpop.permute.xlu0 %1470 }
 0x472   :  { %15326 = vst [vmem:[#allocation17_spill] sm:$0xff] %v8932_v40 }
 0x473   :  { %1583 = vrot.lane.b32.xlu1 %v8850_v17, %s14994_s12  ;;  %1601 = vrot.lane.b32.xlu0 %v8882_v26, %s14994_s12 }
 0x475   :  { %v8940_v42 = vpop.permute.xlu1 %1579  ;;  %v8942_v43 = vpop.permute.xlu0 %1597 }
 0x476   :  { %15327 = vst [vmem:[#allocation18_spill] sm:$0xff] %v8940_v42  ;;  %15328 = vst [vmem:[#allocation19_spill] sm:$0xff] %v8942_v43 }
 0x477   :  { %1687 = vrot.lane.b32.xlu1 %v8870_v22, %s8213_s5  ;;  %1585 = vrot.lane.b32.xlu0 %v8860_v19, %s14994_s12 }
 0x479   :  { %v8948_v44 = vpop.permute.xlu1 %1683  ;;  %v8950_v45 = vpop.permute.xlu0 %1581 }
 0x47a   :  { %15329 = vst [vmem:[#allocation20_spill] sm:$0xff] %v8948_v44  ;;  %15330 = vst [vmem:[#allocation21_spill] sm:$0xff] %v8950_v45 }
 0x47b   :  { %1671 = vrot.lane.b32.xlu1 %v8850_v17, %s8213_s5  ;;  %1689 = vrot.lane.b32.xlu0 %v8882_v26, %s8213_s5 }
 0x47d   :  { %v8956_v46 = vpop.permute.xlu1 %1667  ;;  %v8958_v14 = vpop.permute.xlu0 %1685 }
 0x47e   :  { %15331 = vst [vmem:[#allocation22_spill] sm:$0xff] %v8956_v46  ;;  %15332 = vst [vmem:[#allocation23_spill] sm:$0xff] %v8958_v14 }
 0x47f   :  { %1775 = vrot.lane.b32.xlu1 %v8870_v22, %s8214_s23  ;;  %1673 = vrot.lane.b32.xlu0 %v8860_v19, %s8213_s5 }
 0x481   :  { %v8964_v13 = vpop.permute.xlu1 %1771  ;;  %v8966_v15 = vpop.permute.xlu0 %1669 }
 0x482   :  { %15333 = vst [vmem:[#allocation24_spill] sm:$0xff] %v8964_v13  ;;  %15334 = vst [vmem:[#allocation25_spill] sm:$0xff] %v8966_v15 }
 0x483   :  { %1759 = vrot.lane.b32.xlu1 %v8850_v17, %s8214_s23  ;;  %1777 = vrot.lane.b32.xlu0 %v8882_v26, %s8214_s23 }
 0x485   :  { %v8976_v6 = vpop.permute.xlu1 %1755  ;;  %v8978_v47 = vpop.permute.xlu0 %1773 }
 0x486   :  { %15336 = vst [vmem:[#allocation27_spill] sm:$0xff] %v8976_v6  ;;  %15337 = vst [vmem:[#allocation28_spill] sm:$0xff] %v8978_v47 }
 0x487   :  { %1199 = vrot.lane.b32.xlu1 %v8974_v3, %s14977_s4  ;;  %1761 = vrot.lane.b32.xlu0 %v8860_v19, %s8214_s23 }
 0x489   :  { %v1196_v58 = vpop.permute.xlu1 %1195  ;;  %v9000_v59 = vpop.permute.xlu0 %1757 }
 0x48a   :  { %15340 = vst [vmem:[#allocation31_spill] sm:$0xff] %v9000_v59  ;;  %v1230_v61 = vsel %vm1221_vm4, %v8862_v21, %v1196_v58  ;;  %v9049_v59 = vrot.slane %v1238_v51, %v9033_v23  ;;  %v1226_v47 = vsel %vm1221_vm4, %v1196_v58, %v8884_v27 }
 0x48b   :  { %1215 = vrot.lane.b32.xlu1 %v8991_v53, %s14977_s4  ;;  %1201 = vrot.lane.b32.xlu0 %v8995_v55, %s14977_s4  ;;  %v1261_v20 = vmul.f32 %v9003_v60, %v1230_v61 }
 0x48c   :  { %15348 = vst [vmem:[#allocation39_spill] sm:$0xff] %v9049_v59 }
 0x48d   :  { %v1212_v2 = vpop.permute.xlu1 %1211  ;;  %v1198_v4 = vpop.permute.xlu0 %1197 }
 0x48e   :  { %v1231_v16 = vsel %vm1221_vm4, %v8874_v25, %v1198_v4  ;;  %v1222_v8 = vsel %vm1221_vm4, %v8884_v27, %v1212_v2  ;;  %v1234_v18 = vsel %vm1221_vm4, %v1212_v2, %v8862_v21  ;;  %v1227_v61 = vsel %vm1221_vm4, %v1198_v4, %v8894_v30 }
 0x48f   :  { %v1265_v54 = vmul.f32 %v9003_v60, %v1231_v16  ;;  %1288 = vrot.lane.b32.xlu1 %v8974_v3, %s14979_s6  ;;  %1217 = vrot.lane.b32.xlu0 %v9018_v7, %s14977_s4  ;;  %v1260_v4 = vmul.f32 %v9025_v37, %v1234_v18  ;;  %v1263_v13 = vmul.f32 %v9028_v0, %v1222_v8 }
 0x490   :  { %v1266_v27 = vmul.f32 %v9049_v59, %v1227_v61 }
 0x491   :  { %v9046_v16 = vpop.permute.xlu1 %1284  ;;  %v1214_v52 = vpop.permute.xlu0 %1213  ;;  %v7359_v50 = vpack.c.bf16 %v1265_v54, %v1261_v20  ;;  %v1262_v20 = vmul.f32 %v9049_v59, %v1226_v47 }
 0x492   :  { %v1223_v21 = vsel %vm1221_vm4, %v8894_v30, %v1214_v52  ;;  %v1235_v2 = vsel %vm1221_vm4, %v1214_v52, %v8874_v25 }
 0x493   :  { %v1264_v54 = vmul.f32 %v9025_v37, %v1235_v2  ;;  %v1267_v51 = vmul.f32 %v9028_v0, %v1223_v21  ;;  %1304 = vrot.lane.b32.xlu1 %v8991_v53, %s14979_s6  ;;  %1290 = vrot.lane.b32.xlu0 %v8995_v55, %s14979_s6  ;;  %v7433_v8 = vpack.c.bf16 %v1266_v27, %v1262_v20 }
 0x494   :  { %7360 = vmatprep.subr.bf16.mxu0 %v7359_v50 }
 0x495   :  { %v7361_v30 = vpack.c.bf16 %v1264_v54, %v1260_v4  ;;  %v9069_v58 = vpop.permute.xlu1 %1300  ;;  %v9071_v52 = vpop.permute.xlu0 %1286  ;;  %v7431_v25 = vpack.c.bf16 %v1267_v51, %v1263_v13 }
 0x497   :  { %1376 = vrot.lane.b32.xlu1 %v8974_v3, %s14981_s26  ;;  %1306 = vrot.lane.b32.xlu0 %v9018_v7, %s14979_s6 }
 0x498   :  { %7362 = vmatpush1.bf16.msra.mxu0 %v7361_v30  ;;  %7432 = vmatprep.subr.bf16.mxu1 %v7431_v25 }
 0x499   :  { %v9078_v18 = vpop.permute.xlu1 %1372  ;;  %v9080_v61 = vpop.permute.xlu0 %1302  ;;  %7434 = vmatpush1.bf16.msra.mxu1 %v7433_v8 }
 0x49b   :  { %1392 = vrot.lane.b32.xlu1 %v8991_v53, %s14981_s26  ;;  %1378 = vrot.lane.b32.xlu0 %v8995_v55, %s14981_s26 }
 0x49d   :  { %v9086_v13 = vpop.permute.xlu1 %1388  ;;  %v9088_v47 = vpop.permute.xlu0 %1374 }
 0x49f   :  { %1464 = vrot.lane.b32.xlu1 %v8974_v3, %s14992_s11  ;;  %1394 = vrot.lane.b32.xlu0 %v9018_v7, %s14981_s26 }
 0x4a1   :  { %v9094_v50 = vpop.permute.xlu1 %1460  ;;  %v9096_v21 = vpop.permute.xlu0 %1390 }
 0x4a3   :  { %1480 = vrot.lane.b32.xlu1 %v8991_v53, %s14992_s11  ;;  %1466 = vrot.lane.b32.xlu0 %v8995_v55, %s14992_s11 }
 0x4a5   :  { %v9102_v2 = vpop.permute.xlu1 %1476  ;;  %v9104_v4 = vpop.permute.xlu0 %1462 }
 0x4a7   :  { %1851 = vrot.lane.b32.xlu1 %v8782_v9, %s8215_s28  ;;  %1482 = vrot.lane.b32.xlu0 %v9018_v7, %s14992_s11 }
 0x4a9   :  { %v9110_v54 = vpop.permute.xlu1 %1587  ;;  %v9112_v51 = vpop.permute.xlu0 %1478 }
 0x4aa   :  { %15349 = vst [vmem:[#allocation40_spill] sm:$0xff] %v9110_v54  ;;  %15350 = vst [vmem:[#allocation41_spill] sm:$0xff] %v9112_v51 }
 0x4ab   :  { %1591 = vrot.lane.b32.xlu1 %v8974_v3, %s14994_s12  ;;  %1853 = vrot.lane.b32.xlu0 %v8790_v11, %s8215_s28 }
 0x4ad   :  { %v9118_v27 = vpop.permute.xlu1 %1675  ;;  %v9120_v30 = vpop.permute.xlu0 %1589 }
 0x4ae   :  { %15351 = vst [vmem:[#allocation42_spill] sm:$0xff] %v9118_v27  ;;  %15352 = vst [vmem:[#allocation43_spill] sm:$0xff] %v9120_v30 }
 0x4af   :  { %1679 = vrot.lane.b32.xlu1 %v8974_v3, %s8213_s5  ;;  %1861 = vrot.lane.b32.xlu0 %v8732_v5, %s8215_s28 }
 0x4b1   :  { %v9126_v25 = vpop.permute.xlu1 %1603  ;;  %v9128_v20 = vpop.permute.xlu0 %1677 }
 0x4b2   :  { %15353 = vst [vmem:[#allocation44_spill] sm:$0xff] %v9126_v25  ;;  %15354 = vst [vmem:[#allocation45_spill] sm:$0xff] %v9128_v20 }
 0x4b3   :  { %1607 = vrot.lane.b32.xlu1 %v8991_v53, %s14994_s12  ;;  %1593 = vrot.lane.b32.xlu0 %v8995_v55, %s14994_s12 }
 0x4b5   :  { %v9134_v8 = vpop.permute.xlu1 %1763  ;;  %v9136_v6 = vpop.permute.xlu0 %1605 }
 0x4b6   :  { %15355 = vst [vmem:[#allocation46_spill] sm:$0xff] %v9134_v8  ;;  %15356 = vst [vmem:[#allocation47_spill] sm:$0xff] %v9136_v6 }
 0x4b7   :  { %1767 = vrot.lane.b32.xlu1 %v8974_v3, %s8214_s23  ;;  %1845 = vrot.lane.b32.xlu0 %v8708_v57, %s8215_s28 }
 0x4b9   :  { %v9142_v46 = vpop.permute.xlu1 %1691  ;;  %v9144_v15 = vpop.permute.xlu0 %1765 }
 0x4ba   :  { %15357 = vst [vmem:[#allocation48_spill] sm:$0xff] %v9142_v46  ;;  %15358 = vst [vmem:[#allocation49_spill] sm:$0xff] %v9144_v15  ;;  %v1932_v15 = vld [vmem:[#allocation10 + $0x8] sm:$0xff] }
 0x4bb   :  { %1695 = vrot.lane.b32.xlu1 %v8991_v53, %s8213_s5  ;;  %1681 = vrot.lane.b32.xlu0 %v8995_v55, %s8213_s5 }
 0x4bc   :  { %2035 = vmatprep.mubr.f32.mxu0 %v1932_v15  ;;  %2213 = vmatprep.mubr.f32.mxu1 %v1932_v15 }
 0x4bd   :  { %v9150_v20 = vpop.permute.xlu1 %1779  ;;  %v9152_v8 = vpop.permute.xlu0 %1693 }
 0x4be   :  { %15359 = vst [vmem:[#allocation50_spill] sm:$0xff] %v9150_v20  ;;  %15360 = vst [vmem:[#allocation51_spill] sm:$0xff] %v9152_v8 }
 0x4bf   :  { %1859 = vrot.lane.b32.xlu1 %v8718_v62, %s8215_s28  ;;  %1609 = vrot.lane.b32.xlu0 %v9018_v7, %s14994_s12 }
 0x4c1   :  { %v9158_v14 = vpop.permute.xlu1 %1191  ;;  %v9160_v46 = vpop.permute.xlu0 %1781 }
 0x4c2   :  { %15361 = vst [vmem:[#allocation52_spill] sm:$0xff] %v9160_v46 }
 0x4c3   :  { %1843 = vrot.lane.b32.xlu1 %v8704_v49, %s8215_s28  ;;  %1769 = vrot.lane.b32.xlu0 %v8995_v55, %s8214_s23 }
 0x4c5   :  { %v9166_v20 = vpop.permute.xlu1 %1280  ;;  %v9168_v8 = vpop.permute.xlu0 %1193 }
 0x4c7   :  { %1783 = vrot.lane.b32.xlu1 %v8991_v53, %s8214_s23  ;;  %1865 = vrot.lane.b32.xlu0 %v8882_v26, %s8215_s28 }
 0x4c9   :  { %v9174_v46 = vpop.permute.xlu1 %1207  ;;  %v9176_v27 = vpop.permute.xlu0 %1282 }
 0x4cb   :  { %1855 = vrot.lane.b32.xlu1 %v8974_v3, %s8215_s28  ;;  %1697 = vrot.lane.b32.xlu0 %v9018_v7, %s8213_s5 }
 0x4cd   :  { %v9182_v15 = vpop.permute.xlu1 %1368  ;;  %v9184_v44 = vpop.permute.xlu0 %1209 }
 0x4cf   :  { %1863 = vrot.lane.b32.xlu1 %v8870_v22, %s8215_s28  ;;  %1785 = vrot.lane.b32.xlu0 %v9018_v7, %s8214_s23 }
 0x4d1   :  { %v9190_v25 = vpop.permute.xlu1 %1296  ;;  %v9192_v6 = vpop.permute.xlu0 %1370 }
 0x4d2   :  { %15362 = vst [vmem:[#allocation53_spill] sm:$0xff] %v9192_v6 }
 0x4d3   :  { %1847 = vrot.lane.b32.xlu1 %v8850_v17, %s8215_s28  ;;  %1857 = vrot.lane.b32.xlu0 %v8995_v55, %s8215_s28 }
 0x4d5   :  { %v9198_v45 = vpop.permute.xlu1 %1456  ;;  %v9200_v42 = vpop.permute.xlu0 %1298 }
 0x4d6   :  { %15363 = vst [vmem:[#allocation54_spill] sm:$0xff] %v9198_v45 }
 0x4d7   :  { %1867 = vrot.lane.b32.xlu1 %v8788_v10, %s8215_s28  ;;  %1849 = vrot.lane.b32.xlu0 %v8860_v19, %s8215_s28 }
 0x4d9   :  { %v9206_v54 = vpop.permute.xlu1 %1384  ;;  %v9208_v40 = vpop.permute.xlu0 %1458 }
 0x4da   :  { %15364 = vst [vmem:[#allocation55_spill] sm:$0xff] %v9206_v54  ;;  %15365 = vst [vmem:[#allocation56_spill] sm:$0xff] %v9208_v40 }
 0x4db   :  { %1871 = vrot.lane.b32.xlu1 %v8991_v53, %s8215_s28  ;;  %1869 = vrot.lane.b32.xlu0 %v8796_v12, %s8215_s28 }
 0x4dd   :  { %v9214_v30 = vpop.permute.xlu1 %1472  ;;  %v9216_v43 = vpop.permute.xlu0 %1386 }
 0x4de   :  { %15366 = vst [vmem:[#allocation57_spill] sm:$0xff] %v9214_v30  ;;  %15367 = vst [vmem:[#allocation58_spill] sm:$0xff] %v9216_v43  ;;  %v6864_v30 = vld [vmem:[%s14782_s16 + $0x4] ss:$8 sm:$0xf] }
 0x4df   :  { %1873 = vrot.lane.b32.xlu0 %v9018_v7, %s8215_s28  ;;  %v9236_v43 = vrot.slane %v6864_v30, %v9012_v63 }
 0x4e1   :  { %v9220_v3 = vpop.permute.xlu1 %1599  ;;  %v9222_v45 = vpop.permute.xlu0 %1474  ;;  %15374 = vst [vmem:[#allocation65_spill] sm:$0xff] %v9236_v43 }
 0x4e2   :  { %15368 = vst [vmem:[#allocation59_spill] sm:$0xff] %v9220_v3  ;;  %15369 = vst [vmem:[#allocation60_spill] sm:$0xff] %v9222_v45  ;;  %v9243_v45 = vrot.slane %v6864_v30, %v8998_v56 }
 0x4e4   :  { %15377 = vst [vmem:[#allocation68_spill] sm:$0xff] %v9243_v45 }
 0x4e5   :  { %v9224_v54 = vpop.permute.xlu1 %1583  ;;  %v9226_v40 = vpop.permute.xlu0 %1601 }
 0x4e6   :  { %15370 = vst [vmem:[#allocation61_spill] sm:$0xff] %v9224_v54  ;;  %15371 = vst [vmem:[#allocation62_spill] sm:$0xff] %v9226_v40  ;;  %v9246_v54 = vrot.slane %v6864_v30, %v9014_v1  ;;  %v9261_v40 = vmul.f32 %v8790_v11, %v9243_v45  ;;  %v9281_v11 = vmul.f32 %v8782_v9, %v9243_v45  ;;  %v8018_v9 = vld [vmem:[%s14774_s8 + $0x10] sm:$0xff] }
 0x4e8   :  { %15378 = vst [vmem:[#allocation69_spill] sm:$0xff] %v9246_v54  ;;  %15380 = vst [vmem:[#allocation71_spill] sm:$0xff] %v9261_v40 }
 0x4e9   :  { %v9228_v6 = vpop.permute.xlu1 %1687  ;;  %v9230_v53 = vpop.permute.xlu0 %1585  ;;  %15386 = vst [vmem:[#allocation77_spill] sm:$0xff] %v9281_v11  ;;  %v1310_v11 = vsel %vm15204_vm5, %v8910_v34, %v9080_v61 }
 0x4ea   :  { %15372 = vst [vmem:[#allocation63_spill] sm:$0xff] %v9228_v6  ;;  %15373 = vst [vmem:[#allocation64_spill] sm:$0xff] %v9230_v53  ;;  %v9249_v6 = vrot.slane %v6864_v30, %v9033_v23  ;;  %v14838_v53 = vmov 4   ;;  %v9265_v30 = vmul.f32 %v8796_v12, %v9246_v54  ;;  %v9285_v12 = vmul.f32 %v8788_v10, %v9246_v54  ;;  %v6862_v54 = vld [vmem:[%s14782_s16 + $0x2] ss:$8 sm:$0xf] }
 0x4eb   :  { %7914 = vset.pattern.permute.xlu1 %v14838_v53  ;;  %7915 = vset.pattern.permute.xlu0 %v14838_v53  ;;  %v9269_v53 = vmul.f32 %v8708_v57, %v9236_v43  ;;  %v9289_v57 = vmul.f32 %v8704_v49, %v9236_v43 }
 0x4ec   :  { %15379 = vst [vmem:[#allocation70_spill] sm:$0xff] %v9249_v6  ;;  %15381 = vst [vmem:[#allocation72_spill] sm:$0xff] %v9265_v30  ;;  %v9323_v49 = vmul.f32 %v8870_v22, %v9249_v6 }
 0x4ed   :  { %v9238_v7 = vpop.permute.xlu1 %1671  ;;  %v9240_v3 = vpop.permute.xlu0 %1689  ;;  %15382 = vst [vmem:[#allocation73_spill] sm:$0xff] %v9269_v53  ;;  %15387 = vst [vmem:[#allocation78_spill] sm:$0xff] %v9285_v12 }
 0x4ee   :  { %15375 = vst [vmem:[#allocation66_spill] sm:$0xff] %v9238_v7  ;;  %15376 = vst [vmem:[#allocation67_spill] sm:$0xff] %v9240_v3  ;;  %v8016_v7 = vld [vmem:[%s14774_s8] sm:$0xff]  ;;  %v8017_v3 = vld [vmem:[%s14774_s8 + $0x8] sm:$0xff] }
 0x4ef   :  { %1944 = vperm.xlu1 %7914, %v8016_v7   ;;  %1948 = vperm.xlu0 %7915, %v8017_v3   ;;  %v9273_v7 = vmul.f32 %v8732_v5, %v9249_v6  ;;  %15388 = vst [vmem:[#allocation79_spill] sm:$0xff] %v9289_v57  ;;  %v9293_v5 = vmul.f32 %v8718_v62, %v9249_v6  ;;  %v6861_v3 = vld [vmem:[%s14782_s16 + $0x1] ss:$8 sm:$0xf]  ;;  %15391 = vst [vmem:[#allocation81_spill] sm:$0xff] %v9323_v49 }
 0x4f0   :  { %v9327_v62 = vmul.f32 %v8882_v26, %v9249_v6  ;;  %v9345_v26 = vmul.f32 %v8995_v55, %v9243_v45  ;;  %v9348_v6 = vrot.slane %v6861_v3, %v9012_v63  ;;  %v8019_v55 = vld [vmem:[%s14774_s8 + $0x18] sm:$0xff]  ;;  %v9383_v57 = vrot.slane %v6862_v54, %v9014_v1 }
 0x4f1   :  { %15383 = vst [vmem:[#allocation74_spill] sm:$0xff] %v9273_v7  ;;  %v9275_v51 = vpop.permute.xlu1 %1775  ;;  %v9277_v36 = vpop.permute.xlu0 %1673  ;;  %15389 = vst [vmem:[#allocation80_spill] sm:$0xff] %v9293_v5  ;;  %v1314_v5 = vsel %vm15204_vm5, %v9071_v52, %v8910_v34  ;;  %v9372_v7 = vrot.slane %v6862_v54, %v9012_v63  ;;  %v1397_v49 = vsel %vm15207_vm6, %v8916_v35, %v9086_v13 }
 0x4f2   :  { %15384 = vst [vmem:[#allocation75_spill] sm:$0xff] %v9275_v51  ;;  %15385 = vst [vmem:[#allocation76_spill] sm:$0xff] %v9277_v36  ;;  %v15390_v51 = vmov 2   ;;  %v9331_v36 = vrot.slane %v6861_v3, %v8998_v56 }
 0x4f3   :  { %1952 = vperm.xlu1 %7914, %v8018_v9   ;;  %7917 = vset.pattern.permute.xlu0 %v15390_v51  ;;  %v9315_v9 = vmul.f32 %v8850_v17, %v9236_v43  ;;  %v9319_v51 = vmul.f32 %v8860_v19, %v9236_v43  ;;  %15392 = vst [vmem:[#allocation82_spill] sm:$0xff] %v9327_v62  ;;  %v6863_v19 = vld [vmem:[%s14782_s16 + $0x3] ss:$8 sm:$0xf]  ;;  %15397 = vst [vmem:[#allocation87_spill] sm:$0xff] %v9345_v26 }
 0x4f4   :  { %15393 = vst [vmem:[#allocation83_spill] sm:$0xff] %v9331_v36  ;;  %v9334_v17 = vrot.slane %v6861_v3, %v9033_v23  ;;  %15398 = vst [vmem:[#allocation88_spill] sm:$0xff] %v9348_v6  ;;  %v9351_v43 = vrot.slane %v6861_v3, %v9014_v1  ;;  %v9366_v3 = vrot.slane %v6862_v54, %v8998_v56 }
 0x4f5   :  { %v9339_v10 = vpop.permute.xlu1 %1759  ;;  %v9341_v22 = vpop.permute.xlu0 %1777  ;;  %15402 = vst [vmem:[#allocation92_spill] sm:$0xff] %v9372_v7  ;;  %15403 = vst [vmem:[#allocation93_spill] sm:$0xff] %v9383_v57  ;;  %v9386_v53 = vrot.slane %v6863_v19, %v8998_v56  ;;  %v9413_v34 = vrot.slane %v6863_v19, %v9033_v23  ;;  %v9416_v56 = vrot.slane %v6863_v19, %v9012_v63 }
 0x4f6   :  { %15394 = vst [vmem:[#allocation84_spill] sm:$0xff] %v9334_v17  ;;  %15395 = vst [vmem:[#allocation85_spill] sm:$0xff] %v9339_v10  ;;  %v1318_v10 = vsel %vm15204_vm5, %v8886_v28, %v9071_v52  ;;  %v1313_v52 = vsel %vm15204_vm5, %v9046_v16, %v8900_v31  ;;  %v9392_v30 = vmul.f32 %v9334_v17, %v1314_v5 }
 0x4f7   :  { %15396 = vst [vmem:[#allocation86_spill] sm:$0xff] %v9341_v22  ;;  %15399 = vst [vmem:[#allocation89_spill] sm:$0xff] %v9351_v43  ;;  %1956 = vperm.xlu1 %7914, %v8019_v55   ;;  %v9369_v22 = vrot.slane %v6862_v54, %v9033_v23  ;;  %v1317_v55 = vsel %vm15204_vm5, %v8872_v24, %v9046_v16  ;;  %v9389_v12 = vmul.f32 %v9331_v36, %v1318_v10 }
 0x4f8   :  { %15400 = vst [vmem:[#allocation90_spill] sm:$0xff] %v9366_v3  ;;  %15404 = vst [vmem:[#allocation94_spill] sm:$0xff] %v9386_v53  ;;  %v1322_v16 = vsel %vm15204_vm5, %v9080_v61, %v8886_v28  ;;  %v1309_v10 = vsel %vm15204_vm5, %v8900_v31, %v9069_v58  ;;  %v1321_v5 = vsel %vm15204_vm5, %v9069_v58, %v8872_v24  ;;  %v15408_v28 = vmov 1  }
 0x4f9   :  { %15401 = vst [vmem:[#allocation91_spill] sm:$0xff] %v9369_v22  ;;  %v1200_v54 = vpop.permute.xlu1 %1199  ;;  %v9402_v40 = vpop.permute.xlu0 %1761  ;;  %15406 = vst [vmem:[#allocation96_spill] sm:$0xff] %v9413_v34  ;;  %v9420_v61 = vmul.f32 %v9331_v36, %v1317_v55  ;;  %v1401_v31 = vsel %vm15207_vm6, %v9078_v18, %v8916_v35  ;;  %v1405_v24 = vsel %vm15207_vm6, %v8892_v29, %v9078_v18 }
 0x4fa   :  { %15405 = vst [vmem:[#allocation95_spill] sm:$0xff] %v9402_v40  ;;  %15407 = vst [vmem:[#allocation97_spill] sm:$0xff] %v9416_v56  ;;  %v9423_v40 = vmul.f32 %v9334_v17, %v1313_v52  ;;  %v9434_v58 = vmul.f32 %v9348_v6, %v1322_v16  ;;  %v9441_v52 = vrot.slane %v6863_v19, %v9014_v1 }
 0x4fb   :  { %7916 = vset.pattern.permute.xlu1 %v15408_v28  ;;  %v9437_v28 = vmul.f32 %v9351_v43, %v1310_v11  ;;  %v1232_v55 = vsel %vm1221_vm4, %v9158_v14, %v1200_v54  ;;  %v9447_v23 = vmul.f32 %v9348_v6, %v1321_v5  ;;  %v9450_v18 = vmul.f32 %v9351_v43, %v1309_v10 }
 0x4fc   :  { %15409 = vst [vmem:[#allocation98_spill] sm:$0xff] %v9441_v52  ;;  %v7367_v62 = vpack.c.bf16 %v9389_v12, %v9420_v61  ;;  %v9457_v19 = vmul.f32 %v9366_v3, %v1405_v24  ;;  %v9460_v1 = vmul.f32 %v9369_v22, %v1401_v31  ;;  %v1402_v10 = vsel %vm15207_vm6, %v9088_v47, %v8926_v39 }
 0x4fd   :  { %v1216_v11 = vpop.permute.xlu1 %1215  ;;  %v1202_v63 = vpop.permute.xlu0 %1201  ;;  %v1409_v12 = vsel %vm15207_vm6, %v9086_v13, %v8892_v29  ;;  %v1406_v61 = vsel %vm15207_vm6, %v8902_v32, %v9088_v47  ;;  %v1269_v31 = vmul.f32 %v9003_v60, %v1232_v55  ;;  %v7369_v16 = vpack.c.bf16 %v9434_v58, %v9447_v23 }
 0x4fe   :  { %v1233_v5 = vsel %vm1221_vm4, %v9168_v8, %v1202_v63  ;;  %v1229_v29 = vsel %vm1221_vm4, %v1202_v63, %v9184_v44  ;;  %v7439_v26 = vpack.c.bf16 %v9437_v28, %v9450_v18  ;;  %v9491_v47 = vmul.f32 %v9369_v22, %v1402_v10 }
 0x4ff   :  { %v1273_v24 = vmul.f32 %v9003_v60, %v1233_v5  ;;  %v1224_v55 = vsel %vm1221_vm4, %v9174_v46, %v1216_v11  ;;  %v1236_v23 = vsel %vm1221_vm4, %v1216_v11, %v9158_v14  ;;  %v9500_v13 = vmul.f32 %v9372_v7, %v1409_v12 }
 0x500   :  { %v9503_v63 = vmul.f32 %v9366_v3, %v1406_v61  ;;  %v1398_v28 = vsel %vm15207_vm6, %v8926_v39, %v9096_v21  ;;  %v1228_v18 = vsel %vm1221_vm4, %v1200_v54, %v9174_v46  ;;  %v1410_v14 = vsel %vm15207_vm6, %v9096_v21, %v8902_v32 }
 0x501   :  { %v1289_v58 = vpop.permute.xlu1 %1288  ;;  %v7363_v35 = vpack.c.bf16 %v1273_v24, %v1269_v31  ;;  %v1218_v10 = vpop.permute.xlu0 %1217  ;;  %v1274_v11 = vmul.f32 %v9049_v59, %v1229_v29  ;;  %v1268_v12 = vmul.f32 %v9025_v37, %v1236_v23  ;;  %v1271_v46 = vmul.f32 %v9028_v0, %v1224_v55 }
 0x502   :  { %v1225_v5 = vsel %vm1221_vm4, %v9184_v44, %v1218_v10  ;;  %v1237_v39 = vsel %vm1221_vm4, %v1218_v10, %v9168_v8  ;;  %v9528_v32 = vmul.f32 %v9383_v57, %v1397_v49  ;;  %v7449_v21 = vpack.c.bf16 %v9491_v47, %v9460_v1  ;;  %v15418_v1 = vld [vmem:[#allocation60_spill] sm:$0xff] }
 0x503   :  { %7364 = vmatprep.subr.bf16.mxu0 %v7363_v35  ;;  %v1272_v54 = vmul.f32 %v9025_v37, %v1237_v39  ;;  %v1275_v61 = vmul.f32 %v9028_v0, %v1225_v5  ;;  %v1270_v44 = vmul.f32 %v9049_v59, %v1228_v18  ;;  %v1319_v8 = vsel %vm15204_vm5, %v9166_v20, %v1289_v58 }
 0x504   :  { %v9537_v24 = vmul.f32 %v9372_v7, %v1410_v14  ;;  %v7375_v49 = vpack.c.bf16 %v9503_v63, %v9457_v19  ;;  %v1493_v35 = vsel %vm1484_vm7, %v8908_v33, %v9094_v50  ;;  %v1443_v18 = vmul.f32 %v9383_v57, %v1398_v28 }
 0x505   :  { %v1305_v31 = vpop.permute.xlu1 %1304  ;;  %v7365_v29 = vpack.c.bf16 %v1272_v54, %v1268_v12  ;;  %v1291_v55 = vpop.permute.xlu0 %1290  ;;  %v7435_v23 = vpack.c.bf16 %v1275_v61, %v1271_v46  ;;  %v7437_v10 = vpack.c.bf16 %v1274_v11, %v1270_v44  ;;  %v1357_v14 = vmul.f32 %v9331_v36, %v1319_v8 }
 0x506   :  { %v1320_v5 = vsel %vm15204_vm5, %v9176_v27, %v1291_v55  ;;  %v1316_v39 = vsel %vm15204_vm5, %v1291_v55, %v9200_v42  ;;  %v9558_v63 = vsel %vm1484_vm7, %v9094_v50, %v8924_v38  ;;  %v1311_v28 = vsel %vm15204_vm5, %v9190_v25, %v1305_v31 }
 0x507   :  { %v1361_v19 = vmul.f32 %v9331_v36, %v1320_v5  ;;  %7366 = vmatpush1.bf16.msra.mxu0 %v7365_v29  ;;  %7436 = vmatprep.subr.bf16.mxu1 %v7435_v23  ;;  %v1323_v11 = vsel %vm15204_vm5, %v1305_v31, %v9166_v20  ;;  %v9567_v46 = vmul.f32 %v9386_v53, %v1493_v35 }
 0x508   :  { %7368 = vmatprep.subr.bf16.mxu0 %v7367_v62  ;;  %7438 = vmatpush1.bf16.msra.mxu1 %v7437_v10  ;;  %v7377_v54 = vpack.c.bf16 %v9537_v24, %v9500_v13  ;;  %v1315_v50 = vsel %vm15204_vm5, %v1289_v58, %v9190_v25  ;;  %v1362_v8 = vmul.f32 %v9334_v17, %v1316_v39  ;;  %v15414_v39 = vld [vmem:[#allocation58_spill] sm:$0xff] }
 0x509   :  { %v1377_v12 = vpop.permute.xlu1 %1376  ;;  %7440 = vmatprep.subr.bf16.mxu1 %v7439_v26  ;;  %v1307_v61 = vpop.permute.xlu0 %1306  ;;  %v7371_v44 = vpack.c.bf16 %v1361_v19, %v1357_v14  ;;  %v7447_v31 = vpack.c.bf16 %v1443_v18, %v9528_v32  ;;  %v1356_v13 = vmul.f32 %v9348_v6, %v1323_v11  ;;  %v1359_v24 = vmul.f32 %v9351_v43, %v1311_v28  ;;  %v15411_v18 = vld [vmem:[#allocation16_spill] sm:$0xff]  ;;  %v15415_v11 = vld [vmem:[#allocation55_spill] sm:$0xff] }
 0x50a   :  { %v1312_v20 = vsel %vm15204_vm5, %v9200_v42, %v1307_v61  ;;  %v1324_v62 = vsel %vm15204_vm5, %v1307_v61, %v9176_v27  ;;  %v1485_v42 = vsel %vm1484_vm7, %v8924_v38, %v9102_v2  ;;  %v1358_v58 = vmul.f32 %v9334_v17, %v1315_v50  ;;  %v15482_v17 = vld [vmem:[#allocation48_spill] sm:$0xff] }
 0x50b   :  { %v1360_v25 = vmul.f32 %v9348_v6, %v1324_v62  ;;  %v1363_v26 = vmul.f32 %v9351_v43, %v1312_v20  ;;  %7370 = vmatpush1.bf16.msra.mxu0 %v7369_v16  ;;  %v1407_v27 = vsel %vm15207_vm6, %v9182_v15, %v1377_v12  ;;  %v15410_v32 = vpack.c.bf16 %v9392_v30, %v9423_v40  ;;  %v15412_v30 = vld [vmem:[#allocation41_spill] sm:$0xff]  ;;  %v15483_v43 = vld [vmem:[#allocation31_spill] sm:$0xff] }
 0x50c   :  { %7372 = vmatprep.subr.bf16.mxu0 %v7371_v44  ;;  %v1497_v16 = vsel %vm1484_vm7, %v9102_v2, %v8908_v33  ;;  %v1490_v38 = vsel %vm1484_vm7, %v9104_v4, %v8934_v41  ;;  %v1494_v40 = vsel %vm1484_vm7, %v15411_v18, %v9104_v4  ;;  %v1486_v10 = vsel %vm1484_vm7, %v8934_v41, %v15412_v30  ;;  %v15413_v33 = vld [vmem:[#allocation53_spill] sm:$0xff] }
 0x50d   :  { %7442 = vmatpush1.bf16.msra.mxu1 %v15410_v32  ;;  %v1393_v29 = vpop.permute.xlu1 %1392  ;;  %v7373_v55 = vpack.c.bf16 %v1360_v25, %v1356_v13  ;;  %v1379_v23 = vpop.permute.xlu0 %1378  ;;  %v7443_v35 = vpack.c.bf16 %v1363_v26, %v1359_v24  ;;  %v7445_v5 = vpack.c.bf16 %v1362_v8, %v1358_v58  ;;  %v1445_v14 = vmul.f32 %v9366_v3, %v1407_v27 }
 0x50e   :  { %v1408_v2 = vsel %vm15207_vm6, %v15413_v33, %v1379_v23  ;;  %v1404_v19 = vsel %vm15207_vm6, %v1379_v23, %v15414_v39  ;;  %v1524_v4 = vmul.f32 %v9416_v56, %v1497_v16  ;;  %v1399_v41 = vsel %vm15207_vm6, %v15415_v11, %v1393_v29 }
 0x50f   :  { %v1449_v28 = vmul.f32 %v9366_v3, %v1408_v2  ;;  %7374 = vmatpush1.bf16.msra.mxu0 %v7373_v55  ;;  %7444 = vmatprep.subr.bf16.mxu1 %v7443_v35  ;;  %v1411_v50 = vsel %vm15207_vm6, %v1393_v29, %v9182_v15  ;;  %v1529_v44 = vmul.f32 %v9386_v53, %v1494_v40  ;;  %v15416_v29 = vld [vmem:[#allocation54_spill] sm:$0xff] }
 0x510   :  { %7376 = vmatprep.subr.bf16.mxu0 %v7375_v49  ;;  %v1498_v8 = vsel %vm1484_vm7, %v15412_v30, %v15411_v18  ;;  %v1403_v20 = vsel %vm15207_vm6, %v1377_v12, %v15415_v11  ;;  %v1531_v24 = vmul.f32 %v9441_v52, %v1486_v10  ;;  %v1450_v15 = vmul.f32 %v9369_v22, %v1404_v19  ;;  %v15417_v30 = vld [vmem:[#allocation56_spill] sm:$0xff] }
 0x511   :  { %7446 = vmatpush1.bf16.msra.mxu1 %v7445_v5  ;;  %v1465_v61 = vpop.permute.xlu1 %1464  ;;  %v1395_v62 = vpop.permute.xlu0 %1394  ;;  %v7379_v13 = vpack.c.bf16 %v1449_v28, %v1445_v14  ;;  %v1444_v26 = vmul.f32 %v9372_v7, %v1411_v50  ;;  %v1447_v58 = vmul.f32 %v9383_v57, %v1399_v41  ;;  %v1527_v27 = vmul.f32 %v9441_v52, %v1485_v42  ;;  %v15419_v14 = vld [vmem:[#allocation57_spill] sm:$0xff] }
 0x512   :  { %7448 = vmatprep.subr.bf16.mxu1 %v7447_v31  ;;  %v1400_v49 = vsel %vm15207_vm6, %v15414_v39, %v1395_v62  ;;  %v1412_v25 = vsel %vm15207_vm6, %v1395_v62, %v15413_v33  ;;  %v1446_v32 = vmul.f32 %v9369_v22, %v1403_v20  ;;  %v1495_v16 = vsel %vm1484_vm7, %v15416_v29, %v1465_v61  ;;  %v15420_v50 = vld [vmem:[#allocation69_spill] sm:$0xff] }
 0x513   :  { %v1448_v12 = vmul.f32 %v9372_v7, %v1412_v25  ;;  %v1451_v31 = vmul.f32 %v9383_v57, %v1400_v49  ;;  %7378 = vmatpush1.bf16.msra.mxu0 %v7377_v54  ;;  %v1530_v23 = vmul.f32 %v9413_v34, %v1490_v38  ;;  %v1528_v35 = vmul.f32 %v9416_v56, %v1498_v8  ;;  %v6865_v25 = vld [vmem:[%s14782_s16 + $0x5] ss:$8 sm:$0xf] }
 0x514   :  { %7380 = vmatprep.subr.bf16.mxu0 %v7379_v13  ;;  %v7453_v42 = vpack.c.bf16 %v1450_v15, %v1446_v32  ;;  %v7383_v5 = vpack.c.bf16 %v1529_v44, %v9567_v46  ;;  %v7455_v33 = vpack.c.bf16 %v1531_v24, %v1527_v27  ;;  %v1533_v2 = vmul.f32 %v9386_v53, %v1495_v16  ;;  %v15421_v44 = vld [vmem:[#allocation35_spill] sm:$0xff]  ;;  %v15423_v27 = vld [vmem:[#allocation29_spill] sm:$0xff]  ;;  %v15476_v57 = vld [vmem:[#allocation28_spill] sm:$0xff] }
 0x515   :  { %7450 = vmatpush1.bf16.msra.mxu1 %v7449_v21  ;;  %v1481_v55 = vpop.permute.xlu1 %1480  ;;  %v7381_v18 = vpack.c.bf16 %v1448_v12, %v1444_v26  ;;  %v1467_v54 = vpop.permute.xlu0 %1466  ;;  %v7451_v40 = vpack.c.bf16 %v1451_v31, %v1447_v58  ;;  %v1526_v38 = vmul.f32 %v9413_v34, %v9558_v63  ;;  %v7385_v28 = vpack.c.bf16 %v1528_v35, %v1524_v4  ;;  %v15422_v12 = vld [vmem:[#allocation26_spill] sm:$0xff]  ;;  %v15477_v7 = vld [vmem:[#allocation49_spill] sm:$0xff] }
 0x516   :  { %v1496_v10 = vsel %vm1484_vm7, %v15417_v30, %v1467_v54  ;;  %v1492_v47 = vsel %vm1484_vm7, %v1467_v54, %v15418_v1  ;;  %v1487_v39 = vsel %vm1484_vm7, %v15419_v14, %v1481_v55  ;;  %v1499_v46 = vsel %vm1484_vm7, %v1481_v55, %v15416_v29  ;;  %v9713_v35 = vld [vmem:[%s14782_s16 + $0x6] ss:$8 sm:$0xf] }
 0x517   :  { %v1537_v21 = vmul.f32 %v9386_v53, %v1496_v10  ;;  %7382 = vmatpush1.bf16.msra.mxu0 %v7381_v18  ;;  %7452 = vmatprep.subr.bf16.mxu1 %v7451_v40  ;;  %v1491_v11 = vsel %vm1484_vm7, %v1465_v61, %v15419_v14  ;;  %v9682_v8 = vmul.f32 %v15421_v44, %v15420_v50  ;;  %v15424_v18 = vld [vmem:[#allocation19_spill] sm:$0xff]  ;;  %v15433_v14 = vld [vmem:[#allocation17_spill] sm:$0xff] }
 0x518   :  { %7384 = vmatprep.subr.bf16.mxu0 %v7383_v5  ;;  %v7457_v20 = vpack.c.bf16 %v1530_v23, %v1526_v38  ;;  %v1538_v62 = vmul.f32 %v9413_v34, %v1492_v47  ;;  %v1532_v61 = vmul.f32 %v9416_v56, %v1499_v46  ;;  %v1535_v24 = vmul.f32 %v9441_v52, %v1487_v39  ;;  %v15425_v54 = vld [vmem:[#allocation43_spill] sm:$0xff]  ;;  %v15427_v5 = vld [vmem:[#allocation81_spill] sm:$0xff]  ;;  %v15434_v39 = vld [vmem:[#allocation40_spill] sm:$0xff] }
 0x519   :  { %7454 = vmatpush1.bf16.msra.mxu1 %v7453_v42  ;;  %v9675_v19 = vpop.permute.xlu1 %1851  ;;  %v1483_v41 = vpop.permute.xlu0 %1482  ;;  %v7387_v63 = vpack.c.bf16 %v1537_v21, %v1533_v2  ;;  %v1534_v26 = vmul.f32 %v9413_v34, %v1491_v11  ;;  %v1572_v31 = vmul.f32 %v15422_v12, %v9243_v45  ;;  %v1574_v32 = vmul.f32 %v15423_v27, %v15420_v50  ;;  %v9731_v21 = vld [vmem:[%s14782_s16 + $0x7] ss:$8 sm:$0xf] }
 0x51a   :  { %7456 = vmatprep.subr.bf16.mxu1 %v7455_v33  ;;  %v1488_v13 = vsel %vm1484_vm7, %v15418_v1, %v1483_v41  ;;  %v1500_v4 = vsel %vm1484_vm7, %v1483_v41, %v15417_v30  ;;  %v7397_v23 = vpack.c.bf16 %v9319_v51, %v9315_v9  ;;  %v1617_v40 = vsel %vm15228_vm8, %v15425_v54, %v15424_v18  ;;  %v15426_v30 = vld [vmem:[#allocation87_spill] sm:$0xff]  ;;  %v15428_v33 = vld [vmem:[#allocation82_spill] sm:$0xff]  ;;  %v15429_v1 = vld [vmem:[#allocation33_spill] sm:$0xff] }
 0x51b   :  { %v1536_v15 = vmul.f32 %v9416_v56, %v1500_v4  ;;  %v1539_v49 = vmul.f32 %v9441_v52, %v1488_v13  ;;  %7386 = vmatpush1.bf16.msra.mxu0 %v7385_v28  ;;  %v7461_v42 = vpack.c.bf16 %v1538_v62, %v1534_v26  ;;  %v7395_v10 = vpack.c.bf16 %v15426_v30, %v1572_v31  ;;  %v15431_v9 = vld [vmem:[#allocation30_spill] sm:$0xff]  ;;  %v15436_v41 = vld [vmem:[#allocation21_spill] sm:$0xff]  ;;  %v15444_v26 = vld [vmem:[#allocation72_spill] sm:$0xff] }
 0x51c   :  { %7388 = vmatprep.subr.bf16.mxu0 %v7387_v63  ;;  %v7469_v2 = vpack.c.bf16 %v15428_v33, %v15427_v5  ;;  %v9723_v47 = vrot.slane %v6865_v25, %v15429_v1  ;;  %v9726_v51 = vrot.slane %v6865_v25, %v15431_v9  ;;  %v7467_v38 = vpack.c.bf16 %v9682_v8, %v1574_v32  ;;  %v15435_v28 = vld [vmem:[#allocation18_spill] sm:$0xff]  ;;  %v15437_v63 = vld [vmem:[#allocation47_spill] sm:$0xff]  ;;  %v15439_v62 = vld [vmem:[#allocation77_spill] sm:$0xff] }
 0x51d   :  { %7458 = vmatpush1.bf16.msra.mxu1 %v7457_v20  ;;  %v9699_v58 = vpop.permute.xlu1 %1591  ;;  %v7389_v29 = vpack.c.bf16 %v1536_v15, %v1532_v61  ;;  %v9706_v16 = vpop.permute.xlu0 %1853  ;;  %v7459_v55 = vpack.c.bf16 %v1539_v49, %v1535_v24  ;;  %v1616_v46 = vsel %vm15228_vm8, %v15434_v39, %v15433_v14  ;;  %v1620_v11 = vsel %vm15228_vm8, %v15435_v28, %v15434_v39  ;;  %v15438_v20 = vld [vmem:[#allocation71_spill] sm:$0xff]  ;;  %v15442_v15 = vld [vmem:[#allocation34_spill] sm:$0xff]  ;;  %v15452_v39 = vld [vmem:[#allocation73_spill] sm:$0xff] }
 0x51e   :  { %15430 = vst [vmem:[#allocation16_spill] sm:$0xff] %v9723_v47  ;;  %15432 = vst [vmem:[#allocation41_spill] sm:$0xff] %v9726_v51  ;;  %v1625_v44 = vsel %vm15228_vm8, %v15437_v63, %v15436_v41  ;;  %v15440_v8 = vpack.c.bf16 %v15438_v20, %v15439_v62  ;;  %v9754_v4 = vrot.slane %v9713_v35, %v15429_v1  ;;  %v15445_v12 = vld [vmem:[#allocation78_spill] sm:$0xff]  ;;  %v15467_v53 = vld [vmem:[#allocation61_spill] sm:$0xff] }
 0x51f   :  { %7390 = vmatpush1.bf16.msra.mxu0 %v7389_v29  ;;  %7460 = vmatprep.subr.bf16.mxu1 %v7459_v55  ;;  %v1621_v61 = vsel %vm15228_vm8, %v15436_v41, %v15425_v54  ;;  %v1656_v24 = vmul.f32 %v9726_v51, %v1617_v40  ;;  %v9762_v49 = vrot.slane %v6865_v25, %v15442_v15  ;;  %v15448_v29 = vld [vmem:[#allocation38_spill] sm:$0xff]  ;;  %v15450_v54 = vld [vmem:[#allocation44_spill] sm:$0xff]  ;;  %v15453_v41 = vld [vmem:[#allocation79_spill] sm:$0xff] }
 0x520   :  { %7392 = vmatprep.subr.bf16.mxu0 %v15440_v8  ;;  %15441 = vst [vmem:[#allocation53_spill] sm:$0xff] %v9754_v4  ;;  %v15446_v31 = vpack.c.bf16 %v15444_v26, %v15445_v12  ;;  %v9771_v32 = vrot.slane %v9713_v35, %v15431_v9  ;;  %v9774_v55 = vrot.slane %v6865_v25, %v15448_v29  ;;  %v15456_v62 = vld [vmem:[#allocation42_spill] sm:$0xff] }
 0x521   :  { %7462 = vmatpush1.bf16.msra.mxu1 %v7461_v42  ;;  %v9750_v13 = vpop.permute.xlu1 %1679  ;;  %15443 = vst [vmem:[#allocation58_spill] sm:$0xff] %v9762_v49  ;;  %v9767_v27 = vpop.permute.xlu0 %1861  ;;  %v1624_v40 = vsel %vm15228_vm8, %v15450_v54, %v15435_v28  ;;  %v9782_v42 = vrot.slane %v9731_v21, %v15429_v1  ;;  %v1651_v30 = vmul.f32 %v9723_v47, %v1620_v11  ;;  %v15455_v28 = vld [vmem:[#allocation20_spill] sm:$0xff]  ;;  %v15464_v52 = vld [vmem:[#allocation62_spill] sm:$0xff] }
 0x522   :  { %7464 = vmatprep.subr.bf16.mxu1 %v15446_v31  ;;  %15447 = vst [vmem:[#allocation55_spill] sm:$0xff] %v9771_v32  ;;  %15449 = vst [vmem:[#allocation54_spill] sm:$0xff] %v9774_v55  ;;  %v1652_v5 = vmul.f32 %v9726_v51, %v1616_v46  ;;  %v1613_v33 = vsel %vm15228_vm8, %v15424_v18, %v15437_v63  ;;  %v1658_v25 = vmul.f32 %v9762_v49, %v1625_v44  ;;  %v15457_v46 = vld [vmem:[#allocation59_spill] sm:$0xff]  ;;  %v15458_v63 = vld [vmem:[#allocation74_spill] sm:$0xff] }
 0x523   :  { %15451 = vst [vmem:[#allocation56_spill] sm:$0xff] %v9782_v42  ;;  %v15454_v20 = vpack.c.bf16 %v15452_v39, %v15453_v41  ;;  %v1704_v8 = vsel %vm15226_vm9, %v15456_v62, %v15455_v28  ;;  %v1655_v11 = vmul.f32 %v9723_v47, %v1621_v61  ;;  %v1618_v18 = vsel %vm15228_vm8, %v9699_v58, %v15457_v46  ;;  %v15459_v44 = vld [vmem:[#allocation80_spill] sm:$0xff]  ;;  %v15461_v39 = vld [vmem:[#allocation23_spill] sm:$0xff]  ;;  %v15462_v41 = vld [vmem:[#allocation45_spill] sm:$0xff] }
 0x524   :  { %v15460_v26 = vpack.c.bf16 %v15458_v63, %v15459_v44  ;;  %v1612_v31 = vsel %vm15228_vm8, %v15433_v14, %v15450_v54  ;;  %v1654_v61 = vmul.f32 %v9762_v49, %v1624_v40  ;;  %v7399_v50 = vpack.c.bf16 %v1656_v24, %v1652_v5  ;;  %v15463_v63 = vld [vmem:[#allocation25_spill] sm:$0xff]  ;;  %v15465_v54 = vld [vmem:[#allocation64_spill] sm:$0xff]  ;;  %v15466_v56 = vld [vmem:[#allocation22_spill] sm:$0xff] }
 0x525   :  { %7394 = vmatpush1.bf16.msra.mxu0 %v15454_v20  ;;  %v9807_v12 = vpop.permute.xlu1 %1607  ;;  %v1705_v20 = vsel %vm15226_vm9, %v15462_v41, %v15461_v39  ;;  %v1709_v44 = vsel %vm15226_vm9, %v15463_v63, %v15462_v41  ;;  %v1660_v24 = vmul.f32 %v9726_v51, %v1618_v18  ;;  %v1653_v34 = vmul.f32 %v9774_v55, %v1612_v31 }
 0x526   :  { %7396 = vmatprep.subr.bf16.mxu0 %v7395_v10  ;;  %7466 = vmatpush1.bf16.msra.mxu1 %v15460_v26  ;;  %v1594_v10 = vpop.permute.xlu0 %1593  ;;  %v1657_v26 = vmul.f32 %v9774_v55, %v1613_v33  ;;  %v7471_v41 = vpack.c.bf16 %v1658_v25, %v1654_v61  ;;  %v7401_v33 = vpack.c.bf16 %v1655_v11, %v1651_v30 }
 0x527   :  { %7468 = vmatprep.subr.bf16.mxu1 %v7467_v38  ;;  %v1619_v14 = vsel %vm15228_vm8, %v1594_v10, %v15464_v52  ;;  %v1623_v40 = vsel %vm15228_vm8, %v15465_v54, %v1594_v10  ;;  %v1708_v38 = vsel %vm15226_vm9, %v15466_v56, %v15456_v62  ;;  %v1622_v22 = vsel %vm15228_vm8, %v15467_v53, %v9699_v58  ;;  %v15469_v58 = vld [vmem:[#allocation46_spill] sm:$0xff] }
 0x528   :  { %v1664_v5 = vmul.f32 %v9726_v51, %v1619_v14  ;;  %v1743_v62 = vmul.f32 %v9754_v4, %v1709_v44  ;;  %v1744_v18 = vmul.f32 %v9771_v32, %v1705_v20  ;;  %v1663_v30 = vmul.f32 %v9723_v47, %v1623_v40  ;;  %v15472_v40 = vld [vmem:[#allocation24_spill] sm:$0xff] }
 0x529   :  { %7398 = vmatpush1.bf16.msra.mxu0 %v7397_v23  ;;  %v9840_v10 = vpop.permute.xlu1 %1767  ;;  %v9847_v23 = vld [vmem:[%s14782_s16 + $0x20] ss:$8 sm:$0xf]  ;;  %v7473_v61 = vpack.c.bf16 %v1657_v26, %v1653_v34  ;;  %v9862_v20 = vrot.slane %v9713_v35, %v15448_v29  ;;  %v1739_v44 = vmul.f32 %v9754_v4, %v1708_v38  ;;  %v1740_v14 = vmul.f32 %v9771_v32, %v1704_v8 }
 0x52a   :  { %7400 = vmatprep.subr.bf16.mxu0 %v7399_v50  ;;  %7470 = vmatpush1.bf16.msra.mxu1 %v7469_v2  ;;  %v9850_v25 = vpop.permute.xlu0 %1845  ;;  %v7403_v11 = vpack.c.bf16 %v1664_v5, %v1660_v24  ;;  %v9854_v50 = vrot.slane %v9731_v21, %v15431_v9  ;;  %v15470_v2 = vld [vmem:[#allocation27_spill] sm:$0xff]  ;;  %v1792_v24 = vsel %vm15120_vm10, %v15469_v58, %v15472_v40 }
 0x52b   :  { %7472 = vmatprep.subr.bf16.mxu1 %v7471_v41  ;;  %v1796_v31 = vsel %vm15120_vm10, %v15470_v2, %v15469_v58  ;;  %15471 = vst [vmem:[#allocation57_spill] sm:$0xff] %v9862_v20  ;;  %v1659_v5 = vmul.f32 %v9723_v47, %v1622_v22  ;;  %v9873_v41 = vrot.slane %v9713_v35, %v15442_v15  ;;  %v15474_v34 = vld [vmem:[#allocation63_spill] sm:$0xff] }
 0x52c   :  { %15468 = vst [vmem:[#allocation60_spill] sm:$0xff] %v9854_v50  ;;  %v1706_v26 = vsel %vm15226_vm9, %v9750_v13, %v15474_v34  ;;  %v9881_v8 = vrot.slane %v9847_v23, %v15431_v9  ;;  %v7409_v58 = vpack.c.bf16 %v1743_v62, %v1739_v44  ;;  %v9886_v22 = vmul.f32 %v9782_v42, %v1796_v31  ;;  %v15479_v62 = vld [vmem:[#allocation76_spill] sm:$0xff]  ;;  %v15481_v44 = vld [vmem:[#allocation66_spill] sm:$0xff] }
 0x52d   :  { %7402 = vmatpush1.bf16.msra.mxu0 %v7401_v33  ;;  %15473 = vst [vmem:[#allocation35_spill] sm:$0xff] %v9873_v41  ;;  %v9883_v38 = vpop.permute.xlu1 %1695  ;;  %v7405_v33 = vpack.c.bf16 %v1663_v30, %v1659_v5  ;;  %v7407_v47 = vpack.c.bf16 %v1744_v18, %v1740_v14  ;;  %v1828_v51 = vmul.f32 %v9854_v50, %v1792_v24  ;;  %v15480_v30 = vld [vmem:[#allocation51_spill] sm:$0xff] }
 0x52e   :  { %15475 = vst [vmem:[#allocation26_spill] sm:$0xff] %v9881_v8  ;;  %7404 = vmatprep.subr.bf16.mxu0 %v7403_v11  ;;  %7474 = vmatpush1.bf16.msra.mxu1 %v7473_v61  ;;  %v1682_v35 = vpop.permute.xlu0 %1681  ;;  %v1793_v3 = vsel %vm15120_vm10, %v15477_v7, %v15476_v57  ;;  %v15478_v11 = vld [vmem:[#allocation67_spill] sm:$0xff]  ;;  %v1713_v18 = vsel %vm15226_vm9, %v15480_v30, %v15463_v63 }
 0x52f   :  { %v1707_v61 = vsel %vm15226_vm9, %v1682_v35, %v15478_v11  ;;  %v1711_v31 = vsel %vm15226_vm9, %v15479_v62, %v1682_v35  ;;  %v1710_v14 = vsel %vm15226_vm9, %v15481_v44, %v9750_v13  ;;  %v1748_v24 = vmul.f32 %v9771_v32, %v1706_v26 }
 0x530   :  { %v1752_v5 = vmul.f32 %v9771_v32, %v1707_v61  ;;  %v1712_v35 = vsel %vm15226_vm9, %v15482_v17, %v15466_v56  ;;  %v1797_v63 = vsel %vm15120_vm10, %v15483_v43, %v15477_v7  ;;  %v1614_v13 = vsel %vm15228_vm8, %v15457_v46, %v9807_v12 }
 0x531   :  { %7406 = vmatpush1.bf16.msra.mxu0 %v7405_v33  ;;  %v1626_v26 = vsel %vm15228_vm8, %v9807_v12, %v15467_v53  ;;  %v9926_v33 = vpop.permute.xlu1 %1859  ;;  %v1832_v56 = vmul.f32 %v9854_v50, %v1793_v3  ;;  %v1701_v7 = vsel %vm15226_vm9, %v15461_v39, %v15480_v30  ;;  %v1751_v61 = vmul.f32 %v9754_v4, %v1711_v31 }
 0x532   :  { %7408 = vmatprep.subr.bf16.mxu0 %v7407_v47  ;;  %v1610_v32 = vpop.permute.xlu0 %1609  ;;  %v7411_v6 = vpack.c.bf16 %v1752_v5, %v1748_v24  ;;  %v1746_v46 = vmul.f32 %v9873_v41, %v1713_v18  ;;  %v1747_v36 = vmul.f32 %v9754_v4, %v1710_v14  ;;  %v1661_v47 = vmul.f32 %v9774_v55, %v1614_v13  ;;  %v15484_v14 = vld [vmem:[#allocation75_spill] sm:$0xff] }
 0x533   :  { %v1615_v53 = vsel %vm15228_vm8, %v15464_v52, %v1610_v32  ;;  %v1627_v3 = vsel %vm15228_vm8, %v1610_v32, %v15465_v54  ;;  %v1662_v12 = vmul.f32 %v9762_v49, %v1626_v26  ;;  %v1700_v30 = vsel %vm15226_vm9, %v15455_v28, %v15482_v17  ;;  %v15485_v17 = vld [vmem:[#allocation86_spill] sm:$0xff] }
 0x534   :  { %v1665_v39 = vmul.f32 %v9774_v55, %v1615_v53  ;;  %v1666_v31 = vmul.f32 %v9762_v49, %v1627_v3  ;;  %v1742_v52 = vmul.f32 %v9873_v41, %v1712_v35  ;;  %v1831_v18 = vmul.f32 %v9782_v42, %v1797_v63  ;;  %v15486_v35 = vld [vmem:[#allocation95_spill] sm:$0xff] }
 0x535   :  { %7410 = vmatpush1.bf16.msra.mxu0 %v7409_v58  ;;  %v1794_v32 = vsel %vm15120_vm10, %v9840_v10, %v15484_v14  ;;  %v9956_v54 = vpop.permute.xlu1 %1843  ;;  %v7413_v24 = vpack.c.bf16 %v1751_v61, %v1747_v36  ;;  %v7415_v26 = vpack.c.bf16 %v1832_v56, %v1828_v51  ;;  %v1745_v53 = vmul.f32 %v9862_v20, %v1701_v7  ;;  %v15487_v7 = vld [vmem:[#allocation85_spill] sm:$0xff] }
 0x536   :  { %7412 = vmatprep.subr.bf16.mxu0 %v7411_v6  ;;  %v7477_v5 = vpack.c.bf16 %v1665_v39, %v1661_v47  ;;  %v1770_v58 = vpop.permute.xlu0 %1769  ;;  %v7475_v13 = vpack.c.bf16 %v1666_v31, %v1662_v12  ;;  %v7479_v3 = vpack.c.bf16 %v1746_v46, %v1742_v52  ;;  %v1836_v6 = vmul.f32 %v9854_v50, %v1794_v32  ;;  %v15489_v32 = vld [vmem:[#allocation52_spill] sm:$0xff] }
 0x537   :  { %v1795_v28 = vsel %vm15120_vm10, %v1770_v58, %v15485_v17  ;;  %v1799_v63 = vsel %vm15120_vm10, %v15486_v35, %v1770_v58  ;;  %v1880_v36 = vsel %vm15113_vm11, %v9675_v19, %v9926_v33  ;;  %v1741_v56 = vmul.f32 %v9862_v20, %v1700_v30  ;;  %v15491_v58 = vld [vmem:[#allocation50_spill] sm:$0xff] }
 0x538   :  { %v1840_v51 = vmul.f32 %v9854_v50, %v1795_v28  ;;  %7476 = vmatprep.subr.bf16.mxu1 %v7475_v13  ;;  %v1798_v61 = vsel %vm15120_vm10, %v15487_v7, %v9840_v10  ;;  %v9978_v46 = vrot.slane %v9847_v23, %v15429_v1  ;;  %v7417_v12 = vpack.c.bf16 %v1831_v18, %v9886_v22 }
 0x539   :  { %7414 = vmatpush1.bf16.msra.mxu0 %v7413_v24  ;;  %7478 = vmatpush1.bf16.msra.mxu1 %v7477_v5  ;;  %v9980_v47 = vpop.permute.xlu1 %1783  ;;  %v1881_v39 = vsel %vm15113_vm11, %v9706_v16, %v9767_v27  ;;  %v1839_v31 = vmul.f32 %v9782_v42, %v1799_v63  ;;  %v7481_v52 = vpack.c.bf16 %v1745_v53, %v1741_v56 }
 0x53a   :  { %15488 = vst [vmem:[#allocation29_spill] sm:$0xff] %v9978_v46  ;;  %7416 = vmatprep.subr.bf16.mxu0 %v7415_v26  ;;  %7480 = vmatprep.subr.bf16.mxu1 %v7479_v3  ;;  %v9988_v30 = vpop.permute.xlu0 %1865  ;;  %v7419_v10 = vpack.c.bf16 %v1840_v51, %v1836_v6  ;;  %v1801_v24 = vsel %vm15120_vm10, %v15489_v32, %v15483_v43 }
 0x53b   :  { %v1916_v5 = vmul.f32 %v9881_v8, %v1880_v36  ;;  %v1884_v22 = vsel %vm15113_vm11, %v9956_v54, %v9675_v19  ;;  %v10001_v18 = vrot.slane %v9731_v21, %v15442_v15  ;;  %v1800_v13 = vsel %vm15120_vm10, %v15491_v58, %v15470_v2 }
 0x53c   :  { %v1835_v26 = vmul.f32 %v9782_v42, %v1798_v61  ;;  %v1885_v43 = vsel %vm15113_vm11, %v9850_v25, %v9706_v16  ;;  %v1920_v53 = vmul.f32 %v9881_v8, %v1881_v39  ;;  %v1702_v19 = vsel %vm15226_vm9, %v15474_v34, %v9883_v38  ;;  %v10038_v39 = vld [vmem:[#allocation10] sm:$0xff] }
 0x53d   :  { %15490 = vst [vmem:[#allocation19_spill] sm:$0xff] %v10001_v18  ;;  %7418 = vmatpush1.bf16.msra.mxu0 %v7417_v12  ;;  %v1714_v2 = vsel %vm15226_vm9, %v9883_v38, %v15481_v44  ;;  %7482 = vmatpush1.bf16.msra.mxu1 %v7481_v52  ;;  %v1856_v28 = vpop.permute.xlu1 %1855  ;;  %v1789_v16 = vsel %vm15120_vm10, %v15476_v57, %v15489_v32 }
 0x53e   :  { %7420 = vmatprep.subr.bf16.mxu0 %v7419_v10  ;;  %v1834_v63 = vmul.f32 %v10001_v18, %v1801_v24  ;;  %v1915_v3 = vmul.f32 %v9978_v46, %v1884_v22  ;;  %v7421_v6 = vpack.c.bf16 %v1839_v31, %v1835_v26  ;;  %v1698_v36 = vpop.permute.xlu0 %1697  ;;  %v1919_v34 = vmul.f32 %v9978_v46, %v1885_v43  ;;  %v10051_v22 = vld [vmem:[#allocation10 + $0x20] sm:$0xff] }
 0x53f   :  { %v1703_v38 = vsel %vm15226_vm9, %v15478_v11, %v1698_v36  ;;  %v1715_v44 = vsel %vm15226_vm9, %v1698_v36, %v15479_v62  ;;  %v7423_v51 = vpack.c.bf16 %v1920_v53, %v1916_v5  ;;  %v1749_v56 = vmul.f32 %v9862_v20, %v1702_v19  ;;  %v10066_v53 = vld [vmem:[#allocation10 + $0x18] sm:$0xff] }
 0x540   :  { %v1750_v57 = vmul.f32 %v9873_v41, %v1714_v2  ;;  %v1753_v61 = vmul.f32 %v9862_v20, %v1703_v38  ;;  %v1754_v12 = vmul.f32 %v9873_v41, %v1715_v44  ;;  %v10042_v31 = vrot.slane %v9731_v21, %v15448_v29  ;;  %v10073_v2 = vld [vmem:[#allocation10 + $0x38] sm:$0xff]  ;;  %v1937_v44 = vld [vmem:[#allocation10 + $0x30] sm:$0xff] }
 0x541   :  { %7422 = vmatpush1.bf16.msra.mxu0 %v7421_v6  ;;  %v1788_v11 = vsel %vm15120_vm10, %v15472_v40, %v15491_v58  ;;  %v10048_v62 = vpop.permute.xlu1 %1863  ;;  %v1830_v10 = vmul.f32 %v10001_v18, %v1800_v13  ;;  %v7425_v52 = vpack.c.bf16 %v1919_v34, %v1915_v3  ;;  %v1802_v21 = vsel %vm15120_vm10, %v9980_v47, %v15487_v7 }
 0x542   :  { %15492 = vst [vmem:[#allocation43_spill] sm:$0xff] %v10042_v31  ;;  %7424 = vmatprep.subr.bf16.mxu0 %v7423_v51  ;;  %v7485_v32 = vpack.c.bf16 %v1753_v61, %v1749_v56  ;;  %v1786_v24 = vpop.permute.xlu0 %1785  ;;  %v7483_v5 = vpack.c.bf16 %v1754_v12, %v1750_v57  ;;  %v1833_v26 = vmul.f32 %v10042_v31, %v1789_v16  ;;  %v1941_v57 = vld [vmem:[#allocation10 + $0x50] sm:$0xff] }
 0x543   :  { %v1803_v40 = vsel %vm15120_vm10, %v1786_v24, %v15486_v35  ;;  %v1791_v58 = vsel %vm15120_vm10, %v15485_v17, %v1786_v24  ;;  %v7487_v43 = vpack.c.bf16 %v1834_v63, %v1830_v10  ;;  %v1829_v19 = vmul.f32 %v10042_v31, %v1788_v11 }
 0x544   :  { %2036 = vmatmul.mubr.f32.vlgmr.msra.gmra.mrb[14].mxu0 %v10038_v39  ;;  %v1842_v13 = vmul.f32 %v10001_v18, %v1803_v40  ;;  %7484 = vmatprep.subr.bf16.mxu1 %v7483_v5  ;;  %v1882_v7 = vsel %vm15113_vm11, %v1856_v28, %v10048_v62  ;;  %v1790_v17 = vsel %vm15120_vm10, %v15484_v14, %v9980_v47  ;;  %vm15157_vm10 = vcmp.lt.s32.totalorder %v8980_v48, 33 }
 0x545   :  { %7426 = vmatpush1.bf16.msra.mxu0 %v7425_v52  ;;  %7486 = vmatpush1.bf16.msra.mxu1 %v7485_v32  ;;  %v1848_v35 = vpop.permute.xlu1 %1847  ;;  %v1838_v16 = vmul.f32 %v10001_v18, %v1802_v21  ;;  %v7489_v3 = vpack.c.bf16 %v1833_v26, %v1829_v19  ;;  %v1841_v6 = vmul.f32 %v10042_v31, %v1791_v58  ;;  %v1940_v21 = vld [vmem:[#allocation10 + $0x48] sm:$0xff] }
 0x546   :  { %2041 = vmatprep.mubr.f32.mxu0 %v10051_v22  ;;  %7488 = vmatprep.subr.bf16.mxu1 %v7487_v43  ;;  %v1858_v63 = vpop.permute.xlu0 %1857  ;;  %v1924_v34 = vmul.f32 %v9881_v8, %v1882_v7  ;;  %v1886_v38 = vsel %vm15113_vm11, %v1848_v35, %v1856_v28  ;;  %v1837_v51 = vmul.f32 %v10042_v31, %v1790_v17 }
 0x547   :  { %v1883_v36 = vsel %vm15113_vm11, %v1858_v63, %v9988_v30  ;;  %v7491_v47 = vpack.c.bf16 %v1842_v13, %v1838_v16  ;;  %v10093_v61 = vrot.slane %v9847_v23, %v15448_v29  ;;  %v1923_v28 = vmul.f32 %v9978_v46, %v1886_v38  ;;  %v1933_v16 = vld [vmem:[#allocation10 + $0x10] sm:$0xff]  ;;  %v1936_v38 = vld [vmem:[#allocation10 + $0x28] sm:$0xff] }
 0x548   :  { %2042 = vmatmul.mubr.f32.gmra.mrb[16].mxu0 %v10066_v53  ;;  %v1928_v14 = vmul.f32 %v9881_v8, %v1883_v36  ;;  %v7493_v10 = vpack.c.bf16 %v1841_v6, %v1837_v51  ;;  %v10098_v52 = vrot.slane %v9847_v23, %v15442_v15 }
 0x549   :  { %2047 = vmatprep.mubr.f32.mxu0 %v10073_v2  ;;  %7490 = vmatpush1.bf16.msra.mxu1 %v7489_v3  ;;  %v1868_v56 = vpop.permute.xlu1 %1867  ;;  %15493 = vst [vmem:[#allocation87_spill] sm:$0xff] %v10093_v61 }
 0x54a   :  { %7492 = vmatprep.subr.bf16.mxu1 %v7491_v47  ;;  %v1850_v12 = vpop.permute.xlu0 %1849  ;;  %v7427_v11 = vpack.c.bf16 %v1928_v14, %v1924_v34  ;;  %15494 = vst [vmem:[#allocation81_spill] sm:$0xff] %v10098_v52  ;;  %v1876_v24 = vsel %vm15113_vm11, %v9926_v33, %v1868_v56  ;;  %v1888_v5 = vsel %vm15113_vm11, %v1868_v56, %v9956_v54  ;;  %v1939_v47 = vld [vmem:[#allocation10 + $0x40] sm:$0xff] }
 0x54b   :  { %v1887_v32 = vsel %vm15113_vm11, %v1850_v12, %v1858_v63  ;;  %v1917_v13 = vmul.f32 %v10093_v61, %v1876_v24  ;;  %v1918_v43 = vmul.f32 %v10098_v52, %v1888_v5  ;;  %v15495_v63 = vmov 0.0  }
 0x54c   :  { %2048 = vmatmul.mubr.f32.gmra.mrb[18].mxu0 %v1937_v44  ;;  %v1927_v26 = vmul.f32 %v9978_v46, %v1887_v32  ;;  %7428 = vmatprep.subr.bf16.mxu0 %v7427_v11 }
 0x54d   :  { %2053 = vmatprep.mubr.f32.mxu0 %v1941_v57  ;;  %7494 = vmatpush1.bf16.msra.mxu1 %v7493_v10  ;;  %v1872_v23 = vpop.permute.xlu1 %1871 }
 0x54e   :  { %v7429_v40 = vpack.c.bf16 %v1927_v26, %v1923_v28  ;;  %v1870_v58 = vpop.permute.xlu0 %1869  ;;  %v1878_v19 = vsel %vm15113_vm11, %v10048_v62, %v1872_v23 }
 0x54f   :  { %v1877_v33 = vsel %vm15113_vm11, %v9767_v27, %v1870_v58  ;;  %v1889_v54 = vsel %vm15113_vm11, %v1870_v58, %v9850_v25  ;;  %v1890_v27 = vsel %vm15113_vm11, %v1872_v23, %v1848_v35  ;;  %v1925_v62 = vmul.f32 %v10093_v61, %v1878_v19 }
 0x550   :  { %2054 = vmatmul.mubr.f32.gmra.mrb[20].mxu0 %v1940_v21  ;;  %v1921_v7 = vmul.f32 %v10093_v61, %v1877_v33  ;;  %v1922_v17 = vmul.f32 %v10098_v52, %v1889_v54  ;;  %2214 = vmatmul.mubr.f32.vlgmr.msra.gmra.mrb[16].mxu1 %v10038_v39  ;;  %v1926_v35 = vmul.f32 %v10098_v52, %v1890_v27 }
 0x551   :  { %7430 = vmatpush1.bf16.msra.mxu0 %v7429_v40  ;;  %2124 = vmatprep.mubr.f32.mxu0 %v15495_v63 }
 0x552   :  { %2219 = vmatprep.mubr.f32.mxu1 %v10051_v22  ;;  %v7497_v25 = vpack.c.bf16 %v1921_v7, %v1917_v13  ;;  %v1874_v3 = vpop.permute.xlu0 %1873  ;;  %v7495_v6 = vpack.c.bf16 %v1922_v17, %v1918_v43 }
 0x553   :  { %v1879_v36 = vsel %vm15113_vm11, %v9988_v30, %v1874_v3  ;;  %v1891_v39 = vsel %vm15113_vm11, %v1874_v3, %v1850_v12  ;;  %vm3686_vm11 = vcmp.lt.s32.totalorder %v8980_v48, 34 }
 0x554   :  { %6869 = vmatmul.mubr.msk.f32.vlgmr.msra.gmra.mrb[14].mxu0 %vm15111_vm2, %v1933_v16  ;;  %v1929_v34 = vmul.f32 %v10093_v61, %v1879_v36  ;;  %v1930_v22 = vmul.f32 %v10098_v52, %v1891_v39  ;;  %2220 = vmatmul.mubr.f32.gmra.mrb[18].mxu1 %v10066_v53  ;;  %v1942_v53 = vld [vmem:[#allocation10 + $0x58] sm:$0xff] }
 0x555   :  { %7496 = vmatprep.subr.bf16.mxu1 %v7495_v6  ;;  %2130 = vmatprep.mubr.f32.mxu0 %v15495_v63 }
 0x556   :  { %7498 = vmatpush1.bf16.msra.mxu1 %v7497_v25  ;;  %v7501_v14 = vpack.c.bf16 %v1929_v34, %v1925_v62  ;;  %2225 = vmatprep.mubr.f32.mxu1 %v10073_v2  ;;  %v7499_v30 = vpack.c.bf16 %v1930_v22, %v1926_v35 }
 0x558   :  { %6870 = vmatmul.mubr.msk.f32.gmra.mrb[16].mxu0 %vm15111_vm2, %v1936_v38  ;;  %2226 = vmatmul.mubr.f32.gmra.mrb[20].mxu1 %v1937_v44 }
 0x559   :  { %7500 = vmatprep.subr.bf16.mxu1 %v7499_v30  ;;  %2136 = vmatprep.mubr.f32.mxu0 %v15495_v63 }
 0x55a   :  { %7502 = vmatpush1.bf16.msra.mxu1 %v7501_v14  ;;  %2231 = vmatprep.mubr.f32.mxu1 %v1941_v57 }
 0x55c   :  { %6871 = vmatmul.mubr.msk.f32.gmra.mrb[18].mxu0 %vm15111_vm2, %v1939_v47  ;;  %2232 = vmatmul.mubr.f32.gmra.mrb[22].mxu1 %v1940_v21 }
 0x55d   :  { %2142 = vmatprep.mubr.f32.mxu0 %v15495_v63  ;;  %2302 = vmatprep.mubr.f32.mxu1 %v15495_v63 }
 0x560   :  { %6872 = vmatmul.mubr.msk.f32.gmra.mrb[20].mxu0 %vm15111_vm2, %v1942_v53  ;;  %6873 = vmatmul.mubr.msk.f32.vlgmr.msra.gmra.mrb[16].mxu1 %vm15111_vm2, %v1933_v16 }
 0x561   :  { %2308 = vmatprep.mubr.f32.mxu1 %v15495_v63  ;;  %7155 = vmatprep.mubr.msk.f32.mxu0 %vm8218_vm12, %v15495_v63 }
 0x564   :  { %6874 = vmatmul.mubr.msk.f32.gmra.mrb[18].mxu1 %vm15111_vm2, %v1936_v38 }
 0x565   :  { %2314 = vmatprep.mubr.f32.mxu1 %v15495_v63 }
 0x568   :  { %6875 = vmatmul.mubr.msk.f32.gmra.mrb[20].mxu1 %vm15111_vm2, %v1939_v47 }
 0x569   :  { %2320 = vmatprep.mubr.f32.mxu1 %v15495_v63 }
 0x56c   :  { %6876 = vmatmul.mubr.msk.f32.gmra.mrb[22].mxu1 %vm15111_vm2, %v1942_v53 }
 0x56e   :  { %v1945_v2 = vpop.permute.xlu1 %1944  ;;  %v1949_v12 = vpop.permute.xlu0 %1948 }
 0x572   :  { %v1953_v24 = vpop.permute.xlu1 %1952 }
 0x576   :  { %v1957_v13 = vpop.permute.xlu1 %1956 }
 0x627   :  { %v2126_v44 = vpop.f32.mrb[14].mxu0 }
 0x628   :  { %v10153_v51 = vadd.f32 %v2126_v44, %v1945_v2  ;;  %v2128_v56 = vpop.f32.mrb[15].mxu0 }
 0x629   :  { %v10155_v57 = vadd.f32 %v2128_v56, %v1945_v2 }
 0x62b   :  { %v2132_v11 = vpop.f32.mrb[16].mxu0  ;;  %v2332_v10 = vadd.f32 %v10155_v57, %v10153_v51  ;;  %v2349_v54 = vmax.f32 %v10153_v51, %v10155_v57 }
 0x62c   :  { %v2134_v28 = vpop.f32.mrb[17].mxu0  ;;  %v10159_v32 = vadd.f32 %v2132_v11, %v1949_v12 }
 0x62d   :  { %v10161_v5 = vadd.f32 %v2134_v28, %v1949_v12  ;;  %2333 = vadd.xlane.f32.xlu0 %v2332_v10  ;;  %v8217_v10 = vmov 0.0|0.0  }
 0x62e   :  { %7503 = vmatprep.subr.bf16.mxu0 %v8217_v10 }
 0x62f   :  { %v2138_v26 = vpop.f32.mrb[18].mxu0  ;;  %v2335_v21 = vadd.f32 %v10161_v5, %v10159_v32  ;;  %v2352_v35 = vmax.f32 %v10159_v32, %v10161_v5 }
 0x630   :  { %v10165_v23 = vadd.f32 %v2138_v26, %v1953_v24  ;;  %v2140_v40 = vpop.f32.mrb[19].mxu0 }
 0x631   :  { %v10167_v58 = vadd.f32 %v2140_v40, %v1953_v24  ;;  %2336 = vadd.xlane.f32.xlu1 %v2335_v21 }
 0x633   :  { %v2144_v43 = vpop.f32.mrb[20].mxu0  ;;  %v2338_v33 = vadd.f32 %v10167_v58, %v10165_v23  ;;  %v2304_v17 = vpop.f32.mrb[16].mxu1  ;;  %v2355_v62 = vmax.f32 %v10165_v23, %v10167_v58 }
 0x634   :  { %v10173_v19 = vadd.f32 %v2144_v43, %v1957_v13  ;;  %v2146_v7 = vpop.f32.mrb[21].mxu0  ;;  %v2306_v27 = vpop.f32.mrb[17].mxu1  ;;  %v10177_v25 = vadd.f32 %v2304_v17, %v1945_v2 }
 0x635   :  { %v10175_v16 = vadd.f32 %v2146_v7, %v1957_v13  ;;  %2339 = vadd.xlane.f32.xlu0 %v2338_v33  ;;  %2350 = vmax.xlane.f32.xlu1 %v2349_v54  ;;  %v10179_v3 = vadd.f32 %v2306_v27, %v1945_v2 }
 0x637   :  { %v2341_v6 = vadd.f32 %v10175_v16, %v10173_v19  ;;  %v2310_v36 = vpop.f32.mrb[18].mxu1  ;;  %v2764_v34 = vadd.f32 %v10179_v3, %v10177_v25  ;;  %v2358_v2 = vmax.f32 %v10173_v19, %v10175_v16  ;;  %v2780_v26 = vmax.f32 %v10177_v25, %v10179_v3 }
 0x638   :  { %v2312_v39 = vpop.f32.mrb[19].mxu1  ;;  %v10193_v47 = vadd.f32 %v2310_v36, %v1949_v12 }
 0x639   :  { %2342 = vadd.xlane.f32.xlu0 %v2341_v6  ;;  %2356 = vmax.xlane.f32.xlu1 %v2355_v62  ;;  %v10195_v53 = vadd.f32 %v2312_v39, %v1949_v12 }
 0x63b   :  { %v2316_v22 = vpop.f32.mrb[20].mxu1  ;;  %v2767_v12 = vadd.f32 %v10195_v53, %v10193_v47 }
 0x63c   :  { %v10189_v38 = vadd.f32 %v2316_v22, %v1953_v24  ;;  %v2318_v14 = vpop.f32.mrb[21].mxu1 }
 0x63d   :  { %2353 = vmax.xlane.f32.xlu0 %v2352_v35  ;;  %2765 = vadd.xlane.f32.xlu1 %v2764_v34  ;;  %v10191_v30 = vadd.f32 %v2318_v14, %v1953_v24 }
 0x63f   :  { %v2322_v44 = vpop.f32.mrb[22].mxu1  ;;  %v2770_v56 = vadd.f32 %v10191_v30, %v10189_v38  ;;  %v2786_v40 = vmax.f32 %v10189_v38, %v10191_v30 }
 0x640   :  { %v2324_v11 = vpop.f32.mrb[23].mxu1  ;;  %v10202_v28 = vadd.f32 %v2322_v44, %v1957_v13 }
 0x641   :  { %2359 = vmax.xlane.f32.xlu0 %v2358_v2  ;;  %2771 = vadd.xlane.f32.xlu1 %v2770_v56  ;;  %v10204_v24 = vadd.f32 %v2324_v11, %v1957_v13  ;;  %v2783_v13 = vmax.f32 %v10193_v47, %v10195_v53  ;;  %v2327_v2 = vld [vmem:[%s14779_s13] sm:$0x3]  ;;  %s8271_s13 = smov 45  }
 0x643   :  { %v2773_v21 = vadd.f32 %v10204_v24, %v10202_v28  ;;  %v2789_v43 = vmax.f32 %v10202_v28, %v10204_v24 }
 0x645   :  { %2768 = vadd.xlane.f32.xlu0 %v2767_v12  ;;  %2781 = vmax.xlane.f32.xlu1 %v2780_v26 }
 0x649   :  { %2774 = vadd.xlane.f32.xlu0 %v2773_v21  ;;  %2787 = vmax.xlane.f32.xlu1 %v2786_v40 }
 0x64d   :  { %2784 = vmax.xlane.f32.xlu0 %v2783_v13 }
 0x651   :  { %2790 = vmax.xlane.f32.xlu0 %v2789_v43 }
 0x6ba   :  { %v2334_v33 = vpop.xlane.xlu0 %2333 }
 0x6bb   :  { %v2345_v7 = vmul.f32 0.00390625, %v2334_v33 }
 0x6be   :  { %v2337_v54 = vpop.xlane.xlu1 %2336 }
 0x6bf   :  { %v2346_v17 = vmul.f32 0.00390625, %v2337_v54 }
 0x6c1   :  { %v7504_v27 = vpack.c.bf16 %v2346_v17, %v2345_v7 }
 0x6c2   :  { %v2351_v6 = vpop.xlane.xlu1 %2350  ;;  %v2340_v62 = vpop.xlane.xlu0 %2339 }
 0x6c3   :  { %7505 = vmatpush3.bf16.msra.mxu0 %v7504_v27  ;;  %v2347_v39 = vmul.f32 0.00390625, %v2340_v62 }
 0x6c4   :  { %7506 = vmatprep.subr.bf16.mxu0 %v8217_v10 }
 0x6c6   :  { %v2343_v36 = vpop.xlane.xlu0 %2342  ;;  %v2357_v34 = vpop.xlane.xlu1 %2356 }
 0x6c7   :  { %v2348_v35 = vmul.f32 0.00390625, %v2343_v36 }
 0x6c9   :  { %v7507_v22 = vpack.c.bf16 %v2348_v35, %v2347_v39 }
 0x6ca   :  { %v2354_v14 = vpop.xlane.xlu0 %2353  ;;  %v2766_v56 = vpop.xlane.xlu1 %2765 }
 0x6cb   :  { %7508 = vmatpush3.bf16.msra.mxu0 %v7507_v22  ;;  %v7510_v44 = vpack.c.bf16 %v2354_v14, %v2351_v6  ;;  %v2776_v21 = vmul.f32 0.00390625, %v2766_v56  ;;  %v10250_v22 = vld [vmem:[%s14781_s15] sm:$0x3]  ;;  %v15497_v14 = vmov 4   ;;  %v8221_v56 = vmov 7   ;;  %s14974_s15 = smov 31  }
 0x6cc   :  { %7509 = vmatprep.subr.bf16.mxu0 %v8217_v10  ;;  %3407 = vperm.xlu0 %7917, %v10250_v22  }
 0x6cd   :  { %3355 = vperm.xlu1 %7916, %v10250_v22  }
 0x6ce   :  { %7156 = vmatmul.mubr.msk.f32.vlgmr.msra.gmra.mrb[22].mxu0 %vm15111_vm2, %v2327_v2  ;;  %v2360_v11 = vpop.xlane.xlu0 %2359  ;;  %v2772_v13 = vpop.xlane.xlu1 %2771 }
 0x6cf   :  { %7511 = vmatpush3.bf16.msra.mxu0 %v7510_v44  ;;  %7166 = vmatprep.mubr.msk.f32.mxu0 %vm8218_vm12, %v15495_v63  ;;  %v7513_v12 = vpack.c.bf16 %v2360_v11, %v2357_v34  ;;  %v2778_v54 = vmul.f32 0.00390625, %v2772_v13  ;;  %v10243_v34 = vld [vmem:[%s14780_s14] sm:$0xff]  ;;  %v8220_v44 = vmov 6   ;;  %v8222_v11 = vmov 8  }
 0x6d0   :  { %7512 = vmatprep.subr.bf16.mxu0 %v8217_v10  ;;  %7171 = vmatprep.mubr.msk.f32.mxu1 %vm2506_vm13, %v10243_v34  ;;  %v8227_v13 = vmov 13  }
 0x6d2   :  { %v2769_v26 = vpop.xlane.xlu0 %2768  ;;  %v2782_v27 = vpop.xlane.xlu1 %2781 }
 0x6d3   :  { %v2777_v40 = vmul.f32 0.00390625, %v2769_v26  ;;  %7514 = vmatpush3.bf16.msra.mxu0 %v7513_v12  ;;  %v8223_v12 = vmov 9   ;;  %v8224_v26 = vmov 10  }
 0x6d4   :  { %7515 = vmatprep.subr.bf16.mxu0 %v8217_v10 }
 0x6d5   :  { %v7516_v43 = vpack.c.bf16 %v2777_v40, %v2776_v21  ;;  %v8225_v21 = vmov 11   ;;  %v8226_v40 = vmov 12  }
 0x6d6   :  { %7167 = vmatmul.mubr.msk.f32.vlgmr.msra.gmra.mrb[24].mxu0 %vm15111_vm2, %v2327_v2  ;;  %v2775_v33 = vpop.xlane.xlu0 %2774  ;;  %v2788_v39 = vpop.xlane.xlu1 %2787 }
 0x6d7   :  { %v2779_v7 = vmul.f32 0.00390625, %v2775_v33  ;;  %7517 = vmatpush3.bf16.msra.mxu0 %v7516_v43  ;;  %7193 = vmatprep.mubr.msk.f32.mxu0 %vm8218_vm12, %v15495_v63  ;;  %v8228_v43 = vmov 14   ;;  %v8229_v33 = vmov 15  }
 0x6d8   :  { %7518 = vmatprep.subr.bf16.mxu0 %v8217_v10 }
 0x6d9   :  { %v7519_v17 = vpack.c.bf16 %v2779_v7, %v2778_v54  ;;  %v8230_v54 = vmov 16   ;;  %v8231_v7 = vmov 17  }
 0x6da   :  { %v2785_v6 = vpop.xlane.xlu0 %2784 }
 0x6db   :  { %7520 = vmatpush3.bf16.msra.mxu0 %v7519_v17  ;;  %v7522_v62 = vpack.c.bf16 %v2785_v6, %v2782_v27  ;;  %v8232_v17 = vmov 18   ;;  %v8233_v27 = vmov 19  }
 0x6dc   :  { %7521 = vmatprep.subr.bf16.mxu0 %v8217_v10 }
 0x6de   :  { %v2791_v36 = vpop.xlane.xlu0 %2790  ;;  %7194 = vmatmul.mubr.msk.f32.vlgmr.msra.gmra.mrb[26].mxu0 %vm15111_vm2, %v2327_v2 }
 0x6df   :  { %7523 = vmatpush3.bf16.msra.mxu0 %v7522_v62  ;;  %7204 = vmatprep.mubr.msk.f32.mxu0 %vm8218_vm12, %v15495_v63  ;;  %v7525_v35 = vpack.c.bf16 %v2791_v36, %v2788_v39  ;;  %v8234_v36 = vmov 20  }
 0x6e0   :  { %7524 = vmatprep.subr.bf16.mxu0 %v8217_v10  ;;  %v15496_v10 = vmov 3  }
 0x6e1   :  { %7918 = vset.pattern.permute.xlu0 %v15496_v10 }
 0x6e2   :  { %3459 = vperm.xlu0 %7918, %v10250_v22  }
 0x6e3   :  { %7526 = vmatpush3.bf16.msra.mxu0 %v7525_v35  ;;  %v8235_v35 = vmov 21  }
 0x6e6   :  { %7205 = vmatmul.mubr.msk.f32.vlgmr.msra.gmra.mrb[28].mxu0 %vm15111_vm2, %v2327_v2  ;;  %7919 = vset.pattern.permute.xlu0 %v15497_v14  ;;  %v14899_v2 = vmov 5   ;;  %vm15138_vm2 = vcmp.lt.s32.totalorder %v8980_v48, 35 }
 0x6e7   :  { %3511 = vperm.xlu0 %7919, %v10250_v22  }
 0x6eb   :  { %7920 = vset.pattern.permute.xlu0 %v14899_v2 }
 0x6ec   :  { %3563 = vperm.xlu0 %7920, %v10250_v22  }
 0x6f0   :  { %7921 = vset.pattern.permute.xlu0 %v8220_v44  ;;  %v2329_v44 = vld [vmem:[%s14780_s14 + $0x8] sm:$0xff] }
 0x6f1   :  { %3615 = vperm.xlu0 %7921, %v10250_v22  }
 0x6f5   :  { %7922 = vset.pattern.permute.xlu0 %v8221_v56 }
 0x6f6   :  { %3667 = vperm.xlu0 %7922, %v10250_v22  }
 0x6fa   :  { %7923 = vset.pattern.permute.xlu0 %v8222_v11  ;;  %v2330_v11 = vld [vmem:[%s14780_s14 + $0x10] sm:$0xff] }
 0x6fb   :  { %3719 = vperm.xlu0 %7923, %v10250_v22  }
 0x6ff   :  { %7924 = vset.pattern.permute.xlu0 %v8223_v12  ;;  %v2331_v12 = vld [vmem:[%s14780_s14 + $0x18] sm:$0xff]  ;;  %s8263_s14 = smov 50  }
 0x700   :  { %3771 = vperm.xlu0 %7924, %v10250_v22  }
 0x704   :  { %7925 = vset.pattern.permute.xlu0 %v8224_v26  ;;  %v8236_v26 = vmov 22  }
 0x705   :  { %3823 = vperm.xlu0 %7925, %v10250_v22  }
 0x709   :  { %7926 = vset.pattern.permute.xlu0 %v8225_v21 }
 0x70a   :  { %3875 = vperm.xlu0 %7926, %v10250_v22  }
 0x70e   :  { %7927 = vset.pattern.permute.xlu0 %v8226_v40 }
 0x70f   :  { %3927 = vperm.xlu0 %7927, %v10250_v22  }
 0x713   :  { %7928 = vset.pattern.permute.xlu0 %v8227_v13  ;;  %v8237_v13 = vmov 23  }
 0x714   :  { %3979 = vperm.xlu0 %7928, %v10250_v22  }
 0x718   :  { %7929 = vset.pattern.permute.xlu0 %v8228_v43 }
 0x719   :  { %4031 = vperm.xlu0 %7929, %v10250_v22  }
 0x71d   :  { %7930 = vset.pattern.permute.xlu0 %v8229_v33 }
 0x71e   :  { %4083 = vperm.xlu0 %7930, %v10250_v22  }
 0x722   :  { %7931 = vset.pattern.permute.xlu0 %v8230_v54 }
 0x723   :  { %4134 = vperm.xlu0 %7931, %v10250_v22  }
 0x727   :  { %7932 = vset.pattern.permute.xlu0 %v8231_v7 }
 0x728   :  { %4185 = vperm.xlu0 %7932, %v10250_v22  }
 0x72c   :  { %7933 = vset.pattern.permute.xlu0 %v8232_v17  ;;  %v8238_v17 = vmov 26  }
 0x72d   :  { %4236 = vperm.xlu0 %7933, %v10250_v22  }
 0x731   :  { %7934 = vset.pattern.permute.xlu0 %v8233_v27  ;;  %v8239_v27 = vmov 27  }
 0x732   :  { %4288 = vperm.xlu0 %7934, %v10250_v22  }
 0x736   :  { %7935 = vset.pattern.permute.xlu0 %v8234_v36  ;;  %v8242_v36 = vmov 30  }
 0x737   :  { %4340 = vperm.xlu0 %7935, %v10250_v22  }
 0x73b   :  { %7936 = vset.pattern.permute.xlu0 %v8235_v35  ;;  %v8245_v35 = vmov 35  }
 0x73c   :  { %4392 = vperm.xlu0 %7936, %v10250_v22  }
 0x740   :  { %7937 = vset.pattern.permute.xlu0 %v8236_v26  ;;  %v8252_v26 = vmov 42  }
 0x741   :  { %4444 = vperm.xlu0 %7937, %v10250_v22  }
 0x745   :  { %7938 = vset.pattern.permute.xlu0 %v8237_v13  ;;  %v8255_v13 = vmov 45  }
 0x746   :  { %4495 = vperm.xlu0 %7938, %v10250_v22  }
 0x74a   :  { %7941 = vset.pattern.permute.xlu0 %v8238_v17  ;;  %v8260_v17 = vmov 31  }
 0x74b   :  { %4637 = vperm.xlu0 %7941, %v10250_v22  }
 0x74f   :  { %7942 = vset.pattern.permute.xlu0 %v8239_v27  ;;  %v8261_v27 = vmov 48  }
 0x750   :  { %4689 = vperm.xlu0 %7942, %v10250_v22  }
 0x7a1   :  { %v2430_v6 = vpop.f32.mrb[22].mxu0 }
 0x7a2   :  { %v7157_v62 = vpop.f32.mrb[23].mxu0  ;;  %v2434_v56 = vmax.f32 %v2430_v6, 0.0  ;;  %v8240_v6 = vmov 28  }
 0x7a3   :  { %7943 = vset.pattern.permute.xlu0 %v8240_v6  ;;  %v8241_v62 = vmov 29   ;;  %v10337_v6 = vpop.permute.xlu0 %3407 }
 0x7a4   :  { %4741 = vperm.xlu0 %7943, %v10250_v22   ;;  %15498 = vst [vmem:[#allocation82_spill] sm:$0xff] %v10337_v6 }
 0x7a8   :  { %7944 = vset.pattern.permute.xlu0 %v8241_v62  ;;  %v8262_v62 = vmov 33  }
 0x7a9   :  { %v2501_v39 = vpop.f32.mrb[24].mxu0  ;;  %4793 = vperm.xlu0 %7944, %v10250_v22  }
 0x7aa   :  { %v2505_v10 = vmax.f32 %v2501_v39, 0.0  ;;  %v7168_v14 = vpop.f32.mrb[25].mxu0  ;;  %v8243_v39 = vmov 32  }
 0x7ab   :  { %v8247_v14 = vmov 37  }
 0x7ac   :  { %7169 = vmatprep.subr.msk.mxu1 %vm2519_vm14, %v2505_v10 }
 0x7ad   :  { %7170 = vmatpush3.msk.msra.mxu1 %vm2519_vm14, %v2505_v10  ;;  %7945 = vset.pattern.permute.xlu0 %v8242_v36  ;;  %v8246_v10 = vmov 36   ;;  %v15499_v36 = vmov 0  }
 0x7ae   :  { %7172 = vmatmul.mubr.msk.f32.vlgmr.msra.gmra.mrb[24].mxu1 %vm2506_vm13, %v2329_v44  ;;  %7177 = vmatprep.subr.msk.mxu1 %vm2519_vm14, %v2434_v56 }
 0x7af   :  { %7178 = vmatpush3.msk.msra.mxu1 %vm2519_vm14, %v2434_v56  ;;  %7174 = vmatprep.mubr.msk.f32.mxu1 %vm2506_vm13, %v2330_v11  ;;  %v8249_v56 = vmov 39  }
 0x7b0   :  { %4844 = vperm.xlu0 %7945, %v10250_v22  }
 0x7b1   :  { %v2858_v21 = vpop.f32.mrb[26].mxu0 }
 0x7b2   :  { %7175 = vmatmul.mubr.msk.f32.gmra.mrb[26].mxu1 %vm2506_vm13, %v2331_v12  ;;  %v7195_v40 = vpop.f32.mrb[27].mxu0  ;;  %v2862_v33 = vmax.f32 %v2858_v21, 0.0  ;;  %v8253_v21 = vmov 43  }
 0x7b3   :  { %7179 = vmatprep.mubr.msk.f32.mxu1 %vm2506_vm13, %v10243_v34  ;;  %v8254_v40 = vmov 44  }
 0x7b4   :  { %7947 = vset.pattern.permute.xlu0 %v8243_v39  ;;  %v10342_v39 = vpop.permute.xlu0 %3459 }
 0x7b5   :  { %4946 = vperm.xlu0 %7947, %v10250_v22   ;;  %15500 = vst [vmem:[#allocation33_spill] sm:$0xff] %v10342_v39 }
 0x7b6   :  { %7180 = vmatmul.mubr.msk.f32.vlgmr.msra.gmra.mrb[24].mxu1 %vm2506_vm13, %v2329_v44 }
 0x7b7   :  { %7182 = vmatprep.mubr.msk.f32.mxu1 %vm2506_vm13, %v2330_v11 }
 0x7b9   :  { %v2929_v43 = vpop.f32.mrb[28].mxu0 }
 0x7ba   :  { %v2933_v54 = vmax.f32 %v2929_v43, 0.0  ;;  %7183 = vmatmul.mubr.msk.f32.gmra.mrb[26].mxu1 %vm2506_vm13, %v2331_v12  ;;  %v7206_v7 = vpop.f32.mrb[29].mxu0  ;;  %v8256_v43 = vmov 46  }
 0x7bb   :  { %7209 = vmatprep.mubr.msk.f32.mxu1 %vm2506_vm13, %v10243_v34  ;;  %v8259_v7 = vmov 47  }
 0x7bc   :  { %7207 = vmatprep.subr.msk.mxu1 %vm2519_vm14, %v2933_v54 }
 0x7bd   :  { %7208 = vmatpush3.msk.msra.mxu1 %vm2519_vm14, %v2933_v54  ;;  %v8258_v54 = vmov 25  }
 0x7be   :  { %7210 = vmatmul.mubr.msk.f32.vlgmr.msra.gmra.mrb[28].mxu1 %vm2506_vm13, %v2329_v44  ;;  %7215 = vmatprep.subr.msk.mxu1 %vm2519_vm14, %v2862_v33 }
 0x7bf   :  { %7212 = vmatprep.mubr.msk.f32.mxu1 %vm2506_vm13, %v2330_v11  ;;  %7216 = vmatpush3.msk.msra.mxu1 %vm2519_vm14, %v2862_v33  ;;  %v8257_v33 = vmov 24  }
 0x7c0   :  { %7939 = vset.pattern.permute.xlu1 %v8257_v33 }
 0x7c1   :  { %4534 = vperm.xlu1 %7939, %v10250_v22  }
 0x7c2   :  { %7213 = vmatmul.mubr.msk.f32.gmra.mrb[30].mxu1 %vm2506_vm13, %v2331_v12 }
 0x7c3   :  { %7217 = vmatprep.mubr.msk.f32.mxu1 %vm2506_vm13, %v10243_v34  ;;  %v8244_v34 = vmov 34  }
 0x7c4   :  { %7949 = vset.pattern.permute.xlu0 %v8244_v34  ;;  %v10345_v34 = vpop.permute.xlu0 %3511 }
 0x7c5   :  { %5050 = vperm.xlu0 %7949, %v10250_v22   ;;  %7940 = vset.pattern.permute.xlu1 %v8258_v54  ;;  %15501 = vst [vmem:[#allocation30_spill] sm:$0xff] %v10345_v34 }
 0x7c6   :  { %7218 = vmatmul.mubr.msk.f32.vlgmr.msra.gmra.mrb[28].mxu1 %vm2506_vm13, %v2329_v44  ;;  %v8248_v44 = vmov 38   ;;  %4585 = vperm.xlu1 %7940, %v10250_v22  }
 0x7c7   :  { %7220 = vmatprep.mubr.msk.f32.mxu1 %vm2506_vm13, %v2330_v11  ;;  %v8250_v11 = vmov 40  }
 0x7c9   :  { %7950 = vset.pattern.permute.xlu0 %v8245_v35  ;;  %v10347_v35 = vpop.permute.xlu0 %3563 }
 0x7ca   :  { %7221 = vmatmul.mubr.msk.f32.gmra.mrb[30].mxu1 %vm2506_vm13, %v2331_v12  ;;  %5102 = vperm.xlu0 %7950, %v10250_v22   ;;  %v8251_v12 = vmov 41   ;;  %15502 = vst [vmem:[#allocation17_spill] sm:$0xff] %v10347_v35 }
 0x7cb   :  { %7946 = vset.pattern.permute.xlu1 %v8260_v17 }
 0x7cc   :  { %4895 = vperm.xlu1 %7946, %v10250_v22  }
 0x7ce   :  { %7951 = vset.pattern.permute.xlu0 %v8246_v10  ;;  %v10349_v10 = vpop.permute.xlu0 %3615 }
 0x7cf   :  { %5154 = vperm.xlu0 %7951, %v10250_v22   ;;  %15503 = vst [vmem:[#allocation40_spill] sm:$0xff] %v10349_v10 }
 0x7d0   :  { %7948 = vset.pattern.permute.xlu1 %v8262_v62 }
 0x7d1   :  { %4998 = vperm.xlu1 %7948, %v10250_v22  }
 0x7d3   :  { %7952 = vset.pattern.permute.xlu0 %v8247_v14  ;;  %v10351_v14 = vpop.permute.xlu0 %3667 }
 0x7d4   :  { %5206 = vperm.xlu0 %7952, %v10250_v22   ;;  %15504 = vst [vmem:[#allocation18_spill] sm:$0xff] %v10351_v14  ;;  %v11265_v14 = vld [vmem:[%s14782_s16 + $0x46] ss:$8 sm:$0xf] }
 0x7d5   :  { %7965 = vset.pattern.permute.xlu1 %v15499_v36  ;;  %15693 = vst [vmem:[#allocation235_spill] sm:$0xff] %v11265_v14 }
 0x7d8   :  { %7953 = vset.pattern.permute.xlu0 %v8248_v44  ;;  %v10353_v44 = vpop.permute.xlu0 %3719 }
 0x7d9   :  { %5258 = vperm.xlu0 %7953, %v10250_v22   ;;  %15505 = vst [vmem:[#allocation21_spill] sm:$0xff] %v10353_v44 }
 0x7dd   :  { %7954 = vset.pattern.permute.xlu0 %v8249_v56  ;;  %v10355_v56 = vpop.permute.xlu0 %3771 }
 0x7de   :  { %5310 = vperm.xlu0 %7954, %v10250_v22   ;;  %15506 = vst [vmem:[#allocation47_spill] sm:$0xff] %v10355_v56 }
 0x7e2   :  { %7955 = vset.pattern.permute.xlu0 %v8250_v11  ;;  %v10357_v11 = vpop.permute.xlu0 %3823 }
 0x7e3   :  { %5362 = vperm.xlu0 %7955, %v10250_v22   ;;  %15507 = vst [vmem:[#allocation71_spill] sm:$0xff] %v10357_v11 }
 0x7e7   :  { %7956 = vset.pattern.permute.xlu0 %v8251_v12  ;;  %v10359_v12 = vpop.permute.xlu0 %3875 }
 0x7e8   :  { %5414 = vperm.xlu0 %7956, %v10250_v22   ;;  %15508 = vst [vmem:[#allocation77_spill] sm:$0xff] %v10359_v12 }
 0x7ec   :  { %7957 = vset.pattern.permute.xlu0 %v8252_v26 }
 0x7ed   :  { %5466 = vperm.xlu0 %7957, %v10250_v22  }
 0x7f1   :  { %7958 = vset.pattern.permute.xlu0 %v8253_v21 }
 0x7f2   :  { %5518 = vperm.xlu0 %7958, %v10250_v22  }
 0x7f6   :  { %7959 = vset.pattern.permute.xlu0 %v8254_v40 }
 0x7f7   :  { %5570 = vperm.xlu0 %7959, %v10250_v22  }
 0x7fb   :  { %7960 = vset.pattern.permute.xlu0 %v8255_v13 }
 0x7fc   :  { %5622 = vperm.xlu0 %7960, %v10250_v22  }
 0x800   :  { %7961 = vset.pattern.permute.xlu0 %v8256_v43 }
 0x801   :  { %5674 = vperm.xlu0 %7961, %v10250_v22  }
 0x805   :  { %7962 = vset.pattern.permute.xlu0 %v8259_v7 }
 0x806   :  { %5726 = vperm.xlu0 %7962, %v10250_v22  }
 0x80a   :  { %7963 = vset.pattern.permute.xlu0 %v8261_v27 }
 0x80b   :  { %5778 = vperm.xlu0 %7963, %v10250_v22  }
 0x80f   :  { %7964 = vset.pattern.permute.xlu0 %v15499_v36 }
 0x810   :  { %3303 = vperm.xlu0 %7964, %v10250_v22   ;;  %v10361_v22 = vpop.permute.xlu0 %3927 }
 0x811   :  { %15509 = vst [vmem:[#allocation72_spill] sm:$0xff] %v10361_v22 }
 0x814   :  { %v10363_v26 = vpop.permute.xlu0 %3979 }
 0x815   :  { %15510 = vst [vmem:[#allocation78_spill] sm:$0xff] %v10363_v26 }
 0x818   :  { %v10365_v21 = vpop.permute.xlu0 %4031 }
 0x819   :  { %15511 = vst [vmem:[#allocation38_spill] sm:$0xff] %v10365_v21 }
 0x81c   :  { %v10367_v40 = vpop.permute.xlu0 %4083 }
 0x81d   :  { %15512 = vst [vmem:[#allocation44_spill] sm:$0xff] %v10367_v40 }
 0x820   :  { %v10369_v13 = vpop.permute.xlu0 %4134 }
 0x821   :  { %15513 = vst [vmem:[#allocation73_spill] sm:$0xff] %v10369_v13 }
 0x824   :  { %v10371_v43 = vpop.permute.xlu0 %4185 }
 0x825   :  { %15514 = vst [vmem:[#allocation79_spill] sm:$0xff] %v10371_v43 }
 0x828   :  { %v10373_v33 = vpop.permute.xlu0 %4236 }
 0x829   :  { %15515 = vst [vmem:[#allocation20_spill] sm:$0xff] %v10373_v33 }
 0x82c   :  { %v10380_v27 = vpop.permute.xlu0 %4288 }
 0x82d   :  { %15516 = vst [vmem:[#allocation42_spill] sm:$0xff] %v10380_v27 }
 0x830   :  { %v10389_v50 = vpop.permute.xlu0 %4340 }
 0x831   :  { %15517 = vst [vmem:[#allocation59_spill] sm:$0xff] %v10389_v50 }
 0x889   :  { %v10375_v54 = vpop.f32.mrb[24].mxu1 }
 0x88a   :  { %v2697_v7 = vand.u32 2147483647, %v10375_v54  ;;  %v10378_v17 = vpop.f32.mrb[25].mxu1  ;;  %vm2713_vm15 = vcmp.ge.f32.partialorder %v10375_v54, 0.0 }
 0x88b   :  { %v2696_v62 = vand.u32 2147483647, %v10378_v17  ;;  %vm2712_vm0 = vcmp.ge.f32.partialorder %v10378_v17, 0.0 }
 0x88c   :  { %v2701_v36 = vsub.f32 0.0, %v2697_v7  ;;  %v10391_v7 = vpop.permute.xlu0 %4392 }
 0x88d   :  { %v2700_v2 = vsub.f32 0.0, %v2696_v62  ;;  %v10383_v63 = vpop.f32.mrb[26].mxu1  ;;  %15518 = vst [vmem:[#allocation74_spill] sm:$0xff] %v10391_v7 }
 0x88e   :  { %v2706_v52 = vmul.f32 1.442695, %v2701_v36  ;;  %v2699_v61 = vand.u32 2147483647, %v10383_v63  ;;  %v10386_v8 = vpop.f32.mrb[27].mxu1  ;;  %vm2715_vm1 = vcmp.ge.f32.partialorder %v10383_v63, 0.0 }
 0x88f   :  { %v2704_v46 = vmul.f32 1.442695, %v2700_v2  ;;  %v2698_v18 = vand.u32 2147483647, %v10386_v8  ;;  %vm2714_vm3 = vcmp.ge.f32.partialorder %v10386_v8, 0.0 }
 0x890   :  { %7968 = vpow2.f32 %v2706_v52  ;;  %v2703_v31 = vsub.f32 0.0, %v2699_v61 }
 0x891   :  { %7970 = vpow2.f32 %v2704_v46  ;;  %v2702_v42 = vsub.f32 0.0, %v2698_v18  ;;  %v10399_v18 = vpop.permute.xlu0 %4444 }
 0x892   :  { %v2710_v41 = vmul.f32 1.442695, %v2703_v31  ;;  %15519 = vst [vmem:[#allocation80_spill] sm:$0xff] %v10399_v18 }
 0x893   :  { %v2708_v20 = vmul.f32 1.442695, %v2702_v42 }
 0x894   :  { %7972 = vpow2.f32 %v2710_v41 }
 0x895   :  { %7974 = vpow2.f32 %v2708_v20  ;;  %v10407_v18 = vpop.permute.xlu0 %4495 }
 0x896   :  { %15520 = vst [vmem:[#allocation23_spill] sm:$0xff] %v10407_v18 }
 0x899   :  { %v10393_v62 = vpop.f32.mrb[28].mxu1  ;;  %v10409_v43 = vpop.permute.xlu0 %4637 }
 0x89a   :  { %v7969_v36 = vpop.eup %7968  ;;  %v3111_v4 = vand.u32 2147483647, %v10393_v62  ;;  %v10396_v2 = vpop.f32.mrb[29].mxu1  ;;  %15521 = vst [vmem:[#allocation45_spill] sm:$0xff] %v10409_v43  ;;  %vm3127_vm12 = vcmp.ge.f32.partialorder %v10393_v62, 0.0 }
 0x89b   :  { %v7971_v49 = vpop.eup %7970  ;;  %v2717_v52 = vadd.f32 1.0, %v7969_v36  ;;  %v3110_v61 = vand.u32 2147483647, %v10396_v2  ;;  %vm3126_vm13 = vcmp.ge.f32.partialorder %v10396_v2, 0.0 }
 0x89c   :  { %v2716_v55 = vadd.f32 1.0, %v7971_v49  ;;  %v3115_v46 = vsub.f32 0.0, %v3111_v4 }
 0x89d   :  { %7976 = vrcp.f32 %v2717_v52  ;;  %v3114_v42 = vsub.f32 0.0, %v3110_v61  ;;  %v10401_v20 = vpop.f32.mrb[30].mxu1  ;;  %v10414_v54 = vpop.permute.xlu0 %4689 }
 0x89e   :  { %v7973_v41 = vpop.eup %7972  ;;  %7978 = vrcp.f32 %v2716_v55  ;;  %v3120_v31 = vmul.f32 1.442695, %v3115_v46  ;;  %v3113_v59 = vand.u32 2147483647, %v10401_v20  ;;  %v10404_v0 = vpop.f32.mrb[31].mxu1  ;;  %15522 = vst [vmem:[#allocation25_spill] sm:$0xff] %v10414_v54 }
 0x89f   :  { %v7975_v37 = vpop.eup %7974  ;;  %v2719_v60 = vadd.f32 1.0, %v7973_v41  ;;  %v3118_v45 = vmul.f32 1.442695, %v3114_v42  ;;  %v3112_v7 = vand.u32 2147483647, %v10404_v0  ;;  %vm3129_vm14 = vcmp.ge.f32.partialorder %v10401_v20, 0.0 }
 0x8a0   :  { %v2718_v50 = vadd.f32 1.0, %v7975_v37  ;;  %7980 = vpow2.f32 %v3120_v31  ;;  %v3117_v4 = vsub.f32 0.0, %v3113_v59 }
 0x8a1   :  { %7982 = vrcp.f32 %v2719_v60  ;;  %v3116_v52 = vsub.f32 0.0, %v3112_v7  ;;  %v10418_v63 = vpop.permute.xlu0 %4741 }
 0x8a2   :  { %7984 = vrcp.f32 %v2718_v50  ;;  %v3124_v61 = vmul.f32 1.442695, %v3117_v4  ;;  %15524 = vst [vmem:[#allocation62_spill] sm:$0xff] %v10418_v63 }
 0x8a3   :  { %7986 = vpow2.f32 %v3118_v45  ;;  %v3122_v55 = vmul.f32 1.442695, %v3116_v52 }
 0x8a4   :  { %7988 = vpow2.f32 %v3124_v61 }
 0x8a5   :  { %7990 = vpow2.f32 %v3122_v55 }
 0x8a7   :  { %v7977_v46 = vpop.eup %7976 }
 0x8a8   :  { %v7979_v27 = vpop.eup %7978  ;;  %v2729_v33 = vmul.f32 %v7977_v46, %v7969_v36 }
 0x8a9   :  { %v2728_v42 = vmul.f32 %v7979_v27, %v7971_v49 }
 0x8aa   :  { %v7981_v31 = vpop.eup %7980  ;;  %v2733_v59 = vsel %vm2713_vm15, %v7977_v46, %v2729_v33  ;;  %v15523_v33 = vmov 5   ;;  %vm3128_vm15 = vcmp.ge.f32.partialorder %v10404_v0, 0.0 }
 0x8ab   :  { %v7983_v60 = vpop.eup %7982  ;;  %v3131_v50 = vadd.f32 1.0, %v7981_v31  ;;  %2743 = vperm.xlu0 %7964, %v2733_v59   ;;  %v2732_v7 = vsel %vm2712_vm0, %v7979_v27, %v2728_v42  ;;  %vm3255_vm0 = vcmask 1040384  }
 0x8ac   :  { %v7985_v45 = vpop.eup %7984  ;;  %2738 = vperm.xlu1 %7965, %v2732_v7   ;;  %v2731_v4 = vmul.f32 %v7983_v60, %v7973_v41 }
 0x8ad   :  { %v7987_v52 = vpop.eup %7986  ;;  %7992 = vrcp.f32 %v3131_v50  ;;  %v2730_v17 = vmul.f32 %v7985_v45, %v7975_v37 }
 0x8ae   :  { %v7989_v36 = vpop.eup %7988  ;;  %v3130_v61 = vadd.f32 1.0, %v7987_v52  ;;  %v2735_v55 = vsel %vm2715_vm1, %v7983_v60, %v2731_v4  ;;  %v10422_v60 = vpop.permute.xlu0 %4793  ;;  %vm15125_vm1 = vcmp.lt.s32.totalorder %v8980_v48, 51 }
 0x8af   :  { %v7991_v49 = vpop.eup %7990  ;;  %v3133_v43 = vadd.f32 1.0, %v7989_v36  ;;  %7966 = vset.pattern.permute.xlu0 %v15523_v33  ;;  %v2734_v27 = vsel %vm2714_vm3, %v7985_v45, %v2730_v17  ;;  %15525 = vst [vmem:[#allocation64_spill] sm:$0xff] %v10422_v60  ;;  %vm15128_vm3 = vcmp.lt.s32.totalorder %v8980_v48, 50 }
 0x8b0   :  { %7994 = vrcp.f32 %v3130_v61  ;;  %v3132_v46 = vadd.f32 1.0, %v7991_v49  ;;  %2753 = vperm.xlu1 %7965, %v2735_v55  }
 0x8b1   :  { %7996 = vrcp.f32 %v3133_v43 }
 0x8b2   :  { %7998 = vrcp.f32 %v3132_v46  ;;  %v10425_v55 = vpop.permute.xlu0 %4844 }
 0x8b3   :  { %15526 = vst [vmem:[#allocation22_spill] sm:$0xff] %v10425_v55 }
 0x8b4   :  { %2748 = vperm.xlu1 %7965, %v2734_v27  }
 0x8b6   :  { %v10428_v2 = vpop.permute.xlu0 %4946 }
 0x8b7   :  { %v7993_v41 = vpop.eup %7992  ;;  %15527 = vst [vmem:[#allocation61_spill] sm:$0xff] %v10428_v2 }
 0x8b8   :  { %v3143_v42 = vmul.f32 %v7993_v41, %v7981_v31 }
 0x8ba   :  { %v7995_v59 = vpop.eup %7994  ;;  %v3147_v37 = vsel %vm3127_vm12, %v7993_v41, %v3143_v42  ;;  %v10431_v31 = vpop.permute.xlu0 %5050  ;;  %vm3374_vm12 = vcmp.lt.s32.totalorder %v8980_v48, 49 }
 0x8bb   :  { %v7997_v50 = vpop.eup %7996  ;;  %3157 = vperm.xlu1 %7965, %v3147_v37   ;;  %v3142_v43 = vmul.f32 %v7995_v59, %v7987_v52  ;;  %15528 = vst [vmem:[#allocation46_spill] sm:$0xff] %v10431_v31  ;;  %v10453_v42 = vpop.permute.xlu1 %3355 }
 0x8bc   :  { %v3145_v7 = vmul.f32 %v7997_v50, %v7989_v36  ;;  %v7999_v8 = vpop.eup %7998  ;;  %15539 = vst [vmem:[#allocation31_spill] sm:$0xff] %v10453_v42 }
 0x8bd   :  { %v3146_v45 = vsel %vm3126_vm13, %v7995_v59, %v3142_v43  ;;  %v3144_v61 = vmul.f32 %v7999_v8, %v7991_v49  ;;  %vm15132_vm13 = vcmp.lt.s32.totalorder %v8980_v48, 48 }
 0x8be   :  { %v3149_v4 = vsel %vm3129_vm14, %v7997_v50, %v3145_v7  ;;  %v10433_v52 = vpop.permute.xlu0 %5102  ;;  %vm15133_vm14 = vcmp.lt.s32.totalorder %v8980_v48, 47 }
 0x8bf   :  { %3152 = vperm.xlu1 %7965, %v3146_v45   ;;  %v3148_v62 = vsel %vm3128_vm15, %v7999_v8, %v3144_v61  ;;  %15529 = vst [vmem:[#allocation27_spill] sm:$0xff] %v10433_v52  ;;  %v10457_v37 = vpop.permute.xlu1 %4534  ;;  %vm3530_vm15 = vcmp.lt.s32.totalorder %v8980_v48, 46 }
 0x8c2   :  { %v10435_v20 = vpop.permute.xlu0 %5154 }
 0x8c3   :  { %3167 = vperm.xlu1 %7965, %v3149_v4   ;;  %15530 = vst [vmem:[#allocation24_spill] sm:$0xff] %v10435_v20  ;;  %v10461_v43 = vpop.permute.xlu1 %4585 }
 0x8c4   :  { %15542 = vst [vmem:[#allocation95_spill] sm:$0xff] %v10461_v43 }
 0x8c6   :  { %v10437_v36 = vpop.permute.xlu0 %5206 }
 0x8c7   :  { %3162 = vperm.xlu1 %7965, %v3148_v62   ;;  %15531 = vst [vmem:[#allocation63_spill] sm:$0xff] %v10437_v36  ;;  %v10465_v8 = vpop.permute.xlu1 %4895 }
 0x8c8   :  { %15544 = vst [vmem:[#allocation52_spill] sm:$0xff] %v10465_v8 }
 0x8ca   :  { %v10439_v49 = vpop.permute.xlu0 %5258 }
 0x8cb   :  { %7967 = vset.pattern.permute.xlu1 %v15523_v33  ;;  %15532 = vst [vmem:[#allocation28_spill] sm:$0xff] %v10439_v49  ;;  %v10469_v4 = vpop.permute.xlu1 %4998 }
 0x8cc   :  { %15546 = vst [vmem:[#allocation99_spill] sm:$0xff] %v10469_v4 }
 0x8ce   :  { %v10441_v17 = vpop.permute.xlu0 %5310 }
 0x8cf   :  { %15533 = vst [vmem:[#allocation49_spill] sm:$0xff] %v10441_v17 }
 0x8d2   :  { %v10443_v0 = vpop.permute.xlu0 %5362 }
 0x8d3   :  { %15534 = vst [vmem:[#allocation67_spill] sm:$0xff] %v10443_v0 }
 0x8d6   :  { %v10445_v46 = vpop.permute.xlu0 %5414 }
 0x8d7   :  { %15535 = vst [vmem:[#allocation76_spill] sm:$0xff] %v10445_v46 }
 0x8da   :  { %v10447_v27 = vpop.permute.xlu0 %5466 }
 0x8db   :  { %15536 = vst [vmem:[#allocation51_spill] sm:$0xff] %v10447_v27 }
 0x8de   :  { %v10449_v41 = vpop.permute.xlu0 %5518 }
 0x8df   :  { %15537 = vst [vmem:[#allocation66_spill] sm:$0xff] %v10449_v41 }
 0x8e2   :  { %v10451_v33 = vpop.permute.xlu0 %5570 }
 0x8e3   :  { %15538 = vst [vmem:[#allocation48_spill] sm:$0xff] %v10451_v33 }
 0x8e6   :  { %v10455_v59 = vpop.permute.xlu0 %5622 }
 0x8e7   :  { %15540 = vst [vmem:[#allocation75_spill] sm:$0xff] %v10455_v59 }
 0x8ea   :  { %v10459_v50 = vpop.permute.xlu0 %5674 }
 0x8eb   :  { %15541 = vst [vmem:[#allocation86_spill] sm:$0xff] %v10459_v50 }
 0x8ee   :  { %v10463_v7 = vpop.permute.xlu0 %5726 }
 0x8ef   :  { %15543 = vst [vmem:[#allocation85_spill] sm:$0xff] %v10463_v7 }
 0x8f2   :  { %v10467_v45 = vpop.permute.xlu0 %5778 }
 0x8f3   :  { %15545 = vst [vmem:[#allocation50_spill] sm:$0xff] %v10467_v45 }
 0x8f6   :  { %v10471_v61 = vpop.permute.xlu0 %3303 }
 0x8f7   :  { %15547 = vst [vmem:[#allocation100_spill] sm:$0xff] %v10471_v61 }
 0x92a   :  { %v2744_v33 = vpop.permute.xlu0 %2743 }
 0x92b   :  { %v2739_v62 = vpop.permute.xlu1 %2738  ;;  %v10474_v59 = vmul.f32 %v10159_v32, %v2744_v33  ;;  %v10477_v41 = vmul.f32 %v10161_v5, %v2744_v33 }
 0x92c   :  { %v10480_v50 = vmul.f32 %v10153_v51, %v2739_v62  ;;  %v10483_v7 = vmul.f32 %v10155_v57, %v2739_v62 }
 0x92d   :  { %15548 = vst [vmem:[#allocation101_spill] sm:$0xff] %v10474_v59  ;;  %15549 = vst [vmem:[#allocation102_spill] sm:$0xff] %v10477_v41 }
 0x92e   :  { %15550 = vst [vmem:[#allocation103_spill] sm:$0xff] %v10480_v50  ;;  %15551 = vst [vmem:[#allocation104_spill] sm:$0xff] %v10483_v7  ;;  %v3178_v45 = vadd.f32 %v10474_v59, %v10480_v50  ;;  %v3187_v46 = vadd.f32 %v10477_v41, %v10483_v7  ;;  %v3219_v32 = vmax.f32 %v10480_v50, %v10474_v59 }
 0x92f   :  { %v2754_v27 = vpop.permute.xlu1 %2753  ;;  %v3228_v5 = vmax.f32 %v10483_v7, %v10477_v41 }
 0x930   :  { %v10500_v33 = vmul.f32 %v10173_v19, %v2754_v27  ;;  %v10503_v62 = vmul.f32 %v10175_v16, %v2754_v27 }
 0x932   :  { %15554 = vst [vmem:[#allocation107_spill] sm:$0xff] %v10500_v33  ;;  %15555 = vst [vmem:[#allocation108_spill] sm:$0xff] %v10503_v62 }
 0x933   :  { %v2749_v0 = vpop.permute.xlu1 %2748 }
 0x934   :  { %v10494_v51 = vmul.f32 %v10165_v23, %v2749_v0  ;;  %v10497_v57 = vmul.f32 %v10167_v58, %v2749_v0 }
 0x936   :  { %15552 = vst [vmem:[#allocation105_spill] sm:$0xff] %v10494_v51  ;;  %15553 = vst [vmem:[#allocation106_spill] sm:$0xff] %v10497_v57  ;;  %v3179_v17 = vadd.f32 %v3178_v45, %v10494_v51  ;;  %v3188_v49 = vadd.f32 %v3187_v46, %v10497_v57  ;;  %v3220_v50 = vmax.f32 %v3219_v32, %v10494_v51 }
 0x937   :  { %v3229_v59 = vmax.f32 %v3228_v5, %v10497_v57 }
 0x938   :  { %v3180_v23 = vadd.f32 %v3179_v17, %v10500_v33  ;;  %v3189_v7 = vadd.f32 %v3188_v49, %v10503_v62  ;;  %v3221_v58 = vmax.f32 %v3220_v50, %v10500_v33 }
 0x939   :  { %v3230_v19 = vmax.f32 %v3229_v59, %v10503_v62 }
 0x93a   :  { %v3181_v0 = vrot.slane %v3180_v23, 4  ;;  %v3190_v41 = vrot.slane %v3189_v7, 4  ;;  %v3222_v16 = vrot.slane %v3221_v58, 4  ;;  %v3158_v36 = vpop.permute.xlu1 %3157 }
 0x93b   :  { %v3231_v27 = vrot.slane %v3230_v19, 4 }
 0x93c   :  { %v3182_v45 = vadd.f32 %v3181_v0, %v3180_v23  ;;  %v3191_v20 = vadd.f32 %v3190_v41, %v3189_v7  ;;  %v3223_v46 = vmax.f32 %v3221_v58, %v3222_v16  ;;  %v10520_v58 = vmul.f32 %v10193_v47, %v3158_v36 }
 0x93d   :  { %v3232_v52 = vmax.f32 %v3230_v19, %v3231_v27 }
 0x93e   :  { %v3183_v32 = vrot.slane %v3182_v45, 2  ;;  %v3192_v51 = vrot.slane %v3191_v20, 2  ;;  %v3224_v5 = vrot.slane %v3223_v46, 2  ;;  %v3153_v17 = vpop.permute.xlu1 %3152  ;;  %15558 = vst [vmem:[#allocation111_spill] sm:$0xff] %v10520_v58 }
 0x93f   :  { %v3233_v57 = vrot.slane %v3232_v52, 2  ;;  %v10514_v55 = vmul.f32 %v10177_v25, %v3153_v17  ;;  %v10517_v41 = vmul.f32 %v10179_v3, %v3153_v17 }
 0x940   :  { %v3184_v31 = vadd.f32 %v3183_v32, %v3182_v45  ;;  %v3193_v49 = vadd.f32 %v3192_v51, %v3191_v20  ;;  %v3225_v4 = vmax.f32 %v3223_v46, %v3224_v5  ;;  %v10523_v20 = vmul.f32 %v10195_v53, %v3158_v36 }
 0x941   :  { %v3234_v50 = vmax.f32 %v3232_v52, %v3233_v57  ;;  %15556 = vst [vmem:[#allocation109_spill] sm:$0xff] %v10514_v55  ;;  %15557 = vst [vmem:[#allocation110_spill] sm:$0xff] %v10517_v41  ;;  %v3196_v25 = vadd.f32 %v10520_v58, %v10514_v55 }
 0x942   :  { %v3185_v33 = vrot.slane %v3184_v31, 1  ;;  %v3194_v59 = vrot.slane %v3193_v49, 1  ;;  %v3226_v62 = vrot.slane %v3225_v4, 1  ;;  %v3168_v8 = vpop.permute.xlu1 %3167  ;;  %15559 = vst [vmem:[#allocation112_spill] sm:$0xff] %v10523_v20  ;;  %v3205_v3 = vadd.f32 %v10523_v20, %v10517_v41 }
 0x943   :  { %v3235_v2 = vrot.slane %v3234_v50, 1 }
 0x944   :  { %v3186_v7 = vadd.f32 %v3185_v33, %v3184_v31  ;;  %v3195_v23 = vadd.f32 %v3194_v59, %v3193_v49  ;;  %v3227_v57 = vmax.f32 %v3225_v4, %v3226_v62  ;;  %v3246_v4 = vmax.f32 %v10517_v41, %v10523_v20 }
 0x945   :  { %v3236_v19 = vmax.f32 %v3234_v50, %v3235_v2  ;;  %v3237_v2 = vmax.f32 %v10514_v55, %v10520_v58  ;;  %v10546_v33 = vmul.f32 %v10202_v28, %v3168_v8 }
 0x946   :  { %v3215_v52 = vmul.f32 0.03125, %v3186_v7  ;;  %v3216_v51 = vmul.f32 0.03125, %v3195_v23  ;;  %v3163_v0 = vpop.permute.xlu1 %3162 }
 0x947   :  { %v10530_v31 = vmul.f32 %v10189_v38, %v3163_v0  ;;  %v10533_v47 = vmul.f32 %v10191_v30, %v3163_v0  ;;  %15562 = vst [vmem:[#allocation115_spill] sm:$0xff] %v10546_v33  ;;  %v10549_v38 = vmul.f32 %v10204_v24, %v3168_v8 }
 0x948   :  { %v10536_v53 = vsel %vm3255_vm0, %v3215_v52, %v3227_v57  ;;  %v10539_v36 = vsel %vm3255_vm0, %v3216_v51, %v3236_v19 }
 0x949   :  { %15560 = vst [vmem:[#allocation113_spill] sm:$0xff] %v10530_v31  ;;  %15561 = vst [vmem:[#allocation114_spill] sm:$0xff] %v10533_v47  ;;  %v3197_v30 = vadd.f32 %v3196_v25, %v10530_v31  ;;  %v3206_v62 = vadd.f32 %v3205_v3, %v10533_v47  ;;  %3316 = vrot.lane.b32.xlu0 %v10539_v36, %s8263_s14  ;;  %v3238_v16 = vmax.f32 %v3237_v2, %v10530_v31 }
 0x94a   :  { %15563 = vst [vmem:[#allocation116_spill] sm:$0xff] %v10549_v38  ;;  %v3247_v27 = vmax.f32 %v3246_v4, %v10533_v47  ;;  %3260 = vrot.lane.b32.xlu1 %v10536_v53, %s8264_s18 }
 0x94b   :  { %v3198_v28 = vadd.f32 %v3197_v30, %v10546_v33  ;;  %v3207_v24 = vadd.f32 %v3206_v62, %v10549_v38  ;;  %v3239_v8 = vmax.f32 %v3238_v16, %v10546_v33 }
 0x94c   :  { %v3248_v45 = vmax.f32 %v3247_v27, %v10549_v38 }
 0x94d   :  { %v3199_v46 = vrot.slane %v3198_v28, 4  ;;  %v3208_v32 = vrot.slane %v3207_v24, 4  ;;  %3366 = vrot.lane.b32.xlu0 %v10536_v53, %s8265_s19  ;;  %v3240_v5 = vrot.slane %v3239_v8, 4 }
 0x94e   :  { %v3249_v17 = vrot.slane %v3248_v45, 4  ;;  %3262 = vrot.lane.b32.xlu1 %v10539_v36, %s8264_s18 }
 0x94f   :  { %v3200_v49 = vadd.f32 %v3199_v46, %v3198_v28  ;;  %v3209_v50 = vadd.f32 %v3208_v32, %v3207_v24  ;;  %v3241_v59 = vmax.f32 %v3239_v8, %v3240_v5 }
 0x950   :  { %v3250_v51 = vmax.f32 %v3248_v45, %v3249_v17 }
 0x951   :  { %v3201_v7 = vrot.slane %v3200_v49, 2  ;;  %v3210_v23 = vrot.slane %v3209_v50, 2  ;;  %4547 = vrot.lane.b32.xlu0 %v10539_v36, %s14994_s12  ;;  %v3242_v52 = vrot.slane %v3241_v59, 2 }
 0x952   :  { %3314 = vrot.lane.b32.xlu1 %v10536_v53, %s8263_s14  ;;  %v3251_v3 = vrot.slane %v3250_v51, 2 }
 0x953   :  { %v3202_v57 = vadd.f32 %v3201_v7, %v3200_v49  ;;  %v3211_v19 = vadd.f32 %v3210_v23, %v3209_v50  ;;  %v3243_v25 = vmax.f32 %v3241_v59, %v3242_v52 }
 0x954   :  { %v3252_v62 = vmax.f32 %v3250_v51, %v3251_v3 }
 0x955   :  { %v3203_v0 = vrot.slane %v3202_v57, 1  ;;  %4596 = vrot.lane.b32.xlu0 %v10536_v53, %s14997_s10  ;;  %v3212_v4 = vrot.slane %v3211_v19, 1  ;;  %v3244_v30 = vrot.slane %v3243_v25, 1 }
 0x956   :  { %3368 = vrot.lane.b32.xlu1 %v10539_v36, %s8265_s19  ;;  %v3253_v24 = vrot.slane %v3252_v62, 1 }
 0x957   :  { %v3204_v2 = vadd.f32 %v3203_v0, %v3202_v57  ;;  %v3213_v16 = vadd.f32 %v3212_v4, %v3211_v19  ;;  %v3245_v28 = vmax.f32 %v3243_v25, %v3244_v30 }
 0x958   :  { %v3254_v46 = vmax.f32 %v3252_v62, %v3253_v24 }
 0x959   :  { %4906 = vrot.lane.b32.xlu0 %v10536_v53, %s8215_s28  ;;  %v3217_v27 = vmul.f32 0.03125, %v3204_v2  ;;  %v3218_v8 = vmul.f32 0.03125, %v3213_v16 }
 0x95a   :  { %3418 = vrot.lane.b32.xlu1 %v10536_v53, %s8267_s29 }
 0x95b   :  { %v10584_v45 = vsel %vm3255_vm0, %v3217_v27, %v3245_v28  ;;  %v10591_v32 = vsel %vm3255_vm0, %v3218_v8, %v3254_v46  ;;  %vm15134_vm0 = vcmp.lt.s32.totalorder %v8980_v48, 45 }
 0x95c   :  { %15564 = vst [vmem:[#allocation117_spill] sm:$0xff] %v10584_v45 }
 0x95d   :  { %5737 = vrot.lane.b32.xlu0 %v10536_v53, %s15090_s27 }
 0x95e   :  { %3420 = vrot.lane.b32.xlu1 %v10539_v36, %s8267_s29 }
 0x961   :  { %3264 = vrot.lane.b32.xlu0 %v10584_v45, %s8264_s18 }
 0x962   :  { %3470 = vrot.lane.b32.xlu1 %v10536_v53, %s8269_s2 }
 0x965   :  { %3320 = vrot.lane.b32.xlu0 %v10591_v32, %s8263_s14 }
 0x966   :  { %3472 = vrot.lane.b32.xlu1 %v10539_v36, %s8269_s2 }
 0x969   :  { %3370 = vrot.lane.b32.xlu0 %v10584_v45, %s8265_s19 }
 0x96a   :  { %3522 = vrot.lane.b32.xlu1 %v10536_v53, %s8270_s20 }
 0x96d   :  { %3422 = vrot.lane.b32.xlu0 %v10584_v45, %s8267_s29 }
 0x96e   :  { %3524 = vrot.lane.b32.xlu1 %v10539_v36, %s8270_s20 }
 0x971   :  { %3474 = vrot.lane.b32.xlu0 %v10584_v45, %s8269_s2 }
 0x972   :  { %3574 = vrot.lane.b32.xlu1 %v10536_v53, %s8271_s13 }
 0x975   :  { %3526 = vrot.lane.b32.xlu0 %v10584_v45, %s8270_s20 }
 0x976   :  { %3576 = vrot.lane.b32.xlu1 %v10539_v36, %s8271_s13 }
 0x979   :  { %3578 = vrot.lane.b32.xlu0 %v10584_v45, %s8271_s13 }
 0x97a   :  { %3626 = vrot.lane.b32.xlu1 %v10536_v53, %s14999_s1 }
 0x97d   :  { %3630 = vrot.lane.b32.xlu0 %v10584_v45, %s14999_s1 }
 0x97e   :  { %3628 = vrot.lane.b32.xlu1 %v10539_v36, %s14999_s1  ;;  %s8300_s1 = smov 79  }
 0x981   :  { %3682 = vrot.lane.b32.xlu0 %v10584_v45, %s14991_s3 }
 0x982   :  { %3678 = vrot.lane.b32.xlu1 %v10536_v53, %s14991_s3 }
 0x985   :  { %3734 = vrot.lane.b32.xlu0 %v10584_v45, %s14989_s24 }
 0x986   :  { %3680 = vrot.lane.b32.xlu1 %v10539_v36, %s14991_s3  ;;  %s8296_s3 = smov 83  }
 0x989   :  { %3786 = vrot.lane.b32.xlu0 %v10584_v45, %s14986_s25 }
 0x98a   :  { %3730 = vrot.lane.b32.xlu1 %v10536_v53, %s14989_s24 }
 0x98d   :  { %3838 = vrot.lane.b32.xlu0 %v10584_v45, %s14974_s15 }
 0x98e   :  { %3732 = vrot.lane.b32.xlu1 %v10539_v36, %s14989_s24  ;;  %s8294_s24 = smov 94  }
 0x991   :  { %3890 = vrot.lane.b32.xlu0 %v10584_v45, %s14973_s9 }
 0x992   :  { %3782 = vrot.lane.b32.xlu1 %v10536_v53, %s14986_s25 }
 0x995   :  { %3942 = vrot.lane.b32.xlu0 %v10584_v45, %s14984_s0 }
 0x996   :  { %3784 = vrot.lane.b32.xlu1 %v10539_v36, %s14986_s25  ;;  %s8292_s25 = smov 96  }
 0x999   :  { %3994 = vrot.lane.b32.xlu0 %v10584_v45, %s14975_s21 }
 0x99a   :  { %3834 = vrot.lane.b32.xlu1 %v10536_v53, %s14974_s15 }
 0x99d   :  { %4046 = vrot.lane.b32.xlu0 %v10584_v45, %s14976_s22 }
 0x99e   :  { %3836 = vrot.lane.b32.xlu1 %v10539_v36, %s14974_s15  ;;  %s14990_s15 = smov 2  }
 0x9a1   :  { %4098 = vrot.lane.b32.xlu0 %v10584_v45, %s14977_s4 }
 0x9a2   :  { %3886 = vrot.lane.b32.xlu1 %v10536_v53, %s14973_s9 }
 0x9a5   :  { %4149 = vrot.lane.b32.xlu0 %v10584_v45, %s14979_s6 }
 0x9a6   :  { %3888 = vrot.lane.b32.xlu1 %v10539_v36, %s14973_s9  ;;  %s14988_s9 = smov 3  }
 0x9a9   :  { %4200 = vrot.lane.b32.xlu0 %v10584_v45, %s14981_s26 }
 0x9aa   :  { %3938 = vrot.lane.b32.xlu1 %v10536_v53, %s14984_s0 }
 0x9ad   :  { %4251 = vrot.lane.b32.xlu0 %v10584_v45, %s14983_s30 }
 0x9ae   :  { %3940 = vrot.lane.b32.xlu1 %v10539_v36, %s14984_s0  ;;  %s8290_s0 = smov 98  }
 0x9b1   :  { %4303 = vrot.lane.b32.xlu0 %v10584_v45, %s14985_s7 }
 0x9b2   :  { %3990 = vrot.lane.b32.xlu1 %v10536_v53, %s14975_s21 }
 0x9b5   :  { %4355 = vrot.lane.b32.xlu0 %v10584_v45, %s14988_s9 }
 0x9b6   :  { %3992 = vrot.lane.b32.xlu1 %v10539_v36, %s14975_s21  ;;  %s15002_s21 = smov 125  }
 0x9b9   :  { %4407 = vrot.lane.b32.xlu0 %v10584_v45, %s14990_s15 }
 0x9ba   :  { %4042 = vrot.lane.b32.xlu1 %v10536_v53, %s14976_s22 }
 0x9bb   :  { %v10791_v27 = vpop.permute.xlu0 %3316 }
 0x9bc   :  { %v10681_v5 = vpop.permute.xlu1 %3260  ;;  %15574 = vst [vmem:[#allocation127_spill] sm:$0xff] %v10791_v27 }
 0x9bd   :  { %15565 = vst [vmem:[#allocation118_spill] sm:$0xff] %v10681_v5  ;;  %4459 = vrot.lane.b32.xlu0 %v10584_v45, %s14992_s11 }
 0x9be   :  { %4044 = vrot.lane.b32.xlu1 %v10539_v36, %s14976_s22  ;;  %s8285_s22 = smov 115  }
 0x9bf   :  { %v10803_v24 = vpop.permute.xlu0 %3366 }
 0x9c0   :  { %v10687_v17 = vpop.permute.xlu1 %3262  ;;  %15575 = vst [vmem:[#allocation128_spill] sm:$0xff] %v10803_v24 }
 0x9c1   :  { %4551 = vrot.lane.b32.xlu0 %v10591_v32, %s14994_s12 }
 0x9c2   :  { %4094 = vrot.lane.b32.xlu1 %v10536_v53, %s14977_s4 }
 0x9c3   :  { %v10813_v47 = vpop.permute.xlu0 %4547 }
 0x9c4   :  { %v10693_v49 = vpop.permute.xlu1 %3314  ;;  %15578 = vst [vmem:[#allocation131_spill] sm:$0xff] %v10813_v47 }
 0x9c5   :  { %4600 = vrot.lane.b32.xlu0 %v10584_v45, %s14997_s10 }
 0x9c6   :  { %4096 = vrot.lane.b32.xlu1 %v10539_v36, %s14977_s4  ;;  %s8286_s4 = smov 114  }
 0x9c7   :  { %v10825_v31 = vpop.permute.xlu0 %4596 }
 0x9c8   :  { %v10699_v50 = vpop.permute.xlu1 %3368  ;;  %15580 = vst [vmem:[#allocation133_spill] sm:$0xff] %v10825_v31 }
 0x9c9   :  { %4652 = vrot.lane.b32.xlu0 %v10584_v45, %s15002_s21 }
 0x9ca   :  { %4145 = vrot.lane.b32.xlu1 %v10536_v53, %s14979_s6 }
 0x9cb   :  { %v10835_v20 = vpop.permute.xlu0 %4906 }
 0x9cc   :  { %v10705_v59 = vpop.permute.xlu1 %3418  ;;  %15583 = vst [vmem:[#allocation136_spill] sm:$0xff] %v10835_v20 }
 0x9cd   :  { %15566 = vst [vmem:[#allocation119_spill] sm:$0xff] %v10705_v59  ;;  %4704 = vrot.lane.b32.xlu0 %v10584_v45, %s8285_s22 }
 0x9ce   :  { %4147 = vrot.lane.b32.xlu1 %v10539_v36, %s14979_s6  ;;  %s8287_s6 = smov 110  }
 0x9d0   :  { %v10711_v7 = vpop.permute.xlu1 %3420 }
 0x9d1   :  { %4756 = vrot.lane.b32.xlu0 %v10584_v45, %s8286_s4 }
 0x9d2   :  { %4196 = vrot.lane.b32.xlu1 %v10536_v53, %s14981_s26 }
 0x9d4   :  { %v10717_v23 = vpop.permute.xlu1 %3470 }
 0x9d5   :  { %15567 = vst [vmem:[#allocation120_spill] sm:$0xff] %v10717_v23  ;;  %4808 = vrot.lane.b32.xlu0 %v10584_v45, %s8213_s5 }
 0x9d6   :  { %4198 = vrot.lane.b32.xlu1 %v10539_v36, %s14981_s26  ;;  %s8288_s26 = smov 109  }
 0x9d8   :  { %v10723_v52 = vpop.permute.xlu1 %3472 }
 0x9d9   :  { %4859 = vrot.lane.b32.xlu0 %v10584_v45, %s8214_s23 }
 0x9da   :  { %4247 = vrot.lane.b32.xlu1 %v10536_v53, %s14983_s30 }
 0x9dc   :  { %v10729_v51 = vpop.permute.xlu1 %3522 }
 0x9dd   :  { %15568 = vst [vmem:[#allocation121_spill] sm:$0xff] %v10729_v51  ;;  %4910 = vrot.lane.b32.xlu0 %v10584_v45, %s8215_s28 }
 0x9de   :  { %4249 = vrot.lane.b32.xlu1 %v10539_v36, %s14983_s30  ;;  %s8289_s30 = smov 99  }
 0x9e0   :  { %v10735_v57 = vpop.permute.xlu1 %3524 }
 0x9e1   :  { %4961 = vrot.lane.b32.xlu0 %v10584_v45, %s8287_s6 }
 0x9e2   :  { %4299 = vrot.lane.b32.xlu1 %v10536_v53, %s14985_s7 }
 0x9e4   :  { %v10741_v19 = vpop.permute.xlu1 %3574 }
 0x9e5   :  { %15569 = vst [vmem:[#allocation122_spill] sm:$0xff] %v10741_v19  ;;  %5013 = vrot.lane.b32.xlu0 %v10584_v45, %s8288_s26 }
 0x9e6   :  { %4301 = vrot.lane.b32.xlu1 %v10539_v36, %s14985_s7  ;;  %s8291_s7 = smov 97  }
 0x9e8   :  { %v10747_v0 = vpop.permute.xlu1 %3576 }
 0x9e9   :  { %5065 = vrot.lane.b32.xlu0 %v10584_v45, %s8289_s30 }
 0x9ea   :  { %4351 = vrot.lane.b32.xlu1 %v10536_v53, %s14988_s9 }
 0x9ec   :  { %v10753_v25 = vpop.permute.xlu1 %3626 }
 0x9ed   :  { %15570 = vst [vmem:[#allocation123_spill] sm:$0xff] %v10753_v25  ;;  %5117 = vrot.lane.b32.xlu0 %v10584_v45, %s8290_s0 }
 0x9ee   :  { %4353 = vrot.lane.b32.xlu1 %v10539_v36, %s14988_s9  ;;  %s8293_s9 = smov 95  }
 0x9f0   :  { %v10759_v3 = vpop.permute.xlu1 %3628 }
 0x9f1   :  { %5169 = vrot.lane.b32.xlu0 %v10584_v45, %s8291_s7 }
 0x9f2   :  { %4403 = vrot.lane.b32.xlu1 %v10536_v53, %s14990_s15 }
 0x9f4   :  { %v10765_v2 = vpop.permute.xlu1 %3678 }
 0x9f5   :  { %15571 = vst [vmem:[#allocation124_spill] sm:$0xff] %v10765_v2  ;;  %5221 = vrot.lane.b32.xlu0 %v10584_v45, %s8292_s25 }
 0x9f6   :  { %4405 = vrot.lane.b32.xlu1 %v10539_v36, %s14990_s15  ;;  %s8295_s15 = smov 93  }
 0x9f8   :  { %v10771_v4 = vpop.permute.xlu1 %3680 }
 0x9f9   :  { %5273 = vrot.lane.b32.xlu0 %v10584_v45, %s8293_s9 }
 0x9fa   :  { %4455 = vrot.lane.b32.xlu1 %v10536_v53, %s14992_s11 }
 0x9fc   :  { %v10777_v30 = vpop.permute.xlu1 %3730 }
 0x9fd   :  { %15572 = vst [vmem:[#allocation125_spill] sm:$0xff] %v10777_v30  ;;  %5325 = vrot.lane.b32.xlu0 %v10584_v45, %s8294_s24 }
 0x9fe   :  { %4457 = vrot.lane.b32.xlu1 %v10539_v36, %s14992_s11  ;;  %s8297_s11 = smov 82  }
 0xa00   :  { %v10783_v62 = vpop.permute.xlu1 %3732 }
 0xa01   :  { %5377 = vrot.lane.b32.xlu0 %v10584_v45, %s8295_s15 }
 0xa02   :  { %4545 = vrot.lane.b32.xlu1 %v10536_v53, %s14994_s12  ;;  %s8298_s12 = smov 81  }
 0xa04   :  { %v10789_v16 = vpop.permute.xlu1 %3782 }
 0xa05   :  { %15573 = vst [vmem:[#allocation126_spill] sm:$0xff] %v10789_v16  ;;  %5429 = vrot.lane.b32.xlu0 %v10584_v45, %s8296_s3 }
 0xa06   :  { %4598 = vrot.lane.b32.xlu1 %v10539_v36, %s14997_s10  ;;  %s8299_s10 = smov 80  }
 0xa08   :  { %v10797_v28 = vpop.permute.xlu1 %3784 }
 0xa09   :  { %5481 = vrot.lane.b32.xlu0 %v10584_v45, %s8297_s11 }
 0xa0a   :  { %4648 = vrot.lane.b32.xlu1 %v10536_v53, %s15002_s21 }
 0xa0c   :  { %v10805_v8 = vpop.permute.xlu1 %3834 }
 0xa0d   :  { %15576 = vst [vmem:[#allocation129_spill] sm:$0xff] %v10805_v8  ;;  %5533 = vrot.lane.b32.xlu0 %v10584_v45, %s8298_s12 }
 0xa0e   :  { %4650 = vrot.lane.b32.xlu1 %v10539_v36, %s15002_s21  ;;  %s15107_s21 = smov 78  }
 0xa10   :  { %v10811_v46 = vpop.permute.xlu1 %3836 }
 0xa11   :  { %15577 = vst [vmem:[#allocation130_spill] sm:$0xff] %v10811_v46  ;;  %5585 = vrot.lane.b32.xlu0 %v10584_v45, %s8299_s10  ;;  %v11193_v46 = vld [vmem:[%s14782_s16 + $0x40] ss:$8 sm:$0xf] }
 0xa12   :  { %4700 = vrot.lane.b32.xlu1 %v10536_v53, %s8285_s22  ;;  %15684 = vst [vmem:[#allocation227_spill] sm:$0xff] %v11193_v46 }
 0xa14   :  { %v10819_v38 = vpop.permute.xlu1 %3886 }
 0xa15   :  { %15579 = vst [vmem:[#allocation132_spill] sm:$0xff] %v10819_v38  ;;  %5637 = vrot.lane.b32.xlu0 %v10584_v45, %s8300_s1  ;;  %v11139_v38 = vld [vmem:[%s14782_s16 + $0x25] ss:$8 sm:$0xf] }
 0xa16   :  { %4702 = vrot.lane.b32.xlu1 %v10539_v36, %s8285_s22  ;;  %15675 = vst [vmem:[#allocation219_spill] sm:$0xff] %v11139_v38 }
 0xa18   :  { %v10827_v33 = vpop.permute.xlu1 %3888 }
 0xa19   :  { %15581 = vst [vmem:[#allocation134_spill] sm:$0xff] %v10827_v33  ;;  %5689 = vrot.lane.b32.xlu0 %v10584_v45, %s15107_s21 }
 0xa1a   :  { %4752 = vrot.lane.b32.xlu1 %v10536_v53, %s8286_s4 }
 0xa1c   :  { %v10833_v41 = vpop.permute.xlu1 %3938 }
 0xa1d   :  { %15582 = vst [vmem:[#allocation135_spill] sm:$0xff] %v10833_v41  ;;  %5741 = vrot.lane.b32.xlu0 %v10584_v45, %s15090_s27 }
 0xa1e   :  { %4754 = vrot.lane.b32.xlu1 %v10539_v36, %s8286_s4 }
 0xa20   :  { %v10841_v55 = vpop.permute.xlu1 %3940 }
 0xa21   :  { %15584 = vst [vmem:[#allocation137_spill] sm:$0xff] %v10841_v55 }
 0xa22   :  { %4804 = vrot.lane.b32.xlu1 %v10536_v53, %s8213_s5 }
 0xa24   :  { %v10845_v58 = vpop.permute.xlu1 %3990 }
 0xa25   :  { %15585 = vst [vmem:[#allocation138_spill] sm:$0xff] %v10845_v58 }
 0xa26   :  { %4806 = vrot.lane.b32.xlu1 %v10539_v36, %s8213_s5 }
 0xa28   :  { %v10849_v60 = vpop.permute.xlu1 %3992 }
 0xa29   :  { %15586 = vst [vmem:[#allocation139_spill] sm:$0xff] %v10849_v60 }
 0xa2a   :  { %4855 = vrot.lane.b32.xlu1 %v10536_v53, %s8214_s23 }
 0xa2c   :  { %v10853_v20 = vpop.permute.xlu1 %4042 }
 0xa2d   :  { %15587 = vst [vmem:[#allocation140_spill] sm:$0xff] %v10853_v20 }
 0xa2e   :  { %4857 = vrot.lane.b32.xlu1 %v10539_v36, %s8214_s23 }
 0xa30   :  { %v10857_v63 = vpop.permute.xlu1 %4044 }
 0xa31   :  { %15588 = vst [vmem:[#allocation141_spill] sm:$0xff] %v10857_v63 }
 0xa32   :  { %4908 = vrot.lane.b32.xlu1 %v10539_v36, %s8215_s28 }
 0xa34   :  { %v10861_v54 = vpop.permute.xlu1 %4094 }
 0xa35   :  { %15589 = vst [vmem:[#allocation142_spill] sm:$0xff] %v10861_v54 }
 0xa36   :  { %4957 = vrot.lane.b32.xlu1 %v10536_v53, %s8287_s6 }
 0xa38   :  { %v10865_v43 = vpop.permute.xlu1 %4096 }
 0xa39   :  { %15590 = vst [vmem:[#allocation143_spill] sm:$0xff] %v10865_v43 }
 0xa3a   :  { %4959 = vrot.lane.b32.xlu1 %v10539_v36, %s8287_s6 }
 0xa3c   :  { %v10869_v31 = vpop.permute.xlu1 %4145 }
 0xa3d   :  { %15591 = vst [vmem:[#allocation144_spill] sm:$0xff] %v10869_v31 }
 0xa3e   :  { %5009 = vrot.lane.b32.xlu1 %v10536_v53, %s8288_s26 }
 0xa40   :  { %v10873_v47 = vpop.permute.xlu1 %4147 }
 0xa41   :  { %15592 = vst [vmem:[#allocation145_spill] sm:$0xff] %v10873_v47 }
 0xa42   :  { %5011 = vrot.lane.b32.xlu1 %v10539_v36, %s8288_s26 }
 0xa44   :  { %v10877_v18 = vpop.permute.xlu1 %4196 }
 0xa45   :  { %15593 = vst [vmem:[#allocation146_spill] sm:$0xff] %v10877_v18 }
 0xa46   :  { %5061 = vrot.lane.b32.xlu1 %v10536_v53, %s8289_s30 }
 0xa48   :  { %v10881_v13 = vpop.permute.xlu1 %4198 }
 0xa49   :  { %15594 = vst [vmem:[#allocation147_spill] sm:$0xff] %v10881_v13 }
 0xa4a   :  { %5063 = vrot.lane.b32.xlu1 %v10539_v36, %s8289_s30 }
 0xa4c   :  { %v10885_v40 = vpop.permute.xlu1 %4247 }
 0xa4d   :  { %15595 = vst [vmem:[#allocation148_spill] sm:$0xff] %v10885_v40  ;;  %v10905_v40 = vpop.permute.xlu0 %5737 }
 0xa4e   :  { %5113 = vrot.lane.b32.xlu1 %v10536_v53, %s8290_s0  ;;  %15600 = vst [vmem:[#allocation153_spill] sm:$0xff] %v10905_v40 }
 0xa50   :  { %v10889_v21 = vpop.permute.xlu1 %4249 }
 0xa51   :  { %15596 = vst [vmem:[#allocation149_spill] sm:$0xff] %v10889_v21  ;;  %v10913_v47 = vpop.permute.xlu0 %3264 }
 0xa52   :  { %5115 = vrot.lane.b32.xlu1 %v10539_v36, %s8290_s0  ;;  %15603 = vst [vmem:[#allocation156_spill] sm:$0xff] %v10913_v47 }
 0xa54   :  { %v10893_v31 = vpop.permute.xlu1 %4299 }
 0xa55   :  { %15597 = vst [vmem:[#allocation150_spill] sm:$0xff] %v10893_v31 }
 0xa56   :  { %5165 = vrot.lane.b32.xlu1 %v10536_v53, %s8291_s7 }
 0xa58   :  { %v10897_v18 = vpop.permute.xlu1 %4301 }
 0xa59   :  { %15598 = vst [vmem:[#allocation151_spill] sm:$0xff] %v10897_v18 }
 0xa5a   :  { %5167 = vrot.lane.b32.xlu1 %v10539_v36, %s8291_s7 }
 0xa5c   :  { %v10901_v13 = vpop.permute.xlu1 %4351 }
 0xa5d   :  { %15599 = vst [vmem:[#allocation152_spill] sm:$0xff] %v10901_v13  ;;  %v10921_v13 = vpop.permute.xlu0 %3320 }
 0xa5e   :  { %5217 = vrot.lane.b32.xlu1 %v10536_v53, %s8292_s25  ;;  %15605 = vst [vmem:[#allocation158_spill] sm:$0xff] %v10921_v13 }
 0xa60   :  { %v10907_v21 = vpop.permute.xlu1 %4353 }
 0xa61   :  { %15601 = vst [vmem:[#allocation154_spill] sm:$0xff] %v10907_v21 }
 0xa62   :  { %5219 = vrot.lane.b32.xlu1 %v10539_v36, %s8292_s25 }
 0xa64   :  { %v10911_v31 = vpop.permute.xlu1 %4403 }
 0xa65   :  { %15602 = vst [vmem:[#allocation155_spill] sm:$0xff] %v10911_v31  ;;  %v10929_v31 = vpop.permute.xlu0 %3370 }
 0xa66   :  { %5269 = vrot.lane.b32.xlu1 %v10536_v53, %s8293_s9  ;;  %15608 = vst [vmem:[#allocation161_spill] sm:$0xff] %v10929_v31 }
 0xa68   :  { %v10917_v18 = vpop.permute.xlu1 %4405 }
 0xa69   :  { %15604 = vst [vmem:[#allocation157_spill] sm:$0xff] %v10917_v18  ;;  %v10937_v18 = vpop.permute.xlu0 %3422 }
 0xa6a   :  { %5271 = vrot.lane.b32.xlu1 %v10539_v36, %s8293_s9  ;;  %15610 = vst [vmem:[#allocation163_spill] sm:$0xff] %v10937_v18 }
 0xa6c   :  { %v10923_v40 = vpop.permute.xlu1 %4455 }
 0xa6d   :  { %15606 = vst [vmem:[#allocation159_spill] sm:$0xff] %v10923_v40 }
 0xa6e   :  { %5321 = vrot.lane.b32.xlu1 %v10536_v53, %s8294_s24 }
 0xa70   :  { %v10927_v21 = vpop.permute.xlu1 %4457 }
 0xa71   :  { %15607 = vst [vmem:[#allocation160_spill] sm:$0xff] %v10927_v21  ;;  %v10945_v21 = vpop.permute.xlu0 %3474 }
 0xa72   :  { %5323 = vrot.lane.b32.xlu1 %v10539_v36, %s8294_s24  ;;  %15613 = vst [vmem:[#allocation166_spill] sm:$0xff] %v10945_v21 }
 0xa74   :  { %v10933_v26 = vpop.permute.xlu1 %4545 }
 0xa75   :  { %15609 = vst [vmem:[#allocation162_spill] sm:$0xff] %v10933_v26  ;;  %v10953_v26 = vpop.permute.xlu0 %3526 }
 0xa76   :  { %5373 = vrot.lane.b32.xlu1 %v10536_v53, %s8295_s15  ;;  %15615 = vst [vmem:[#allocation168_spill] sm:$0xff] %v10953_v26 }
 0xa78   :  { %v10939_v54 = vpop.permute.xlu1 %4598 }
 0xa79   :  { %15611 = vst [vmem:[#allocation164_spill] sm:$0xff] %v10939_v54 }
 0xa7a   :  { %5375 = vrot.lane.b32.xlu1 %v10539_v36, %s8295_s15 }
 0xa7c   :  { %v10943_v40 = vpop.permute.xlu1 %4648 }
 0xa7d   :  { %15612 = vst [vmem:[#allocation165_spill] sm:$0xff] %v10943_v40  ;;  %v10961_v40 = vpop.permute.xlu0 %3578 }
 0xa7e   :  { %5425 = vrot.lane.b32.xlu1 %v10536_v53, %s8296_s3  ;;  %15618 = vst [vmem:[#allocation171_spill] sm:$0xff] %v10961_v40 }
 0xa80   :  { %v10949_v43 = vpop.permute.xlu1 %4650 }
 0xa81   :  { %15614 = vst [vmem:[#allocation167_spill] sm:$0xff] %v10949_v43  ;;  %v10969_v43 = vpop.permute.xlu0 %3630 }
 0xa82   :  { %5427 = vrot.lane.b32.xlu1 %v10539_v36, %s8296_s3  ;;  %15620 = vst [vmem:[#allocation173_spill] sm:$0xff] %v10969_v43 }
 0xa84   :  { %v10955_v22 = vpop.permute.xlu1 %4700 }
 0xa85   :  { %15616 = vst [vmem:[#allocation169_spill] sm:$0xff] %v10955_v22 }
 0xa86   :  { %5477 = vrot.lane.b32.xlu1 %v10536_v53, %s8297_s11 }
 0xa88   :  { %v10959_v54 = vpop.permute.xlu1 %4702 }
 0xa89   :  { %15617 = vst [vmem:[#allocation170_spill] sm:$0xff] %v10959_v54  ;;  %v10977_v54 = vpop.permute.xlu0 %3682 }
 0xa8a   :  { %5479 = vrot.lane.b32.xlu1 %v10539_v36, %s8297_s11  ;;  %15623 = vst [vmem:[#allocation176_spill] sm:$0xff] %v10977_v54  ;;  %v11275_v54 = vld [vmem:[%s14782_s16 + $0x47] ss:$8 sm:$0xf] }
 0xa8b   :  { %15694 = vst [vmem:[#allocation236_spill] sm:$0xff] %v11275_v54 }
 0xa8c   :  { %v10965_v20 = vpop.permute.xlu1 %4752 }
 0xa8d   :  { %15619 = vst [vmem:[#allocation172_spill] sm:$0xff] %v10965_v20  ;;  %v10985_v20 = vpop.permute.xlu0 %3734 }
 0xa8e   :  { %5529 = vrot.lane.b32.xlu1 %v10536_v53, %s8298_s12  ;;  %15625 = vst [vmem:[#allocation178_spill] sm:$0xff] %v10985_v20 }
 0xa90   :  { %v10971_v63 = vpop.permute.xlu1 %4754 }
 0xa91   :  { %15621 = vst [vmem:[#allocation174_spill] sm:$0xff] %v10971_v63 }
 0xa92   :  { %5531 = vrot.lane.b32.xlu1 %v10539_v36, %s8298_s12 }
 0xa94   :  { %v10975_v22 = vpop.permute.xlu1 %4804 }
 0xa95   :  { %15622 = vst [vmem:[#allocation175_spill] sm:$0xff] %v10975_v22  ;;  %v10993_v22 = vpop.permute.xlu0 %3786 }
 0xa96   :  { %5581 = vrot.lane.b32.xlu1 %v10536_v53, %s8299_s10  ;;  %15628 = vst [vmem:[#allocation181_spill] sm:$0xff] %v10993_v22 }
 0xa98   :  { %v10981_v12 = vpop.permute.xlu1 %4806 }
 0xa99   :  { %15624 = vst [vmem:[#allocation177_spill] sm:$0xff] %v10981_v12  ;;  %v11001_v12 = vpop.permute.xlu0 %3838 }
 0xa9a   :  { %5583 = vrot.lane.b32.xlu1 %v10539_v36, %s8299_s10  ;;  %15630 = vst [vmem:[#allocation183_spill] sm:$0xff] %v11001_v12 }
 0xa9c   :  { %v10987_v58 = vpop.permute.xlu1 %4855 }
 0xa9d   :  { %15626 = vst [vmem:[#allocation179_spill] sm:$0xff] %v10987_v58 }
 0xa9e   :  { %5633 = vrot.lane.b32.xlu1 %v10536_v53, %s8300_s1 }
 0xaa0   :  { %v10991_v63 = vpop.permute.xlu1 %4857 }
 0xaa1   :  { %15627 = vst [vmem:[#allocation180_spill] sm:$0xff] %v10991_v63  ;;  %v11009_v63 = vpop.permute.xlu0 %3890 }
 0xaa2   :  { %5635 = vrot.lane.b32.xlu1 %v10539_v36, %s8300_s1  ;;  %15633 = vst [vmem:[#allocation186_spill] sm:$0xff] %v11009_v63 }
 0xaa4   :  { %v10997_v60 = vpop.permute.xlu1 %4908 }
 0xaa5   :  { %15629 = vst [vmem:[#allocation182_spill] sm:$0xff] %v10997_v60  ;;  %v11017_v60 = vpop.permute.xlu0 %3942 }
 0xaa6   :  { %5685 = vrot.lane.b32.xlu1 %v10536_v53, %s15107_s21  ;;  %15635 = vst [vmem:[#allocation188_spill] sm:$0xff] %v11017_v60 }
 0xaa8   :  { %v11003_v11 = vpop.permute.xlu1 %4957 }
 0xaa9   :  { %15631 = vst [vmem:[#allocation184_spill] sm:$0xff] %v11003_v11 }
 0xaaa   :  { %5687 = vrot.lane.b32.xlu1 %v10539_v36, %s15107_s21  ;;  %s15793_s21 = smov 125  }
 0xaac   :  { %v11007_v58 = vpop.permute.xlu1 %4959 }
 0xaad   :  { %15632 = vst [vmem:[#allocation185_spill] sm:$0xff] %v11007_v58  ;;  %v11025_v58 = vpop.permute.xlu0 %3994 }
 0xaae   :  { %5739 = vrot.lane.b32.xlu1 %v10539_v36, %s15090_s27  ;;  %15638 = vst [vmem:[#allocation191_spill] sm:$0xff] %v11025_v58  ;;  %s15688_s27 = smov 16  }
 0xab0   :  { %v11013_v22 = vpop.permute.xlu1 %5009 }
 0xab1   :  { %15634 = vst [vmem:[#allocation187_spill] sm:$0xff] %v11013_v22  ;;  %v11033_v22 = vpop.permute.xlu0 %4046 }
 0xab2   :  { %3266 = vrot.lane.b32.xlu1 %v10591_v32, %s8264_s18  ;;  %15640 = vst [vmem:[#allocation193_spill] sm:$0xff] %v11033_v22  ;;  %s15650_s18 = smov 34  }
 0xab4   :  { %v11019_v12 = vpop.permute.xlu1 %5011 }
 0xab5   :  { %15636 = vst [vmem:[#allocation189_spill] sm:$0xff] %v11019_v12 }
 0xab6   :  { %3318 = vrot.lane.b32.xlu1 %v10584_v45, %s8263_s14  ;;  %s15647_s14 = smov 35  }
 0xab8   :  { %v11023_v11 = vpop.permute.xlu1 %5061 }
 0xab9   :  { %15637 = vst [vmem:[#allocation190_spill] sm:$0xff] %v11023_v11  ;;  %v11041_v11 = vpop.permute.xlu0 %4098 }
 0xaba   :  { %3372 = vrot.lane.b32.xlu1 %v10591_v32, %s8265_s19  ;;  %15643 = vst [vmem:[#allocation196_spill] sm:$0xff] %v11041_v11  ;;  %s15652_s19 = smov 33  }
 0xabc   :  { %v11029_v63 = vpop.permute.xlu1 %5063 }
 0xabd   :  { %15639 = vst [vmem:[#allocation192_spill] sm:$0xff] %v11029_v63  ;;  %v11049_v63 = vpop.permute.xlu0 %4149 }
 0xabe   :  { %3424 = vrot.lane.b32.xlu1 %v10591_v32, %s8267_s29  ;;  %15645 = vst [vmem:[#allocation198_spill] sm:$0xff] %v11049_v63  ;;  %s15655_s29 = smov 32  }
 0xac0   :  { %v11035_v60 = vpop.permute.xlu1 %5113 }
 0xac1   :  { %15641 = vst [vmem:[#allocation194_spill] sm:$0xff] %v11035_v60 }
 0xac2   :  { %3476 = vrot.lane.b32.xlu1 %v10591_v32, %s8269_s2  ;;  %s15658_s2 = smov 31  }
 0xac4   :  { %v11039_v12 = vpop.permute.xlu1 %5115 }
 0xac5   :  { %15642 = vst [vmem:[#allocation195_spill] sm:$0xff] %v11039_v12  ;;  %v11057_v12 = vpop.permute.xlu0 %4200 }
 0xac6   :  { %3528 = vrot.lane.b32.xlu1 %v10591_v32, %s8270_s20  ;;  %15649 = vst [vmem:[#allocation201_spill] sm:$0xff] %v11057_v12  ;;  %s15660_s20 = smov 30  }
 0xac8   :  { %v11045_v58 = vpop.permute.xlu1 %5165 }
 0xac9   :  { %15644 = vst [vmem:[#allocation197_spill] sm:$0xff] %v11045_v58  ;;  %v11065_v58 = vpop.permute.xlu0 %4251 }
 0xaca   :  { %3580 = vrot.lane.b32.xlu1 %v10591_v32, %s8271_s13  ;;  %15653 = vst [vmem:[#allocation203_spill] sm:$0xff] %v11065_v58  ;;  %s15663_s13 = smov 29  }
 0xacc   :  { %v11051_v22 = vpop.permute.xlu1 %5167 }
 0xacd   :  { %15646 = vst [vmem:[#allocation199_spill] sm:$0xff] %v11051_v22 }
 0xace   :  { %3632 = vrot.lane.b32.xlu1 %v10591_v32, %s15647_s14  ;;  %s15677_s14 = smov 17  }
 0xad0   :  { %v11055_v60 = vpop.permute.xlu1 %5217 }
 0xad1   :  { %15648 = vst [vmem:[#allocation200_spill] sm:$0xff] %v11055_v60  ;;  %v11073_v60 = vpop.permute.xlu0 %4303 }
 0xad2   :  { %3684 = vrot.lane.b32.xlu1 %v10591_v32, %s15650_s18  ;;  %15657 = vst [vmem:[#allocation206_spill] sm:$0xff] %v11073_v60  ;;  %s15701_s18 = smov 14  }
 0xad4   :  { %v11061_v11 = vpop.permute.xlu1 %5219 }
 0xad5   :  { %15651 = vst [vmem:[#allocation202_spill] sm:$0xff] %v11061_v11  ;;  %v11081_v11 = vpop.permute.xlu0 %4355 }
 0xad6   :  { %3736 = vrot.lane.b32.xlu1 %v10591_v32, %s15652_s19  ;;  %15661 = vst [vmem:[#allocation208_spill] sm:$0xff] %v11081_v11  ;;  %s15666_s19 = smov 19  }
 0xad8   :  { %v11067_v63 = vpop.permute.xlu1 %5269 }
 0xad9   :  { %15654 = vst [vmem:[#allocation204_spill] sm:$0xff] %v11067_v63  ;;  %v6925_v63 = vld [vmem:[%s14782_s16 + $0x81] ss:$8 sm:$0xf]  ;;  %v11093_v41 = vpop.permute.xlu0 %4407 }
 0xada   :  { %3788 = vrot.lane.b32.xlu1 %v10591_v32, %s15655_s29  ;;  %v4512_v60 = vrot.slane %v6925_v63, %v15429_v1  ;;  %15665 = vst [vmem:[#allocation211_spill] sm:$0xff] %v11093_v41  ;;  %v4524_v55 = vrot.slane %v6925_v63, %v15442_v15 }
 0xadc   :  { %v11071_v22 = vpop.permute.xlu1 %5271  ;;  %v4529_v56 = vmul.f32 %v4512_v60, %v10536_v53  ;;  %v11125_v60 = vld [vmem:[%s14782_s16 + $0x24] ss:$8 sm:$0xf]  ;;  %v4532_v15 = vmul.f32 %v4524_v55, %v10591_v32 }
 0xadd   :  { %15656 = vst [vmem:[#allocation205_spill] sm:$0xff] %v11071_v22  ;;  %15672 = vst [vmem:[#allocation216_spill] sm:$0xff] %v11125_v60  ;;  %v11127_v53 = vpop.permute.xlu0 %4459 }
 0xade   :  { %3840 = vrot.lane.b32.xlu1 %v10591_v32, %s15658_s2  ;;  %15673 = vst [vmem:[#allocation217_spill] sm:$0xff] %v11127_v53  ;;  %v11142_v33 = vmul.f32 %v10457_v37, %v4529_v56  ;;  %v3441_v56 = vrot.slane %v11125_v60, %v15431_v9  ;;  %v11162_v53 = vld [vmem:[%s14782_s16 + $0x26] ss:$8 sm:$0xf] }
 0xadf   :  { %15679 = vst [vmem:[#allocation222_spill] sm:$0xff] %v11162_v53 }
 0xae0   :  { %v11077_v12 = vpop.permute.xlu1 %5321  ;;  %15676 = vst [vmem:[#allocation220_spill] sm:$0xff] %v11142_v33  ;;  %v11174_v33 = vld [vmem:[%s14782_s16 + $0x27] ss:$8 sm:$0xf] }
 0xae1   :  { %15659 = vst [vmem:[#allocation207_spill] sm:$0xff] %v11077_v12  ;;  %v4516_v12 = vrot.slane %v6925_v63, %v15431_v9  ;;  %15680 = vst [vmem:[#allocation223_spill] sm:$0xff] %v11174_v33 }
 0xae2   :  { %3892 = vrot.lane.b32.xlu1 %v10591_v32, %s15660_s20  ;;  %s15715_s20 = smov 3  }
 0xae3   :  { %v4530_v41 = vmul.f32 %v4516_v12, %v10539_v36 }
 0xae4   :  { %v11083_v58 = vpop.permute.xlu1 %5323 }
 0xae5   :  { %15662 = vst [vmem:[#allocation209_spill] sm:$0xff] %v11083_v58  ;;  %v4520_v58 = vrot.slane %v6925_v63, %v15448_v29  ;;  %v11119_v63 = vld [vmem:[%s14782_s16 + $0x23] ss:$8 sm:$0xf] }
 0xae6   :  { %3944 = vrot.lane.b32.xlu1 %v10591_v32, %s15663_s13  ;;  %s15669_s13 = smov 18   ;;  %15671 = vst [vmem:[#allocation215_spill] sm:$0xff] %v11119_v63  ;;  %v3389_v55 = vrot.slane %v11119_v63, %v15431_v9 }
 0xae7   :  { %v4531_v36 = vmul.f32 %v4520_v58, %v10584_v45  ;;  %v11152_v58 = vmul.f32 %v10457_v37, %v4530_v41  ;;  %v11182_v45 = vmul.f32 %v10457_v37, %v4532_v15  ;;  %v3325_v41 = vsel %vm15128_vm3, %v10693_v49, %v10791_v27  ;;  %v11232_v27 = vld [vmem:[%s14782_s16 + $0x43] ss:$8 sm:$0xf] }
 0xae8   :  { %v11090_v22 = vpop.permute.xlu1 %5373  ;;  %v3271_v15 = vsel %vm15125_vm1, %v10681_v5, %v10687_v17  ;;  %15689 = vst [vmem:[#allocation231_spill] sm:$0xff] %v11232_v27  ;;  %v11280_v5 = vld [vmem:[%s14782_s16 + $0x60] ss:$8 sm:$0xf] }
 0xae9   :  { %15664 = vst [vmem:[#allocation210_spill] sm:$0xff] %v11090_v22  ;;  %v11106_v22 = vld [vmem:[%s14782_s16 + $0x21] ss:$8 sm:$0xf]  ;;  %15678 = vst [vmem:[#allocation221_spill] sm:$0xff] %v11152_v58  ;;  %v11179_v8 = vmul.f32 %v10457_v37, %v4531_v36  ;;  %v3377_v58 = vsel %vm3374_vm12, %v10803_v24, %v10699_v50 }
 0xaea   :  { %3996 = vrot.lane.b32.xlu1 %v10591_v32, %s15666_s19  ;;  %15668 = vst [vmem:[#allocation213_spill] sm:$0xff] %v11106_v22  ;;  %v3283_v20 = vrot.slane %v11106_v22, %v15431_v9  ;;  %15683 = vst [vmem:[#allocation226_spill] sm:$0xff] %v11182_v45  ;;  %v11198_v36 = vld [vmem:[%s14782_s16 + $0x41] ss:$8 sm:$0xf]  ;;  %v11212_v45 = vpop.permute.xlu0 %4551  ;;  %v3403_v16 = vmul.f32 %v3389_v55, %v3377_v58  ;;  %s15725_s19 = smov 2  }
 0xaeb   :  { %15682 = vst [vmem:[#allocation225_spill] sm:$0xff] %v11179_v8  ;;  %15685 = vst [vmem:[#allocation228_spill] sm:$0xff] %v11198_v36  ;;  %v11210_v8 = vld [vmem:[%s14782_s16 + $0x42] ss:$8 sm:$0xf] }
 0xaec   :  { %v11098_v11 = vpop.permute.xlu1 %5375  ;;  %15686 = vst [vmem:[#allocation229_spill] sm:$0xff] %v11210_v8  ;;  %15687 = vst [vmem:[#allocation230_spill] sm:$0xff] %v11212_v45  ;;  %v11243_v37 = vld [vmem:[%s14782_s16 + $0x44] ss:$8 sm:$0xf] }
 0xaed   :  { %15667 = vst [vmem:[#allocation212_spill] sm:$0xff] %v11098_v11  ;;  %v11114_v11 = vld [vmem:[%s14782_s16 + $0x22] ss:$8 sm:$0xf]  ;;  %15690 = vst [vmem:[#allocation232_spill] sm:$0xff] %v11243_v37 }
 0xaee   :  { %4048 = vrot.lane.b32.xlu1 %v10591_v32, %s15669_s13  ;;  %15670 = vst [vmem:[#allocation214_spill] sm:$0xff] %v11114_v11  ;;  %15695 = vst [vmem:[#allocation237_spill] sm:$0xff] %v11280_v5  ;;  %s15696_s13 = smov 15   ;;  %v11298_v8 = vpop.permute.xlu0 %4600  ;;  %v11303_v55 = vld [vmem:[%s14782_s16 + $0x61] ss:$8 sm:$0xf] }
 0xaef   :  { %15697 = vst [vmem:[#allocation238_spill] sm:$0xff] %v11298_v8  ;;  %15698 = vst [vmem:[#allocation239_spill] sm:$0xff] %v11303_v55  ;;  %v3411_v8 = vmul.f32 %v10337_v6, %v3403_v16  ;;  %v3326_v16 = vsel %vm15128_vm3, %v10921_v13, %v10693_v49  ;;  %v3533_v49 = vsel %vm3530_vm15, %v10729_v51, %v10735_v57  ;;  %vm15167_vm3 = vcmp.lt.s32.totalorder %v8980_v48, 31 }
 0xaf0   :  { %v11129_v12 = vpop.permute.xlu1 %5425  ;;  %v15705_v13 = vrot.slane %v11114_v11, %v15429_v1 }
 0xaf1   :  { %15674 = vst [vmem:[#allocation218_spill] sm:$0xff] %v11129_v12  ;;  %v3337_v12 = vrot.slane %v11114_v11, %v15431_v9 }
 0xaf2   :  { %4100 = vrot.lane.b32.xlu1 %v10591_v32, %s15677_s14 }
 0xaf3   :  { %v3351_v45 = vmul.f32 %v3337_v12, %v3325_v41  ;;  %v3429_v41 = vsel %vm15132_vm13, %v10705_v59, %v10711_v7 }
 0xaf4   :  { %v11176_v44 = vpop.permute.xlu1 %5427  ;;  %v3455_v59 = vmul.f32 %v3441_v56, %v3429_v41  ;;  %v3481_v41 = vsel %vm15133_vm14, %v10717_v23, %v10723_v52  ;;  %v15702_v23 = vrot.slane %v11139_v38, %v15431_v9 }
 0xaf5   :  { %15681 = vst [vmem:[#allocation224_spill] sm:$0xff] %v11176_v44  ;;  %v11248_v44 = vld [vmem:[%s14782_s16 + $0x45] ss:$8 sm:$0xf]  ;;  %v3359_v24 = vmul.f32 %v10453_v42, %v3351_v45 }
 0xaf6   :  { %4151 = vrot.lane.b32.xlu1 %v10591_v32, %s15688_s27  ;;  %15691 = vst [vmem:[#allocation233_spill] sm:$0xff] %v11248_v44  ;;  %v11308_v45 = vld [vmem:[%s14782_s16 + $0x62] ss:$8 sm:$0xf]  ;;  %v3507_v5 = vmul.f32 %v15702_v23, %v3481_v41  ;;  %v3376_v23 = vsel %vm3374_vm12, %v10699_v50, %v10929_v31 }
 0xaf7   :  { %15699 = vst [vmem:[#allocation240_spill] sm:$0xff] %v11308_v45 }
 0xaf8   :  { %v11250_v12 = vpop.permute.xlu1 %5477  ;;  %v3515_v31 = vmul.f32 %v10345_v34, %v3507_v5 }
 0xaf9   :  { %15692 = vst [vmem:[#allocation234_spill] sm:$0xff] %v11250_v12  ;;  %v3297_v12 = vmul.f32 %v3283_v20, %v3271_v15  ;;  %v11334_v15 = vld [vmem:[%s14782_s16 + $0x63] ss:$8 sm:$0xf] }
 0xafa   :  { %4202 = vrot.lane.b32.xlu1 %v10591_v32, %s15696_s13 }
 0xafb   :  { %v3307_v58 = vmul.f32 %v10471_v61, %v3297_v12  ;;  %v11360_v12 = vld [vmem:[%s14782_s16 + $0x64] ss:$8 sm:$0xf] }
 0xafc   :  { %v11310_v56 = vpop.permute.xlu1 %5479 }
 0xafd   :  { %15700 = vst [vmem:[#allocation241_spill] sm:$0xff] %v11310_v56  ;;  %v3270_v56 = vsel %vm15125_vm1, %v10687_v17, %v10913_v47  ;;  %v3363_v27 = vadd.f32 %v3359_v24, %v3307_v58  ;;  %v3463_v47 = vmul.f32 %v10342_v39, %v3455_v59  ;;  %vm15161_vm1 = vcmp.lt.s32.totalorder %v8980_v48, 32  ;;  %v11444_v58 = vld [vmem:[%s14782_s16 + $0x66] ss:$8 sm:$0xf] }
 0xafe   :  { %4253 = vrot.lane.b32.xlu1 %v10591_v32, %s15701_s18  ;;  %v15704_v59 = vrot.slane %v11106_v22, %v15448_v29  ;;  %s15707_s18 = smov 13  }
 0xaff   :  { %v3415_v17 = vadd.f32 %v3411_v8, %v3363_v27  ;;  %v11390_v27 = vld [vmem:[%s14782_s16 + $0x65] ss:$8 sm:$0xf]  ;;  %v15708_v8 = vrot.slane %v11162_v53, %v15431_v9 }
 0xb00   :  { %v11362_v20 = vpop.permute.xlu1 %5529  ;;  %v3298_v24 = vmul.f32 %v15704_v59, %v3270_v56  ;;  %v3585_v56 = vsel %vm15134_vm0, %v10741_v19, %v10747_v0  ;;  %v11383_v59 = vpop.permute.xlu0 %4652  ;;  %v15709_v19 = vrot.slane %v11119_v63, %v15448_v29 }
 0xb01   :  { %15703 = vst [vmem:[#allocation242_spill] sm:$0xff] %v11362_v20  ;;  %v3350_v20 = vmul.f32 %v15705_v13, %v3326_v16  ;;  %15706 = vst [vmem:[#allocation243_spill] sm:$0xff] %v11383_v59  ;;  %v3428_v13 = vsel %vm15132_vm13, %v10711_v7, %v10937_v18  ;;  %v3559_v16 = vmul.f32 %v15708_v8, %v3533_v49  ;;  %vm15169_vm13 = vcmp.lt.s32.totalorder %v8980_v48, 30 }
 0xb02   :  { %4305 = vrot.lane.b32.xlu1 %v10591_v32, %s15707_s18  ;;  %v3467_v41 = vadd.f32 %v3463_v47, %v3415_v17  ;;  %v3404_v51 = vmul.f32 %v15709_v19, %v3376_v23  ;;  %v3480_v7 = vsel %vm15133_vm14, %v10723_v52, %v10945_v21  ;;  %v11417_v8 = vmul.f32 %v10471_v61, %v3298_v24  ;;  %v15773_v61 = vld [vmem:[#allocation186_spill] sm:$0xff]  ;;  %s15776_s18 = smov 126  }
 0xb03   :  { %v15712_v47 = vrot.slane %v11174_v33, %v15431_v9  ;;  %v3637_v19 = vsel %vm15138_vm2, %v10753_v25, %v10759_v3  ;;  %v11429_v52 = vmul.f32 %v10453_v42, %v3350_v20  ;;  %v15714_v23 = vrot.slane %v11125_v60, %v15448_v29 }
 0xb04   :  { %v11414_v49 = vpop.permute.xlu1 %5531  ;;  %15711 = vst [vmem:[#allocation245_spill] sm:$0xff] %v11417_v8  ;;  %vm3946_vm14 = vcmp.lt.s32.totalorder %v8980_v48, 29  ;;  %v3567_v20 = vmul.f32 %v10347_v35, %v3559_v16  ;;  %v3519_v17 = vadd.f32 %v3515_v31, %v3467_v41  ;;  %v11461_v50 = vmul.f32 %v10337_v6, %v3404_v51  ;;  %v15765_v6 = vld [vmem:[#allocation183_spill] sm:$0xff]  ;;  %v15774_v8 = vld [vmem:[#allocation72_spill] sm:$0xff] }
 0xb05   :  { %15710 = vst [vmem:[#allocation244_spill] sm:$0xff] %v11414_v49  ;;  %v3611_v5 = vmul.f32 %v15712_v47, %v3585_v56  ;;  %15713 = vst [vmem:[#allocation246_spill] sm:$0xff] %v11429_v52  ;;  %v3456_v24 = vmul.f32 %v15714_v23, %v3428_v13  ;;  %v3532_v56 = vsel %vm3530_vm15, %v10735_v57, %v10953_v26  ;;  %v15739_v49 = vld [vmem:[#allocation231_spill] sm:$0xff] }
 0xb06   :  { %4357 = vrot.lane.b32.xlu1 %v10591_v32, %s15715_s20  ;;  %v15716_v13 = vrot.slane %v11139_v38, %v15448_v29  ;;  %v3584_v57 = vsel %vm15134_vm0, %v10747_v0, %v10961_v40  ;;  %v3689_v47 = vsel %vm3686_vm11, %v10765_v2, %v10771_v4  ;;  %15717 = vst [vmem:[#allocation247_spill] sm:$0xff] %v11461_v50  ;;  %vm3998_vm0 = vcmp.lt.s32.totalorder %v8980_v48, 19  ;;  %v11471_v0 = vpop.permute.xlu0 %4704  ;;  %v15735_v2 = vld [vmem:[#allocation130_spill] sm:$0xff]  ;;  %s15743_s20 = smov 1  }
 0xb07   :  { %v3636_v16 = vsel %vm15138_vm2, %v10759_v3, %v10969_v43  ;;  %15719 = vst [vmem:[#allocation248_spill] sm:$0xff] %v11471_v0  ;;  %v15721_v31 = vrot.slane %v11162_v53, %v15448_v29  ;;  %v3619_v41 = vmul.f32 %v10349_v10, %v3611_v5  ;;  %v3741_v3 = vsel %vm15157_vm10, %v10777_v30, %v10783_v62  ;;  %v15826_v38 = vld [vmem:[#allocation42_spill] sm:$0xff] }
 0xb08   :  { %v3508_v23 = vmul.f32 %v15716_v13, %v3480_v7  ;;  %v15718_v7 = vrot.slane %v11193_v46, %v15431_v9  ;;  %v11473_v40 = vpop.permute.xlu1 %5581  ;;  %v11491_v43 = vmul.f32 %v10342_v39, %v3456_v24  ;;  %vm4050_vm2 = vcmp.lt.s32.totalorder %v8980_v48, 18  ;;  %v15753_v39 = vld [vmem:[#allocation135_spill] sm:$0xff] }
 0xb09   :  { %15720 = vst [vmem:[#allocation249_spill] sm:$0xff] %v11473_v40  ;;  %v3560_v51 = vmul.f32 %v15721_v31, %v3532_v56  ;;  %v15723_v56 = vrot.slane %v11174_v33, %v15448_v29  ;;  %v15724_v31 = vrot.slane %v11198_v36, %v15431_v9  ;;  %v3571_v21 = vadd.f32 %v3567_v20, %v3519_v17  ;;  %v15730_v17 = vld [vmem:[#allocation176_spill] sm:$0xff] }
 0xb0a   :  { %v3663_v13 = vmul.f32 %v15718_v7, %v3637_v19  ;;  %v11488_v7 = vld [vmem:[%s14782_s16 + $0x67] ss:$8 sm:$0xf]  ;;  %15722 = vst [vmem:[#allocation250_spill] sm:$0xff] %v11491_v43  ;;  %4409 = vrot.lane.b32.xlu1 %v10591_v32, %s15725_s19  ;;  %v11505_v24 = vmul.f32 %v10345_v34, %v3508_v23  ;;  %v15727_v18 = vrot.slane %v11193_v46, %v15448_v29  ;;  %s15759_s19 = smov 127  }
 0xb0b   :  { %v3612_v5 = vmul.f32 %v15723_v56, %v3584_v57  ;;  %v3715_v26 = vmul.f32 %v15724_v31, %v3689_v47  ;;  %v15728_v56 = vld [vmem:[#allocation126_spill] sm:$0xff]  ;;  %v3688_v20 = vsel %vm3686_vm11, %v10771_v4, %v15730_v17  ;;  %v15731_v23 = vld [vmem:[#allocation229_spill] sm:$0xff]  ;;  %v11532_v30 = vmul.f32 %v10347_v35, %v3560_v51  ;;  %v11547_v51 = vpop.permute.xlu0 %4756  ;;  %v15820_v33 = vld [vmem:[#allocation20_spill] sm:$0xff] }
 0xb0c   :  { %15726 = vst [vmem:[#allocation251_spill] sm:$0xff] %v11505_v24  ;;  %v3664_v57 = vmul.f32 %v15727_v18, %v3636_v16  ;;  %v3793_v47 = vsel %vm15161_vm1, %v15728_v56, %v10797_v28  ;;  %v11517_v31 = vld [vmem:[%s14782_s16 + $0x80] ss:$8 sm:$0xf]  ;;  %v15732_v18 = vrot.slane %v15731_v23, %v15431_v9  ;;  %v11529_v56 = vpop.permute.xlu1 %5583  ;;  %v3623_v24 = vadd.f32 %v3619_v41, %v3571_v21 }
 0xb0d   :  { %v15729_v19 = vld [vmem:[#allocation18_spill] sm:$0xff]  ;;  %15733 = vst [vmem:[#allocation252_spill] sm:$0xff] %v11529_v56  ;;  %15734 = vst [vmem:[#allocation253_spill] sm:$0xff] %v11532_v30  ;;  %v11541_v17 = vmul.f32 %v10349_v10, %v3612_v5  ;;  %v15740_v56 = vrot.slane %v15739_v49, %v15431_v9  ;;  %v15747_v21 = vld [vmem:[#allocation132_spill] sm:$0xff] }
 0xb0e   :  { %v3671_v40 = vmul.f32 %v15729_v19, %v3663_v13  ;;  %v3767_v16 = vmul.f32 %v15732_v18, %v3741_v3  ;;  %v15736_v13 = vld [vmem:[#allocation129_spill] sm:$0xff]  ;;  %15741 = vst [vmem:[#allocation254_spill] sm:$0xff] %v11547_v51  ;;  %4461 = vrot.lane.b32.xlu1 %v10591_v32, %s15743_s20  ;;  %v15746_v4 = vld [vmem:[#allocation134_spill] sm:$0xff] }
 0xb0f   :  { %v3845_v34 = vsel %vm15167_vm3, %v15736_v13, %v15735_v2  ;;  %15737 = vst [vmem:[#allocation130_spill] sm:$0xff] %v11541_v17  ;;  %v15738_v3 = vld [vmem:[#allocation21_spill] sm:$0xff]  ;;  %v3819_v25 = vmul.f32 %v15740_v56, %v3793_v47  ;;  %v15745_v56 = vrot.slane %v11198_v36, %v15448_v29  ;;  %v3897_v17 = vsel %vm15169_vm13, %v15747_v21, %v15746_v4  ;;  %v15748_v10 = vld [vmem:[#allocation178_spill] sm:$0xff]  ;;  %v15804_v36 = vld [vmem:[#allocation148_spill] sm:$0xff] }
 0xb10   :  { %v3723_v18 = vmul.f32 %v15738_v3, %v3715_v26  ;;  %v11554_v41 = vld [vmem:[%s14782_s16 + $0x82] ss:$8 sm:$0xf]  ;;  %v11559_v5 = vld [vmem:[%s14782_s16 + $0x83] ss:$8 sm:$0xf]  ;;  %v11564_v26 = vmul.f32 %v15729_v19, %v3664_v57  ;;  %v3675_v30 = vadd.f32 %v3671_v40, %v3623_v24  ;;  %v3740_v35 = vsel %vm15157_vm10, %v10783_v62, %v15748_v10 }
 0xb11   :  { %15742 = vst [vmem:[#allocation255_spill] sm:$0xff] %v11559_v5  ;;  %v3716_v47 = vmul.f32 %v15745_v56, %v3688_v20  ;;  %v15749_v57 = vld [vmem:[#allocation47_spill] sm:$0xff]  ;;  %v15750_v19 = vrot.slane %v11243_v37, %v15431_v9  ;;  %v11583_v56 = vpop.permute.xlu1 %5633  ;;  %v15752_v43 = vld [vmem:[#allocation137_spill] sm:$0xff]  ;;  %v15754_v24 = vld [vmem:[#allocation34_spill] sm:$0xff]  ;;  %vm15208_vm10 = vcmp.lt.s32.totalorder %v8980_v48, 14 }
 0xb12   :  { %15744 = vst [vmem:[#allocation256_spill] sm:$0xff] %v11564_v26  ;;  %v3775_v26 = vmul.f32 %v15749_v57, %v3767_v16  ;;  %15751 = vst [vmem:[#allocation134_spill] sm:$0xff] %v11583_v56  ;;  %v3949_v21 = vsel %vm3946_vm14, %v15753_v39, %v15752_v43  ;;  %v3727_v16 = vadd.f32 %v3723_v18, %v3675_v30  ;;  %v15755_v10 = vld [vmem:[#allocation181_spill] sm:$0xff]  ;;  %v15763_v62 = vld [vmem:[#allocation139_spill] sm:$0xff] }
 0xb13   :  { %v3871_v20 = vmul.f32 %v15750_v19, %v3845_v34  ;;  %v3792_v34 = vsel %vm15161_vm1, %v10797_v28, %v15755_v10  ;;  %v15756_v19 = vld [vmem:[#allocation71_spill] sm:$0xff]  ;;  %v15757_v39 = vrot.slane %v11248_v44, %v15431_v9  ;;  %v15760_v30 = vld [vmem:[#allocation117_spill] sm:$0xff]  ;;  %v11612_v18 = vmul.f32 %v15738_v3, %v3716_v47  ;;  %v15764_v40 = vld [vmem:[#allocation138_spill] sm:$0xff] }
 0xb14   :  { %v3827_v56 = vmul.f32 %v15756_v19, %v3819_v25  ;;  %v11607_v13 = vld [vmem:[%s14782_s16 + $0x84] ss:$8 sm:$0xf]  ;;  %4549 = vrot.lane.b32.xlu1 %v15760_v30, %s15759_s19  ;;  %v15762_v25 = vrot.slane %v15731_v23, %v15448_v29  ;;  %v3779_v10 = vadd.f32 %v3775_v26, %v3727_v16  ;;  %v3844_v30 = vsel %vm15167_vm3, %v15735_v2, %v15765_v6 }
 0xb15   :  { %v3923_v52 = vmul.f32 %v15757_v39, %v3897_v17  ;;  %15758 = vst [vmem:[#allocation137_spill] sm:$0xff] %v11607_v13  ;;  %15761 = vst [vmem:[#allocation34_spill] sm:$0xff] %v11612_v18  ;;  %v4001_v39 = vsel %vm3998_vm0, %v15764_v40, %v15763_v62  ;;  %v15766_v47 = vld [vmem:[#allocation77_spill] sm:$0xff]  ;;  %v15767_v3 = vrot.slane %v11265_v14, %v15431_v9  ;;  %vm15210_vm1 = vcmp.lt.s32.totalorder %v8980_v48, 13  ;;  %v11639_v26 = vpop.permute.xlu1 %5635  ;;  %v15772_v6 = vld [vmem:[#allocation140_spill] sm:$0xff] }
 0xb16   :  { %v3768_v28 = vmul.f32 %v15762_v25, %v3740_v35  ;;  %v3879_v18 = vmul.f32 %v15766_v47, %v3871_v20  ;;  %v11631_v25 = vpop.permute.xlu0 %4808  ;;  %v11637_v17 = vld [vmem:[%s14782_s16 + $0x85] ss:$8 sm:$0xf]  ;;  %15769 = vst [vmem:[#allocation139_spill] sm:$0xff] %v11639_v26  ;;  %v15770_v2 = vrot.slane %v15739_v49, %v15448_v29  ;;  %v3831_v50 = vadd.f32 %v3827_v56, %v3779_v10 }
 0xb17   :  { %v3975_v35 = vmul.f32 %v15767_v3, %v3949_v21  ;;  %15768 = vst [vmem:[#allocation117_spill] sm:$0xff] %v11631_v25  ;;  %v15771_v20 = vld [vmem:[#allocation141_spill] sm:$0xff]  ;;  %v3896_v26 = vsel %vm15169_vm13, %v15746_v4, %v15773_v61  ;;  %v3931_v42 = vmul.f32 %v15774_v8, %v3923_v52  ;;  %vm4359_vm3 = vcmp.lt.s32.totalorder %v8980_v48, 3  ;;  %v15779_v40 = vld [vmem:[#allocation143_spill] sm:$0xff]  ;;  %v15780_v4 = vld [vmem:[#allocation142_spill] sm:$0xff] }
 0xb18   :  { %v3820_v16 = vmul.f32 %v15770_v2, %v3792_v34  ;;  %v4053_v3 = vsel %vm4050_vm2, %v15772_v6, %v15771_v20  ;;  %v15775_v34 = vrot.slane %v11275_v54, %v15431_v9  ;;  %4602 = vrot.lane.b32.xlu1 %v10591_v32, %s15776_s18  ;;  %v11664_v21 = vmul.f32 %v15749_v57, %v3768_v28  ;;  %v15781_v28 = vld [vmem:[#allocation188_spill] sm:$0xff]  ;;  %v15783_v6 = vld [vmem:[#allocation237_spill] sm:$0xff]  ;;  %s16114_s18 = smov 77  }
 0xb19   :  { %v15778_v10 = vrot.slane %v11243_v37, %v15448_v29  ;;  %v4104_v52 = vsel %vm1221_vm4, %v15780_v4, %v15779_v40  ;;  %v3883_v61 = vadd.f32 %v3879_v18, %v3831_v50  ;;  %v15784_v57 = vrot.slane %v15783_v6, %v15431_v9  ;;  %v15788_v49 = vld [vmem:[#allocation145_spill] sm:$0xff]  ;;  %v15789_v23 = vld [vmem:[#allocation144_spill] sm:$0xff] }
 0xb1a   :  { %v4027_v2 = vmul.f32 %v15775_v34, %v4001_v39  ;;  %15777 = vst [vmem:[#allocation141_spill] sm:$0xff] %v11664_v21  ;;  %v11678_v34 = vld [vmem:[%s14782_s16 + $0x86] ss:$8 sm:$0xf]  ;;  %v3948_v21 = vsel %vm3946_vm14, %v15752_v43, %v15781_v28  ;;  %vm4411_vm13 = vcmp.lt.s32.totalorder %v8980_v48, 2  ;;  %v11689_v39 = vpop.permute.xlu1 %5685  ;;  %v11692_v37 = vmul.f32 %v15756_v19, %v3820_v16 }
 0xb1b   :  { %v3872_v56 = vmul.f32 %v15778_v10, %v3844_v30  ;;  %v15782_v30 = vld [vmem:[#allocation78_spill] sm:$0xff]  ;;  %v4079_v4 = vmul.f32 %v15784_v57, %v4053_v3  ;;  %15785 = vst [vmem:[#allocation143_spill] sm:$0xff] %v11689_v39  ;;  %v15787_v50 = vrot.slane %v11248_v44, %v15448_v29  ;;  %v4155_v43 = vsel %vm15204_vm5, %v15789_v23, %v15788_v49  ;;  %v15803_v44 = vld [vmem:[#allocation149_spill] sm:$0xff] }
 0xb1c   :  { %v3983_v10 = vmul.f32 %v15782_v30, %v3975_v35  ;;  %15786 = vst [vmem:[#allocation257_spill] sm:$0xff] %v11692_v37  ;;  %v3935_v57 = vadd.f32 %v3931_v42, %v3883_v61  ;;  %v15790_v3 = vld [vmem:[#allocation38_spill] sm:$0xff]  ;;  %v15791_v39 = vrot.slane %v11303_v55, %v15431_v9  ;;  %v11707_v37 = vpop.permute.xlu0 %4859  ;;  %4654 = vrot.lane.b32.xlu1 %v10591_v32, %s15793_s21 }
 0xb1d   :  { %v3924_v18 = vmul.f32 %v15787_v50, %v3896_v26  ;;  %v4035_v28 = vmul.f32 %v15790_v3, %v4027_v2  ;;  %15792 = vst [vmem:[#allocation145_spill] sm:$0xff] %v11707_v37  ;;  %v11714_v50 = vld [vmem:[%s14782_s16 + $0x87] ss:$8 sm:$0xf]  ;;  %v11719_v42 = vmul.f32 %v15766_v47, %v3872_v56  ;;  %v15795_v61 = vrot.slane %v11265_v14, %v15448_v29 }
 0xb1e   :  { %v4130_v16 = vmul.f32 %v15791_v39, %v4104_v52  ;;  %v15796_v52 = vld [vmem:[#allocation147_spill] sm:$0xff]  ;;  %v15797_v39 = vld [vmem:[#allocation146_spill] sm:$0xff]  ;;  %v3987_v19 = vadd.f32 %v3983_v10, %v3935_v57  ;;  %v15800_v47 = vrot.slane %v11308_v45, %v15431_v9  ;;  %v11743_v14 = vpop.permute.xlu1 %5687  ;;  %v4258_v10 = vsel %vm15208_vm10, %v15804_v36, %v15803_v44  ;;  %v15811_v57 = vld [vmem:[#allocation193_spill] sm:$0xff] }
 0xb1f   :  { %15794 = vst [vmem:[#allocation258_spill] sm:$0xff] %v11719_v42  ;;  %v3976_v2 = vmul.f32 %v15795_v61, %v3948_v21  ;;  %v4206_v26 = vsel %vm15207_vm6, %v15797_v39, %v15796_v52  ;;  %v11733_v23 = vld [vmem:[%s14782_s16 + $0xa0] ss:$8 sm:$0xf]  ;;  %15801 = vst [vmem:[#allocation147_spill] sm:$0xff] %v11743_v14  ;;  %v11746_v35 = vmul.f32 %v15774_v8, %v3924_v18 }
 0xb20   :  { %v15798_v56 = vld [vmem:[#allocation191_spill] sm:$0xff]  ;;  %v15799_v21 = vld [vmem:[#allocation44_spill] sm:$0xff]  ;;  %v4181_v39 = vmul.f32 %v15800_v47, %v4155_v43  ;;  %v15806_v47 = vrot.slane %v11334_v15, %v15431_v9  ;;  %4706 = vrot.lane.b32.xlu1 %v10591_v32, %s8285_s22 }
 0xb21   :  { %v4000_v42 = vsel %vm3998_vm0, %v15763_v62, %v15798_v56  ;;  %v4087_v61 = vmul.f32 %v15799_v21, %v4079_v4  ;;  %15802 = vst [vmem:[#allocation44_spill] sm:$0xff] %v11746_v35  ;;  %v4039_v4 = vadd.f32 %v4035_v28, %v3987_v19  ;;  %v15805_v56 = vld [vmem:[#allocation73_spill] sm:$0xff]  ;;  %v11770_v62 = vmul.f32 %v15782_v30, %v3976_v2  ;;  %v15812_v2 = vld [vmem:[#allocation79_spill] sm:$0xff]  ;;  %v11786_v30 = vpop.permute.xlu0 %4910  ;;  %v15816_v8 = vld [vmem:[#allocation196_spill] sm:$0xff] }
 0xb22   :  { %v4138_v46 = vmul.f32 %v15805_v56, %v4130_v16  ;;  %v4232_v43 = vmul.f32 %v15806_v47, %v4206_v26  ;;  %v11765_v14 = vld [vmem:[%s14782_s16 + $0xa1] ss:$8 sm:$0xf]  ;;  %v15808_v19 = vrot.slane %v11275_v54, %v15448_v29  ;;  %v4052_v35 = vsel %vm4050_vm2, %v15771_v20, %v15811_v57  ;;  %v11796_v18 = vpop.permute.xlu1 %5739 }
 0xb23   :  { %15807 = vst [vmem:[#allocation149_spill] sm:$0xff] %v11770_v62  ;;  %v15809_v16 = vld [vmem:[#allocation151_spill] sm:$0xff]  ;;  %v15810_v26 = vld [vmem:[#allocation150_spill] sm:$0xff]  ;;  %v4091_v36 = vadd.f32 %v4087_v61, %v4039_v4  ;;  %v4189_v62 = vmul.f32 %v15812_v2, %v4181_v39  ;;  %15815 = vst [vmem:[#allocation259_spill] sm:$0xff] %v11796_v18  ;;  %v4103_v20 = vsel %vm1221_vm4, %v15779_v40, %v15816_v8 }
 0xb24   :  { %v4028_v28 = vmul.f32 %v15808_v19, %v4000_v42  ;;  %v4310_v47 = vsel %vm15210_vm1, %v15810_v26, %v15809_v16  ;;  %15813 = vst [vmem:[#allocation151_spill] sm:$0xff] %v11786_v30  ;;  %v15814_v42 = vrot.slane %v11360_v12, %v15431_v9  ;;  %v11794_v26 = vld [vmem:[%s14782_s16 + $0xa2] ss:$8 sm:$0xf]  ;;  %v4240_v53 = vmul.f32 %v15820_v33, %v4232_v43 }
 0xb25   :  { %v15817_v61 = vld [vmem:[#allocation154_spill] sm:$0xff]  ;;  %v15818_v39 = vld [vmem:[#allocation152_spill] sm:$0xff]  ;;  %v4142_v57 = vadd.f32 %v4138_v46, %v4091_v36  ;;  %v15821_v40 = vrot.slane %v11390_v27, %v15431_v9  ;;  %4758 = vrot.lane.b32.xlu1 %v10591_v32, %s8286_s4  ;;  %v15822_v46 = vrot.slane %v15783_v6, %v15448_v29 }
 0xb26   :  { %v4284_v19 = vmul.f32 %v15814_v42, %v4258_v10  ;;  %v4362_v4 = vsel %vm4359_vm3, %v15818_v39, %v15817_v61  ;;  %v15819_v54 = vld [vmem:[#allocation198_spill] sm:$0xff]  ;;  %v15823_v42 = vld [vmem:[#allocation157_spill] sm:$0xff]  ;;  %v11837_v10 = vmul.f32 %v15790_v3, %v4028_v28  ;;  %v11848_v6 = vpop.permute.xlu1 %3266  ;;  %v15831_v28 = vld [vmem:[#allocation160_spill] sm:$0xff] }
 0xb27   :  { %v4154_v18 = vsel %vm15204_vm5, %v15788_v49, %v15819_v54  ;;  %v4336_v8 = vmul.f32 %v15821_v40, %v4310_v47  ;;  %v11821_v39 = vld [vmem:[%s14782_s16 + $0xa3] ss:$8 sm:$0xf]  ;;  %v4080_v36 = vmul.f32 %v15822_v46, %v4052_v35  ;;  %v4193_v54 = vadd.f32 %v4189_v62, %v4142_v57  ;;  %15828 = vst [vmem:[#allocation157_spill] sm:$0xff] %v11848_v6 }
 0xb28   :  { %v15824_v49 = vld [vmem:[#allocation155_spill] sm:$0xff]  ;;  %15825 = vst [vmem:[#allocation154_spill] sm:$0xff] %v11837_v10  ;;  %v4292_v60 = vmul.f32 %v15826_v38, %v4284_v19  ;;  %v15827_v35 = vrot.slane %v11444_v58, %v15431_v9  ;;  %v15829_v40 = vrot.slane %v11303_v55, %v15448_v29  ;;  %v15830_v57 = vrot.slane %v11308_v45, %v15448_v29  ;;  %v15833_v10 = vld [vmem:[#allocation201_spill] sm:$0xff]  ;;  %v11866_v55 = vpop.permute.xlu0 %4961 }
 0xb29   :  { %v4414_v43 = vsel %vm4411_vm13, %v15824_v49, %v15823_v42  ;;  %v11846_v49 = vld [vmem:[%s14782_s16 + $0xa4] ss:$8 sm:$0xf]  ;;  %v4205_v3 = vsel %vm15207_vm6, %v15796_v52, %v15833_v10  ;;  %v4244_v6 = vadd.f32 %v4240_v53, %v4193_v54  ;;  %15834 = vst [vmem:[#allocation160_spill] sm:$0xff] %v11866_v55  ;;  %vm15214_vm5 = vcmp.lt.s32.totalorder %v8980_v48, 126  ;;  %4810 = vrot.lane.b32.xlu1 %v10591_v32, %s8213_s5 }
 0xb2a   :  { %v4388_v46 = vmul.f32 %v15827_v35, %v4362_v4  ;;  %v4131_v47 = vmul.f32 %v15829_v40, %v4103_v20  ;;  %v4182_v62 = vmul.f32 %v15830_v57, %v4154_v18  ;;  %v15832_v19 = vld [vmem:[#allocation159_spill] sm:$0xff]  ;;  %v15836_v18 = vrot.slane %v11488_v7, %v15431_v9  ;;  %v11903_v52 = vpop.permute.xlu1 %3318 }
 0xb2b   :  { %v4465_v4 = vsel %vm1484_vm7, %v15832_v19, %v15831_v28  ;;  %v15835_v20 = vld [vmem:[#allocation59_spill] sm:$0xff]  ;;  %v11881_v54 = vmul.f32 %v15799_v21, %v4080_v36  ;;  %v4296_v10 = vadd.f32 %v4292_v60, %v4244_v6  ;;  %v15839_v19 = vld [vmem:[#allocation74_spill] sm:$0xff]  ;;  %v15840_v36 = vrot.slane %v11517_v31, %v15431_v9 }
 0xb2c   :  { %v4344_v40 = vmul.f32 %v15835_v20, %v4336_v8  ;;  %v4440_v57 = vmul.f32 %v15836_v18, %v4414_v43  ;;  %v11876_v35 = vld [vmem:[%s14782_s16 + $0xa5] ss:$8 sm:$0xf]  ;;  %v4396_v45 = vmul.f32 %v15839_v19, %v4388_v46  ;;  %vm15221_vm6 = vcmp.lt.s32.totalorder %v8980_v48, 125 }
 0xb2d   :  { %15837 = vst [vmem:[#allocation260_spill] sm:$0xff] %v11881_v54  ;;  %v15838_v43 = vld [vmem:[#allocation203_spill] sm:$0xff]  ;;  %v4491_v54 = vmul.f32 %v15840_v36, %v4465_v4  ;;  %v11906_v53 = vmul.f32 %v15805_v56, %v4131_v47  ;;  %v15842_v6 = vrot.slane %v11334_v15, %v15448_v29  ;;  %v15843_v60 = vld [vmem:[#allocation206_spill] sm:$0xff]  ;;  %v11919_v36 = vmul.f32 %v15812_v2, %v4182_v62  ;;  %v15845_v47 = vld [vmem:[#allocation80_spill] sm:$0xff]  ;;  %v11943_v56 = vpop.permute.xlu0 %5013 }
 0xb2e   :  { %v4257_v18 = vsel %vm15208_vm10, %v15803_v44, %v15838_v43  ;;  %v11901_v8 = vld [vmem:[%s14782_s16 + $0xa6] ss:$8 sm:$0xf]  ;;  %v4309_v46 = vsel %vm15210_vm1, %v15809_v16, %v15843_v60  ;;  %vm15227_vm10 = vcmp.lt.s32.totalorder %v8980_v48, 115  ;;  %v4348_v43 = vadd.f32 %v4344_v40, %v4296_v10  ;;  %4861 = vrot.lane.b32.xlu1 %v10591_v32, %s8214_s23  ;;  %15848 = vst [vmem:[#allocation263_spill] sm:$0xff] %v11943_v56 }
 0xb2f   :  { %15841 = vst [vmem:[#allocation261_spill] sm:$0xff] %v11906_v53  ;;  %v4233_v44 = vmul.f32 %v15842_v6, %v4205_v3  ;;  %15844 = vst [vmem:[#allocation262_spill] sm:$0xff] %v11919_v36  ;;  %v4448_v53 = vmul.f32 %v15845_v47, %v4440_v57  ;;  %v11927_v3 = vld [vmem:[%s14782_s16 + $0xa7] ss:$8 sm:$0xf]  ;;  %v15846_v16 = vrot.slane %v11360_v12, %v15448_v29  ;;  %vm15224_vm1 = vcmp.lt.s32.totalorder %v8980_v48, 114  ;;  %v11958_v57 = vpop.permute.xlu1 %3372 }
 0xb30   :  { %v15847_v62 = vld [vmem:[#allocation208_spill] sm:$0xff]  ;;  %v15849_v4 = vrot.slane %v11390_v27, %v15448_v29  ;;  %v15853_v27 = vld [vmem:[#allocation217_spill] sm:$0xff]  ;;  %v15884_v2 = vrot.slane %v11607_v13, %v15429_v1 }
 0xb31   :  { %v4285_v6 = vmul.f32 %v15846_v16, %v4257_v18  ;;  %v4361_v10 = vsel %vm4359_vm3, %v15817_v61, %v15847_v62  ;;  %v4400_v18 = vadd.f32 %v4396_v45, %v4348_v43  ;;  %v15850_v16 = vld [vmem:[#allocation211_spill] sm:$0xff]  ;;  %v11961_v36 = vmul.f32 %v15820_v33, %v4233_v44 }
 0xb32   :  { %v4337_v12 = vmul.f32 %v15849_v4, %v4309_v46  ;;  %v4413_v61 = vsel %vm4411_vm13, %v15823_v42, %v15850_v16  ;;  %v15851_v62 = vld [vmem:[#allocation23_spill] sm:$0xff]  ;;  %v4464_v45 = vsel %vm1484_vm7, %v15831_v28, %v15853_v27  ;;  %v15854_v44 = vrot.slane %v11444_v58, %v15448_v29  ;;  %v15857_v42 = vld [vmem:[#allocation230_spill] sm:$0xff]  ;;  %4912 = vrot.lane.b32.xlu1 %v10591_v32, %s8215_s28 }
 0xb33   :  { %v4499_v60 = vmul.f32 %v15851_v62, %v4491_v54  ;;  %v11956_v40 = vld [vmem:[%s14782_s16 + $0xc0] ss:$8 sm:$0xf]  ;;  %15852 = vst [vmem:[#allocation264_spill] sm:$0xff] %v11961_v36  ;;  %v4452_v4 = vadd.f32 %v4448_v53, %v4400_v18  ;;  %v11990_v27 = vmul.f32 %v15826_v38, %v4285_v6  ;;  %v15861_v6 = vrot.slane %v11517_v31, %v15448_v29  ;;  %v12033_v38 = vpop.permute.xlu0 %5065 }
 0xb34   :  { %v11974_v43 = vld [vmem:[%s14782_s16 + $0xc1] ss:$8 sm:$0xf]  ;;  %v4389_v46 = vmul.f32 %v15854_v44, %v4361_v10  ;;  %v15859_v10 = vrot.slane %v11488_v7, %v15448_v29  ;;  %v12017_v44 = vpop.permute.xlu1 %3424  ;;  %v15863_v18 = vrot.slane %v11554_v41, %v15429_v1 }
 0xb35   :  { %v15855_v16 = vld [vmem:[#allocation131_spill] sm:$0xff]  ;;  %v15856_v36 = vld [vmem:[#allocation162_spill] sm:$0xff]  ;;  %15862 = vst [vmem:[#allocation266_spill] sm:$0xff] %v12017_v44 }
 0xb36   :  { %v4555_v28 = vsel %vm15228_vm8, %v15856_v36, %v15855_v16  ;;  %v4556_v54 = vsel %vm15228_vm8, %v15857_v42, %v15856_v36  ;;  %15858 = vst [vmem:[#allocation162_spill] sm:$0xff] %v11990_v27  ;;  %v4441_v53 = vmul.f32 %v15859_v10, %v4413_v61  ;;  %v12002_v36 = vld [vmem:[%s14782_s16 + $0xc2] ss:$8 sm:$0xf]  ;;  %v12005_v42 = vmul.f32 %v15835_v20, %v4337_v12 }
 0xb37   :  { %v4492_v27 = vmul.f32 %v15861_v6, %v4464_v45  ;;  %v4503_v16 = vadd.f32 %v4499_v60, %v4452_v4  ;;  %v12015_v10 = vld [vmem:[%s14782_s16 + $0xc3] ss:$8 sm:$0xf]  ;;  %v4580_v12 = vmul.f32 %v15863_v18, %v4555_v28  ;;  %v12036_v33 = vmul.f32 %v15839_v19, %v4389_v46  ;;  %4963 = vrot.lane.b32.xlu1 %v10591_v32, %s8287_s6 }
 0xb38   :  { %15860 = vst [vmem:[#allocation265_spill] sm:$0xff] %v12005_v42  ;;  %v15864_v42 = vrot.slane %v11554_v41, %v15754_v24  ;;  %v15865_v45 = vld [vmem:[#allocation238_spill] sm:$0xff]  ;;  %v15866_v60 = vld [vmem:[#allocation164_spill] sm:$0xff]  ;;  %v15867_v6 = vld [vmem:[#allocation133_spill] sm:$0xff]  ;;  %v12047_v18 = vmul.f32 %v15845_v47, %v4441_v53  ;;  %vm15246_vm8 = vcmp.lt.s32.totalorder %v8980_v48, 98 }
 0xb39   :  { %v4606_v4 = vsel %vm15214_vm5, %v15866_v60, %v15865_v45  ;;  %v4607_v61 = vsel %vm15214_vm5, %v15867_v6, %v15866_v60  ;;  %15868 = vst [vmem:[#allocation164_spill] sm:$0xff] %v12033_v38  ;;  %15869 = vst [vmem:[#allocation267_spill] sm:$0xff] %v12036_v33  ;;  %v15871_v60 = vld [vmem:[#allocation167_spill] sm:$0xff]  ;;  %v15872_v6 = vld [vmem:[#allocation165_spill] sm:$0xff]  ;;  %vm4965_vm5 = vcmp.lt.s32.totalorder %v8980_v48, 110  ;;  %v15874_v45 = vrot.slane %v11559_v5, %v15431_v9 }
 0xb3a   :  { %v4583_v20 = vmul.f32 %v15864_v42, %v4556_v54  ;;  %15870 = vst [vmem:[#allocation268_spill] sm:$0xff] %v12047_v18  ;;  %v4658_v46 = vsel %vm15221_vm6, %v15871_v60, %v11383_v59  ;;  %v4659_v28 = vsel %vm15221_vm6, %v15872_v6, %v15871_v60  ;;  %v15873_v42 = vrot.slane %v11559_v5, %v15429_v1  ;;  %v15875_v33 = vld [vmem:[#allocation170_spill] sm:$0xff]  ;;  %v15876_v59 = vld [vmem:[#allocation169_spill] sm:$0xff]  ;;  %v12077_v6 = vpop.permute.xlu1 %3476 }
 0xb3b   :  { %v4633_v18 = vmul.f32 %v15874_v45, %v4606_v4  ;;  %v4711_v47 = vsel %vm15227_vm10, %v15876_v59, %v15875_v33  ;;  %v12075_v54 = vld [vmem:[%s14782_s16 + $0xc4] ss:$8 sm:$0xf]  ;;  %15877 = vst [vmem:[#allocation167_spill] sm:$0xff] %v12077_v6  ;;  %v4684_v5 = vmul.f32 %v15884_v2, %v4659_v28  ;;  %vm15240_vm6 = vcmp.lt.s32.totalorder %v8980_v48, 109  ;;  %5015 = vrot.lane.b32.xlu1 %v10591_v32, %s8288_s26 }
 0xb3c   :  { %v4632_v53 = vmul.f32 %v15873_v42, %v4607_v61  ;;  %v12080_v61 = vmul.f32 %v15851_v62, %v4492_v27  ;;  %v15879_v42 = vld [vmem:[#allocation95_spill] sm:$0xff]  ;;  %v15882_v59 = vld [vmem:[#allocation221_spill] sm:$0xff]  ;;  %v15885_v27 = vrot.slane %v11607_v13, %v15431_v9  ;;  %v16148_v13 = vld [vmem:[#allocation214_spill] sm:$0xff] }
 0xb3d   :  { %v12083_v45 = vmul.f32 %v15879_v42, %v4580_v12  ;;  %v12086_v4 = vmul.f32 %v15879_v42, %v4583_v20  ;;  %v12091_v60 = vld [vmem:[%s14782_s16 + $0xc5] ss:$8 sm:$0xf]  ;;  %v12094_v19 = vadd.f32 %v15882_v59, %v4503_v16  ;;  %v4710_v20 = vsel %vm15227_vm10, %v15875_v33, %v11471_v0 }
 0xb3e   :  { %15878 = vst [vmem:[#allocation170_spill] sm:$0xff] %v12080_v61  ;;  %v4685_v12 = vmul.f32 %v15885_v27, %v4658_v46  ;;  %v15887_v61 = vld [vmem:[#allocation172_spill] sm:$0xff]  ;;  %v15888_v59 = vrot.slane %v11637_v17, %v15429_v1  ;;  %v12129_v27 = vpop.permute.xlu0 %5117  ;;  %v12141_v28 = vpop.permute.xlu1 %3528 }
 0xb3f   :  { %15880 = vst [vmem:[#allocation269_spill] sm:$0xff] %v12083_v45  ;;  %15881 = vst [vmem:[#allocation270_spill] sm:$0xff] %v12086_v4  ;;  %v15886_v4 = vld [vmem:[#allocation174_spill] sm:$0xff]  ;;  %5067 = vrot.lane.b32.xlu1 %v10591_v32, %s8289_s30  ;;  %v15996_v42 = vld [vmem:[#allocation128_spill] sm:$0xff] }
 0xb40   :  { %15883 = vst [vmem:[#allocation221_spill] sm:$0xff] %v12094_v19  ;;  %v4763_v45 = vsel %vm15224_vm1, %v15887_v61, %v15886_v4  ;;  %v4736_v2 = vmul.f32 %v15888_v59, %v4711_v47  ;;  %v4762_v16 = vsel %vm15224_vm1, %v15886_v4, %v11547_v51  ;;  %v12127_v46 = vld [vmem:[%s14782_s16 + $0xc6] ss:$8 sm:$0xf]  ;;  %15889 = vst [vmem:[#allocation174_spill] sm:$0xff] %v12129_v27  ;;  %vm15245_vm1 = vcmp.lt.s32.totalorder %v8980_v48, 99 }
 0xb41   :  { %v15890_v61 = vld [vmem:[#allocation45_spill] sm:$0xff]  ;;  %15893 = vst [vmem:[#allocation273_spill] sm:$0xff] %v12141_v28  ;;  %v15894_v51 = vrot.slane %v11637_v17, %v15431_v9  ;;  %v15895_v19 = vrot.slane %v11678_v34, %v15429_v1  ;;  %v15897_v4 = vld [vmem:[#allocation175_spill] sm:$0xff]  ;;  %v15901_v17 = vrot.slane %v11678_v34, %v15431_v9 }
 0xb42   :  { %v12132_v47 = vmul.f32 %v15890_v61, %v4632_v53  ;;  %v12135_v59 = vmul.f32 %v15890_v61, %v4633_v18  ;;  %v15898_v61 = vld [vmem:[#allocation25_spill] sm:$0xff] }
 0xb43   :  { %v4737_v0 = vmul.f32 %v15894_v51, %v4710_v20  ;;  %v4788_v53 = vmul.f32 %v15895_v19, %v4763_v45  ;;  %v12162_v51 = vmul.f32 %v15898_v61, %v4685_v12  ;;  %v4789_v19 = vmul.f32 %v15901_v17, %v4762_v16  ;;  %v12172_v20 = vld [vmem:[%s14782_s16 + $0xc7] ss:$8 sm:$0xf]  ;;  %v12207_v45 = vld [vmem:[%s14782_s16 + $0xe0] ss:$8 sm:$0xf]  ;;  %5119 = vrot.lane.b32.xlu1 %v10591_v32, %s8290_s0 }
 0xb44   :  { %15891 = vst [vmem:[#allocation271_spill] sm:$0xff] %v12132_v47  ;;  %15892 = vst [vmem:[#allocation272_spill] sm:$0xff] %v12135_v59  ;;  %v15896_v47 = vld [vmem:[#allocation177_spill] sm:$0xff]  ;;  %v12159_v59 = vmul.f32 %v15898_v61, %v4684_v5  ;;  %v15903_v5 = vld [vmem:[#allocation62_spill] sm:$0xff] }
 0xb45   :  { %v4813_v18 = vsel %vm15226_vm9, %v15896_v47, %v11631_v25  ;;  %v4814_v33 = vsel %vm15226_vm9, %v15897_v4, %v15896_v47  ;;  %15900 = vst [vmem:[#allocation274_spill] sm:$0xff] %v12162_v51  ;;  %15902 = vst [vmem:[#allocation275_spill] sm:$0xff] %v12172_v20  ;;  %v12177_v47 = vmul.f32 %v15903_v5, %v4736_v2  ;;  %v15905_v12 = vld [vmem:[#allocation180_spill] sm:$0xff]  ;;  %vm15906_vm9 = vcmp.lt.s32.totalorder %v8980_v48, 112  ;;  %v15907_v16 = vld [vmem:[#allocation179_spill] sm:$0xff] }
 0xb46   :  { %15899 = vst [vmem:[#allocation177_spill] sm:$0xff] %v12159_v59  ;;  %v4864_v34 = vsel %vm15906_vm9, %v15905_v12, %v11707_v37  ;;  %vm15908_vm10 = vmmov %vm15906_vm9  ;;  %v15909_v4 = vrot.slane %v11714_v50, %v15429_v1  ;;  %v15910_v25 = vrot.slane %v11714_v50, %v15431_v9  ;;  %v15911_v37 = vld [vmem:[#allocation182_spill] sm:$0xff]  ;;  %vm15912_vm9 = vcmp.lt.s32.totalorder %v8980_v48, 111 }
 0xb47   :  { %15904 = vst [vmem:[#allocation276_spill] sm:$0xff] %v12177_v47  ;;  %v4865_v17 = vsel %vm15908_vm10, %v15907_v16, %v15905_v12  ;;  %v4915_v47 = vsel %vm15912_vm9, %v15911_v37, %v11786_v30  ;;  %v15913_v12 = vld [vmem:[#allocation136_spill] sm:$0xff]  ;;  %vm15914_vm10 = vmmov %vm15912_vm9  ;;  %v12212_v50 = vmul.f32 %v15903_v5, %v4737_v0  ;;  %v15923_v0 = vrot.slane %v11733_v23, %v15429_v1 }
 0xb48   :  { %v4839_v2 = vmul.f32 %v15909_v4, %v4814_v33  ;;  %v4840_v61 = vmul.f32 %v15910_v25, %v4813_v18  ;;  %v4916_v16 = vsel %vm15914_vm10, %v15913_v12, %v15911_v37  ;;  %15915 = vst [vmem:[#allocation180_spill] sm:$0xff] %v12207_v45  ;;  %v12209_v33 = vpop.permute.xlu1 %3580  ;;  %v15918_v25 = vld [vmem:[#allocation64_spill] sm:$0xff]  ;;  %v12226_v12 = vpop.permute.xlu0 %5169  ;;  %v15924_v18 = vrot.slane %v11733_v23, %v15431_v9 }
 0xb49   :  { %15916 = vst [vmem:[#allocation182_spill] sm:$0xff] %v12209_v33  ;;  %15917 = vst [vmem:[#allocation277_spill] sm:$0xff] %v12212_v50  ;;  %v12215_v4 = vmul.f32 %v15918_v25, %v4788_v53  ;;  %v12224_v37 = vld [vmem:[%s14782_s16 + $0xe1] ss:$8 sm:$0xf]  ;;  %v12229_v51 = vmul.f32 %v15918_v25, %v4789_v19  ;;  %v4890_v53 = vmul.f32 %v15923_v0, %v4865_v17  ;;  %vm5173_vm9 = vcmp.lt.s32.totalorder %v8980_v48, 97 }
 0xb4a   :  { %15920 = vst [vmem:[#allocation279_spill] sm:$0xff] %v12224_v37  ;;  %15921 = vst [vmem:[#allocation280_spill] sm:$0xff] %v12226_v12  ;;  %v4891_v5 = vmul.f32 %v15924_v18, %v4864_v34  ;;  %v15926_v30 = vld [vmem:[#allocation184_spill] sm:$0xff]  ;;  %v15927_v19 = vrot.slane %v11765_v14, %v15429_v1  ;;  %v15928_v17 = vrot.slane %v11765_v14, %v15431_v9  ;;  %v15929_v18 = vld [vmem:[#allocation22_spill] sm:$0xff]  ;;  %vm15255_vm10 = vcmp.lt.s32.totalorder %v8980_v48, 96 }
 0xb4b   :  { %15919 = vst [vmem:[#allocation278_spill] sm:$0xff] %v12215_v4  ;;  %15922 = vst [vmem:[#allocation281_spill] sm:$0xff] %v12229_v51  ;;  %v15925_v4 = vld [vmem:[#allocation185_spill] sm:$0xff]  ;;  %v12260_v51 = vmul.f32 %v15929_v18, %v4840_v61  ;;  %v15935_v61 = vld [vmem:[#allocation187_spill] sm:$0xff]  ;;  %5171 = vrot.lane.b32.xlu1 %v10591_v32, %s8291_s7  ;;  %v15980_v45 = vrot.slane %v11901_v8, %v15431_v9 }
 0xb4c   :  { %v4968_v50 = vsel %vm4965_vm5, %v15926_v30, %v15925_v4  ;;  %v4941_v25 = vmul.f32 %v15927_v19, %v4916_v16  ;;  %v4942_v0 = vmul.f32 %v15928_v17, %v4915_v47  ;;  %v4967_v23 = vsel %vm4965_vm5, %v15925_v4, %v11866_v55  ;;  %v12266_v47 = vpop.permute.xlu1 %3632  ;;  %v15934_v17 = vld [vmem:[#allocation189_spill] sm:$0xff]  ;;  %v15936_v16 = vld [vmem:[#allocation52_spill] sm:$0xff]  ;;  %v15948_v37 = vld [vmem:[#allocation99_spill] sm:$0xff] }
 0xb4d   :  { %v12257_v30 = vmul.f32 %v15929_v18, %v4839_v2  ;;  %15931 = vst [vmem:[#allocation282_spill] sm:$0xff] %v12260_v51  ;;  %15932 = vst [vmem:[#allocation283_spill] sm:$0xff] %v12266_v47  ;;  %v15933_v4 = vrot.slane %v11794_v26, %v15429_v1  ;;  %v5019_v2 = vsel %vm15240_vm6, %v15934_v17, %v11943_v56  ;;  %v15992_v51 = vld [vmem:[#allocation63_spill] sm:$0xff] }
 0xb4e   :  { %v5020_v34 = vsel %vm15240_vm6, %v15935_v61, %v15934_v17  ;;  %v12283_v18 = vmul.f32 %v15936_v16, %v4890_v53  ;;  %v15940_v17 = vld [vmem:[#allocation61_spill] sm:$0xff]  ;;  %v3341_v53 = vrot.slane %v11114_v11, %v15448_v29  ;;  %v15945_v55 = vrot.slane %v11821_v39, %v15431_v9  ;;  %v16040_v11 = vld [vmem:[#allocation123_spill] sm:$0xff] }
 0xb4f   :  { %15930 = vst [vmem:[#allocation185_spill] sm:$0xff] %v12257_v30  ;;  %v4993_v19 = vmul.f32 %v15933_v4, %v4968_v50  ;;  %v12286_v50 = vmul.f32 %v15936_v16, %v4891_v5  ;;  %v15939_v4 = vrot.slane %v11794_v26, %v15431_v9  ;;  %v12296_v61 = vmul.f32 %v15940_v17, %v4941_v25  ;;  %v12305_v26 = vpop.permute.xlu0 %5221  ;;  %v15946_v16 = vld [vmem:[#allocation192_spill] sm:$0xff]  ;;  %v15947_v5 = vld [vmem:[#allocation190_spill] sm:$0xff] }
 0xb50   :  { %15937 = vst [vmem:[#allocation189_spill] sm:$0xff] %v12283_v18  ;;  %v12299_v14 = vmul.f32 %v15940_v17, %v4942_v0  ;;  %15943 = vst [vmem:[#allocation287_spill] sm:$0xff] %v12305_v26  ;;  %v5046_v25 = vmul.f32 %v15945_v55, %v5019_v2  ;;  %v5071_v0 = vsel %vm15245_vm1, %v15946_v16, %v12033_v38  ;;  %vm15263_vm6 = vcmp.lt.s32.totalorder %v8980_v48, 95  ;;  %v15957_v55 = vld [vmem:[#allocation46_spill] sm:$0xff]  ;;  %v15975_v30 = vld [vmem:[#allocation200_spill] sm:$0xff] }
 0xb51   :  { %15938 = vst [vmem:[#allocation284_spill] sm:$0xff] %v12286_v50  ;;  %v4994_v56 = vmul.f32 %v15939_v4, %v4967_v23  ;;  %15941 = vst [vmem:[#allocation285_spill] sm:$0xff] %v12296_v61  ;;  %v15944_v23 = vrot.slane %v11821_v39, %v15429_v1  ;;  %v5072_v17 = vsel %vm15245_vm1, %v15947_v5, %v15946_v16  ;;  %v12322_v61 = vpop.permute.xlu1 %3684  ;;  %v15951_v16 = vld [vmem:[#allocation195_spill] sm:$0xff]  ;;  %v15952_v5 = vld [vmem:[#allocation194_spill] sm:$0xff]  ;;  %5223 = vrot.lane.b32.xlu1 %v10591_v32, %s8292_s25 }
 0xb52   :  { %15942 = vst [vmem:[#allocation286_spill] sm:$0xff] %v12299_v14  ;;  %v5124_v38 = vsel %vm15246_vm8, %v15952_v5, %v15951_v16  ;;  %v15954_v2 = vrot.slane %v11846_v49, %v15429_v1  ;;  %v5123_v5 = vsel %vm15246_vm8, %v15951_v16, %v12129_v27  ;;  %v12362_v14 = vmul.f32 %v15957_v55, %v5046_v25 }
 0xb53   :  { %v5045_v4 = vmul.f32 %v15944_v23, %v5020_v34  ;;  %v12325_v34 = vmul.f32 %v15948_v37, %v4993_v19  ;;  %v12334_v23 = vmul.f32 %v15948_v37, %v4994_v56  ;;  %v15953_v19 = vld [vmem:[#allocation216_spill] sm:$0xff]  ;;  %v15955_v56 = vrot.slane %v11846_v49, %v15431_v9 }
 0xb54   :  { %v5097_v39 = vmul.f32 %v15954_v2, %v5072_v17  ;;  %15959 = vst [vmem:[#allocation289_spill] sm:$0xff] %v12362_v14  ;;  %v15960_v17 = vld [vmem:[#allocation127_spill] sm:$0xff]  ;;  %vm15961_vm1 = vcmp.lt.s32.totalorder %v8980_v48, 50  ;;  %v15962_v16 = vrot.slane %v11876_v35, %v15429_v1  ;;  %vm15270_vm8 = vcmp.lt.s32.totalorder %v8980_v48, 94 }
 0xb55   :  { %15949 = vst [vmem:[#allocation192_spill] sm:$0xff] %v12325_v34  ;;  %15950 = vst [vmem:[#allocation288_spill] sm:$0xff] %v12334_v23  ;;  %v5098_v37 = vmul.f32 %v15955_v56, %v5071_v0  ;;  %v15956_v34 = vld [vmem:[#allocation219_spill] sm:$0xff]  ;;  %v12359_v18 = vmul.f32 %v15957_v55, %v5045_v4  ;;  %v3324_v49 = vsel %vm15961_vm1, %v15960_v17, %v11903_v52  ;;  %v12370_v2 = vpop.permute.xlu1 %3736  ;;  %v15964_v4 = vld [vmem:[#allocation197_spill] sm:$0xff]  ;;  %v12384_v0 = vpop.permute.xlu0 %5273  ;;  %5275 = vrot.lane.b32.xlu1 %v10591_v32, %s8293_s9 }
 0xb56   :  { %v5149_v56 = vmul.f32 %v15962_v16, %v5124_v38  ;;  %v15963_v23 = vld [vmem:[#allocation199_spill] sm:$0xff]  ;;  %v15965_v55 = vld [vmem:[#allocation222_spill] sm:$0xff]  ;;  %15966 = vst [vmem:[#allocation127_spill] sm:$0xff] %v12384_v0  ;;  %vm15279_vm1 = vcmp.lt.s32.totalorder %v8980_v48, 93 }
 0xb57   :  { %15958 = vst [vmem:[#allocation195_spill] sm:$0xff] %v12359_v18  ;;  %v5176_v25 = vsel %vm5173_vm9, %v15964_v4, %v15963_v23  ;;  %v15967_v18 = vrot.slane %v11876_v35, %v15431_v9  ;;  %v5175_v38 = vsel %vm5173_vm9, %v15963_v23, %v12226_v12  ;;  %v15968_v16 = vld [vmem:[#allocation223_spill] sm:$0xff]  ;;  %v15973_v23 = vrot.slane %v11901_v8, %v15429_v1  ;;  %v15974_v12 = vld [vmem:[#allocation202_spill] sm:$0xff] }
 0xb58   :  { %v15969_v17 = vld [vmem:[#allocation27_spill] sm:$0xff]  ;;  %v5228_v27 = vsel %vm15255_vm10, %v15975_v30, %v15974_v12 }
 0xb59   :  { %v5150_v14 = vmul.f32 %v15967_v18, %v5123_v5  ;;  %v12400_v50 = vmul.f32 %v15969_v17, %v5097_v39  ;;  %v12403_v35 = vmul.f32 %v15969_v17, %v5098_v37  ;;  %v3352_v18 = vmul.f32 %v3341_v53, %v3324_v49  ;;  %v15972_v5 = vld [vmem:[#allocation227_spill] sm:$0xff]  ;;  %v12418_v17 = vpop.permute.xlu1 %3788  ;;  %v15978_v53 = vld [vmem:[#allocation24_spill] sm:$0xff]  ;;  %5327 = vrot.lane.b32.xlu1 %v10591_v32, %s8294_s24  ;;  %v15988_v37 = vld [vmem:[#allocation157_spill] sm:$0xff] }
 0xb5a   :  { %v5201_v4 = vmul.f32 %v15973_v23, %v5176_v25  ;;  %15977 = vst [vmem:[#allocation202_spill] sm:$0xff] %v12418_v17  ;;  %v12421_v49 = vmul.f32 %v15978_v53, %v5149_v56  ;;  %v5202_v25 = vmul.f32 %v15980_v45, %v5175_v38  ;;  %v5227_v23 = vsel %vm15255_vm10, %v15974_v12, %v12305_v26  ;;  %v15982_v56 = vld [vmem:[#allocation229_spill] sm:$0xff]  ;;  %v15983_v45 = vld [vmem:[#allocation231_spill] sm:$0xff]  ;;  %v12456_v38 = vpop.permute.xlu0 %5325 }
 0xb5b   :  { %15970 = vst [vmem:[#allocation199_spill] sm:$0xff] %v12400_v50  ;;  %15971 = vst [vmem:[#allocation223_spill] sm:$0xff] %v12403_v35  ;;  %v15976_v50 = vld [vmem:[#allocation228_spill] sm:$0xff]  ;;  %v12433_v30 = vmul.f32 %v15978_v53, %v5150_v14  ;;  %v15984_v12 = vrot.slane %v11927_v3, %v15429_v1  ;;  %v15985_v14 = vld [vmem:[#allocation205_spill] sm:$0xff]  ;;  %vm15989_vm10 = vcmp.lt.s32.totalorder %v8980_v48, 51 }
 0xb5c   :  { %15979 = vst [vmem:[#allocation290_spill] sm:$0xff] %v12421_v49  ;;  %v15986_v53 = vld [vmem:[#allocation204_spill] sm:$0xff]  ;;  %v15987_v49 = vld [vmem:[#allocation118_spill] sm:$0xff]  ;;  %15991 = vst [vmem:[#allocation205_spill] sm:$0xff] %v12456_v38  ;;  %v12459_v59 = vmul.f32 %v15992_v51, %v5201_v4  ;;  %v3378_v4 = vsel %vm3374_vm12, %v11958_v57, %v15996_v42 }
 0xb5d   :  { %15981 = vst [vmem:[#allocation291_spill] sm:$0xff] %v12433_v30  ;;  %v5253_v39 = vmul.f32 %v15984_v12, %v5228_v27  ;;  %v5280_v26 = vsel %vm15263_vm6, %v15986_v53, %v15985_v14  ;;  %v3272_v8 = vsel %vm15989_vm10, %v15988_v37, %v15987_v49  ;;  %v15990_v30 = vld [vmem:[#allocation31_spill] sm:$0xff]  ;;  %v15994_v27 = vrot.slane %v11927_v3, %v15431_v9  ;;  %v12470_v49 = vpop.permute.xlu1 %3840  ;;  %v15997_v3 = vld [vmem:[#allocation232_spill] sm:$0xff]  ;;  %v16008_v42 = vld [vmem:[#allocation209_spill] sm:$0xff] }
 0xb5e   :  { %v3360_v35 = vmul.f32 %v15990_v30, %v3352_v18  ;;  %15993 = vst [vmem:[#allocation118_spill] sm:$0xff] %v12459_v59  ;;  %v5279_v53 = vsel %vm15263_vm6, %v15985_v14, %v12384_v0  ;;  %v12473_v18 = vmul.f32 %v15992_v51, %v5202_v25  ;;  %v15998_v14 = vrot.slane %v11956_v40, %v15429_v1  ;;  %v16000_v51 = vld [vmem:[#allocation233_spill] sm:$0xff]  ;;  %v16001_v59 = vld [vmem:[#allocation28_spill] sm:$0xff]  ;;  %v16005_v30 = vld [vmem:[#allocation119_spill] sm:$0xff] }
 0xb5f   :  { %v5254_v12 = vmul.f32 %v15994_v27, %v5227_v23  ;;  %v15999_v0 = vrot.slane %v11106_v22, %v15429_v1  ;;  %5379 = vrot.lane.b32.xlu1 %v10591_v32, %s8295_s15  ;;  %v16003_v27 = vrot.slane %v11956_v40, %v15431_v9  ;;  %vm16006_vm10 = vcmp.lt.s32.totalorder %v8980_v48, 48  ;;  %v16009_v22 = vld [vmem:[#allocation207_spill] sm:$0xff] }
 0xb60   :  { %15995 = vst [vmem:[#allocation157_spill] sm:$0xff] %v12473_v18  ;;  %v5305_v20 = vmul.f32 %v15998_v14, %v5280_v26  ;;  %v12496_v18 = vmul.f32 %v16001_v59, %v5253_v39  ;;  %v16004_v14 = vld [vmem:[#allocation245_spill] sm:$0xff]  ;;  %v5332_v39 = vsel %vm15270_vm8, %v16009_v22, %v16008_v42  ;;  %vm5433_vm6 = vcmp.lt.s32.totalorder %v8980_v48, 83 }
 0xb61   :  { %v3296_v25 = vmul.f32 %v15999_v0, %v3272_v8  ;;  %v5306_v26 = vmul.f32 %v16003_v27, %v5279_v53  ;;  %v3364_v62 = vadd.f32 %v3360_v35, %v16004_v14  ;;  %v3430_v0 = vsel %vm16006_vm10, %v12017_v44, %v16005_v30  ;;  %v12517_v35 = vpop.permute.xlu1 %3892  ;;  %v16012_v27 = vld [vmem:[#allocation235_spill] sm:$0xff] }
 0xb62   :  { %16002 = vst [vmem:[#allocation128_spill] sm:$0xff] %v12496_v18  ;;  %v12507_v8 = vmul.f32 %v16001_v59, %v5254_v12  ;;  %v16010_v40 = vrot.slane %v11119_v63, %v15429_v1  ;;  %16011 = vst [vmem:[#allocation233_spill] sm:$0xff] %v12517_v35  ;;  %v5331_v30 = vsel %vm15270_vm8, %v16008_v42, %v12456_v38  ;;  %v16013_v12 = vld [vmem:[#allocation120_spill] sm:$0xff]  ;;  %vm16014_vm10 = vcmp.lt.s32.totalorder %v8980_v48, 47  ;;  %v12533_v59 = vpop.permute.xlu0 %5377  ;;  %v16017_v18 = vld [vmem:[#allocation49_spill] sm:$0xff] }
 0xb63   :  { %v3482_v23 = vsel %vm16014_vm10, %v12077_v6, %v16013_v12  ;;  %16016 = vst [vmem:[#allocation245_spill] sm:$0xff] %v12533_v59  ;;  %v12536_v14 = vmul.f32 %v16017_v18, %v5305_v20  ;;  %v16020_v42 = vrot.slane %v15953_v19, %v15429_v1  ;;  %5431 = vrot.lane.b32.xlu1 %v10591_v32, %s8296_s3  ;;  %v16026_v19 = vld [vmem:[#allocation82_spill] sm:$0xff]  ;;  %vm16031_vm10 = vcmp.lt.s32.totalorder %v8980_v48, 45 }
 0xb64   :  { %16007 = vst [vmem:[#allocation232_spill] sm:$0xff] %v12507_v8  ;;  %v3402_v53 = vmul.f32 %v16010_v40, %v3378_v4  ;;  %v16015_v4 = vld [vmem:[#allocation236_spill] sm:$0xff]  ;;  %v12547_v22 = vmul.f32 %v16017_v18, %v5306_v26  ;;  %v16022_v40 = vrot.slane %v11974_v43, %v15429_v1  ;;  %v16027_v26 = vrot.slane %v15956_v34, %v15429_v1  ;;  %v16035_v34 = vld [vmem:[#allocation33_spill] sm:$0xff] }
 0xb65   :  { %16018 = vst [vmem:[#allocation119_spill] sm:$0xff] %v12536_v14  ;;  %v16019_v8 = vld [vmem:[#allocation100_spill] sm:$0xff]  ;;  %v3454_v38 = vmul.f32 %v16020_v42, %v3430_v0  ;;  %v16023_v14 = vld [vmem:[#allocation247_spill] sm:$0xff]  ;;  %v16025_v42 = vrot.slane %v11974_v43, %v15431_v9  ;;  %vm15301_vm8 = vcmp.lt.s32.totalorder %v8980_v48, 82 }
 0xb66   :  { %v3306_v63 = vmul.f32 %v16019_v8, %v3296_v25  ;;  %16021 = vst [vmem:[#allocation209_spill] sm:$0xff] %v12547_v22  ;;  %v5357_v20 = vmul.f32 %v16022_v40, %v5332_v39  ;;  %v3416_v6 = vadd.f32 %v16023_v14, %v3364_v62  ;;  %v16024_v25 = vld [vmem:[#allocation121_spill] sm:$0xff]  ;;  %v3410_v12 = vmul.f32 %v16026_v19, %v3402_v53  ;;  %v12564_v22 = vpop.permute.xlu1 %3944  ;;  %v16029_v14 = vld [vmem:[#allocation212_spill] sm:$0xff]  ;;  %v16034_v62 = vld [vmem:[#allocation246_spill] sm:$0xff] }
 0xb67   :  { %v3534_v0 = vsel %vm3530_vm15, %v12141_v28, %v16024_v25  ;;  %v5358_v8 = vmul.f32 %v16025_v42, %v5331_v30  ;;  %v3506_v18 = vmul.f32 %v16027_v26, %v3482_v23  ;;  %v16028_v39 = vld [vmem:[#allocation237_spill] sm:$0xff]  ;;  %v5383_v40 = vsel %vm15279_vm1, %v16029_v14, %v12533_v59  ;;  %v16030_v25 = vld [vmem:[#allocation122_spill] sm:$0xff]  ;;  %v16032_v23 = vld [vmem:[#allocation239_spill] sm:$0xff]  ;;  %5483 = vrot.lane.b32.xlu1 %v10591_v32, %s8297_s11 }
 0xb68   :  { %v3586_v43 = vsel %vm16031_vm10, %v12209_v33, %v16030_v25  ;;  %v16033_v42 = vld [vmem:[#allocation210_spill] sm:$0xff]  ;;  %v3362_v59 = vadd.f32 %v16034_v62, %v3306_v63  ;;  %v3462_v19 = vmul.f32 %v16035_v34, %v3454_v38  ;;  %v16036_v25 = vrot.slane %v15965_v55, %v15429_v1  ;;  %v16037_v53 = vld [vmem:[#allocation67_spill] sm:$0xff]  ;;  %v12602_v38 = vpop.permute.xlu0 %5429  ;;  %v16048_v55 = vld [vmem:[#allocation124_spill] sm:$0xff] }
 0xb69   :  { %v5384_v26 = vsel %vm15279_vm1, %v16033_v42, %v16029_v14  ;;  %v12593_v30 = vmul.f32 %v16037_v53, %v5357_v20  ;;  %v16039_v28 = vld [vmem:[#allocation250_spill] sm:$0xff]  ;;  %vm16041_vm10 = vcmp.lt.s32.totalorder %v8980_v48, 35  ;;  %16042 = vst [vmem:[#allocation247_spill] sm:$0xff] %v12602_v38  ;;  %v16045_v20 = vrot.slane %v15968_v16, %v15429_v1 }
 0xb6a   :  { %v3558_v33 = vmul.f32 %v16036_v25, %v3534_v0  ;;  %v3468_v44 = vadd.f32 %v16039_v28, %v3416_v6  ;;  %v3638_v14 = vsel %vm16041_vm10, %v12266_v47, %v16040_v11  ;;  %v12605_v0 = vmul.f32 %v16037_v53, %v5358_v8  ;;  %v16044_v25 = vld [vmem:[#allocation30_spill] sm:$0xff]  ;;  %v12611_v28 = vpop.permute.xlu1 %3996 }
 0xb6b   :  { %16038 = vst [vmem:[#allocation120_spill] sm:$0xff] %v12593_v30  ;;  %v3414_v62 = vadd.f32 %v3410_v12, %v3362_v59  ;;  %v3514_v42 = vmul.f32 %v16044_v25, %v3506_v18  ;;  %v3610_v6 = vmul.f32 %v16045_v20, %v3586_v43  ;;  %v16046_v11 = vrot.slane %v12002_v36, %v15429_v1  ;;  %v16049_v18 = vld [vmem:[#allocation240_spill] sm:$0xff]  ;;  %v16050_v43 = vld [vmem:[#allocation17_spill] sm:$0xff]  ;;  %v16057_v8 = vld [vmem:[#allocation218_spill] sm:$0xff] }
 0xb6c   :  { %16043 = vst [vmem:[#allocation121_spill] sm:$0xff] %v12605_v0  ;;  %v16047_v63 = vrot.slane %v12002_v36, %v15431_v9  ;;  %v3690_v59 = vsel %vm3686_vm11, %v12322_v61, %v16048_v55  ;;  %vm15298_vm10 = vcmp.lt.s32.totalorder %v8980_v48, 81  ;;  %v3566_v20 = vmul.f32 %v16050_v43, %v3558_v33  ;;  %5535 = vrot.lane.b32.xlu1 %v10591_v32, %s8298_s12  ;;  %v12635_v36 = vld [vmem:[%s14782_s16 + $0x62] ss:$8 sm:$0xf] }
 0xb6d   :  { %v5409_v30 = vmul.f32 %v16046_v11, %v5384_v26  ;;  %v3466_v12 = vadd.f32 %v3462_v19, %v3414_v62  ;;  %v16051_v26 = vrot.slane %v15972_v5, %v15429_v1  ;;  %16052 = vst [vmem:[#allocation237_spill] sm:$0xff] %v12635_v36  ;;  %v16054_v19 = vld [vmem:[#allocation251_spill] sm:$0xff]  ;;  %v16055_v62 = vld [vmem:[#allocation125_spill] sm:$0xff]  ;;  %vm16056_vm1 = vcmp.lt.s32.totalorder %v8980_v48, 33  ;;  %v16058_v0 = vld [vmem:[#allocation40_spill] sm:$0xff] }
 0xb6e   :  { %v5410_v47 = vmul.f32 %v16047_v63, %v5383_v40  ;;  %v16053_v40 = vld [vmem:[#allocation224_spill] sm:$0xff]  ;;  %v3520_v63 = vadd.f32 %v16054_v19, %v3468_v44  ;;  %v3618_v36 = vmul.f32 %v16058_v0, %v3610_v6  ;;  %v12658_v19 = vpop.permute.xlu1 %4048  ;;  %v12677_v6 = vpop.permute.xlu0 %5481 }
 0xb6f   :  { %v3662_v11 = vmul.f32 %v16051_v26, %v3638_v14  ;;  %v5435_v33 = vsel %vm5433_vm6, %v16053_v40, %v12602_v38  ;;  %v3742_v14 = vsel %vm16056_vm1, %v12370_v2, %v16055_v62  ;;  %v5436_v55 = vsel %vm5433_vm6, %v16057_v8, %v16053_v40  ;;  %16060 = vst [vmem:[#allocation212_spill] sm:$0xff] %v12658_v19  ;;  %v16061_v5 = vld [vmem:[#allocation76_spill] sm:$0xff]  ;;  %v16064_v26 = vld [vmem:[#allocation126_spill] sm:$0xff] }
 0xb70   :  { %v3518_v53 = vadd.f32 %v3514_v42, %v3466_v12  ;;  %v16059_v38 = vrot.slane %v15976_v50, %v15429_v1  ;;  %v12661_v43 = vmul.f32 %v16061_v5, %v5409_v30  ;;  %v12664_v62 = vmul.f32 %v16061_v5, %v5410_v47  ;;  %v12673_v42 = vld [vmem:[%s14782_s16 + $0x63] ss:$8 sm:$0xf]  ;;  %16067 = vst [vmem:[#allocation33_spill] sm:$0xff] %v12677_v6 }
 0xb71   :  { %vm16065_vm1 = vcmp.lt.s32.totalorder %v8980_v48, 32  ;;  %16066 = vst [vmem:[#allocation246_spill] sm:$0xff] %v12673_v42  ;;  %v16069_v47 = vrot.slane %v15982_v56, %v15429_v1  ;;  %5587 = vrot.lane.b32.xlu1 %v10591_v32, %s8299_s10  ;;  %v16076_v56 = vld [vmem:[#allocation21_spill] sm:$0xff] }
 0xb72   :  { %v3714_v44 = vmul.f32 %v16059_v38, %v3690_v59  ;;  %16062 = vst [vmem:[#allocation122_spill] sm:$0xff] %v12661_v43  ;;  %16063 = vst [vmem:[#allocation239_spill] sm:$0xff] %v12664_v62  ;;  %v3794_v40 = vsel %vm16065_vm1, %v12418_v17, %v16064_v26  ;;  %v3570_v30 = vadd.f32 %v3566_v20, %v3518_v53  ;;  %v16068_v59 = vld [vmem:[#allocation18_spill] sm:$0xff]  ;;  %v16074_v43 = vld [vmem:[#allocation129_spill] sm:$0xff]  ;;  %vm16075_vm1 = vcmp.lt.s32.totalorder %v8980_v48, 31  ;;  %v12707_v50 = vpop.permute.xlu1 %4100 }
 0xb73   :  { %v3670_v12 = vmul.f32 %v16068_v59, %v3662_v11  ;;  %v3766_v5 = vmul.f32 %v16069_v47, %v3742_v14  ;;  %v12688_v26 = vld [vmem:[%s14782_s16 + $0x64] ss:$8 sm:$0xf]  ;;  %v16071_v53 = vrot.slane %v12015_v10, %v15429_v1  ;;  %v16072_v11 = vrot.slane %v12015_v10, %v15431_v9 }
 0xb74   :  { %16070 = vst [vmem:[#allocation250_spill] sm:$0xff] %v12688_v26  ;;  %v16073_v14 = vld [vmem:[#allocation253_spill] sm:$0xff]  ;;  %v3846_v62 = vsel %vm16075_vm1, %v12470_v49, %v16074_v43  ;;  %v3622_v42 = vadd.f32 %v3618_v36, %v3570_v30  ;;  %v3722_v59 = vmul.f32 %v16076_v56, %v3714_v44  ;;  %v16077_v38 = vrot.slane %v15983_v45, %v15429_v1  ;;  %v16089_v56 = vld [vmem:[#allocation135_spill] sm:$0xff] }
 0xb75   :  { %v5461_v20 = vmul.f32 %v16071_v53, %v5436_v55  ;;  %v5462_v8 = vmul.f32 %v16072_v11, %v5435_v33  ;;  %v3572_v47 = vadd.f32 %v16073_v14, %v3520_v63  ;;  %v16078_v55 = vld [vmem:[#allocation241_spill] sm:$0xff]  ;;  %v16079_v63 = vld [vmem:[#allocation132_spill] sm:$0xff]  ;;  %vm16080_vm1 = vcmp.lt.s32.totalorder %v8980_v48, 30  ;;  %v16083_v11 = vld [vmem:[#allocation47_spill] sm:$0xff]  ;;  %5639 = vrot.lane.b32.xlu1 %v10591_v32, %s8300_s1  ;;  %s16100_s1 = smov 78  }
 0xb76   :  { %v3818_v17 = vmul.f32 %v16077_v38, %v3794_v40  ;;  %v5487_v33 = vsel %vm15301_vm8, %v16078_v55, %v12677_v6  ;;  %v3898_v43 = vsel %vm16080_vm1, %v12517_v35, %v16079_v63  ;;  %v12722_v36 = vld [vmem:[%s14782_s16 + $0x65] ss:$8 sm:$0xf]  ;;  %v3674_v53 = vadd.f32 %v3670_v12, %v3622_v42  ;;  %v12749_v42 = vpop.permute.xlu0 %5533 }
 0xb77   :  { %16081 = vst [vmem:[#allocation123_spill] sm:$0xff] %v12722_v36  ;;  %v16082_v38 = vld [vmem:[#allocation234_spill] sm:$0xff]  ;;  %v3774_v14 = vmul.f32 %v16083_v11, %v3766_v5  ;;  %v16084_v63 = vrot.slane %v15997_v3, %v15429_v1  ;;  %v16085_v6 = vld [vmem:[#allocation51_spill] sm:$0xff]  ;;  %v3950_v5 = vsel %vm3946_vm14, %v12564_v22, %v16089_v56  ;;  %16090 = vst [vmem:[#allocation240_spill] sm:$0xff] %v12749_v42  ;;  %vm15303_vm1 = vcmp.lt.s32.totalorder %v8980_v48, 80 }
 0xb78   :  { %v5488_v30 = vsel %vm15301_vm8, %v16082_v38, %v16078_v55  ;;  %v12739_v44 = vmul.f32 %v16085_v6, %v5461_v20  ;;  %v12742_v40 = vmul.f32 %v16085_v6, %v5462_v8  ;;  %v16088_v35 = vld [vmem:[#allocation130_spill] sm:$0xff]  ;;  %v16091_v12 = vld [vmem:[#allocation71_spill] sm:$0xff]  ;;  %v16092_v20 = vrot.slane %v16000_v51, %v15429_v1  ;;  %v12756_v8 = vpop.permute.xlu1 %4151 }
 0xb79   :  { %v3870_v10 = vmul.f32 %v16084_v63, %v3846_v62  ;;  %v3624_v45 = vadd.f32 %v16088_v35, %v3572_v47  ;;  %v3726_v62 = vadd.f32 %v3722_v59, %v3674_v53  ;;  %v3826_v55 = vmul.f32 %v16091_v12, %v3818_v17  ;;  %v16095_v59 = vld [vmem:[#allocation244_spill] sm:$0xff]  ;;  %v16096_v53 = vld [vmem:[#allocation138_spill] sm:$0xff]  ;;  %5691 = vrot.lane.b32.xlu1 %v10591_v32, %s16100_s1 }
 0xb7a   :  { %16086 = vst [vmem:[#allocation30_spill] sm:$0xff] %v12739_v44  ;;  %16087 = vst [vmem:[#allocation124_spill] sm:$0xff] %v12742_v40  ;;  %v3922_v63 = vmul.f32 %v16092_v20, %v3898_v43  ;;  %v16093_v47 = vrot.slane %v12075_v54, %v15429_v1  ;;  %v16094_v6 = vrot.slane %v12075_v54, %v15431_v9  ;;  %v16097_v20 = vld [vmem:[#allocation242_spill] sm:$0xff]  ;;  %v16102_v40 = vld [vmem:[#allocation140_spill] sm:$0xff]  ;;  %vm16134_vm8 = vcmp.lt.s32.totalorder %v8980_v48, 50 }
 0xb7b   :  { %v5539_v17 = vsel %vm15298_vm10, %v16095_v59, %v12749_v42  ;;  %v4002_v43 = vsel %vm3998_vm0, %v12611_v28, %v16096_v53  ;;  %v5540_v35 = vsel %vm15298_vm10, %v16097_v20, %v16095_v59  ;;  %v16099_v54 = vrot.slane %v16012_v27, %v15429_v1  ;;  %v16104_v59 = vld [vmem:[#allocation72_spill] sm:$0xff] }
 0xb7c   :  { %v5513_v56 = vmul.f32 %v16093_v47, %v5488_v30  ;;  %v5514_v38 = vmul.f32 %v16094_v6, %v5487_v33  ;;  %v3778_v30 = vadd.f32 %v3774_v14, %v3726_v62  ;;  %v16098_v47 = vld [vmem:[#allocation77_spill] sm:$0xff]  ;;  %v16101_v33 = vld [vmem:[#allocation256_spill] sm:$0xff]  ;;  %v4054_v53 = vsel %vm4050_vm2, %v12658_v19, %v16102_v40  ;;  %v12802_v20 = vpop.permute.xlu1 %4202  ;;  %v16106_v19 = vld [vmem:[#allocation66_spill] sm:$0xff] }
 0xb7d   :  { %v3878_v44 = vmul.f32 %v16098_v47, %v3870_v10  ;;  %v3974_v6 = vmul.f32 %v16099_v54, %v3950_v5  ;;  %v3676_v42 = vadd.f32 %v16101_v33, %v3624_v45  ;;  %v12792_v14 = vld [vmem:[%s14782_s16 + $0x66] ss:$8 sm:$0xf]  ;;  %v3930_v54 = vmul.f32 %v16104_v59, %v3922_v63  ;;  %5743 = vrot.lane.b32.xlu1 %v10591_v32, %s16114_s18 }
 0xb7e   :  { %16103 = vst [vmem:[#allocation224_spill] sm:$0xff] %v12792_v14  ;;  %v3830_v62 = vadd.f32 %v3826_v55, %v3778_v30  ;;  %v16105_v45 = vrot.slane %v16015_v4, %v15429_v1  ;;  %v12807_v27 = vmul.f32 %v16106_v19, %v5513_v56  ;;  %v16108_v10 = vrot.slane %v12091_v60, %v15429_v1  ;;  %v16110_v30 = vld [vmem:[#allocation142_spill] sm:$0xff] }
 0xb7f   :  { %v16109_v55 = vrot.slane %v12091_v60, %v15431_v9  ;;  %v16112_v5 = vld [vmem:[#allocation78_spill] sm:$0xff]  ;;  %vm16117_vm10 = vcmp.lt.s32.totalorder %v8980_v48, 16 }
 0xb80   :  { %v4026_v33 = vmul.f32 %v16105_v45, %v4002_v43  ;;  %16107 = vst [vmem:[#allocation251_spill] sm:$0xff] %v12807_v27  ;;  %v5565_v14 = vmul.f32 %v16108_v10, %v5540_v35  ;;  %v4105_v43 = vsel %vm1221_vm4, %v12707_v50, %v16110_v30  ;;  %v12820_v45 = vmul.f32 %v16106_v19, %v5514_v38  ;;  %v16115_v60 = vld [vmem:[#allocation34_spill] sm:$0xff]  ;;  %v16120_v30 = vld [vmem:[#allocation48_spill] sm:$0xff]  ;;  %v16129_v19 = vld [vmem:[#allocation249_spill] sm:$0xff] }
 0xb81   :  { %v5566_v63 = vmul.f32 %v16109_v55, %v5539_v17  ;;  %v3882_v40 = vadd.f32 %v3878_v44, %v3830_v62  ;;  %v3982_v56 = vmul.f32 %v16112_v5, %v3974_v6  ;;  %v16113_v27 = vrot.slane %v16028_v39, %v15429_v1  ;;  %v16116_v17 = vld [vmem:[#allocation144_spill] sm:$0xff]  ;;  %v16118_v62 = vld [vmem:[#allocation38_spill] sm:$0xff] }
 0xb82   :  { %16111 = vst [vmem:[#allocation125_spill] sm:$0xff] %v12820_v45  ;;  %v3728_v35 = vadd.f32 %v16115_v60, %v3676_v42  ;;  %v4156_v10 = vsel %vm16117_vm10, %v12756_v8, %v16116_v17  ;;  %v4034_v55 = vmul.f32 %v16118_v62, %v4026_v33  ;;  %v12846_v60 = vmul.f32 %v16120_v30, %v5565_v14  ;;  %v16123_v38 = vld [vmem:[#allocation146_spill] sm:$0xff] }
 0xb83   :  { %v4078_v4 = vmul.f32 %v16113_v27, %v4054_v53  ;;  %v3934_v6 = vadd.f32 %v3930_v54, %v3882_v40  ;;  %v16119_v27 = vrot.slane %v16032_v23, %v15429_v1  ;;  %v12841_v53 = vpop.permute.xlu1 %4253  ;;  %v12849_v17 = vmul.f32 %v16120_v30, %v5566_v63  ;;  %v12857_v40 = vpop.permute.xlu0 %5585  ;;  %v16128_v30 = vld [vmem:[#allocation252_spill] sm:$0xff] }
 0xb84   :  { %16121 = vst [vmem:[#allocation40_spill] sm:$0xff] %v12846_v60  ;;  %vm16124_vm10 = vcmp.lt.s32.totalorder %v8980_v48, 15  ;;  %16125 = vst [vmem:[#allocation253_spill] sm:$0xff] %v12857_v40  ;;  %v16126_v14 = vrot.slane %v16049_v18, %v15429_v1  ;;  %v5592_v33 = vsel %vm15303_vm1, %v16129_v19, %v16128_v30  ;;  %v16135_v60 = vld [vmem:[#allocation73_spill] sm:$0xff] }
 0xb85   :  { %v4129_v32 = vmul.f32 %v16119_v27, %v4105_v43  ;;  %16122 = vst [vmem:[#allocation126_spill] sm:$0xff] %v12849_v17  ;;  %v4207_v54 = vsel %vm16124_vm10, %v12802_v20, %v16123_v38  ;;  %v3986_v43 = vadd.f32 %v3982_v56, %v3934_v6  ;;  %v4086_v27 = vmul.f32 %v15799_v21, %v4078_v4  ;;  %v16130_v56 = vld [vmem:[#allocation141_spill] sm:$0xff]  ;;  %v16131_v4 = vld [vmem:[#allocation148_spill] sm:$0xff] }
 0xb86   :  { %v4180_v44 = vmul.f32 %v16126_v14, %v4156_v10  ;;  %v5591_v38 = vsel %vm15303_vm1, %v16128_v30, %v12857_v40  ;;  %v3780_v6 = vadd.f32 %v16130_v56, %v3728_v35  ;;  %vm16132_vm10 = vcmp.lt.s32.totalorder %v8980_v48, 14  ;;  %v16133_v10 = vld [vmem:[#allocation158_spill] sm:$0xff]  ;;  %v16138_v35 = vld [vmem:[#allocation156_spill] sm:$0xff] }
 0xb87   :  { %v4259_v18 = vsel %vm16132_vm10, %v12841_v53, %v16131_v4  ;;  %v3323_v14 = vsel %vm16134_vm8, %v11903_v52, %v16133_v10  ;;  %v4038_v42 = vadd.f32 %v4034_v55, %v3986_v43  ;;  %v4137_v40 = vmul.f32 %v16135_v60, %v4129_v32  ;;  %v12886_v30 = vpop.permute.xlu1 %4305  ;;  %v16140_v4 = vld [vmem:[#allocation150_spill] sm:$0xff]  ;;  %v16143_v32 = vld [vmem:[#allocation161_spill] sm:$0xff] }
 0xb88   :  { %v16136_v17 = vrot.slane %v11334_v15, %v15429_v1  ;;  %16137 = vst [vmem:[#allocation129_spill] sm:$0xff] %v12886_v30  ;;  %vm16139_vm1 = vcmp.lt.s32.totalorder %v8980_v48, 51  ;;  %vm16141_vm10 = vcmp.lt.s32.totalorder %v8980_v48, 13  ;;  %v12899_v52 = vld [vmem:[%s14782_s16 + $0x83] ss:$8 sm:$0xf]  ;;  %v16145_v10 = vrot.slane %v12688_v26, %v15429_v1 }
 0xb89   :  { %v3269_v56 = vsel %vm16139_vm1, %v16138_v35, %v15988_v37  ;;  %v4311_v19 = vsel %vm16141_vm10, %v12886_v30, %v16140_v4  ;;  %16142 = vst [vmem:[#allocation241_spill] sm:$0xff] %v12899_v52  ;;  %v3375_v37 = vsel %vm3374_vm12, %v16143_v32, %v11958_v57  ;;  %v16146_v4 = vrot.slane %v12127_v46, %v15429_v1  ;;  %v16150_v57 = vld [vmem:[#allocation257_spill] sm:$0xff] }
 0xb8a   :  { %v4231_v45 = vmul.f32 %v16136_v17, %v4207_v54  ;;  %v4090_v17 = vadd.f32 %v4086_v27, %v4038_v42  ;;  %v16144_v54 = vld [vmem:[#allocation79_spill] sm:$0xff]  ;;  %v4283_v35 = vmul.f32 %v16145_v10, %v4259_v18  ;;  %v16147_v15 = vrot.slane %v12127_v46, %v15431_v9  ;;  %v16151_v27 = vld [vmem:[#allocation266_spill] sm:$0xff]  ;;  %v16154_v10 = vld [vmem:[#allocation20_spill] sm:$0xff] }
 0xb8b   :  { %v4188_v43 = vmul.f32 %v16144_v54, %v4180_v44  ;;  %v5617_v63 = vmul.f32 %v16146_v4, %v5592_v33  ;;  %v16149_v52 = vrot.slane %v16148_v13, %v15754_v24  ;;  %v3832_v42 = vadd.f32 %v16150_v57, %v3780_v6  ;;  %v16152_v44 = vld [vmem:[#allocation163_spill] sm:$0xff]  ;;  %v12931_v46 = vpop.permute.xlu1 %4357  ;;  %v16157_v13 = vld [vmem:[#allocation213_spill] sm:$0xff]  ;;  %v16161_v57 = vld [vmem:[#allocation152_spill] sm:$0xff] }
 0xb8c   :  { %v5618_v55 = vmul.f32 %v16147_v15, %v5591_v38  ;;  %vm16153_vm8 = vcmp.lt.s32.totalorder %v8980_v48, 48  ;;  %v4141_v18 = vadd.f32 %v4137_v40, %v4090_v17  ;;  %v4239_v26 = vmul.f32 %v16154_v10, %v4231_v45  ;;  %16156 = vst [vmem:[#allocation132_spill] sm:$0xff] %v12931_v46  ;;  %v16163_v17 = vld [vmem:[#allocation167_spill] sm:$0xff]  ;;  %v16171_v10 = vld [vmem:[#allocation258_spill] sm:$0xff]  ;;  %v16172_v40 = vld [vmem:[#allocation216_spill] sm:$0xff] }
 0xb8d   :  { %v3353_v30 = vmul.f32 %v16149_v52, %v3323_v14  ;;  %v3427_v32 = vsel %vm16153_vm8, %v16152_v44, %v16151_v27  ;;  %v16155_v33 = vrot.slane %v12722_v36, %v15429_v1  ;;  %vm5641_vm12 = vcmp.lt.s32.totalorder %v8980_v48, 79  ;;  %v16159_v14 = vld [vmem:[#allocation215_spill] sm:$0xff]  ;;  %v16164_v27 = vld [vmem:[#allocation166_spill] sm:$0xff] }
 0xb8e   :  { %v16158_v38 = vrot.slane %v16157_v13, %v15754_v24  ;;  %v16160_v52 = vrot.slane %v16159_v14, %v15754_v24  ;;  %v4363_v45 = vsel %vm4359_vm3, %v12931_v46, %v16161_v57  ;;  %vm16165_vm1 = vcmp.lt.s32.totalorder %v8980_v48, 47  ;;  %v16168_v14 = vld [vmem:[#allocation75_spill] sm:$0xff] }
 0xb8f   :  { %v4335_v4 = vmul.f32 %v16155_v33, %v4311_v19  ;;  %v12947_v19 = vld [vmem:[%s14782_s16 + $0x84] ss:$8 sm:$0xf]  ;;  %v4192_v44 = vadd.f32 %v4188_v43, %v4141_v18  ;;  %v16167_v13 = vrot.slane %v11444_v58, %v15429_v1  ;;  %v3884_v46 = vadd.f32 %v16171_v10, %v3832_v42 }
 0xb90   :  { %v3299_v6 = vmul.f32 %v16158_v38, %v3269_v56  ;;  %v3405_v15 = vmul.f32 %v16160_v52, %v3375_v37  ;;  %16162 = vst [vmem:[#allocation47_spill] sm:$0xff] %v12947_v19  ;;  %v3479_v56 = vsel %vm16165_vm1, %v16164_v27, %v16163_v17  ;;  %v16166_v37 = vld [vmem:[#allocation42_spill] sm:$0xff]  ;;  %v12960_v52 = vmul.f32 %v16168_v14, %v5617_v63  ;;  %v16170_v57 = vld [vmem:[#allocation31_spill] sm:$0xff]  ;;  %v16175_v43 = vld [vmem:[#allocation273_spill] sm:$0xff]  ;;  %v12975_v27 = vpop.permute.xlu1 %4409 }
 0xb91   :  { %v4291_v33 = vmul.f32 %v16166_v37, %v4283_v35  ;;  %v4387_v38 = vmul.f32 %v16167_v13, %v4363_v45  ;;  %v3361_v36 = vmul.f32 %v16170_v57, %v3353_v30  ;;  %v16173_v19 = vrot.slane %v16172_v40, %v15754_v24  ;;  %v16176_v35 = vld [vmem:[#allocation168_spill] sm:$0xff]  ;;  %v16177_v45 = vld [vmem:[#allocation59_spill] sm:$0xff]  ;;  %v16179_v42 = vld [vmem:[#allocation82_spill] sm:$0xff] }
 0xb92   :  { %16169 = vst [vmem:[#allocation130_spill] sm:$0xff] %v12960_v52  ;;  %v12968_v17 = vmul.f32 %v16168_v14, %v5618_v55  ;;  %v3531_v58 = vsel %vm3530_vm15, %v16176_v35, %v16175_v43  ;;  %v4243_v18 = vadd.f32 %v4239_v26, %v4192_v44  ;;  %v4343_v63 = vmul.f32 %v16177_v45, %v4335_v4  ;;  %v16178_v30 = vld [vmem:[#allocation100_spill] sm:$0xff]  ;;  %v16180_v57 = vld [vmem:[#allocation219_spill] sm:$0xff]  ;;  %v16183_v14 = vld [vmem:[#allocation182_spill] sm:$0xff] }
 0xb93   :  { %v3457_v54 = vmul.f32 %v16173_v19, %v3427_v32  ;;  %v3309_v13 = vmul.f32 %v16178_v30, %v3299_v6  ;;  %v3413_v10 = vmul.f32 %v16179_v42, %v3405_v15  ;;  %v16181_v32 = vrot.slane %v16180_v57, %v15754_v24  ;;  %v16182_v55 = vld [vmem:[#allocation155_spill] sm:$0xff]  ;;  %v16186_v44 = vld [vmem:[#allocation74_spill] sm:$0xff]  ;;  %v16188_v42 = vld [vmem:[#allocation44_spill] sm:$0xff] }
 0xb94   :  { %16174 = vst [vmem:[#allocation135_spill] sm:$0xff] %v12968_v17  ;;  %v4415_v40 = vsel %vm4411_vm13, %v12975_v27, %v16182_v55  ;;  %v16184_v43 = vld [vmem:[#allocation171_spill] sm:$0xff]  ;;  %vm16185_vm15 = vcmp.lt.s32.totalorder %v8980_v48, 45  ;;  %v4295_v4 = vadd.f32 %v4291_v33, %v4243_v18  ;;  %v4395_v35 = vmul.f32 %v16186_v44, %v4387_v38  ;;  %v16192_v45 = vld [vmem:[#allocation173_spill] sm:$0xff]  ;;  %v16194_v38 = vld [vmem:[#allocation80_spill] sm:$0xff] }
 0xb95   :  { %v3509_v19 = vmul.f32 %v16181_v32, %v3479_v56  ;;  %v3583_v26 = vsel %vm16185_vm15, %v16184_v43, %v16183_v14  ;;  %v16187_v6 = vrot.slane %v11488_v7, %v15429_v1  ;;  %v3365_v30 = vadd.f32 %v3361_v36, %v3309_v13  ;;  %v16189_v32 = vld [vmem:[#allocation222_spill] sm:$0xff]  ;;  %v16191_v17 = vld [vmem:[#allocation283_spill] sm:$0xff]  ;;  %v13004_v43 = vpop.permute.xlu1 %4461  ;;  %v16198_v13 = vld [vmem:[#allocation176_spill] sm:$0xff] }
 0xb96   :  { %v3936_v56 = vadd.f32 %v16188_v42, %v3884_v46  ;;  %v3465_v57 = vmul.f32 %v16035_v34, %v3457_v54  ;;  %v16190_v55 = vrot.slane %v16189_v32, %v15754_v24  ;;  %vm16193_vm10 = vcmp.lt.s32.totalorder %v8980_v48, 35  ;;  %v13009_v36 = vld [vmem:[%s14782_s16 + $0x85] ss:$8 sm:$0xf] }
 0xb97   :  { %v4439_v15 = vmul.f32 %v16187_v6, %v4415_v40  ;;  %v3635_v33 = vsel %vm16193_vm10, %v16192_v45, %v16191_v17  ;;  %v4347_v14 = vadd.f32 %v4343_v63, %v4295_v4  ;;  %16195 = vst [vmem:[#allocation71_spill] sm:$0xff] %v13009_v36  ;;  %v3417_v54 = vadd.f32 %v3413_v10, %v3365_v30  ;;  %v16197_v45 = vld [vmem:[#allocation159_spill] sm:$0xff] }
 0xb98   :  { %v3561_v52 = vmul.f32 %v16190_v55, %v3531_v58  ;;  %v3517_v46 = vmul.f32 %v16044_v25, %v3509_v19  ;;  %v16196_v58 = vrot.slane %v15968_v16, %v15754_v24  ;;  %v4466_v63 = vsel %vm1484_vm7, %v13004_v43, %v16197_v45  ;;  %v13030_v16 = vpop.permute.xlu0 %5637  ;;  %v16202_v30 = vld [vmem:[#allocation227_spill] sm:$0xff]  ;;  %v16204_v55 = vld [vmem:[#allocation149_spill] sm:$0xff] }
 0xb99   :  { %v4447_v18 = vmul.f32 %v16194_v38, %v4439_v15  ;;  %v3687_v40 = vsel %vm3686_vm11, %v16198_v13, %v12322_v61  ;;  %v4399_v4 = vadd.f32 %v4395_v35, %v4347_v14  ;;  %v16199_v10 = vrot.slane %v11517_v31, %v15429_v1  ;;  %16200 = vst [vmem:[#allocation244_spill] sm:$0xff] %v13030_v16  ;;  %v16205_v61 = vld [vmem:[#allocation139_spill] sm:$0xff]  ;;  %v16206_v14 = vld [vmem:[#allocation178_spill] sm:$0xff] }
 0xb9a   :  { %v3613_v17 = vmul.f32 %v16196_v58, %v3583_v26  ;;  %v3469_v19 = vadd.f32 %v3465_v57, %v3417_v54  ;;  %v16201_v26 = vld [vmem:[#allocation17_spill] sm:$0xff]  ;;  %v16203_v42 = vrot.slane %v16202_v30, %v15754_v24  ;;  %v3988_v58 = vadd.f32 %v16204_v55, %v3936_v56  ;;  %v16208_v57 = vld [vmem:[#allocation23_spill] sm:$0xff]  ;;  %v16213_v55 = vld [vmem:[#allocation134_spill] sm:$0xff] }
 0xb9b   :  { %v4490_v6 = vmul.f32 %v16199_v10, %v4466_v63  ;;  %v3569_v15 = vmul.f32 %v16201_v26, %v3561_v52  ;;  %v5643_v35 = vsel %vm5641_vm12, %v16205_v61, %v13030_v16  ;;  %vm16207_vm11 = vcmp.lt.s32.totalorder %v8980_v48, 33  ;;  %v13046_v52 = vpop.permute.xlu1 %4549  ;;  %v16209_v10 = vld [vmem:[#allocation228_spill] sm:$0xff]  ;;  %v16211_v30 = vld [vmem:[#allocation131_spill] sm:$0xff]  ;;  %v16235_v16 = vld [vmem:[#allocation269_spill] sm:$0xff] }
 0xb9c   :  { %v3665_v32 = vmul.f32 %v16203_v42, %v3635_v33  ;;  %v3739_v45 = vsel %vm16207_vm11, %v16206_v14, %v12370_v2  ;;  %v4451_v63 = vadd.f32 %v4447_v18, %v4399_v4  ;;  %v3521_v13 = vadd.f32 %v3517_v46, %v3469_v19  ;;  %v16214_v18 = vld [vmem:[#allocation202_spill] sm:$0xff]  ;;  %v16215_v4 = vld [vmem:[#allocation181_spill] sm:$0xff]  ;;  %v16222_v34 = vld [vmem:[#allocation183_spill] sm:$0xff] }
 0xb9d   :  { %v4498_v54 = vmul.f32 %v16208_v57, %v4490_v6  ;;  %v3621_v33 = vmul.f32 %v16058_v0, %v3613_v17  ;;  %v16210_v56 = vrot.slane %v16209_v10, %v15754_v24  ;;  %vm16212_vm8 = vcmp.lt.s32.totalorder %v8980_v48, 127  ;;  %v16218_v19 = vld [vmem:[#allocation18_spill] sm:$0xff]  ;;  %v16219_v10 = vld [vmem:[#allocation229_spill] sm:$0xff] }
 0xb9e   :  { %v4554_v42 = vsel %vm16212_vm8, %v16211_v30, %v13046_v52  ;;  %v5644_v2 = vsel %vm5641_vm12, %v16213_v55, %v16205_v61  ;;  %vm16216_vm1 = vcmp.lt.s32.totalorder %v8980_v48, 32  ;;  %v16217_v17 = vrot.slane %v11554_v41, %v15431_v9  ;;  %v16221_v61 = vld [vmem:[#allocation154_spill] sm:$0xff] }
 0xb9f   :  { %v3717_v26 = vmul.f32 %v16210_v56, %v3687_v40  ;;  %v3791_v46 = vsel %vm16216_vm1, %v16215_v4, %v16214_v18  ;;  %v4502_v0 = vadd.f32 %v4498_v54, %v4451_v63  ;;  %vm5693_vm15 = vcmp.lt.s32.totalorder %v8980_v48, 78  ;;  %v16224_v54 = vld [vmem:[#allocation220_spill] sm:$0xff]  ;;  %v16225_v4 = vld [vmem:[#allocation95_spill] sm:$0xff]  ;;  %v16233_v55 = vld [vmem:[#allocation186_spill] sm:$0xff] }
 0xba0   :  { %v4581_v40 = vmul.f32 %v16217_v17, %v4554_v42  ;;  %v3573_v6 = vadd.f32 %v3569_v15, %v3521_v13  ;;  %v3673_v14 = vmul.f32 %v16218_v19, %v3665_v32  ;;  %v16220_v56 = vrot.slane %v16219_v10, %v15754_v24  ;;  %v13079_v17 = vpop.permute.xlu1 %4602  ;;  %v13084_v15 = vld [vmem:[%s14782_s16 + $0x86] ss:$8 sm:$0xf] }
 0xba1   :  { %v4040_v25 = vadd.f32 %v16221_v61, %v3988_v58  ;;  %vm16223_vm10 = vcmp.lt.s32.totalorder %v8980_v48, 31  ;;  %v4541_v18 = vadd.f32 %v16224_v54, %v4502_v0  ;;  %v16226_v58 = vld [vmem:[#allocation275_spill] sm:$0xff]  ;;  %v16232_v54 = vld [vmem:[#allocation233_spill] sm:$0xff]  ;;  %vm16234_vm11 = vcmp.lt.s32.totalorder %v8980_v48, 30 }
 0xba2   :  { %v3769_v30 = vmul.f32 %v16220_v56, %v3739_v45  ;;  %v3843_v63 = vsel %vm16223_vm10, %v16222_v34, %v12470_v49  ;;  %v4589_v42 = vmul.f32 %v16225_v4, %v4581_v40  ;;  %v16227_v45 = vrot.slane %v16226_v58, %v15429_v1  ;;  %v16228_v49 = vld [vmem:[#allocation21_spill] sm:$0xff]  ;;  %v16229_v0 = vld [vmem:[#allocation231_spill] sm:$0xff] }
 0xba3   :  { %v3625_v19 = vadd.f32 %v3621_v33, %v3573_v6  ;;  %v3725_v34 = vmul.f32 %v16228_v49, %v3717_v26  ;;  %v16230_v40 = vrot.slane %v16229_v0, %v15754_v24  ;;  %v16231_v56 = vrot.slane %v16226_v58, %v15431_v9  ;;  %v16236_v4 = vld [vmem:[#allocation221_spill] sm:$0xff]  ;;  %v16240_v0 = vld [vmem:[#allocation271_spill] sm:$0xff] }
 0xba4   :  { %v5669_v13 = vmul.f32 %v16227_v45, %v5644_v2  ;;  %v3895_v32 = vsel %vm16234_vm11, %v16233_v55, %v16232_v54  ;;  %v4592_v36 = vadd.f32 %v16235_v16, %v4541_v18  ;;  %v4593_v2 = vadd.f32 %v4589_v42, %v16236_v4  ;;  %v16238_v45 = vld [vmem:[#allocation260_spill] sm:$0xff]  ;;  %v13115_v18 = vpop.permute.xlu1 %4654  ;;  %v16244_v4 = vld [vmem:[#allocation191_spill] sm:$0xff] }
 0xba5   :  { %v3821_v10 = vmul.f32 %v16230_v40, %v3791_v46  ;;  %v5670_v61 = vmul.f32 %v16231_v56, %v5643_v35  ;;  %v3677_v33 = vadd.f32 %v3673_v14, %v3625_v19  ;;  %v3777_v26 = vmul.f32 %v16083_v11, %v3769_v30  ;;  %v16239_v35 = vld [vmem:[#allocation188_spill] sm:$0xff]  ;;  %v16242_v14 = vld [vmem:[#allocation86_spill] sm:$0xff]  ;;  %v16245_v19 = vld [vmem:[#allocation177_spill] sm:$0xff] }
 0xba6   :  { %v16237_v6 = vrot.slane %v15997_v3, %v15754_v24  ;;  %v4092_v49 = vadd.f32 %v16238_v45, %v4040_v25  ;;  %v3947_v58 = vsel %vm3946_vm14, %v16239_v35, %v12564_v22  ;;  %v4644_v55 = vadd.f32 %v16240_v0, %v4592_v36  ;;  %v16241_v40 = vld [vmem:[#allocation272_spill] sm:$0xff]  ;;  %v16246_v56 = vld [vmem:[#allocation274_spill] sm:$0xff]  ;;  %v16253_v0 = vld [vmem:[#allocation277_spill] sm:$0xff] }
 0xba7   :  { %v4645_v16 = vadd.f32 %v16241_v40, %v4593_v2  ;;  %v13120_v30 = vmul.f32 %v16242_v14, %v5669_v13  ;;  %vm5745_vm8 = vcmp.lt.s32.totalorder %v8980_v48, 77  ;;  %v3729_v3 = vadd.f32 %v3725_v34, %v3677_v33  ;;  %v16252_v35 = vld [vmem:[#allocation276_spill] sm:$0xff] }
 0xba8   :  { %v3873_v46 = vmul.f32 %v16237_v6, %v3843_v63  ;;  %v3829_v25 = vmul.f32 %v16091_v12, %v3821_v10  ;;  %v16243_v22 = vrot.slane %v16000_v51, %v15754_v24  ;;  %v13128_v36 = vmul.f32 %v16242_v14, %v5670_v61  ;;  %v16247_v12 = vld [vmem:[#allocation235_spill] sm:$0xff]  ;;  %v16250_v61 = vld [vmem:[#allocation212_spill] sm:$0xff]  ;;  %v16251_v6 = vld [vmem:[#allocation193_spill] sm:$0xff]  ;;  %v13147_v40 = vpop.permute.xlu1 %4706 }
 0xba9   :  { %v3999_v42 = vsel %vm3998_vm0, %v16244_v4, %v12611_v28  ;;  %v4696_v13 = vadd.f32 %v16245_v19, %v4644_v55  ;;  %v4697_v54 = vadd.f32 %v16246_v56, %v4645_v16  ;;  %v3781_v2 = vadd.f32 %v3777_v26, %v3729_v3  ;;  %v16256_v4 = vld [vmem:[#allocation147_spill] sm:$0xff]  ;;  %v16258_v56 = vld [vmem:[#allocation196_spill] sm:$0xff] }
 0xbaa   :  { %v3925_v63 = vmul.f32 %v16243_v22, %v3895_v32  ;;  %v3881_v34 = vmul.f32 %v16098_v47, %v3873_v46  ;;  %v16248_v10 = vrot.slane %v16247_v12, %v15754_v24  ;;  %v16249_v32 = vld [vmem:[#allocation261_spill] sm:$0xff]  ;;  %v4051_v45 = vsel %vm4050_vm2, %v16251_v6, %v16250_v61  ;;  %v16257_v19 = vld [vmem:[#allocation143_spill] sm:$0xff]  ;;  %v13172_v12 = vpop.permute.xlu0 %5689  ;;  %v16262_v6 = vld [vmem:[#allocation262_spill] sm:$0xff] }
 0xbab   :  { %v4143_v33 = vadd.f32 %v16249_v32, %v4092_v49  ;;  %v4748_v28 = vadd.f32 %v16252_v35, %v4696_v13  ;;  %v4749_v55 = vadd.f32 %v16253_v0, %v4697_v54  ;;  %v13152_v47 = vld [vmem:[%s14782_s16 + $0x87] ss:$8 sm:$0xf]  ;;  %v3833_v46 = vadd.f32 %v3829_v25, %v3781_v2 }
 0xbac   :  { %v3977_v51 = vmul.f32 %v16248_v10, %v3947_v58  ;;  %v3933_v49 = vmul.f32 %v16104_v59, %v3925_v63  ;;  %v16254_v58 = vld [vmem:[#allocation236_spill] sm:$0xff]  ;;  %v5696_v13 = vsel %vm5693_vm15, %v16257_v19, %v16256_v4  ;;  %v4102_v54 = vsel %vm1221_vm4, %v16258_v56, %v12707_v50  ;;  %v16259_v25 = vld [vmem:[#allocation278_spill] sm:$0xff]  ;;  %v16260_v59 = vld [vmem:[#allocation281_spill] sm:$0xff] }
 0xbad   :  { %v16255_v16 = vrot.slane %v16254_v58, %v15754_v24  ;;  %v4800_v2 = vadd.f32 %v16259_v25, %v4748_v28  ;;  %v4801_v63 = vadd.f32 %v16260_v59, %v4749_v55  ;;  %v16261_v32 = vrot.slane %v16028_v39, %v15754_v24  ;;  %v16263_v28 = vld [vmem:[#allocation198_spill] sm:$0xff]  ;;  %v16270_v59 = vld [vmem:[#allocation201_spill] sm:$0xff]  ;;  %v16296_v22 = vld [vmem:[#allocation132_spill] sm:$0xff] }
 0xbae   :  { %v3985_v10 = vmul.f32 %v16112_v5, %v3977_v51  ;;  %v4194_v35 = vadd.f32 %v16262_v6, %v4143_v33  ;;  %v5695_v50 = vsel %vm5693_vm15, %v16256_v4, %v13172_v12  ;;  %vm16264_vm2 = vcmp.lt.s32.totalorder %v8980_v48, 16  ;;  %v16265_v55 = vld [vmem:[#allocation282_spill] sm:$0xff]  ;;  %v16268_v4 = vld [vmem:[#allocation180_spill] sm:$0xff]  ;;  %v16357_v26 = vld [vmem:[#allocation71_spill] sm:$0xff] }
 0xbaf   :  { %v4029_v3 = vmul.f32 %v16255_v16, %v3999_v42  ;;  %v3885_v42 = vadd.f32 %v3881_v34, %v3833_v46  ;;  %v4081_v61 = vmul.f32 %v16261_v32, %v4051_v45  ;;  %v4153_v0 = vsel %vm16264_vm2, %v16263_v28, %v12756_v8  ;;  %v13188_v46 = vpop.permute.xlu1 %4758  ;;  %v13193_v39 = vld [vmem:[%s14782_s16 + $0xa0] ss:$8 sm:$0xf] }
 0xbb0   :  { %v4852_v34 = vadd.f32 %v16265_v55, %v4801_v63  ;;  %v16266_v45 = vrot.slane %v16032_v23, %v15754_v24  ;;  %v16267_v8 = vld [vmem:[#allocation185_spill] sm:$0xff]  ;;  %v16269_v56 = vrot.slane %v16268_v4, %v15429_v1  ;;  %vm16271_vm14 = vcmp.lt.s32.totalorder %v8980_v48, 15  ;;  %v16272_v32 = vld [vmem:[#allocation284_spill] sm:$0xff] }
 0xbb1   :  { %v3937_v51 = vadd.f32 %v3933_v49, %v3885_v42  ;;  %v4037_v33 = vmul.f32 %v16118_v62, %v4029_v3  ;;  %v4851_v16 = vadd.f32 %v16267_v8, %v4800_v2  ;;  %v4204_v63 = vsel %vm16271_vm14, %v16270_v59, %v12802_v20  ;;  %v16273_v3 = vld [vmem:[#allocation237_spill] sm:$0xff]  ;;  %v16275_v42 = vld [vmem:[#allocation264_spill] sm:$0xff]  ;;  %v16279_v8 = vld [vmem:[#allocation203_spill] sm:$0xff] }
 0xbb2   :  { %v4132_v58 = vmul.f32 %v16266_v45, %v4102_v54  ;;  %v5721_v25 = vmul.f32 %v16269_v56, %v5696_v13  ;;  %v4903_v6 = vadd.f32 %v16272_v32, %v4852_v34  ;;  %v4089_v23 = vmul.f32 %v15799_v21, %v4081_v61  ;;  %v16277_v45 = vld [vmem:[#allocation259_spill] sm:$0xff]  ;;  %v16278_v20 = vld [vmem:[#allocation153_spill] sm:$0xff] }
 0xbb3   :  { %v3989_v49 = vadd.f32 %v3985_v10, %v3937_v51  ;;  %v16274_v54 = vrot.slane %v16273_v3, %v15754_v24  ;;  %v4245_v28 = vadd.f32 %v16275_v42, %v4194_v35  ;;  %v16276_v13 = vrot.slane %v16268_v4, %v15431_v9  ;;  %v16281_v10 = vld [vmem:[#allocation286_spill] sm:$0xff]  ;;  %v13229_v51 = vpop.permute.xlu1 %4810  ;;  %v16284_v32 = vld [vmem:[#allocation189_spill] sm:$0xff] }
 0xbb4   :  { %v5748_v34 = vsel %vm5745_vm8, %v16278_v20, %v16277_v45  ;;  %vm16280_vm0 = vcmp.lt.s32.totalorder %v8980_v48, 14  ;;  %v4954_v61 = vadd.f32 %v16281_v10, %v4903_v6  ;;  %v4140_v4 = vmul.f32 %v16135_v60, %v4132_v58  ;;  %v16286_v6 = vld [vmem:[#allocation129_spill] sm:$0xff]  ;;  %v16289_v60 = vld [vmem:[#allocation288_spill] sm:$0xff]  ;;  %v16291_v10 = vld [vmem:[#allocation250_spill] sm:$0xff] }
 0xbb5   :  { %v4183_v2 = vmul.f32 %v16274_v54, %v4153_v0  ;;  %v5722_v55 = vmul.f32 %v16276_v13, %v5695_v50  ;;  %v4256_v21 = vsel %vm16280_vm0, %v16279_v8, %v12841_v53  ;;  %v13231_v0 = vpop.permute.xlu0 %5741  ;;  %v4041_v35 = vadd.f32 %v4037_v33, %v3989_v49  ;;  %v16282_v50 = vld [vmem:[#allocation246_spill] sm:$0xff]  ;;  %v16285_v54 = vld [vmem:[#allocation85_spill] sm:$0xff]  ;;  %v16290_v8 = vld [vmem:[#allocation79_spill] sm:$0xff] }
 0xbb6   :  { %v16283_v56 = vrot.slane %v16282_v50, %v15754_v24  ;;  %v4902_v3 = vadd.f32 %v16284_v32, %v4851_v16  ;;  %v13239_v42 = vmul.f32 %v16285_v54, %v5721_v25  ;;  %v5747_v53 = vsel %vm5745_vm8, %v16277_v45, %v13231_v0  ;;  %v16287_v13 = vld [vmem:[#allocation206_spill] sm:$0xff]  ;;  %v16294_v45 = vld [vmem:[#allocation279_spill] sm:$0xff] }
 0xbb7   :  { %vm16288_vm1 = vcmp.lt.s32.totalorder %v8980_v48, 13  ;;  %v5006_v58 = vadd.f32 %v16289_v60, %v4954_v61  ;;  %v4093_v49 = vadd.f32 %v4089_v23, %v4041_v35  ;;  %v16292_v16 = vrot.slane %v16291_v10, %v15754_v24  ;;  %v16293_v50 = vld [vmem:[#allocation162_spill] sm:$0xff]  ;;  %v16298_v61 = vld [vmem:[#allocation289_spill] sm:$0xff]  ;;  %v13266_v35 = vpop.permute.xlu1 %4861 }
 0xbb8   :  { %v4234_v59 = vmul.f32 %v16283_v56, %v4204_v63  ;;  %v4308_v33 = vsel %vm16288_vm1, %v16287_v13, %v16286_v6  ;;  %v4191_v63 = vmul.f32 %v16290_v8, %v4183_v2  ;;  %v4297_v56 = vadd.f32 %v16293_v50, %v4245_v28  ;;  %v16297_v6 = vld [vmem:[#allocation208_spill] sm:$0xff]  ;;  %v16300_v28 = vld [vmem:[#allocation123_spill] sm:$0xff]  ;;  %v16302_v10 = vld [vmem:[#allocation285_spill] sm:$0xff] }
 0xbb9   :  { %v4286_v25 = vmul.f32 %v16292_v16, %v4256_v21  ;;  %v13256_v32 = vmul.f32 %v16285_v54, %v5722_v55  ;;  %v16295_v62 = vrot.slane %v16294_v45, %v15429_v1  ;;  %v4360_v23 = vsel %vm4359_vm3, %v16297_v6, %v16296_v22  ;;  %v16299_v21 = vld [vmem:[#allocation20_spill] sm:$0xff]  ;;  %v16304_v50 = vld [vmem:[#allocation211_spill] sm:$0xff] }
 0xbba   :  { %v5058_v2 = vadd.f32 %v16298_v61, %v5006_v58  ;;  %v4144_v13 = vadd.f32 %v4140_v4, %v4093_v49  ;;  %v4242_v60 = vmul.f32 %v16299_v21, %v4234_v59  ;;  %v16301_v55 = vrot.slane %v16300_v28, %v15754_v24  ;;  %v16305_v58 = vld [vmem:[#allocation223_spill] sm:$0xff] }
 0xbbb   :  { %v5773_v5 = vmul.f32 %v16295_v62, %v5748_v34  ;;  %v4953_v16 = vadd.f32 %v16302_v10, %v4902_v3  ;;  %v16303_v62 = vrot.slane %v16294_v45, %v15431_v9  ;;  %v4412_v22 = vsel %vm4411_vm13, %v16304_v50, %v12975_v27  ;;  %v13284_v4 = vld [vmem:[%s14782_s16 + $0xa1] ss:$8 sm:$0xf] }
 0xbbc   :  { %v4338_v8 = vmul.f32 %v16301_v55, %v4308_v33  ;;  %v5110_v6 = vadd.f32 %v16305_v58, %v5058_v2  ;;  %v4195_v3 = vadd.f32 %v4191_v63, %v4144_v13  ;;  %v4294_v33 = vmul.f32 %v16166_v37, %v4286_v25  ;;  %v16306_v9 = vld [vmem:[#allocation224_spill] sm:$0xff]  ;;  %v16308_v45 = vld [vmem:[#allocation265_spill] sm:$0xff]  ;;  %v16309_v27 = vld [vmem:[#allocation50_spill] sm:$0xff]  ;;  %v13303_v37 = vpop.permute.xlu1 %4912 }
 0xbbd   :  { %v5774_v34 = vmul.f32 %v16303_v62, %v5747_v53  ;;  %v16307_v53 = vrot.slane %v16306_v9, %v15754_v24  ;;  %v4349_v61 = vadd.f32 %v16308_v45, %v4297_v56  ;;  %v13294_v21 = vmul.f32 %v16309_v27, %v5773_v5  ;;  %v16310_v2 = vld [vmem:[#allocation217_spill] sm:$0xff]  ;;  %v16311_v55 = vld [vmem:[#allocation291_spill] sm:$0xff]  ;;  %v16314_v62 = vld [vmem:[#allocation192_spill] sm:$0xff] }
 0xbbe   :  { %v4463_v28 = vsel %vm1484_vm7, %v16310_v2, %v13004_v43  ;;  %v5162_v10 = vadd.f32 %v16311_v55, %v5110_v6  ;;  %v4246_v25 = vadd.f32 %v4242_v60, %v4195_v3  ;;  %v16312_v13 = vld [vmem:[#allocation59_spill] sm:$0xff]  ;;  %v16313_v56 = vrot.slane %v11488_v7, %v15754_v24  ;;  %v16315_v43 = vld [vmem:[#allocation157_spill] sm:$0xff]  ;;  %v16318_v45 = vld [vmem:[#allocation232_spill] sm:$0xff] }
 0xbbf   :  { %v4390_v49 = vmul.f32 %v16307_v53, %v4360_v23  ;;  %v4346_v23 = vmul.f32 %v16312_v13, %v4338_v8  ;;  %v5005_v50 = vadd.f32 %v16314_v62, %v4953_v16  ;;  %v13311_v58 = vmul.f32 %v16309_v27, %v5774_v34  ;;  %v13317_v6 = vld [vmem:[%s14782_s16 + $0xa2] ss:$8 sm:$0xf] }
 0xbc0   :  { %v4442_v5 = vmul.f32 %v16313_v56, %v4412_v22  ;;  %v5214_v9 = vadd.f32 %v16315_v43, %v5162_v10  ;;  %v4298_v7 = vadd.f32 %v4294_v33, %v4246_v25  ;;  %v16316_v16 = vrot.slane %v11517_v31, %v15754_v24  ;;  %v16317_v3 = vld [vmem:[#allocation267_spill] sm:$0xff]  ;;  %v13329_v55 = vpop.permute.xlu1 %4963  ;;  %v16320_v56 = vld [vmem:[#allocation230_spill] sm:$0xff]  ;;  %v16322_v43 = vld [vmem:[#allocation209_spill] sm:$0xff] }
 0xbc1   :  { %v4398_v22 = vmul.f32 %v16186_v44, %v4390_v49  ;;  %v4401_v53 = vadd.f32 %v16317_v3, %v4349_v61  ;;  %v13334_v10 = vld [vmem:[%s14782_s16 + $0xa3] ss:$8 sm:$0xf]  ;;  %v13343_v31 = vld [vmem:[%s14782_s16 + $0xa4] ss:$8 sm:$0xf] }
 0xbc2   :  { %v4493_v34 = vmul.f32 %v16316_v16, %v4463_v28  ;;  %v5266_v2 = vadd.f32 %v16318_v45, %v5214_v9  ;;  %v4350_v61 = vadd.f32 %v4346_v23, %v4298_v7  ;;  %v4450_v28 = vmul.f32 %v16194_v38, %v4442_v5  ;;  %v16319_v25 = vld [vmem:[#allocation195_spill] sm:$0xff]  ;;  %v16338_v44 = vld [vmem:[#allocation124_spill] sm:$0xff]  ;;  %v16347_v8 = vld [vmem:[#allocation137_spill] sm:$0xff] }
 0xbc3   :  { %v5057_v13 = vadd.f32 %v16319_v25, %v5005_v50  ;;  %vm16321_vm3 = vcmp.lt.s32.totalorder %v8980_v48, 127  ;;  %v13359_v3 = vld [vmem:[%s14782_s16 + $0xa5] ss:$8 sm:$0xf]  ;;  %v16324_v25 = vrot.slane %v11554_v41, %v15448_v29  ;;  %vm16327_vm13 = vcmp.lt.s32.totalorder %v8980_v48, 126 }
 0xbc4   :  { %v4553_v62 = vsel %vm16321_vm3, %v13046_v52, %v16320_v56  ;;  %v5318_v9 = vadd.f32 %v16322_v43, %v5266_v2  ;;  %v4402_v5 = vadd.f32 %v4398_v22, %v4350_v61  ;;  %v4501_v50 = vmul.f32 %v16208_v57, %v4493_v34  ;;  %v16323_v52 = vld [vmem:[#allocation268_spill] sm:$0xff]  ;;  %v16325_v43 = vld [vmem:[#allocation121_spill] sm:$0xff]  ;;  %v16326_v22 = vld [vmem:[#allocation238_spill] sm:$0xff]  ;;  %v13382_v34 = vpop.permute.xlu1 %5015 }
 0xbc5   :  { %v4453_v7 = vadd.f32 %v16323_v52, %v4401_v53  ;;  %v13370_v45 = vld [vmem:[%s14782_s16 + $0xa6] ss:$8 sm:$0xf]  ;;  %v4582_v56 = vmul.f32 %v16324_v25, %v4553_v62  ;;  %v4605_v57 = vsel %vm16327_vm13, %v16326_v22, %v13079_v17  ;;  %v13390_v41 = vld [vmem:[%s14782_s16 + $0xa7] ss:$8 sm:$0xf]  ;;  %vm16331_vm10 = vmmov %vm16327_vm13 }
 0xbc6   :  { %v5370_v38 = vadd.f32 %v16325_v43, %v5318_v9  ;;  %v4454_v61 = vadd.f32 %v4450_v28, %v4402_v5  ;;  %v16328_v52 = vld [vmem:[#allocation199_spill] sm:$0xff]  ;;  %v16330_v22 = vld [vmem:[#allocation133_spill] sm:$0xff]  ;;  %v16332_v9 = vld [vmem:[#allocation170_spill] sm:$0xff]  ;;  %vm16336_vm11 = vcmp.lt.s32.totalorder %v8980_v48, 125  ;;  %vm16345_vm14 = vcmp.lt.s32.totalorder %v8980_v48, 115 }
 0xbc7   :  { %v5109_v23 = vadd.f32 %v16328_v52, %v5057_v13  ;;  %v16329_v25 = vld [vmem:[#allocation239_spill] sm:$0xff]  ;;  %v4608_v28 = vsel %vm16331_vm10, %v13079_v17, %v16330_v22  ;;  %v4504_v53 = vadd.f32 %v16332_v9, %v4453_v7  ;;  %vm16343_vm2 = vmmov %vm16336_vm11  ;;  %v16346_v7 = vld [vmem:[#allocation125_spill] sm:$0xff]  ;;  %vm16360_vm1 = vcmp.lt.s32.totalorder %v8980_v48, 114 }
 0xbc8   :  { %v5422_v43 = vadd.f32 %v16329_v25, %v5370_v38  ;;  %v13404_v13 = vld [vmem:[%s14782_s16 + $0xc0] ss:$8 sm:$0xf]  ;;  %v4505_v62 = vadd.f32 %v4501_v50, %v4454_v61  ;;  %v13420_v5 = vpop.permute.xlu1 %5067  ;;  %v13425_v50 = vld [vmem:[%s14782_s16 + $0xc1] ss:$8 sm:$0xf]  ;;  %vm16353_vm0 = vmmov %vm16345_vm14 }
 0xbc9   :  { %v16333_v38 = vld [vmem:[#allocation255_spill] sm:$0xff]  ;;  %v16339_v61 = vld [vmem:[#allocation290_spill] sm:$0xff]  ;;  %v16352_v60 = vld [vmem:[#allocation169_spill] sm:$0xff]  ;;  %vm16370_vm13 = vcmp.lt.s32.totalorder %v8980_v48, 113 }
 0xbca   :  { %v16334_v25 = vrot.slane %v16333_v38, %v15448_v29  ;;  %v16335_v17 = vld [vmem:[#allocation243_spill] sm:$0xff]  ;;  %v5474_v33 = vadd.f32 %v16338_v44, %v5422_v43  ;;  %v5161_v9 = vadd.f32 %v16339_v61, %v5109_v23  ;;  %v16340_v38 = vld [vmem:[#allocation241_spill] sm:$0xff]  ;;  %vm16366_vm3 = vmmov %vm16360_vm1 }
 0xbcb   :  { %v4657_v22 = vsel %vm16336_vm11, %v16335_v17, %v13115_v18  ;;  %v16337_v16 = vld [vmem:[#allocation95_spill] sm:$0xff]  ;;  %v16342_v44 = vld [vmem:[#allocation165_spill] sm:$0xff]  ;;  %vm16373_vm10 = vmmov %vm16370_vm13  ;;  %vm16377_vm11 = vcmp.lt.s32.totalorder %v8980_v48, 112 }
 0xbcc   :  { %v4634_v2 = vmul.f32 %v16334_v25, %v4605_v57  ;;  %v4590_v49 = vmul.f32 %v16337_v16, %v4582_v56  ;;  %v16341_v16 = vrot.slane %v16340_v38, %v15754_v24  ;;  %v4660_v43 = vsel %vm16343_vm2, %v13115_v18, %v16342_v44  ;;  %v16344_v25 = vld [vmem:[#allocation248_spill] sm:$0xff]  ;;  %v16349_v38 = vld [vmem:[#allocation226_spill] sm:$0xff]  ;;  %v16350_v44 = vld [vmem:[#allocation225_spill] sm:$0xff] }
 0xbcd   :  { %v4709_v17 = vsel %vm16345_vm14, %v16344_v25, %v13147_v40  ;;  %v5526_v52 = vadd.f32 %v16346_v7, %v5474_v33  ;;  %v16348_v57 = vrot.slane %v16347_v8, %v15448_v29  ;;  %v4543_v25 = vadd.f32 %v16350_v44, %v4504_v53  ;;  %v16351_v33 = vld [vmem:[#allocation45_spill] sm:$0xff]  ;;  %v16355_v63 = vld [vmem:[#allocation47_spill] sm:$0xff]  ;;  %v13474_v53 = vpop.permute.xlu1 %5119  ;;  %vm16382_vm2 = vmmov %vm16377_vm11 }
 0xbce   :  { %v4635_v56 = vmul.f32 %v16341_v16, %v4608_v28  ;;  %v13450_v28 = vld [vmem:[%s14782_s16 + $0xc2] ss:$8 sm:$0xf]  ;;  %v4544_v16 = vadd.f32 %v16349_v38, %v4505_v62  ;;  %v4642_v7 = vmul.f32 %v16351_v33, %v4634_v2  ;;  %v4712_v8 = vsel %vm16353_vm0, %v13147_v40, %v16352_v60 }
 0xbcf   :  { %v4686_v23 = vmul.f32 %v16348_v57, %v4657_v22  ;;  %v16354_v22 = vld [vmem:[#allocation126_spill] sm:$0xff]  ;;  %v16356_v59 = vrot.slane %v16355_v63, %v15754_v24  ;;  %v16358_v18 = vrot.slane %v16357_v26, %v15448_v29  ;;  %v4594_v40 = vadd.f32 %v4590_v49, %v4543_v25  ;;  %v16372_v27 = vld [vmem:[#allocation175_spill] sm:$0xff] }
 0xbd0   :  { %v5578_v57 = vadd.f32 %v16354_v22, %v5526_v52  ;;  %v16359_v62 = vld [vmem:[#allocation254_spill] sm:$0xff]  ;;  %v4643_v60 = vmul.f32 %v16351_v33, %v4635_v56  ;;  %v16362_v52 = vld [vmem:[#allocation135_spill] sm:$0xff]  ;;  %v16364_v22 = vrot.slane %v16357_v26, %v15754_v24  ;;  %vm16384_vm14 = vcmp.lt.s32.totalorder %v8980_v48, 111 }
 0xbd1   :  { %v4687_v61 = vmul.f32 %v16356_v59, %v4660_v43  ;;  %v4738_v11 = vmul.f32 %v16358_v18, %v4709_v17  ;;  %v4761_v2 = vsel %vm16360_vm1, %v16359_v62, %v13188_v46  ;;  %v16361_v38 = vld [vmem:[#allocation118_spill] sm:$0xff]  ;;  %v16363_v17 = vld [vmem:[#allocation25_spill] sm:$0xff]  ;;  %v4646_v33 = vadd.f32 %v4642_v7, %v4594_v40  ;;  %v16374_v7 = vld [vmem:[#allocation128_spill] sm:$0xff] }
 0xbd2   :  { %v5213_v44 = vadd.f32 %v16361_v38, %v5161_v9  ;;  %v13481_v59 = vld [vmem:[%s14782_s16 + $0xc3] ss:$8 sm:$0xf]  ;;  %v5630_v43 = vadd.f32 %v16362_v52, %v5578_v57  ;;  %v4694_v18 = vmul.f32 %v16363_v17, %v4686_v23  ;;  %v4739_v62 = vmul.f32 %v16364_v22, %v4712_v8  ;;  %vm16388_vm0 = vmmov %vm16384_vm14 }
 0xbd3   :  { %v16365_v9 = vld [vmem:[#allocation172_spill] sm:$0xff]  ;;  %v16367_v56 = vld [vmem:[#allocation270_spill] sm:$0xff]  ;;  %v16368_v38 = vrot.slane %v13084_v15, %v15448_v29  ;;  %v16369_v57 = vld [vmem:[#allocation117_spill] sm:$0xff]  ;;  %v4695_v8 = vmul.f32 %v16363_v17, %v4687_v61  ;;  %vm16398_vm1 = vcmp.lt.s32.totalorder %v8980_v48, 109 }
 0xbd4   :  { %v4764_v49 = vsel %vm16366_vm3, %v13188_v46, %v16365_v9  ;;  %v4595_v25 = vadd.f32 %v16367_v56, %v4544_v16  ;;  %v4812_v23 = vsel %vm16370_vm13, %v16369_v57, %v13229_v51  ;;  %v5682_v26 = vadd.f32 %v13128_v36, %v5630_v43  ;;  %v16371_v52 = vld [vmem:[#allocation62_spill] sm:$0xff]  ;;  %v13509_v16 = vpop.permute.xlu1 %5171  ;;  %v16376_v36 = vld [vmem:[#allocation145_spill] sm:$0xff] }
 0xbd5   :  { %v4790_v63 = vmul.f32 %v16368_v38, %v4761_v2  ;;  %v4746_v22 = vmul.f32 %v16371_v52, %v4738_v11  ;;  %v4815_v46 = vsel %vm16373_vm10, %v13229_v51, %v16372_v27  ;;  %v5265_v2 = vadd.f32 %v16374_v7, %v5213_v44  ;;  %v16379_v44 = vld [vmem:[#allocation64_spill] sm:$0xff] }
 0xbd6   :  { %v4647_v40 = vadd.f32 %v4643_v60, %v4595_v25  ;;  %v16375_v9 = vrot.slane %v13084_v15, %v15754_v24  ;;  %v4863_v61 = vsel %vm16377_vm11, %v16376_v36, %v13266_v35  ;;  %v5734_v11 = vadd.f32 %v13256_v32, %v5682_v26  ;;  %v16381_v25 = vld [vmem:[#allocation179_spill] sm:$0xff] }
 0xbd7   :  { %v4698_v43 = vadd.f32 %v4694_v18, %v4646_v33  ;;  %v4747_v17 = vmul.f32 %v16371_v52, %v4739_v62  ;;  %v16378_v51 = vrot.slane %v13152_v47, %v15448_v29  ;;  %v4798_v60 = vmul.f32 %v16379_v44, %v4790_v63  ;;  %v16383_v32 = vld [vmem:[#allocation151_spill] sm:$0xff] }
 0xbd8   :  { %v4791_v56 = vmul.f32 %v16375_v9, %v4764_v49  ;;  %v16380_v15 = vrot.slane %v13152_v47, %v15754_v24  ;;  %v4866_v38 = vsel %vm16382_vm2, %v13266_v35, %v16381_v25  ;;  %v4914_v18 = vsel %vm16384_vm14, %v16383_v32, %v13303_v37  ;;  %v13540_v47 = vpop.permute.xlu1 %5223  ;;  %v16386_v26 = vld [vmem:[#allocation119_spill] sm:$0xff]  ;;  %v16387_v35 = vld [vmem:[#allocation136_spill] sm:$0xff] }
 0xbd9   :  { %v4841_v27 = vmul.f32 %v16378_v51, %v4812_v23  ;;  %v5786_v62 = vadd.f32 %v13311_v58, %v5734_v11  ;;  %v4699_v33 = vadd.f32 %v4695_v8, %v4647_v40  ;;  %v4750_v57 = vadd.f32 %v4746_v22, %v4698_v43  ;;  %v16389_v9 = vld [vmem:[#allocation160_spill] sm:$0xff]  ;;  %v16390_v22 = vld [vmem:[#allocation22_spill] sm:$0xff] }
 0xbda   :  { %v4842_v49 = vmul.f32 %v16380_v15, %v4815_v46  ;;  %v16385_v63 = vrot.slane %v13193_v39, %v15448_v29  ;;  %v5317_v52 = vadd.f32 %v16386_v26, %v5265_v2  ;;  %v4799_v46 = vmul.f32 %v16379_v44, %v4791_v56  ;;  %v16400_v26 = vld [vmem:[#allocation61_spill] sm:$0xff] }
 0xbdb   :  { %v4917_v7 = vsel %vm16388_vm0, %v13303_v37, %v16387_v35  ;;  %v4966_v58 = vsel %vm4965_vm5, %v16389_v9, %v13329_v55  ;;  %v4751_v8 = vadd.f32 %v4747_v17, %v4699_v33  ;;  %v4849_v40 = vmul.f32 %v16390_v22, %v4841_v27  ;;  %v16393_v37 = vld [vmem:[#allocation184_spill] sm:$0xff] }
 0xbdc   :  { %v4892_v23 = vmul.f32 %v16385_v63, %v4863_v61  ;;  %v16391_v36 = vrot.slane %v13193_v39, %v15754_v24  ;;  %v16392_v2 = vrot.slane %v13284_v4, %v15448_v29  ;;  %v4802_v11 = vadd.f32 %v4798_v60, %v4750_v57  ;;  %v16394_v17 = vld [vmem:[#allocation52_spill] sm:$0xff]  ;;  %v16397_v60 = vld [vmem:[#allocation263_spill] sm:$0xff]  ;;  %v13575_v32 = vpop.permute.xlu1 %5275 }
 0xbdd   :  { %v4850_v43 = vmul.f32 %v16390_v22, %v4842_v49  ;;  %v4969_v51 = vsel %vm4965_vm5, %v13329_v55, %v16393_v37  ;;  %v5794_v44 = vrot.slane %v5786_v62, 1  ;;  %v16395_v27 = vrot.slane %v13284_v4, %v15754_v24  ;;  %vm16403_vm5 = vmmov %vm16398_vm1  ;;  %v16408_v37 = vld [vmem:[#allocation122_spill] sm:$0xff] }
 0xbde   :  { %v4893_v61 = vmul.f32 %v16391_v36, %v4866_v38  ;;  %v4943_v56 = vmul.f32 %v16392_v2, %v4914_v18  ;;  %v4900_v15 = vmul.f32 %v16394_v17, %v4892_v23  ;;  %v16396_v25 = vrot.slane %v13317_v6, %v15448_v29  ;;  %v16399_v18 = vld [vmem:[#allocation120_spill] sm:$0xff]  ;;  %v16407_v2 = vld [vmem:[#allocation99_spill] sm:$0xff] }
 0xbdf   :  { %v4944_v39 = vmul.f32 %v16395_v27, %v4917_v7  ;;  %v5018_v49 = vsel %vm16398_vm1, %v16397_v60, %v13382_v34  ;;  %v5369_v55 = vadd.f32 %v16399_v18, %v5317_v52  ;;  %v4803_v33 = vadd.f32 %v4799_v46, %v4751_v8 }
 0xbe0   :  { %v4995_v38 = vmul.f32 %v16396_v25, %v4966_v58  ;;  %v5456_v57 = vrot.slane %v13481_v59, %v15754_v24  ;;  %v13580_v63 = vadd.f32 %v5794_v44, %v5786_v62  ;;  %v4853_v4 = vadd.f32 %v4849_v40, %v4802_v11  ;;  %v16402_v58 = vld [vmem:[#allocation187_spill] sm:$0xff]  ;;  %v16405_v62 = vld [vmem:[#allocation164_spill] sm:$0xff]  ;;  %v5328_v11 = vpop.permute.xlu1 %5327 }
 0xbe1   :  { %v4901_v23 = vmul.f32 %v16394_v17, %v4893_v61  ;;  %v4951_v35 = vmul.f32 %v16400_v26, %v4943_v56  ;;  %v16401_v7 = vrot.slane %v13317_v6, %v15754_v24  ;;  %v5021_v52 = vsel %vm16403_vm5, %v13382_v34, %v16402_v58  ;;  %v16411_v17 = vld [vmem:[#allocation174_spill] sm:$0xff] }
 0xbe2   :  { %v16404_v46 = vrot.slane %v13334_v10, %v15448_v29  ;;  %vm16406_vm3 = vcmp.lt.s32.totalorder %v8980_v48, 99  ;;  %v5806_v40 = vand.u32 2147483647, %v13580_v63  ;;  %v4854_v36 = vadd.f32 %v4850_v43, %v4803_v33  ;;  %v16415_v33 = vld [vmem:[#allocation46_spill] sm:$0xff] }
 0xbe3   :  { %v4996_v9 = vmul.f32 %v16401_v7, %v4969_v51  ;;  %v5070_v22 = vsel %vm16406_vm3, %v16405_v62, %v13420_v5  ;;  %v4904_v61 = vadd.f32 %v4900_v15, %v4853_v4  ;;  %v4952_v6 = vmul.f32 %v16400_v26, %v4944_v39  ;;  %v16409_v51 = vld [vmem:[#allocation190_spill] sm:$0xff]  ;;  %vm16410_vm13 = vmmov %vm16406_vm3 }
 0xbe4   :  { %v5047_v8 = vmul.f32 %v16404_v46, %v5018_v49  ;;  %v5003_v56 = vmul.f32 %v16407_v2, %v4995_v38  ;;  %v5421_v34 = vadd.f32 %v16408_v37, %v5369_v55  ;;  %v5073_v44 = vsel %vm16410_vm13, %v13420_v5, %v16409_v51  ;;  %v13619_v49 = vld [vmem:[%s14782_s16 + $0xc4] ss:$8 sm:$0xf] }
 0xbe5   :  { %vm16412_vm10 = vcmp.lt.s32.totalorder %v8980_v48, 98  ;;  %v5810_v25 = vsub.f32 0.0, %v5806_v40  ;;  %v4905_v43 = vadd.f32 %v4901_v23, %v4854_v36  ;;  %v16413_v15 = vrot.slane %v13334_v10, %v15754_v24  ;;  %v16417_v7 = vld [vmem:[#allocation194_spill] sm:$0xff]  ;;  %v16424_v51 = vld [vmem:[#allocation287_spill] sm:$0xff] }
 0xbe6   :  { %v5122_v27 = vsel %vm16412_vm10, %v16411_v17, %v13474_v53  ;;  %v16414_v38 = vrot.slane %v13343_v31, %v15448_v29  ;;  %v5504_v5 = vrot.slane %v13619_v49, %v15448_v29  ;;  %v4955_v18 = vadd.f32 %v4951_v35, %v4904_v61  ;;  %vm16418_vm11 = vmmov %vm16412_vm10  ;;  %v16420_v35 = vld [vmem:[#allocation280_spill] sm:$0xff]  ;;  %v16421_v62 = vld [vmem:[#allocation30_spill] sm:$0xff] }
 0xbe7   :  { %v5048_v39 = vmul.f32 %v16413_v15, %v5021_v52  ;;  %v5004_v55 = vmul.f32 %v16407_v2, %v4996_v9  ;;  %v5055_v4 = vmul.f32 %v16415_v33, %v5047_v8  ;;  %v5815_v23 = vmul.f32 1.442695, %v5810_v25  ;;  %v5380_v8 = vpop.permute.xlu1 %5379  ;;  %v16422_v61 = vld [vmem:[#allocation27_spill] sm:$0xff] }
 0xbe8   :  { %v5099_v60 = vmul.f32 %v16414_v38, %v5070_v22  ;;  %v16416_v10 = vrot.slane %v13343_v31, %v15754_v24  ;;  %v5125_v58 = vsel %vm16418_vm11, %v13474_v53, %v16417_v7  ;;  %v16419_v52 = vrot.slane %v13359_v3, %v15448_v29  ;;  %v16423_v53 = vld [vmem:[#allocation197_spill] sm:$0xff] }
 0xbe9   :  { %v5174_v9 = vsel %vm5173_vm9, %v16420_v35, %v13509_v16  ;;  %v5473_v22 = vadd.f32 %v16421_v62, %v5421_v34  ;;  %v4956_v40 = vadd.f32 %v4952_v6, %v4905_v43  ;;  %v5007_v31 = vadd.f32 %v5003_v56, %v4955_v18  ;;  %v16436_v62 = vld [vmem:[#allocation63_spill] sm:$0xff] }
 0xbea   :  { %v5100_v26 = vmul.f32 %v16416_v10, %v5073_v44  ;;  %v5151_v46 = vmul.f32 %v16419_v52, %v5122_v27  ;;  %8000 = vpow2.f32 %v5815_v23  ;;  %v5056_v36 = vmul.f32 %v16415_v33, %v5048_v39  ;;  %v16428_v39 = vld [vmem:[#allocation24_spill] sm:$0xff] }
 0xbeb   :  { %v5107_v2 = vmul.f32 %v16422_v61, %v5099_v60  ;;  %v5177_v37 = vsel %vm5173_vm9, %v13509_v16, %v16423_v53  ;;  %vm16425_vm2 = vcmp.lt.s32.totalorder %v8980_v48, 96  ;;  %v16426_v34 = vrot.slane %v13359_v3, %v15754_v24  ;;  %v13661_v16 = vld [vmem:[%s14782_s16 + $0xc5] ss:$8 sm:$0xf]  ;;  %v5432_v60 = vpop.permute.xlu1 %5431 }
 0xbec   :  { %v5226_v44 = vsel %vm16425_vm2, %v16424_v51, %v13540_v47  ;;  %v16427_v56 = vrot.slane %v13370_v45, %v15448_v29  ;;  %v5508_v27 = vrot.slane %v13619_v49, %v15754_v24  ;;  %v5556_v25 = vrot.slane %v13661_v16, %v15448_v29  ;;  %v16430_v23 = vld [vmem:[#allocation200_spill] sm:$0xff]  ;;  %vm16431_vm9 = vmmov %vm16425_vm2 }
 0xbed   :  { %v5152_v6 = vmul.f32 %v16426_v34, %v5125_v58  ;;  %v5008_v43 = vadd.f32 %v5004_v55, %v4956_v40  ;;  %v5059_v15 = vadd.f32 %v5055_v4, %v5007_v31  ;;  %v5108_v3 = vmul.f32 %v16422_v61, %v5100_v26  ;;  %v16433_v55 = vld [vmem:[#allocation127_spill] sm:$0xff]  ;;  %v16437_v40 = vld [vmem:[#allocation204_spill] sm:$0xff]  ;;  %v16439_v61 = vld [vmem:[#allocation205_spill] sm:$0xff] }
 0xbee   :  { %v5203_v17 = vmul.f32 %v16427_v56, %v5174_v9  ;;  %v5159_v38 = vmul.f32 %v16428_v39, %v5151_v46  ;;  %v16429_v18 = vrot.slane %v13370_v45, %v15754_v24  ;;  %v5229_v10 = vsel %vm16431_vm9, %v13540_v47, %v16430_v23  ;;  %v16435_v26 = vld [vmem:[#allocation251_spill] sm:$0xff] }
 0xbef   :  { %v16432_v7 = vrot.slane %v13390_v41, %v15448_v29  ;;  %vm16434_vm14 = vcmp.lt.s32.totalorder %v8980_v48, 95  ;;  %v5525_v52 = vadd.f32 %v16435_v26, %v5473_v22  ;;  %v5060_v46 = vadd.f32 %v5056_v36, %v5008_v43  ;;  %v5484_v51 = vpop.permute.xlu1 %5483 }
 0xbf0   :  { %v5204_v33 = vmul.f32 %v16429_v18, %v5177_v37  ;;  %v5278_v4 = vsel %vm16434_vm14, %v16433_v55, %v13575_v32  ;;  %v5111_v35 = vadd.f32 %v5107_v2, %v5059_v15  ;;  %v5560_v45 = vrot.slane %v13661_v16, %v15754_v24  ;;  %vm16438_vm0 = vmmov %vm16434_vm14  ;;  %v16445_v18 = vld [vmem:[#allocation207_spill] sm:$0xff]  ;;  %v16448_v55 = vld [vmem:[#allocation245_spill] sm:$0xff] }
 0xbf1   :  { %v5255_v58 = vmul.f32 %v16432_v7, %v5226_v44  ;;  %v5160_v9 = vmul.f32 %v16428_v39, %v5152_v6  ;;  %v5211_v47 = vmul.f32 %v16436_v62, %v5203_v17  ;;  %v5281_v31 = vsel %vm16438_vm0, %v13575_v32, %v16437_v40  ;;  %v13702_v44 = vld [vmem:[%s14782_s16 + $0xc6] ss:$8 sm:$0xf] }
 0xbf2   :  { %vm16440_vm1 = vcmp.lt.s32.totalorder %v8980_v48, 94  ;;  %v16441_v22 = vrot.slane %v13390_v41, %v15754_v24  ;;  %v16442_v2 = vrot.slane %v13404_v13, %v15448_v29  ;;  %v5608_v32 = vrot.slane %v13702_v44, %v15448_v29  ;;  %v16443_v17 = vld [vmem:[#allocation28_spill] sm:$0xff]  ;;  %v16452_v40 = vld [vmem:[#allocation210_spill] sm:$0xff] }
 0xbf3   :  { %v5330_v53 = vsel %vm16440_vm1, %v16439_v61, %v5328_v11  ;;  %v5612_v34 = vrot.slane %v13702_v44, %v15754_v24  ;;  %v5112_v6 = vadd.f32 %v5108_v3, %v5060_v46  ;;  %v5163_v56 = vadd.f32 %v5159_v38, %v5111_v35  ;;  %vm16446_vm5 = vmmov %vm16440_vm1  ;;  %v16451_v35 = vld [vmem:[#allocation49_spill] sm:$0xff]  ;;  %v5536_v61 = vpop.permute.xlu1 %5535 }
 0xbf4   :  { %v5256_v36 = vmul.f32 %v16441_v22, %v5229_v10  ;;  %v5307_v37 = vmul.f32 %v16442_v2, %v5278_v4  ;;  %v5212_v41 = vmul.f32 %v16436_v62, %v5204_v33  ;;  %v5263_v43 = vmul.f32 %v16443_v17, %v5255_v58  ;;  %v13722_v38 = vpop.eup %8000  ;;  %v16450_v33 = vld [vmem:[#allocation40_spill] sm:$0xff]  ;;  %v16456_v2 = vld [vmem:[#allocation247_spill] sm:$0xff] }
 0xbf5   :  { %v16444_v15 = vrot.slane %v13404_v13, %v15754_v24  ;;  %v5333_v23 = vsel %vm16446_vm5, %v5328_v11, %v16445_v18  ;;  %v16447_v10 = vrot.slane %v13425_v50, %v15448_v29  ;;  %vm16449_vm3 = vcmp.lt.s32.totalorder %v8980_v48, 93  ;;  %v13728_v13 = vld [vmem:[%s14782_s16 + $0xc7] ss:$8 sm:$0xf] }
 0xbf6   :  { %v5382_v3 = vsel %vm16449_vm3, %v16448_v55, %v5380_v8  ;;  %v5577_v58 = vadd.f32 %v16450_v33, %v5525_v52  ;;  %v5164_v4 = vadd.f32 %v5160_v9, %v5112_v6  ;;  %v5215_v26 = vadd.f32 %v5211_v47, %v5163_v56  ;;  %vm16453_vm13 = vmmov %vm16449_vm3  ;;  %v16460_v55 = vld [vmem:[#allocation33_spill] sm:$0xff]  ;;  %v16462_v33 = vld [vmem:[#allocation130_spill] sm:$0xff] }
 0xbf7   :  { %v5308_v39 = vmul.f32 %v16444_v15, %v5281_v31  ;;  %v5359_v7 = vmul.f32 %v16447_v10, %v5330_v53  ;;  %v5660_v11 = vrot.slane %v13728_v13, %v15448_v29  ;;  %v5264_v46 = vmul.f32 %v16443_v17, %v5256_v36  ;;  %v16457_v17 = vld [vmem:[#allocation67_spill] sm:$0xff] }
 0xbf8   :  { %v5315_v62 = vmul.f32 %v16451_v35, %v5307_v37  ;;  %v5385_v31 = vsel %vm16453_vm13, %v5380_v8, %v16452_v40  ;;  %v5826_v52 = vadd.f32 1.0, %v13722_v38  ;;  %v16454_v9 = vrot.slane %v13425_v50, %v15754_v24 }
 0xbf9   :  { %v16455_v53 = vrot.slane %v13450_v28, %v15448_v29  ;;  %v5434_v36 = vsel %vm5433_vm6, %v16456_v2, %v5432_v60  ;;  %v5664_v37 = vrot.slane %v13728_v13, %v15754_v24  ;;  %v5216_v6 = vadd.f32 %v5212_v41, %v5164_v4 }
 0xbfa   :  { %v5360_v47 = vmul.f32 %v16454_v9, %v5333_v23  ;;  %v5267_v8 = vadd.f32 %v5263_v43, %v5215_v26  ;;  %v5316_v56 = vmul.f32 %v16451_v35, %v5308_v39  ;;  %v5367_v15 = vmul.f32 %v16457_v17, %v5359_v7  ;;  %v16459_v23 = vld [vmem:[#allocation218_spill] sm:$0xff]  ;;  %v5588_v26 = vpop.permute.xlu1 %5587  ;;  %v16464_v35 = vld [vmem:[#allocation76_spill] sm:$0xff] }
 0xbfb   :  { %v5411_v22 = vmul.f32 %v16455_v53, %v5382_v3  ;;  %v16458_v50 = vrot.slane %v13450_v28, %v15754_v24  ;;  %v5437_v10 = vsel %vm5433_vm6, %v5432_v60, %v16459_v23  ;;  %vm16461_vm10 = vcmp.lt.s32.totalorder %v8980_v48, 82  ;;  %v16467_v9 = vld [vmem:[#allocation240_spill] sm:$0xff] }
 0xbfc   :  { %v5486_v3 = vsel %vm16461_vm10, %v16460_v55, %v5484_v51  ;;  %8002 = vrcp.f32 %v5826_v52  ;;  %v5629_v41 = vadd.f32 %v16462_v33, %v5577_v58  ;;  %v5268_v43 = vadd.f32 %v5264_v46, %v5216_v6  ;;  %vm16466_vm6 = vmmov %vm16461_vm10  ;;  %v16476_v33 = vld [vmem:[#allocation249_spill] sm:$0xff] }
 0xbfd   :  { %v5412_v18 = vmul.f32 %v16458_v50, %v5385_v31  ;;  %v5319_v4 = vadd.f32 %v5315_v62, %v5267_v8  ;;  %v16463_v39 = vrot.slane %v13481_v59, %v15448_v29  ;;  %v5368_v28 = vmul.f32 %v16457_v17, %v5360_v47  ;;  %v16465_v31 = vld [vmem:[#allocation234_spill] sm:$0xff] }
 0xbfe   :  { %v5419_v40 = vmul.f32 %v16464_v35, %v5411_v22  ;;  %v5489_v60 = vsel %vm16466_vm6, %v5484_v51, %v16465_v31  ;;  %vm16468_vm11 = vcmp.lt.s32.totalorder %v8980_v48, 81  ;;  %v5464_v58 = vmul.f32 %v5456_v57, %v5437_v10  ;;  %v8046_v62 = vld [vmem:[%s14782_s16 + $0xe0] ss:$8 sm:$0xf] }
 0xbff   :  { %v5463_v7 = vmul.f32 %v16463_v39, %v5434_v36  ;;  %v5538_v52 = vsel %vm16468_vm11, %v16467_v9, %v5536_v61  ;;  %v5515_v46 = vmul.f32 %v5504_v5, %v5486_v3  ;;  %v5712_v47 = vrot.slane %v8046_v62, %v15448_v29  ;;  %v16469_v36 = vld [vmem:[#allocation253_spill] sm:$0xff]  ;;  %v16471_v57 = vld [vmem:[#allocation51_spill] sm:$0xff]  ;;  %v16472_v8 = vld [vmem:[#allocation242_spill] sm:$0xff] }
 0xc00   :  { %v5716_v51 = vrot.slane %v8046_v62, %v15754_v24  ;;  %v5320_v53 = vadd.f32 %v5316_v56, %v5268_v43  ;;  %v5371_v22 = vadd.f32 %v5367_v15, %v5319_v4  ;;  %v5420_v2 = vmul.f32 %v16464_v35, %v5412_v18  ;;  %vm16473_vm9 = vmmov %vm16468_vm11  ;;  %v5640_v15 = vpop.permute.xlu1 %5639  ;;  %v16474_v10 = vld [vmem:[#allocation244_spill] sm:$0xff] }
 0xc01   :  { %vm16470_vm2 = vcmp.lt.s32.totalorder %v8980_v48, 80  ;;  %v5471_v6 = vmul.f32 %v16471_v57, %v5463_v7  ;;  %v5516_v5 = vmul.f32 %v5508_v27, %v5489_v60  ;;  %v5541_v17 = vsel %vm16473_vm9, %v5536_v61, %v16472_v8  ;;  %v16475_v27 = vld [vmem:[#allocation66_spill] sm:$0xff] }
 0xc02   :  { %v5590_v59 = vsel %vm16470_vm2, %v16469_v36, %v5588_v26  ;;  %v5567_v56 = vmul.f32 %v5556_v25, %v5538_v52  ;;  %v5681_v50 = vadd.f32 %v13120_v30, %v5629_v41  ;;  %v5372_v18 = vadd.f32 %v5368_v28, %v5320_v53  ;;  %vm16477_vm14 = vmmov %vm16470_vm2  ;;  %v8047_v41 = vld [vmem:[%s14782_s16 + $0xe1] ss:$8 sm:$0xf] }
 0xc03   :  { %v5423_v23 = vadd.f32 %v5419_v40, %v5371_v22  ;;  %v5642_v55 = vsel %vm5641_vm12, %v16474_v10, %v5640_v15  ;;  %v5472_v49 = vmul.f32 %v16471_v57, %v5464_v58  ;;  %v5523_v3 = vmul.f32 %v16475_v27, %v5515_v46  ;;  %v16478_v28 = vld [vmem:[#allocation48_spill] sm:$0xff]  ;;  %v16480_v46 = vld [vmem:[#allocation75_spill] sm:$0xff] }
 0xc04   :  { %v5593_v61 = vsel %vm16477_vm14, %v5588_v26, %v16476_v33  ;;  %v5619_v25 = vmul.f32 %v5608_v32, %v5590_v59  ;;  %v5424_v43 = vadd.f32 %v5420_v2, %v5372_v18  ;;  %v5568_v30 = vmul.f32 %v5560_v45, %v5541_v17  ;;  %v5692_v32 = vpop.permute.xlu1 %5691  ;;  %v16479_v45 = vld [vmem:[#allocation134_spill] sm:$0xff]  ;;  %v16486_v33 = vld [vmem:[#allocation68_spill] sm:$0xff] }
 0xc05   :  { %v5764_v4 = vrot.slane %v8047_v41, %v15448_v29  ;;  %v5768_v39 = vrot.slane %v8047_v41, %v15754_v24  ;;  %v5475_v7 = vadd.f32 %v5471_v6, %v5423_v23  ;;  %v5524_v26 = vmul.f32 %v16475_v27, %v5516_v5 }
 0xc06   :  { %v5575_v35 = vmul.f32 %v16478_v28, %v5567_v56  ;;  %v5671_v40 = vmul.f32 %v5660_v11, %v5642_v55  ;;  %v8003_v31 = vpop.eup %8002  ;;  %v5733_v60 = vadd.f32 %v13239_v42, %v5681_v50  ;;  %v5620_v16 = vmul.f32 %v5612_v34, %v5593_v61  ;;  %v16482_v50 = vld [vmem:[#allocation102_spill] sm:$0xff] }
 0xc07   :  { %v5645_v29 = vsel %vm5641_vm12, %v5640_v15, %v16479_v45  ;;  %v5694_v9 = vsel %vm5693_vm15, %v13172_v12, %v5692_v32  ;;  %v5476_v52 = vadd.f32 %v5472_v49, %v5424_v43  ;;  %v5527_v58 = vadd.f32 %v5523_v3, %v5475_v7  ;;  %v16485_v55 = vld [vmem:[#allocation106_spill] sm:$0xff]  ;;  %v16504_v7 = vld [vmem:[#allocation37_spill] sm:$0xff] }
 0xc08   :  { %v5627_v11 = vmul.f32 %v16480_v46, %v5619_v25  ;;  %v5723_v62 = vmul.f32 %v5712_v47, %v5694_v9  ;;  %v5576_v53 = vmul.f32 %v16478_v28, %v5568_v30  ;;  %v5697_v42 = vsel %vm5693_vm15, %v5692_v32, %v16257_v19  ;;  %v5744_v36 = vpop.permute.xlu1 %5743 }
 0xc09   :  { %vm5822_vm0 = vcmp.ge.f32.partialorder %v13580_v63, 0.0  ;;  %v5838_v44 = vmul.f32 %v8003_v31, %v13722_v38  ;;  %v5528_v34 = vadd.f32 %v5524_v26, %v5476_v52  ;;  %v5579_v22 = vadd.f32 %v5575_v35, %v5527_v58 }
 0xc0a   :  { %v5672_v12 = vmul.f32 %v5664_v37, %v5645_v29  ;;  %v5679_v2 = vmul.f32 %v16242_v14, %v5671_v40  ;;  %v5628_v47 = vmul.f32 %v16480_v46, %v5620_v16  ;;  %v5746_v59 = vsel %vm5745_vm8, %v13231_v0, %v5744_v36  ;;  %v16481_v0 = vld [vmem:[#allocation50_spill] sm:$0xff] }
 0xc0b   :  { %v5749_v19 = vsel %vm5745_vm8, %v5744_v36, %v16278_v20  ;;  %v5842_v63 = vsel %vm5822_vm0, %v8003_v31, %v5838_v44  ;;  %v5631_v38 = vadd.f32 %v5627_v11, %v5579_v22  ;;  %v5724_v57 = vmul.f32 %v5716_v51, %v5697_v42  ;;  %v16483_v20 = vld [vmem:[#allocation104_spill] sm:$0xff] }
 0xc0c   :  { %v5731_v6 = vmul.f32 %v16285_v54, %v5723_v62  ;;  %v5775_v24 = vmul.f32 %v5764_v4, %v5746_v59  ;;  %v5580_v13 = vadd.f32 %v5576_v53, %v5528_v34  ;;  %v5852_v37 = vrot.slane %v5842_v63, %v15429_v1  ;;  %v16484_v51 = vld [vmem:[#allocation108_spill] sm:$0xff] }
 0xc0d   :  { %v5785_v5 = vadd.f32 %v13294_v21, %v5733_v60  ;;  %v5680_v8 = vmul.f32 %v16242_v14, %v5672_v12  ;;  %v5683_v17 = vadd.f32 %v5679_v2, %v5631_v38  ;;  %v5776_v56 = vmul.f32 %v5768_v39, %v5749_v19 }
 0xc0e   :  { %v5783_v15 = vmul.f32 %v16481_v0, %v5775_v24  ;;  %v13853_v18 = vmul.f32 %v5852_v37, %v16482_v50  ;;  %v13856_v23 = vmul.f32 %v5852_v37, %v16483_v20  ;;  %v13859_v10 = vmul.f32 %v5852_v37, %v16484_v51  ;;  %v16490_v50 = vld [vmem:[#allocation109_spill] sm:$0xff]  ;;  %v16491_v20 = vld [vmem:[#allocation112_spill] sm:$0xff]  ;;  %v16492_v51 = vld [vmem:[#allocation110_spill] sm:$0xff] }
 0xc0f   :  { %v13862_v49 = vmul.f32 %v5852_v37, %v16485_v55  ;;  %v5632_v27 = vadd.f32 %v5628_v47, %v5580_v13  ;;  %v5732_v21 = vmul.f32 %v16285_v54, %v5724_v57  ;;  %v5735_v14 = vadd.f32 %v5731_v6, %v5683_v17  ;;  %v16487_v13 = vld [vmem:[#allocation101_spill] sm:$0xff] }
 0xc10   :  { %5887 = vrot.lane.b32.xlu1 %v13853_v18, %s15677_s14  ;;  %5885 = vrot.lane.b32.xlu0 %v13856_v23, %s15677_s14  ;;  %v5793_v3 = vrot.slane %v5785_v5, 1  ;;  %v13871_v61 = vmul.f32 %v13856_v23, %v16486_v33  ;;  %v5784_v43 = vmul.f32 %v16481_v0, %v5776_v56  ;;  %v13876_v41 = vmul.f32 %v13853_v18, %v16486_v33  ;;  %v16489_v0 = vld [vmem:[#allocation111_spill] sm:$0xff] }
 0xc11   :  { %v5684_v25 = vadd.f32 %v5680_v8, %v5632_v27  ;;  %v5787_v30 = vadd.f32 %v5783_v15, %v5735_v14  ;;  %v13880_v54 = vmul.f32 %v13862_v49, %v16486_v33  ;;  %v13884_v4 = vmul.f32 %v13859_v10, %v16486_v33  ;;  %v16488_v8 = vld [vmem:[#allocation103_spill] sm:$0xff] }
 0xc12   :  { %v5801_v40 = vadd.f32 %v5793_v3, %v5785_v5  ;;  %v16496_v3 = vld [vmem:[#allocation113_spill] sm:$0xff]  ;;  %vm16506_vm1 = vcmp.lt.s32.totalorder %v8980_v48, 16 }
 0xc13   :  { %v5736_v39 = vadd.f32 %v5732_v21, %v5684_v25  ;;  %v5795_v35 = vrot.slane %v5787_v30, 1  ;;  %v16495_v21 = vld [vmem:[#allocation115_spill] sm:$0xff]  ;;  %v16497_v25 = vld [vmem:[#allocation116_spill] sm:$0xff]  ;;  %vm16509_vm5 = vmmov %vm16506_vm1 }
 0xc14   :  { %5891 = vrot.lane.b32.xlu1 %v13859_v10, %s15677_s14  ;;  %5889 = vrot.lane.b32.xlu0 %v13862_v49, %s15677_s14  ;;  %v5805_v60 = vand.u32 2147483647, %v5801_v40  ;;  %vm5821_vm12 = vcmp.ge.f32.partialorder %v5801_v40, 0.0  ;;  %vm16510_vm3 = vmmov %vm16506_vm1 }
 0xc15   :  { %v5788_v28 = vadd.f32 %v5784_v43, %v5736_v39  ;;  %v5803_v31 = vadd.f32 %v5795_v35, %v5787_v30  ;;  %v16498_v30 = vld [vmem:[#allocation114_spill] sm:$0xff]  ;;  %vm16511_vm13 = vmmov %vm16506_vm1 }
 0xc16   :  { %v5809_v29 = vsub.f32 0.0, %v5805_v60  ;;  %vm16512_vm10 = vmmov %vm16506_vm1 }
 0xc17   :  { %v5796_v32 = vrot.slane %v5788_v28, 1  ;;  %v5807_v45 = vand.u32 2147483647, %v5803_v31  ;;  %vm5823_vm15 = vcmp.ge.f32.partialorder %v5803_v31, 0.0  ;;  %vm16515_vm6 = vmmov %vm16506_vm1 }
 0xc18   :  { %5951 = vrot.lane.b32.xlu1 %v13853_v18, %s15688_s27  ;;  %5949 = vrot.lane.b32.xlu0 %v13856_v23, %s15688_s27  ;;  %v5813_v58 = vmul.f32 1.442695, %v5809_v29  ;;  %vm16516_vm11 = vmmov %vm16506_vm1 }
 0xc19   :  { %v5804_v16 = vadd.f32 %v5796_v32, %v5788_v28  ;;  %v5811_v52 = vsub.f32 0.0, %v5807_v45  ;;  %vm16518_vm2 = vmmov %vm16506_vm1 }
 0xc1a   :  { %8004 = vpow2.f32 %v5813_v58  ;;  %vm16519_vm9 = vmmov %vm16506_vm1 }
 0xc1b   :  { %v5808_v9 = vand.u32 2147483647, %v5804_v16  ;;  %v5817_v11 = vmul.f32 1.442695, %v5811_v52  ;;  %vm5824_vm8 = vcmp.ge.f32.partialorder %v5804_v16, 0.0  ;;  %vm16520_vm14 = vmmov %vm16506_vm1 }
 0xc1c   :  { %5955 = vrot.lane.b32.xlu1 %v13859_v10, %s15688_s27  ;;  %5953 = vrot.lane.b32.xlu0 %v13862_v49, %s15688_s27  ;;  %vm16521_vm0 = vmmov %vm16506_vm1 }
 0xc1d   :  { %v5812_v46 = vsub.f32 0.0, %v5808_v9  ;;  %8006 = vpow2.f32 %v5817_v11 }
 0xc1f   :  { %v5819_v62 = vmul.f32 1.442695, %v5812_v46 }
 0xc20   :  { %6015 = vrot.lane.b32.xlu1 %v13853_v18, %s15696_s13  ;;  %6013 = vrot.lane.b32.xlu0 %v13856_v23, %s15696_s13 }
 0xc21   :  { %8008 = vpow2.f32 %v5819_v62 }
 0xc24   :  { %6019 = vrot.lane.b32.xlu1 %v13859_v10, %s15696_s13  ;;  %6017 = vrot.lane.b32.xlu0 %v13862_v49, %s15696_s13  ;;  %v8005_v53 = vpop.eup %8004 }
 0xc25   :  { %v5825_v42 = vadd.f32 1.0, %v8005_v53 }
 0xc27   :  { %v8007_v44 = vpop.eup %8006  ;;  %8010 = vrcp.f32 %v5825_v42 }
 0xc28   :  { %6079 = vrot.lane.b32.xlu1 %v13853_v18, %s15743_s20  ;;  %6077 = vrot.lane.b32.xlu0 %v13856_v23, %s15743_s20  ;;  %v5827_v34 = vadd.f32 1.0, %v8007_v44 }
 0xc2a   :  { %8012 = vrcp.f32 %v5827_v34 }
 0xc2b   :  { %v8009_v22 = vpop.eup %8008 }
 0xc2c   :  { %6083 = vrot.lane.b32.xlu1 %v13859_v10, %s15743_s20  ;;  %6081 = vrot.lane.b32.xlu0 %v13862_v49, %s15743_s20  ;;  %v5828_v12 = vadd.f32 1.0, %v8009_v22 }
 0xc2e   :  { %8014 = vrcp.f32 %v5828_v12 }
 0xc30   :  { %6159 = vrot.lane.b32.xlu1 %v13853_v18, %s15759_s19  ;;  %6157 = vrot.lane.b32.xlu0 %v13856_v23, %s15759_s19 }
 0xc31   :  { %v8011_v2 = vpop.eup %8010 }
 0xc32   :  { %v5837_v36 = vmul.f32 %v8011_v2, %v8005_v53 }
 0xc34   :  { %6163 = vrot.lane.b32.xlu1 %v13859_v10, %s15759_s19  ;;  %6161 = vrot.lane.b32.xlu0 %v13862_v49, %s15759_s19  ;;  %v8013_v47 = vpop.eup %8012  ;;  %v5841_v19 = vsel %vm5821_vm12, %v8011_v2, %v5837_v36  ;;  %vm16522_vm12 = vmmov %vm16521_vm0 }
 0xc35   :  { %v5839_v59 = vmul.f32 %v8013_v47, %v8007_v44  ;;  %v5848_v38 = vrot.slane %v5841_v19, %v15429_v1 }
 0xc37   :  { %v5843_v6 = vsel %vm5823_vm15, %v8013_v47, %v5839_v59  ;;  %v13953_v37 = vmul.f32 %v5848_v38, %v16487_v13  ;;  %v13956_v17 = vmul.f32 %v5848_v38, %v16488_v8  ;;  %vm16523_vm15 = vmmov %vm16521_vm0 }
 0xc38   :  { %6223 = vrot.lane.b32.xlu1 %v13853_v18, %s8213_s5  ;;  %6221 = vrot.lane.b32.xlu0 %v13856_v23, %s8213_s5  ;;  %v8015_v63 = vpop.eup %8014  ;;  %v5856_v24 = vrot.slane %v5843_v6, %v15429_v1 }
 0xc39   :  { %v5840_v57 = vmul.f32 %v8015_v63, %v8009_v22 }
 0xc3a   :  { %v13964_v15 = vmul.f32 %v5856_v24, %v16489_v0  ;;  %v13994_v14 = vmul.f32 %v5856_v24, %v16495_v21  ;;  %v13997_v33 = vmul.f32 %v5856_v24, %v16496_v3  ;;  %v16502_v0 = vld [vmem:[#allocation32_spill] sm:$0xff] }
 0xc3b   :  { %v5844_v5 = vsel %vm5824_vm8, %v8015_v63, %v5840_v57  ;;  %vm16524_vm8 = vmmov %vm16521_vm0 }
 0xc3c   :  { %6227 = vrot.lane.b32.xlu1 %v13859_v10, %s8213_s5  ;;  %6225 = vrot.lane.b32.xlu0 %v13862_v49, %s8213_s5  ;;  %v5860_v56 = vrot.slane %v5844_v5, %v15429_v1  ;;  %v16493_v1 = vld [vmem:[#allocation107_spill] sm:$0xff] }
 0xc3d   :  { %v13984_v55 = vmul.f32 %v5848_v38, %v16493_v1 }
 0xc3e   :  { %v14004_v43 = vmul.f32 %v5860_v56, %v16497_v25  ;;  %v14007_v39 = vmul.f32 %v5860_v56, %v16498_v30 }
 0xc40   :  { %6287 = vrot.lane.b32.xlu1 %v13853_v18, %s8214_s23  ;;  %6285 = vrot.lane.b32.xlu0 %v13856_v23, %s8214_s23 }
 0xc44   :  { %6291 = vrot.lane.b32.xlu1 %v13859_v10, %s8214_s23  ;;  %6289 = vrot.lane.b32.xlu0 %v13862_v49, %s8214_s23 }
 0xc48   :  { %6351 = vrot.lane.b32.xlu1 %v13853_v18, %s8215_s28  ;;  %6349 = vrot.lane.b32.xlu0 %v13856_v23, %s8215_s28  ;;  %v13967_v18 = vmul.f32 %v5856_v24, %v16490_v50  ;;  %v13974_v23 = vmul.f32 %v5860_v56, %v16491_v20 }
 0xc4c   :  { %6355 = vrot.lane.b32.xlu1 %v13859_v10, %s8215_s28  ;;  %6353 = vrot.lane.b32.xlu0 %v13862_v49, %s8215_s28  ;;  %v13977_v10 = vmul.f32 %v5860_v56, %v16492_v51  ;;  %v16494_v49 = vld [vmem:[#allocation105_spill] sm:$0xff] }
 0xc4d   :  { %v13987_v27 = vmul.f32 %v5848_v38, %v16494_v49 }
 0xc50   :  { %5879 = vrot.lane.b32.xlu1 %v13953_v37, %s15677_s14  ;;  %5877 = vrot.lane.b32.xlu0 %v13956_v17, %s15677_s14 }
 0xc54   :  { %5895 = vrot.lane.b32.xlu1 %v13964_v15, %s15677_s14  ;;  %5893 = vrot.lane.b32.xlu0 %v13967_v18, %s15677_s14 }
 0xc58   :  { %5903 = vrot.lane.b32.xlu1 %v13974_v23, %s15677_s14  ;;  %5901 = vrot.lane.b32.xlu0 %v13977_v10, %s15677_s14 }
 0xc5c   :  { %5883 = vrot.lane.b32.xlu1 %v13984_v55, %s15677_s14  ;;  %5881 = vrot.lane.b32.xlu0 %v13987_v27, %s15677_s14 }
 0xc60   :  { %5899 = vrot.lane.b32.xlu1 %v13994_v14, %s15677_s14  ;;  %5897 = vrot.lane.b32.xlu0 %v13997_v33, %s15677_s14 }
 0xc64   :  { %5907 = vrot.lane.b32.xlu1 %v14004_v43, %s15677_s14  ;;  %5905 = vrot.lane.b32.xlu0 %v14007_v39, %s15677_s14 }
 0xc68   :  { %5943 = vrot.lane.b32.xlu1 %v13953_v37, %s15688_s27  ;;  %5941 = vrot.lane.b32.xlu0 %v13956_v17, %s15688_s27 }
 0xc6c   :  { %5959 = vrot.lane.b32.xlu1 %v13964_v15, %s15688_s27  ;;  %5957 = vrot.lane.b32.xlu0 %v13967_v18, %s15688_s27 }
 0xc70   :  { %5967 = vrot.lane.b32.xlu1 %v13974_v23, %s15688_s27  ;;  %5965 = vrot.lane.b32.xlu0 %v13977_v10, %s15688_s27 }
 0xc74   :  { %5947 = vrot.lane.b32.xlu1 %v13984_v55, %s15688_s27  ;;  %5945 = vrot.lane.b32.xlu0 %v13987_v27, %s15688_s27 }
 0xc78   :  { %5963 = vrot.lane.b32.xlu1 %v13994_v14, %s15688_s27  ;;  %5961 = vrot.lane.b32.xlu0 %v13997_v33, %s15688_s27 }
 0xc7c   :  { %5971 = vrot.lane.b32.xlu1 %v14004_v43, %s15688_s27  ;;  %5969 = vrot.lane.b32.xlu0 %v14007_v39, %s15688_s27 }
 0xc80   :  { %6007 = vrot.lane.b32.xlu1 %v13953_v37, %s15696_s13  ;;  %6005 = vrot.lane.b32.xlu0 %v13956_v17, %s15696_s13 }
 0xc82   :  { %v14041_v28 = vpop.permute.xlu0 %5885  ;;  %v14043_v35 = vpop.permute.xlu1 %5887 }
 0xc84   :  { %6023 = vrot.lane.b32.xlu1 %v13964_v15, %s15696_s13  ;;  %6021 = vrot.lane.b32.xlu0 %v13967_v18, %s15696_s13 }
 0xc86   :  { %v14049_v40 = vpop.permute.xlu0 %5889  ;;  %v14051_v32 = vpop.permute.xlu1 %5891 }
 0xc88   :  { %6031 = vrot.lane.b32.xlu1 %v13974_v23, %s15696_s13  ;;  %6029 = vrot.lane.b32.xlu0 %v13977_v10, %s15696_s13 }
 0xc8a   :  { %v14057_v31 = vpop.permute.xlu0 %5949  ;;  %v14059_v60 = vpop.permute.xlu1 %5951 }
 0xc8c   :  { %6011 = vrot.lane.b32.xlu1 %v13984_v55, %s15696_s13  ;;  %6009 = vrot.lane.b32.xlu0 %v13987_v27, %s15696_s13 }
 0xc8e   :  { %v14065_v16 = vpop.permute.xlu0 %5953  ;;  %v14067_v45 = vpop.permute.xlu1 %5955 }
 0xc90   :  { %6027 = vrot.lane.b32.xlu1 %v13994_v14, %s15696_s13  ;;  %6025 = vrot.lane.b32.xlu0 %v13997_v33, %s15696_s13 }
 0xc92   :  { %v14073_v29 = vpop.permute.xlu0 %6013  ;;  %v14075_v9 = vpop.permute.xlu1 %6015 }
 0xc94   :  { %6035 = vrot.lane.b32.xlu1 %v14004_v43, %s15696_s13  ;;  %6033 = vrot.lane.b32.xlu0 %v14007_v39, %s15696_s13 }
 0xc96   :  { %v14081_v52 = vpop.permute.xlu0 %6017  ;;  %v14083_v58 = vpop.permute.xlu1 %6019 }
 0xc98   :  { %6071 = vrot.lane.b32.xlu1 %v13953_v37, %s15743_s20  ;;  %6069 = vrot.lane.b32.xlu0 %v13956_v17, %s15743_s20 }
 0xc9a   :  { %v14089_v46 = vpop.permute.xlu0 %6077  ;;  %v14091_v11 = vpop.permute.xlu1 %6079 }
 0xc9c   :  { %6087 = vrot.lane.b32.xlu1 %v13964_v15, %s15743_s20  ;;  %6085 = vrot.lane.b32.xlu0 %v13967_v18, %s15743_s20 }
 0xc9e   :  { %v14097_v62 = vpop.permute.xlu0 %6081  ;;  %v14099_v53 = vpop.permute.xlu1 %6083 }
 0xca0   :  { %6095 = vrot.lane.b32.xlu1 %v13974_v23, %s15743_s20  ;;  %6093 = vrot.lane.b32.xlu0 %v13977_v10, %s15743_s20 }
 0xca2   :  { %v14105_v42 = vpop.permute.xlu0 %6157  ;;  %v14107_v44 = vpop.permute.xlu1 %6159 }
 0xca4   :  { %6075 = vrot.lane.b32.xlu1 %v13984_v55, %s15743_s20  ;;  %6073 = vrot.lane.b32.xlu0 %v13987_v27, %s15743_s20 }
 0xca6   :  { %v14113_v34 = vpop.permute.xlu0 %6161  ;;  %v14115_v22 = vpop.permute.xlu1 %6163 }
 0xca8   :  { %6091 = vrot.lane.b32.xlu1 %v13994_v14, %s15743_s20  ;;  %6089 = vrot.lane.b32.xlu0 %v13997_v33, %s15743_s20 }
 0xcaa   :  { %v14121_v12 = vpop.permute.xlu1 %6223  ;;  %v14123_v2 = vpop.permute.xlu0 %6221 }
 0xcac   :  { %6099 = vrot.lane.b32.xlu1 %v14004_v43, %s15743_s20  ;;  %6097 = vrot.lane.b32.xlu0 %v14007_v39, %s15743_s20 }
 0xcae   :  { %v14129_v36 = vpop.permute.xlu1 %6227  ;;  %v14131_v47 = vpop.permute.xlu0 %6225 }
 0xcb0   :  { %6151 = vrot.lane.b32.xlu1 %v13953_v37, %s15759_s19  ;;  %6149 = vrot.lane.b32.xlu0 %v13956_v17, %s15759_s19 }
 0xcb2   :  { %v14137_v59 = vpop.permute.xlu1 %6287  ;;  %v14139_v19 = vpop.permute.xlu0 %6285 }
 0xcb4   :  { %6167 = vrot.lane.b32.xlu1 %v13964_v15, %s15759_s19  ;;  %6165 = vrot.lane.b32.xlu0 %v13967_v18, %s15759_s19 }
 0xcb6   :  { %v14145_v63 = vpop.permute.xlu1 %6291  ;;  %v14147_v38 = vpop.permute.xlu0 %6289 }
 0xcb8   :  { %6175 = vrot.lane.b32.xlu1 %v13974_v23, %s15759_s19  ;;  %6173 = vrot.lane.b32.xlu0 %v13977_v10, %s15759_s19 }
 0xcba   :  { %v14153_v57 = vpop.permute.xlu1 %6351  ;;  %v14155_v6 = vpop.permute.xlu0 %6349 }
 0xcbb   :  { %16499 = vst [vmem:[#allocation138_spill] sm:$0xff] %v14155_v6 }
 0xcbc   :  { %6155 = vrot.lane.b32.xlu1 %v13984_v55, %s15759_s19  ;;  %6153 = vrot.lane.b32.xlu0 %v13987_v27, %s15759_s19 }
 0xcbe   :  { %v14161_v24 = vpop.permute.xlu1 %6355  ;;  %v14163_v13 = vpop.permute.xlu0 %6353 }
 0xcbf   :  { %16500 = vst [vmem:[#allocation77_spill] sm:$0xff] %v14161_v24  ;;  %16501 = vst [vmem:[#allocation256_spill] sm:$0xff] %v14163_v13 }
 0xcc0   :  { %6171 = vrot.lane.b32.xlu1 %v13994_v14, %s15759_s19  ;;  %6169 = vrot.lane.b32.xlu0 %v13997_v33, %s15759_s19 }
 0xcc2   :  { %v5880_v5 = vpop.permute.xlu1 %5879  ;;  %v5878_v56 = vpop.permute.xlu0 %5877 }
 0xcc3   :  { %v5918_v8 = vsel %vm1221_vm4, %v5880_v5, %v14043_v35  ;;  %v5917_v20 = vsel %vm1221_vm4, %v5878_v56, %v14041_v28 }
 0xcc4   :  { %v5930_v50 = vmul.f32 %v5918_v8, %v16502_v0  ;;  %6179 = vrot.lane.b32.xlu1 %v14004_v43, %s15759_s19  ;;  %v5926_v51 = vmul.f32 %v5917_v20, %v16502_v0  ;;  %6177 = vrot.lane.b32.xlu0 %v14007_v39, %s15759_s19 }
 0xcc6   :  { %v5896_v1 = vpop.permute.xlu1 %5895  ;;  %v5894_v49 = vpop.permute.xlu0 %5893  ;;  %v7527_v21 = vpack.c.bf16 %v5930_v50, %v5926_v51  ;;  %v16503_v51 = vld [vmem:[#allocation36_spill] sm:$0xff] }
 0xcc7   :  { %v5914_v3 = vsel %vm1221_vm4, %v14043_v35, %v5896_v1  ;;  %v5913_v25 = vsel %vm1221_vm4, %v14041_v28, %v5894_v49  ;;  %v16505_v28 = vld [vmem:[#allocation39_spill] sm:$0xff] }
 0xcc8   :  { %6215 = vrot.lane.b32.xlu1 %v13953_v37, %s8213_s5  ;;  %6213 = vrot.lane.b32.xlu0 %v13956_v17, %s8213_s5  ;;  %v5931_v24 = vmul.f32 %v5914_v3, %v16505_v28 }
 0xcc9   :  { %7528 = vmatprep.subr.bf16.mxu0 %v7527_v21 }
 0xcca   :  { %v5904_v30 = vpop.permute.xlu1 %5903  ;;  %v5902_v20 = vpop.permute.xlu0 %5901 }
 0xccb   :  { %v5910_v8 = vsel %vm1221_vm4, %v5896_v1, %v5904_v30  ;;  %v5922_v50 = vsel %vm1221_vm4, %v5904_v30, %v5880_v5  ;;  %v5909_v13 = vsel %vm1221_vm4, %v5894_v49, %v5902_v20  ;;  %v5921_v35 = vsel %vm1221_vm4, %v5902_v20, %v5878_v56 }
 0xccc   :  { %v5929_v26 = vmul.f32 %v5922_v50, %v16503_v51  ;;  %v5932_v21 = vmul.f32 %v5910_v8, %v16504_v7  ;;  %6231 = vrot.lane.b32.xlu1 %v13964_v15, %s8213_s5  ;;  %v5927_v1 = vmul.f32 %v5913_v25, %v16505_v28  ;;  %v5925_v5 = vmul.f32 %v5921_v35, %v16503_v51 }
 0xccd   :  { %v5928_v30 = vmul.f32 %v5909_v13, %v16504_v7  ;;  %6229 = vrot.lane.b32.xlu0 %v13967_v18, %s8213_s5 }
 0xcce   :  { %v5884_v8 = vpop.permute.xlu1 %5883  ;;  %v7529_v50 = vpack.c.bf16 %v5929_v26, %v5925_v5  ;;  %v5882_v49 = vpop.permute.xlu0 %5881  ;;  %v7601_v13 = vpack.c.bf16 %v5931_v24, %v5927_v1 }
 0xccf   :  { %v5920_v56 = vsel %vm1221_vm4, %v5884_v8, %v14051_v32  ;;  %v7599_v20 = vpack.c.bf16 %v5932_v21, %v5928_v30  ;;  %v5919_v3 = vsel %vm1221_vm4, %v5882_v49, %v14049_v40 }
 0xcd0   :  { %v5938_v6 = vmul.f32 %v5920_v56, %v16502_v0  ;;  %6239 = vrot.lane.b32.xlu1 %v13974_v23, %s8213_s5  ;;  %v5934_v25 = vmul.f32 %v5919_v3, %v16502_v0  ;;  %7530 = vmatpush1.bf16.msra.mxu0 %v7529_v50 }
 0xcd1   :  { %6237 = vrot.lane.b32.xlu0 %v13977_v10, %s8213_s5  ;;  %7600 = vmatprep.subr.bf16.mxu1 %v7599_v20 }
 0xcd2   :  { %v5900_v26 = vpop.permute.xlu1 %5899  ;;  %7602 = vmatpush1.bf16.msra.mxu1 %v7601_v13  ;;  %v5898_v21 = vpop.permute.xlu0 %5897  ;;  %v7531_v35 = vpack.c.bf16 %v5938_v6, %v5934_v25 }
 0xcd3   :  { %v5916_v24 = vsel %vm1221_vm4, %v14051_v32, %v5900_v26  ;;  %v5915_v0 = vsel %vm1221_vm4, %v14049_v40, %v5898_v21 }
 0xcd4   :  { %6219 = vrot.lane.b32.xlu1 %v13984_v55, %s8213_s5  ;;  %7532 = vmatprep.subr.bf16.mxu0 %v7531_v35  ;;  %v5939_v40 = vmul.f32 %v5916_v24, %v16505_v28  ;;  %v5935_v3 = vmul.f32 %v5915_v0, %v16505_v28 }
 0xcd5   :  { %6217 = vrot.lane.b32.xlu0 %v13987_v27, %s8213_s5 }
 0xcd6   :  { %v5908_v1 = vpop.permute.xlu1 %5907  ;;  %v5906_v30 = vpop.permute.xlu0 %5905 }
 0xcd7   :  { %v5912_v5 = vsel %vm1221_vm4, %v5900_v26, %v5908_v1  ;;  %v5924_v6 = vsel %vm1221_vm4, %v5908_v1, %v5884_v8  ;;  %v5911_v20 = vsel %vm1221_vm4, %v5898_v21, %v5906_v30  ;;  %v5923_v32 = vsel %vm1221_vm4, %v5906_v30, %v5882_v49  ;;  %v16507_v1 = vld [vmem:[#allocation83_spill] sm:$0xff]  ;;  %vm16508_vm4 = vmmov %vm16506_vm1 }
 0xcd8   :  { %v5937_v50 = vmul.f32 %v5924_v6, %v16503_v51  ;;  %v5940_v56 = vmul.f32 %v5912_v5, %v16504_v7  ;;  %6235 = vrot.lane.b32.xlu1 %v13994_v14, %s8213_s5  ;;  %v5933_v8 = vmul.f32 %v5923_v32, %v16503_v51  ;;  %v5936_v13 = vmul.f32 %v5911_v20, %v16504_v7 }
 0xcd9   :  { %6233 = vrot.lane.b32.xlu0 %v13997_v33, %s8213_s5  ;;  %v7605_v7 = vpack.c.bf16 %v5939_v40, %v5935_v3  ;;  %v16513_v3 = vld [vmem:[#allocation88_spill] sm:$0xff] }
 0xcda   :  { %v5944_v25 = vpop.permute.xlu1 %5943  ;;  %v7533_v26 = vpack.c.bf16 %v5937_v50, %v5933_v8  ;;  %v5942_v21 = vpop.permute.xlu0 %5941  ;;  %v7603_v35 = vpack.c.bf16 %v5940_v56, %v5936_v13  ;;  %v16514_v13 = vld [vmem:[#allocation89_spill] sm:$0xff] }
 0xcdb   :  { %v5982_v49 = vsel %vm16506_vm1, %v5944_v25, %v14059_v60  ;;  %v5981_v28 = vsel %vm16508_vm4, %v5942_v21, %v14057_v31  ;;  %vm16525_vm1 = vmmov %vm16521_vm0  ;;  %vm16526_vm4 = vcmp.lt.s32.totalorder %v8980_v48, 15 }
 0xcdc   :  { %v5994_v5 = vmul.f32 %v5982_v49, %v16507_v1  ;;  %6243 = vrot.lane.b32.xlu1 %v14004_v43, %s8213_s5  ;;  %v5990_v51 = vmul.f32 %v5981_v28, %v16507_v1  ;;  %7534 = vmatpush1.bf16.msra.mxu0 %v7533_v26 }
 0xcdd   :  { %6241 = vrot.lane.b32.xlu0 %v14007_v39, %s8213_s5  ;;  %7604 = vmatprep.subr.bf16.mxu1 %v7603_v35 }
 0xcde   :  { %v5960_v24 = vpop.permute.xlu1 %5959  ;;  %7606 = vmatpush1.bf16.msra.mxu1 %v7605_v7  ;;  %v5958_v0 = vpop.permute.xlu0 %5957  ;;  %v7535_v6 = vpack.c.bf16 %v5994_v5, %v5990_v51 }
 0xcdf   :  { %v5978_v30 = vsel %vm16509_vm5, %v14059_v60, %v5960_v24  ;;  %v5977_v50 = vsel %vm16510_vm3, %v14057_v31, %v5958_v0  ;;  %v16517_v31 = vld [vmem:[#allocation84_spill] sm:$0xff]  ;;  %vm16528_vm5 = vmmov %vm16526_vm4 }
 0xce0   :  { %6279 = vrot.lane.b32.xlu1 %v13953_v37, %s8214_s23  ;;  %7536 = vmatprep.subr.bf16.mxu0 %v7535_v6  ;;  %v5995_v35 = vmul.f32 %v5978_v30, %v16517_v31  ;;  %v5991_v5 = vmul.f32 %v5977_v50, %v16517_v31  ;;  %vm16529_vm3 = vmmov %vm16526_vm4 }
 0xce1   :  { %6277 = vrot.lane.b32.xlu0 %v13956_v17, %s8214_s23 }
 0xce2   :  { %v5968_v56 = vpop.permute.xlu1 %5967  ;;  %v5966_v40 = vpop.permute.xlu0 %5965  ;;  %v7609_v50 = vpack.c.bf16 %v5995_v35, %v5991_v5 }
 0xce3   :  { %v5974_v20 = vsel %vm16511_vm13, %v5960_v24, %v5968_v56  ;;  %v5986_v32 = vsel %vm16512_vm10, %v5968_v56, %v5944_v25  ;;  %v5973_v49 = vsel %vm16515_vm6, %v5958_v0, %v5966_v40  ;;  %v5985_v60 = vsel %vm16516_vm11, %v5966_v40, %v5942_v21  ;;  %vm16530_vm13 = vmmov %vm16529_vm3 }
 0xce4   :  { %v5993_v8 = vmul.f32 %v5986_v32, %v16513_v3  ;;  %v5996_v26 = vmul.f32 %v5974_v20, %v16514_v13  ;;  %6295 = vrot.lane.b32.xlu1 %v13964_v15, %s8214_s23  ;;  %v5989_v25 = vmul.f32 %v5985_v60, %v16513_v3  ;;  %v5992_v28 = vmul.f32 %v5973_v49, %v16514_v13  ;;  %vm16531_vm10 = vmmov %vm16529_vm3 }
 0xce5   :  { %6293 = vrot.lane.b32.xlu0 %v13967_v18, %s8214_s23  ;;  %vm16532_vm6 = vmmov %vm16529_vm3 }
 0xce6   :  { %v5948_v7 = vpop.permute.xlu1 %5947  ;;  %v7537_v51 = vpack.c.bf16 %v5993_v8, %v5989_v25  ;;  %v5946_v24 = vpop.permute.xlu0 %5945  ;;  %v7607_v0 = vpack.c.bf16 %v5996_v26, %v5992_v28  ;;  %vm16535_vm11 = vmmov %vm16529_vm3 }
 0xce7   :  { %v5984_v21 = vsel %vm16518_vm2, %v5948_v7, %v14067_v45  ;;  %v5983_v30 = vsel %vm16519_vm9, %v5946_v24, %v14065_v16  ;;  %vm16536_vm2 = vmmov %vm16529_vm3 }
 0xce8   :  { %v6002_v6 = vmul.f32 %v5984_v21, %v16507_v1  ;;  %6303 = vrot.lane.b32.xlu1 %v13974_v23, %s8214_s23  ;;  %v5998_v56 = vmul.f32 %v5983_v30, %v16507_v1  ;;  %7538 = vmatpush1.bf16.msra.mxu0 %v7537_v51  ;;  %vm16538_vm9 = vmmov %vm16536_vm2 }
 0xce9   :  { %6301 = vrot.lane.b32.xlu0 %v13977_v10, %s8214_s23  ;;  %7608 = vmatprep.subr.bf16.mxu1 %v7607_v0 }
 0xcea   :  { %v5964_v20 = vpop.permute.xlu1 %5963  ;;  %7610 = vmatpush1.bf16.msra.mxu1 %v7609_v50  ;;  %v5962_v32 = vpop.permute.xlu0 %5961  ;;  %v7539_v40 = vpack.c.bf16 %v6002_v6, %v5998_v56  ;;  %v16527_v56 = vld [vmem:[#allocation90_spill] sm:$0xff] }
 0xceb   :  { %v5980_v1 = vsel %vm16520_vm14, %v14067_v45, %v5964_v20  ;;  %v5979_v8 = vsel %vm16521_vm0, %v14065_v16, %v5962_v32  ;;  %vm16539_vm14 = vmmov %vm16536_vm2 }
 0xcec   :  { %6283 = vrot.lane.b32.xlu1 %v13984_v55, %s8214_s23  ;;  %7540 = vmatprep.subr.bf16.mxu0 %v7539_v40  ;;  %v6003_v16 = vmul.f32 %v5980_v1, %v16517_v31  ;;  %v5999_v51 = vmul.f32 %v5979_v8, %v16517_v31  ;;  %v6407_v40 = vld [vmem:[#allocation10 + $0x68] sm:$0xff]  ;;  %vm16540_vm0 = vmmov %vm16536_vm2 }
 0xced   :  { %6281 = vrot.lane.b32.xlu0 %v13987_v27, %s8214_s23  ;;  %6510 = vmatprep.mubr.f32.mxu0 %v6407_v40 }
 0xcee   :  { %v5972_v26 = vpop.permute.xlu1 %5971  ;;  %v5970_v35 = vpop.permute.xlu0 %5969  ;;  %6688 = vmatprep.mubr.f32.mxu1 %v6407_v40 }
 0xcef   :  { %v5976_v49 = vsel %vm16522_vm12, %v5964_v20, %v5972_v26  ;;  %v5988_v60 = vsel %vm16523_vm15, %v5972_v26, %v5948_v7  ;;  %v5975_v28 = vsel %vm16524_vm8, %v5962_v32, %v5970_v35  ;;  %v5987_v45 = vsel %vm16525_vm1, %v5970_v35, %v5946_v24  ;;  %vm16541_vm12 = vmmov %vm16540_vm0 }
 0xcf0   :  { %v6001_v5 = vmul.f32 %v5988_v60, %v16513_v3  ;;  %v6004_v25 = vmul.f32 %v5976_v49, %v16514_v13  ;;  %6299 = vrot.lane.b32.xlu1 %v13994_v14, %s8214_s23  ;;  %v5997_v7 = vmul.f32 %v5987_v45, %v16513_v3  ;;  %v6000_v21 = vmul.f32 %v5975_v28, %v16514_v13  ;;  %v16533_v28 = vld [vmem:[#allocation92_spill] sm:$0xff]  ;;  %vm16542_vm15 = vmmov %vm16540_vm0 }
 0xcf1   :  { %6297 = vrot.lane.b32.xlu0 %v13997_v33, %s8214_s23  ;;  %v7613_v3 = vpack.c.bf16 %v6003_v16, %v5999_v51  ;;  %v16534_v16 = vld [vmem:[#allocation93_spill] sm:$0xff]  ;;  %vm16543_vm8 = vmmov %vm16540_vm0 }
 0xcf2   :  { %v6008_v0 = vpop.permute.xlu1 %6007  ;;  %v7541_v6 = vpack.c.bf16 %v6001_v5, %v5997_v7  ;;  %v6006_v30 = vpop.permute.xlu0 %6005  ;;  %v7611_v50 = vpack.c.bf16 %v6004_v25, %v6000_v21  ;;  %vm16544_vm1 = vmmov %vm16540_vm0 }
 0xcf3   :  { %v6046_v24 = vsel %vm16526_vm4, %v6008_v0, %v14075_v9  ;;  %v6045_v31 = vsel %vm16528_vm5, %v6006_v30, %v14073_v29  ;;  %vm16545_vm4 = vmmov %vm16540_vm0 }
 0xcf4   :  { %v6058_v20 = vmul.f32 %v6046_v24, %v16527_v56  ;;  %6307 = vrot.lane.b32.xlu1 %v14004_v43, %s8214_s23  ;;  %v6054_v13 = vmul.f32 %v6045_v31, %v16527_v56  ;;  %7542 = vmatpush1.bf16.msra.mxu0 %v7541_v6 }
 0xcf5   :  { %6305 = vrot.lane.b32.xlu0 %v14007_v39, %s8214_s23  ;;  %7612 = vmatprep.subr.bf16.mxu1 %v7611_v50 }
 0xcf6   :  { %v6024_v32 = vpop.permute.xlu1 %6023  ;;  %7614 = vmatpush1.bf16.msra.mxu1 %v7613_v3  ;;  %v6022_v1 = vpop.permute.xlu0 %6021  ;;  %v7543_v8 = vpack.c.bf16 %v6058_v20, %v6054_v13 }
 0xcf7   :  { %v6042_v26 = vsel %vm16529_vm3, %v14075_v9, %v6024_v32  ;;  %v6041_v49 = vsel %vm16530_vm13, %v14073_v29, %v6022_v1  ;;  %v16537_v29 = vld [vmem:[#allocation91_spill] sm:$0xff] }
 0xcf8   :  { %6343 = vrot.lane.b32.xlu1 %v13953_v37, %s8215_s28  ;;  %7544 = vmatprep.subr.bf16.mxu0 %v7543_v8  ;;  %v6059_v21 = vmul.f32 %v6042_v26, %v16537_v29  ;;  %v6055_v6 = vmul.f32 %v6041_v49, %v16537_v29 }
 0xcf9   :  { %6341 = vrot.lane.b32.xlu0 %v13956_v17, %s8215_s28 }
 0xcfa   :  { %v6032_v60 = vpop.permute.xlu1 %6031  ;;  %v6030_v25 = vpop.permute.xlu0 %6029  ;;  %v7617_v40 = vpack.c.bf16 %v6059_v21, %v6055_v6 }
 0xcfb   :  { %v6038_v35 = vsel %vm16531_vm10, %v6024_v32, %v6032_v60  ;;  %v6050_v5 = vsel %vm16532_vm6, %v6032_v60, %v6008_v0  ;;  %v6037_v7 = vsel %vm16535_vm11, %v6022_v1, %v6030_v25  ;;  %v6049_v9 = vsel %vm16536_vm2, %v6030_v25, %v6006_v30 }
 0xcfc   :  { %v6057_v45 = vmul.f32 %v6050_v5, %v16533_v28  ;;  %v6060_v51 = vmul.f32 %v6038_v35, %v16534_v16  ;;  %6359 = vrot.lane.b32.xlu1 %v13964_v15, %s8215_s28  ;;  %v6053_v0 = vmul.f32 %v6049_v9, %v16533_v28  ;;  %v6056_v24 = vmul.f32 %v6037_v7, %v16534_v16 }
 0xcfd   :  { %6357 = vrot.lane.b32.xlu0 %v13967_v18, %s8215_s28 }
 0xcfe   :  { %v6012_v50 = vpop.permute.xlu1 %6011  ;;  %v7545_v20 = vpack.c.bf16 %v6057_v45, %v6053_v0  ;;  %v6010_v31 = vpop.permute.xlu0 %6009  ;;  %v7615_v3 = vpack.c.bf16 %v6060_v51, %v6056_v24 }
 0xcff   :  { %v6048_v30 = vsel %vm16538_vm9, %v6012_v50, %v14083_v58  ;;  %v6047_v32 = vsel %vm16539_vm14, %v6010_v31, %v14081_v52 }
 0xd00   :  { %v6066_v13 = vmul.f32 %v6048_v30, %v16527_v56  ;;  %6367 = vrot.lane.b32.xlu1 %v13974_v23, %s8215_s28  ;;  %v6062_v1 = vmul.f32 %v6047_v32, %v16527_v56  ;;  %7546 = vmatpush1.bf16.msra.mxu0 %v7545_v20 }
 0xd01   :  { %6365 = vrot.lane.b32.xlu0 %v13977_v10, %s8215_s28  ;;  %7616 = vmatprep.subr.bf16.mxu1 %v7615_v3  ;;  %v16546_v3 = vld [vmem:[#allocation94_spill] sm:$0xff] }
 0xd02   :  { %v6028_v8 = vpop.permute.xlu1 %6027  ;;  %7618 = vmatpush1.bf16.msra.mxu1 %v7617_v40  ;;  %v6026_v26 = vpop.permute.xlu0 %6025  ;;  %v7547_v49 = vpack.c.bf16 %v6066_v13, %v6062_v1 }
 0xd03   :  { %v6044_v56 = vsel %vm16540_vm0, %v14083_v58, %v6028_v8  ;;  %v6043_v60 = vsel %vm16541_vm12, %v14081_v52, %v6026_v26 }
 0xd04   :  { %6347 = vrot.lane.b32.xlu1 %v13984_v55, %s8215_s28  ;;  %7548 = vmatprep.subr.bf16.mxu0 %v7547_v49  ;;  %v6067_v52 = vmul.f32 %v6044_v56, %v16537_v29  ;;  %v6063_v21 = vmul.f32 %v6043_v60, %v16537_v29  ;;  %v8048_v49 = vld [vmem:[%s14774_s8 + $0x8] sm:$0xff]  ;;  %v8049_v56 = vld [vmem:[%s14774_s8] sm:$0xff] }
 0xd05   :  { %6345 = vrot.lane.b32.xlu0 %v13987_v27, %s8215_s28 }
 0xd06   :  { %v6036_v35 = vpop.permute.xlu1 %6035  ;;  %v6034_v45 = vpop.permute.xlu0 %6033 }
 0xd07   :  { %v6040_v5 = vsel %vm16542_vm15, %v6028_v8, %v6036_v35  ;;  %v6052_v25 = vsel %vm16543_vm8, %v6036_v35, %v6012_v50  ;;  %v6039_v9 = vsel %vm16544_vm1, %v6026_v26, %v6034_v45  ;;  %v6051_v58 = vsel %vm16545_vm4, %v6034_v45, %v6010_v31  ;;  %v16547_v35 = vld [vmem:[#allocation96_spill] sm:$0xff] }
 0xd08   :  { %v6065_v51 = vmul.f32 %v6052_v25, %v16533_v28  ;;  %v6068_v7 = vmul.f32 %v6040_v5, %v16534_v16  ;;  %6363 = vrot.lane.b32.xlu1 %v13994_v14, %s8215_s28  ;;  %v6061_v6 = vmul.f32 %v6051_v58, %v16533_v28  ;;  %v6064_v0 = vmul.f32 %v6039_v9, %v16534_v16  ;;  %v16549_v9 = vld [vmem:[#allocation98_spill] sm:$0xff] }
 0xd09   :  { %6361 = vrot.lane.b32.xlu0 %v13997_v33, %s8215_s28  ;;  %v7621_v28 = vpack.c.bf16 %v6067_v52, %v6063_v21 }
 0xd0a   :  { %v6072_v24 = vpop.permute.xlu1 %6071  ;;  %v7549_v50 = vpack.c.bf16 %v6065_v51, %v6061_v6  ;;  %v6070_v30 = vpop.permute.xlu0 %6069  ;;  %v7619_v31 = vpack.c.bf16 %v6068_v7, %v6064_v0  ;;  %v16548_v51 = vld [vmem:[#allocation97_spill] sm:$0xff]  ;;  %v8050_v6 = vld [vmem:[%s14774_s8 + $0x10] sm:$0xff] }
 0xd0b   :  { %v6110_v20 = vsel %vm1484_vm7, %v6072_v24, %v14091_v11  ;;  %v6109_v29 = vsel %vm1484_vm7, %v6070_v30, %v14089_v46 }
 0xd0c   :  { %v6122_v13 = vmul.f32 %v6110_v20, %v16546_v3  ;;  %6371 = vrot.lane.b32.xlu1 %v14004_v43, %s8215_s28  ;;  %v6118_v16 = vmul.f32 %v6109_v29, %v16546_v3  ;;  %7550 = vmatpush1.bf16.msra.mxu0 %v7549_v50  ;;  %v8051_v50 = vld [vmem:[%s14774_s8 + $0x18] sm:$0xff]  ;;  %s8302_s8 = smov [#allocation11]  }
 0xd0d   :  { %6369 = vrot.lane.b32.xlu0 %v14007_v39, %s8215_s28  ;;  %7620 = vmatprep.subr.bf16.mxu1 %v7619_v31  ;;  %s6823_s19 = sshll.u32 %s8302_s8, 4  ;;  %s6824_s19 = int_to_ptr.vmem [resolvable:$true] %s6823_s19 }
 0xd0e   :  { %v6088_v32 = vpop.permute.xlu1 %6087  ;;  %7622 = vmatpush1.bf16.msra.mxu1 %v7621_v28  ;;  %v6086_v40 = vpop.permute.xlu0 %6085  ;;  %v7551_v1 = vpack.c.bf16 %v6122_v13, %v6118_v16  ;;  %s8162_s25 = scalar_lea.vmem %s6824_s19, 2048  ;;  %p8167_p13 = scmp.lt.s32.totalorder %s6824_s19, %s6824_s19 }
 0xd0f   :  { %v6106_v8 = vsel %vm1484_vm7, %v14091_v11, %v6088_v32  ;;  %v6105_v26 = vsel %vm1484_vm7, %v14089_v46, %v6086_v40  ;;  %p8163_p12 = scmp.ne.s32.totalorder %s6824_s19, %s8162_s25  ;;  %p8168_p0 = scmp.lt.s32.totalorder %s8162_s25, %s8162_s25 }
 0xd10   :  { %6423 = vperm.xlu1 %7967, %v8048_v49   ;;  %7552 = vmatprep.subr.bf16.mxu0 %v7551_v1  ;;  %v6123_v5 = vmul.f32 %v6106_v8, %v16547_v35  ;;  %v6119_v11 = vmul.f32 %v6105_v26, %v16547_v35 }
 0xd11   :  { %6419 = vperm.xlu0 %7966, %v8049_v56   ;;  %p8169_p1 = por %p8168_p0, %p8167_p13 }
 0xd12   :  { %v6096_v60 = vpop.permute.xlu1 %6095  ;;  %v6094_v45 = vpop.permute.xlu0 %6093  ;;  %v7625_v28 = vpack.c.bf16 %v6123_v5, %v6119_v11 }
 0xd13   :  { %v6102_v25 = vsel %vm1484_vm7, %v6088_v32, %v6096_v60  ;;  %v6114_v46 = vsel %vm1484_vm7, %v6096_v60, %v6072_v24  ;;  %v6101_v52 = vsel %vm1484_vm7, %v6086_v40, %v6094_v45  ;;  %v6113_v21 = vsel %vm1484_vm7, %v6094_v45, %v6070_v30  ;;  %p8170_p2 = pnand %p8169_p1, %p8163_p12 }
 0xd14   :  { %v6121_v7 = vmul.f32 %v6114_v46, %v16548_v51  ;;  %v6124_v58 = vmul.f32 %v6102_v25, %v16549_v9  ;;  %6427 = vperm.xlu1 %7967, %v8050_v6   ;;  %v6117_v0 = vmul.f32 %v6113_v21, %v16548_v51  ;;  %v6120_v24 = vmul.f32 %v6101_v52, %v16549_v9  ;;  %v16550_v52 = vld [vmem:[#allocation69_spill] sm:$0xff] }
 0xd15   :  { %6431 = vperm.xlu0 %7966, %v8051_v50   ;;  %v6136_v21 = vmul.f32 %v13977_v10, %v16550_v52  ;;  %v6140_v6 = vmul.f32 %v13974_v23, %v16550_v52 }
 0xd16   :  { %v6076_v20 = vpop.permute.xlu1 %6075  ;;  %v7553_v31 = vpack.c.bf16 %v6121_v7, %v6117_v0  ;;  %v6074_v13 = vpop.permute.xlu0 %6073  ;;  %v7623_v29 = vpack.c.bf16 %v6124_v58, %v6120_v24 }
 0xd17   :  { %v6112_v30 = vsel %vm1484_vm7, %v6076_v20, %v14099_v53  ;;  %v6111_v32 = vsel %vm1484_vm7, %v6074_v13, %v14097_v62 }
 0xd18   :  { %v6130_v16 = vmul.f32 %v6112_v30, %v16546_v3  ;;  %v6126_v40 = vmul.f32 %v6111_v32, %v16546_v3  ;;  %7554 = vmatpush1.bf16.msra.mxu0 %v7553_v31  ;;  %7624 = vmatprep.subr.bf16.mxu1 %v7623_v29  ;;  %v16551_v31 = vld [vmem:[#allocation65_spill] sm:$0xff] }
 0xd19   :  { %7626 = vmatpush1.bf16.msra.mxu1 %v7625_v28  ;;  %v6133_v30 = vmul.f32 %v13956_v17, %v16551_v31  ;;  %v6141_v23 = vmul.f32 %v13987_v27, %v16551_v31  ;;  %v7631_v28 = vpack.c.bf16 %v6140_v6, %v6136_v21  ;;  %v6148_v17 = vmul.f32 %v14004_v43, %v16550_v52 }
 0xd1a   :  { %v6092_v1 = vpop.permute.xlu1 %6091  ;;  %v6090_v8 = vpop.permute.xlu0 %6089  ;;  %v7555_v26 = vpack.c.bf16 %v6130_v16, %v6126_v40  ;;  %v6144_v16 = vmul.f32 %v14007_v39, %v16550_v52  ;;  %v16557_v40 = vld [vmem:[#allocation41_spill] sm:$0xff] }
 0xd1b   :  { %v6108_v49 = vsel %vm1484_vm7, %v14099_v53, %v6092_v1  ;;  %v6107_v56 = vsel %vm1484_vm7, %v14097_v62, %v6090_v8 }
 0xd1c   :  { %7556 = vmatprep.subr.bf16.mxu0 %v7555_v26  ;;  %v6131_v5 = vmul.f32 %v6108_v49, %v16547_v35  ;;  %v6127_v3 = vmul.f32 %v6107_v56, %v16547_v35  ;;  %v7635_v26 = vpack.c.bf16 %v6148_v17, %v6144_v16  ;;  %v16559_v49 = vld [vmem:[#allocation16_spill] sm:$0xff]  ;;  %v16560_v56 = vpack.c.bf16 %v13884_v4, %v13880_v54 }
 0xd1e   :  { %v6100_v60 = vpop.permute.xlu1 %6099  ;;  %v6098_v46 = vpop.permute.xlu0 %6097  ;;  %v7629_v29 = vpack.c.bf16 %v6131_v5, %v6127_v3 }
 0xd1f   :  { %v6104_v11 = vsel %vm1484_vm7, %v6092_v1, %v6100_v60  ;;  %v6116_v25 = vsel %vm1484_vm7, %v6100_v60, %v6076_v20  ;;  %v6103_v62 = vsel %vm1484_vm7, %v6090_v8, %v6098_v46  ;;  %v6115_v7 = vsel %vm1484_vm7, %v6098_v46, %v6074_v13 }
 0xd20   :  { %v6129_v45 = vmul.f32 %v6116_v25, %v16548_v51  ;;  %v6132_v53 = vmul.f32 %v6104_v11, %v16549_v9  ;;  %v6125_v58 = vmul.f32 %v6115_v7, %v16548_v51  ;;  %v6128_v35 = vmul.f32 %v6103_v62, %v16549_v9  ;;  %v16552_v51 = vld [vmem:[#allocation70_spill] sm:$0xff] }
 0xd21   :  { %v6137_v13 = vmul.f32 %v13953_v37, %v16551_v31  ;;  %v6135_v9 = vmul.f32 %v13967_v18, %v16552_v51  ;;  %v6139_v10 = vmul.f32 %v13964_v15, %v16552_v51  ;;  %v16553_v37 = vpack.c.bf16 %v13876_v41, %v13871_v61  ;;  %v16564_v7 = vld [vmem:[#allocation58_spill] sm:$0xff] }
 0xd22   :  { %v6152_v0 = vpop.permute.xlu1 %6151  ;;  %v7557_v24 = vpack.c.bf16 %v6129_v45, %v6125_v58  ;;  %v6150_v50 = vpop.permute.xlu0 %6149  ;;  %v7627_v20 = vpack.c.bf16 %v6132_v53, %v6128_v35  ;;  %v6145_v15 = vmul.f32 %v13984_v55, %v16551_v31  ;;  %v6143_v27 = vmul.f32 %v13997_v33, %v16552_v51  ;;  %v16563_v53 = vld [vmem:[#allocation54_spill] sm:$0xff] }
 0xd23   :  { %v6147_v32 = vmul.f32 %v13994_v14, %v16552_v51  ;;  %vm16554_vm7 = vcmp.lt.s32.totalorder %v8980_v48, 127  ;;  %v7561_v43 = vpack.c.bf16 %v6137_v13, %v6133_v30  ;;  %v7633_v1 = vpack.c.bf16 %v6139_v10, %v6135_v9 }
 0xd24   :  { %7558 = vmatpush1.bf16.msra.mxu0 %v7557_v24  ;;  %7628 = vmatprep.subr.bf16.mxu1 %v7627_v20  ;;  %v6190_v39 = vsel %vm16554_vm7, %v6152_v0, %v14107_v44  ;;  %vm16555_vm5 = vmmov %vm16554_vm7  ;;  %v7565_v5 = vpack.c.bf16 %v6145_v15, %v6141_v23  ;;  %vm16575_vm7 = vcmp.lt.s32.totalorder %v8980_v48, 113 }
 0xd25   :  { %7560 = vmatprep.subr.bf16.mxu0 %v16553_v37  ;;  %7630 = vmatpush1.bf16.msra.mxu1 %v7629_v29  ;;  %vm16556_vm3 = vmmov %vm16555_vm5  ;;  %v7637_v3 = vpack.c.bf16 %v6147_v32, %v6143_v27 }
 0xd26   :  { %v6168_v18 = vpop.permute.xlu1 %6167  ;;  %7632 = vmatprep.subr.bf16.mxu1 %v7631_v28  ;;  %v6166_v41 = vpop.permute.xlu0 %6165  ;;  %v6189_v55 = vsel %vm16556_vm3, %v6150_v50, %v14105_v42  ;;  %vm16558_vm13 = vmmov %vm16556_vm3 }
 0xd27   :  { %v6186_v61 = vsel %vm16555_vm5, %v14107_v44, %v6168_v18  ;;  %v6185_v14 = vsel %vm16558_vm13, %v14105_v42, %v6166_v41  ;;  %v6201_v44 = vmul.f32 %v6190_v39, %v16559_v49  ;;  %v6197_v11 = vmul.f32 %v6189_v55, %v16559_v49  ;;  %vm16561_vm10 = vmmov %vm16556_vm3 }
 0xd28   :  { %v6202_v33 = vmul.f32 %v6186_v61, %v16557_v40  ;;  %v6198_v8 = vmul.f32 %v6185_v14, %v16557_v40  ;;  %7562 = vmatpush1.bf16.msra.mxu0 %v7561_v43  ;;  %vm16562_vm6 = vmmov %vm16556_vm3 }
 0xd29   :  { %7564 = vmatprep.subr.bf16.mxu0 %v16560_v56  ;;  %7634 = vmatpush1.bf16.msra.mxu1 %v7633_v1  ;;  %vm16565_vm11 = vmmov %vm16556_vm3  ;;  %v7569_v6 = vpack.c.bf16 %v6201_v44, %v6197_v11 }
 0xd2a   :  { %v6176_v60 = vpop.permute.xlu1 %6175  ;;  %7636 = vmatprep.subr.bf16.mxu1 %v7635_v26  ;;  %v6174_v46 = vpop.permute.xlu0 %6173  ;;  %v7567_v45 = vpack.c.bf16 %v6202_v33, %v6198_v8  ;;  %vm16566_vm2 = vmmov %vm16556_vm3  ;;  %v16577_v26 = vld [vmem:[#allocation53_spill] sm:$0xff] }
 0xd2b   :  { %v6182_v42 = vsel %vm16561_vm10, %v6168_v18, %v6176_v60  ;;  %v6194_v25 = vsel %vm16562_vm6, %v6176_v60, %v6152_v0  ;;  %v6181_v4 = vsel %vm16565_vm11, %v6166_v41, %v6174_v46  ;;  %v6193_v58 = vsel %vm16566_vm2, %v6174_v46, %v6150_v50  ;;  %vm16567_vm9 = vmmov %vm16566_vm2 }
 0xd2c   :  { %v6203_v62 = vmul.f32 %v6182_v42, %v16563_v53  ;;  %v6204_v54 = vmul.f32 %v6194_v25, %v16564_v7  ;;  %v6199_v35 = vmul.f32 %v6181_v4, %v16563_v53  ;;  %v6200_v52 = vmul.f32 %v6193_v58, %v16564_v7  ;;  %7566 = vmatpush1.bf16.msra.mxu0 %v7565_v5  ;;  %vm16568_vm14 = vmmov %vm16566_vm2  ;;  %v16579_v5 = vld [vmem:[#allocation55_spill] sm:$0xff] }
 0xd2d   :  { %7568 = vmatprep.subr.bf16.mxu0 %v7567_v45  ;;  %7638 = vmatpush1.bf16.msra.mxu1 %v7637_v3  ;;  %vm16569_vm0 = vmmov %vm16566_vm2  ;;  %v16584_v4 = vld [vmem:[#allocation35_spill] sm:$0xff] }
 0xd2e   :  { %v6156_v21 = vpop.permute.xlu1 %6155  ;;  %v7641_v0 = vpack.c.bf16 %v6203_v62, %v6199_v35  ;;  %v6154_v24 = vpop.permute.xlu0 %6153  ;;  %v7639_v20 = vpack.c.bf16 %v6204_v54, %v6200_v52  ;;  %vm16570_vm12 = vmmov %vm16569_vm0 }
 0xd2f   :  { %v6192_v31 = vsel %vm16567_vm9, %v6156_v21, %v14115_v22  ;;  %v6191_v50 = vsel %vm16568_vm14, %v6154_v24, %v14113_v34  ;;  %vm16571_vm15 = vmmov %vm16569_vm0 }
 0xd30   :  { %7570 = vmatpush1.bf16.msra.mxu0 %v7569_v6  ;;  %7640 = vmatprep.subr.bf16.mxu1 %v7639_v20  ;;  %v6209_v13 = vmul.f32 %v6192_v31, %v16559_v49  ;;  %v6205_v29 = vmul.f32 %v6191_v50, %v16559_v49  ;;  %vm16572_vm8 = vmmov %vm16569_vm0 }
 0xd31   :  { %7642 = vmatpush1.bf16.msra.mxu1 %v7641_v0  ;;  %vm16573_vm1 = vmmov %vm16569_vm0 }
 0xd32   :  { %v6172_v30 = vpop.permute.xlu1 %6171  ;;  %v6170_v9 = vpop.permute.xlu0 %6169  ;;  %v7573_v17 = vpack.c.bf16 %v6209_v13, %v6205_v29  ;;  %vm16574_vm4 = vmmov %vm16569_vm0 }
 0xd33   :  { %v6188_v51 = vsel %vm16569_vm0, %v14115_v22, %v6172_v30  ;;  %v6187_v23 = vsel %vm16570_vm12, %v14113_v34, %v6170_v9  ;;  %vm16576_vm5 = vmmov %vm16575_vm7 }
 0xd34   :  { %v6210_v10 = vmul.f32 %v6188_v51, %v16557_v40  ;;  %v6206_v28 = vmul.f32 %v6187_v23, %v16557_v40  ;;  %vm16578_vm3 = vmmov %vm16576_vm5 }
 0xd35   :  { %vm16580_vm13 = vmmov %vm16578_vm3 }
 0xd36   :  { %v6180_v16 = vpop.permute.xlu1 %6179  ;;  %v6178_v15 = vpop.permute.xlu0 %6177  ;;  %v7571_v27 = vpack.c.bf16 %v6210_v10, %v6206_v28  ;;  %vm16581_vm10 = vmmov %vm16578_vm3 }
 0xd37   :  { %v6184_v37 = vsel %vm16571_vm15, %v6172_v30, %v6180_v16  ;;  %v6196_v18 = vsel %vm16572_vm8, %v6180_v16, %v6156_v21  ;;  %v6183_v39 = vsel %vm16573_vm1, %v6170_v9, %v6178_v15  ;;  %v6195_v34 = vsel %vm16574_vm4, %v6178_v15, %v6154_v24  ;;  %vm16582_vm6 = vmmov %vm16578_vm3 }
 0xd38   :  { %v6211_v22 = vmul.f32 %v6184_v37, %v16563_v53  ;;  %v6212_v32 = vmul.f32 %v6196_v18, %v16564_v7  ;;  %v6207_v61 = vmul.f32 %v6183_v39, %v16563_v53  ;;  %v6208_v41 = vmul.f32 %v6195_v34, %v16564_v7  ;;  %7572 = vmatprep.subr.bf16.mxu0 %v7571_v27  ;;  %vm16585_vm11 = vmmov %vm16578_vm3 }
 0xd39   :  { %7574 = vmatpush1.bf16.msra.mxu0 %v7573_v17  ;;  %vm16586_vm2 = vmmov %vm16578_vm3 }
 0xd3a   :  { %v6216_v43 = vpop.permute.xlu1 %6215  ;;  %v7645_v55 = vpack.c.bf16 %v6211_v22, %v6207_v61  ;;  %v6214_v40 = vpop.permute.xlu0 %6213  ;;  %v7643_v33 = vpack.c.bf16 %v6212_v32, %v6208_v41  ;;  %vm16587_vm9 = vmmov %vm16586_vm2 }
 0xd3b   :  { %v6254_v14 = vsel %vm16575_vm7, %v6216_v43, %v14121_v12  ;;  %v6253_v1 = vsel %vm16576_vm5, %v6214_v40, %v14123_v2  ;;  %vm16588_vm14 = vmmov %vm16586_vm2  ;;  %vm16595_vm7 = vcmp.lt.s32.totalorder %v8980_v48, 112 }
 0xd3c   :  { %7644 = vmatprep.subr.bf16.mxu1 %v7643_v33  ;;  %v6265_v49 = vmul.f32 %v6254_v14, %v16577_v26  ;;  %v6261_v44 = vmul.f32 %v6253_v1, %v16577_v26  ;;  %vm16589_vm0 = vmmov %vm16586_vm2  ;;  %v16597_v1 = vld [vmem:[#allocation56_spill] sm:$0xff] }
 0xd3d   :  { %7646 = vmatpush1.bf16.msra.mxu1 %v7645_v55  ;;  %vm16590_vm12 = vmmov %vm16589_vm0 }
 0xd3e   :  { %v6232_v8 = vpop.permute.xlu1 %6231  ;;  %v7577_v46 = vpack.c.bf16 %v6265_v49, %v6261_v44  ;;  %vm16591_vm15 = vmmov %vm16589_vm0 }
 0xd3f   :  { %v6250_v56 = vsel %vm16578_vm3, %v14121_v12, %v6232_v8  ;;  %v6230_v60 = vpop.permute.xlu0 %6229  ;;  %v16583_v12 = vld [vmem:[#allocation57_spill] sm:$0xff]  ;;  %vm16592_vm8 = vmmov %vm16589_vm0 }
 0xd40   :  { %v6266_v3 = vmul.f32 %v6250_v56, %v16579_v5  ;;  %v6249_v11 = vsel %vm16580_vm13, %v14123_v2, %v6230_v60  ;;  %vm16593_vm1 = vmmov %vm16589_vm0  ;;  %v16599_v56 = vld [vmem:[#allocation60_spill] sm:$0xff] }
 0xd41   :  { %v6262_v42 = vmul.f32 %v6249_v11, %v16579_v5  ;;  %vm16594_vm4 = vmmov %vm16589_vm0 }
 0xd42   :  { %v6240_v25 = vpop.permute.xlu1 %6239  ;;  %vm16596_vm5 = vmmov %vm16595_vm7 }
 0xd43   :  { %v6246_v45 = vsel %vm16581_vm10, %v6232_v8, %v6240_v25  ;;  %v6258_v53 = vsel %vm16582_vm6, %v6240_v25, %v6216_v43  ;;  %v6238_v62 = vpop.permute.xlu0 %6237  ;;  %v7575_v7 = vpack.c.bf16 %v6266_v3, %v6262_v42  ;;  %vm16598_vm3 = vmmov %vm16596_vm5 }
 0xd44   :  { %v6267_v54 = vmul.f32 %v6246_v45, %v16583_v12  ;;  %v6268_v58 = vmul.f32 %v6258_v53, %v16584_v4  ;;  %v6245_v35 = vsel %vm16585_vm11, %v6230_v60, %v6238_v62  ;;  %v6257_v2 = vsel %vm16586_vm2, %v6238_v62, %v6214_v40  ;;  %vm16600_vm13 = vmmov %vm16598_vm3 }
 0xd45   :  { %v6263_v52 = vmul.f32 %v6245_v35, %v16583_v12  ;;  %v6264_v21 = vmul.f32 %v6257_v2, %v16584_v4  ;;  %7576 = vmatprep.subr.bf16.mxu0 %v7575_v7  ;;  %vm16601_vm10 = vmmov %vm16598_vm3  ;;  %v16604_v7 = vld [vmem:[#allocation19_spill] sm:$0xff] }
 0xd46   :  { %7578 = vmatpush1.bf16.msra.mxu0 %v7577_v46  ;;  %v6220_v6 = vpop.permute.xlu1 %6219  ;;  %vm16602_vm6 = vmmov %vm16598_vm3 }
 0xd47   :  { %v7649_v0 = vpack.c.bf16 %v6267_v54, %v6263_v52  ;;  %v6218_v24 = vpop.permute.xlu0 %6217  ;;  %v7647_v20 = vpack.c.bf16 %v6268_v58, %v6264_v21  ;;  %v6256_v31 = vsel %vm16587_vm9, %v6220_v6, %v14129_v36  ;;  %vm16605_vm11 = vmmov %vm16598_vm3 }
 0xd48   :  { %v6255_v50 = vsel %vm16588_vm14, %v6218_v24, %v14131_v47  ;;  %v6273_v13 = vmul.f32 %v6256_v31, %v16577_v26  ;;  %vm16606_vm2 = vmmov %vm16598_vm3 }
 0xd49   :  { %7648 = vmatprep.subr.bf16.mxu1 %v7647_v20  ;;  %v6269_v29 = vmul.f32 %v6255_v50, %v16577_v26  ;;  %vm16607_vm9 = vmmov %vm16606_vm2 }
 0xd4a   :  { %7650 = vmatpush1.bf16.msra.mxu1 %v7649_v0  ;;  %v6236_v30 = vpop.permute.xlu1 %6235  ;;  %vm16608_vm14 = vmmov %vm16606_vm2 }
 0xd4b   :  { %v6252_v51 = vsel %vm16589_vm0, %v14129_v36, %v6236_v30  ;;  %v6234_v9 = vpop.permute.xlu0 %6233  ;;  %v7581_v17 = vpack.c.bf16 %v6273_v13, %v6269_v29  ;;  %vm16609_vm0 = vmmov %vm16606_vm2 }
 0xd4c   :  { %v6274_v10 = vmul.f32 %v6252_v51, %v16579_v5  ;;  %v6251_v23 = vsel %vm16590_vm12, %v14131_v47, %v6234_v9  ;;  %vm16610_vm12 = vmmov %vm16609_vm0 }
 0xd4d   :  { %v6270_v28 = vmul.f32 %v6251_v23, %v16579_v5 }
 0xd4e   :  { %v6244_v16 = vpop.permute.xlu1 %6243 }
 0xd4f   :  { %v6248_v37 = vsel %vm16591_vm15, %v6236_v30, %v6244_v16  ;;  %v6260_v18 = vsel %vm16592_vm8, %v6244_v16, %v6220_v6  ;;  %v6242_v15 = vpop.permute.xlu0 %6241  ;;  %v7579_v27 = vpack.c.bf16 %v6274_v10, %v6270_v28  ;;  %vm16611_vm15 = vmmov %vm16609_vm0 }
 0xd50   :  { %v6275_v36 = vmul.f32 %v6248_v37, %v16583_v12  ;;  %v6276_v22 = vmul.f32 %v6260_v18, %v16584_v4  ;;  %v6247_v32 = vsel %vm16593_vm1, %v6234_v9, %v6242_v15  ;;  %v6259_v47 = vsel %vm16594_vm4, %v6242_v15, %v6218_v24  ;;  %vm16612_vm8 = vmmov %vm16609_vm0 }
 0xd51   :  { %v6271_v39 = vmul.f32 %v6247_v32, %v16583_v12  ;;  %v6272_v34 = vmul.f32 %v6259_v47, %v16584_v4  ;;  %7580 = vmatprep.subr.bf16.mxu0 %v7579_v27  ;;  %vm16613_vm1 = vmmov %vm16609_vm0 }
 0xd52   :  { %7582 = vmatpush1.bf16.msra.mxu0 %v7581_v17  ;;  %v6280_v61 = vpop.permute.xlu1 %6279  ;;  %vm16614_vm4 = vmmov %vm16609_vm0 }
 0xd53   :  { %v7653_v41 = vpack.c.bf16 %v6275_v36, %v6271_v39  ;;  %v6278_v43 = vpop.permute.xlu0 %6277  ;;  %v7651_v55 = vpack.c.bf16 %v6276_v22, %v6272_v34  ;;  %v6318_v40 = vsel %vm16595_vm7, %v6280_v61, %v14137_v59  ;;  %v6406_v22 = vld [vmem:[#allocation10 + $0x60] sm:$0xff]  ;;  %vm16615_vm7 = vcmp.lt.s32.totalorder %v8980_v48, 111 }
 0xd54   :  { %v6317_v33 = vsel %vm16596_vm5, %v6278_v43, %v14139_v19  ;;  %v6329_v8 = vmul.f32 %v6318_v40, %v16597_v1  ;;  %v6410_v34 = vld [vmem:[#allocation10 + $0x80] sm:$0xff]  ;;  %vm16617_vm5 = vmmov %vm16615_vm7  ;;  %v6409_v40 = vld [vmem:[#allocation10 + $0x78] sm:$0xff] }
 0xd55   :  { %7652 = vmatprep.subr.bf16.mxu1 %v7651_v55  ;;  %v6325_v26 = vmul.f32 %v6317_v33, %v16597_v1  ;;  %v16618_v33 = vld [vmem:[#allocation29_spill] sm:$0xff]  ;;  %v6414_v48 = vld [vmem:[#allocation10 + $0xa0] sm:$0xff] }
 0xd56   :  { %7654 = vmatpush1.bf16.msra.mxu1 %v7653_v41  ;;  %v6296_v14 = vpop.permute.xlu1 %6295  ;;  %v16616_v41 = vld [vmem:[#allocation138_spill] sm:$0xff] }
 0xd57   :  { %v6314_v49 = vsel %vm16598_vm3, %v14137_v59, %v6296_v14  ;;  %v6294_v44 = vpop.permute.xlu0 %6293  ;;  %v7585_v42 = vpack.c.bf16 %v6329_v8, %v6325_v26  ;;  %v16603_v59 = vld [vmem:[#allocation43_spill] sm:$0xff]  ;;  %vm16619_vm3 = vmmov %vm16617_vm5 }
 0xd58   :  { %v6330_v60 = vmul.f32 %v6314_v49, %v16599_v56  ;;  %v6313_v5 = vsel %vm16600_vm13, %v14139_v19, %v6294_v44  ;;  %v6413_v49 = vld [vmem:[#allocation10 + $0x98] sm:$0xff]  ;;  %vm16621_vm13 = vmmov %vm16619_vm3 }
 0xd59   :  { %v6326_v3 = vmul.f32 %v6313_v5, %v16599_v56 }
 0xd5a   :  { %v6304_v11 = vpop.permute.xlu1 %6303 }
 0xd5b   :  { %v6310_v25 = vsel %vm16601_vm10, %v6296_v14, %v6304_v11  ;;  %v6322_v46 = vsel %vm16602_vm6, %v6304_v11, %v6280_v61  ;;  %v6302_v45 = vpop.permute.xlu0 %6301  ;;  %v7583_v53 = vpack.c.bf16 %v6330_v60, %v6326_v3  ;;  %vm16622_vm10 = vmmov %vm16619_vm3 }
 0xd5c   :  { %v6331_v62 = vmul.f32 %v6310_v25, %v16603_v59  ;;  %v6332_v12 = vmul.f32 %v6322_v46, %v16604_v7  ;;  %v6309_v54 = vsel %vm16605_vm11, %v6294_v44, %v6302_v45  ;;  %v6321_v19 = vsel %vm16606_vm2, %v6302_v45, %v6278_v43  ;;  %v16620_v44 = vld [vmem:[#allocation26_spill] sm:$0xff]  ;;  %vm16623_vm6 = vmmov %vm16619_vm3  ;;  %v16624_v45 = vld [vmem:[#allocation87_spill] sm:$0xff] }
 0xd5d   :  { %v6327_v4 = vmul.f32 %v6309_v54, %v16603_v59  ;;  %v6328_v58 = vmul.f32 %v6321_v19, %v16604_v7  ;;  %7584 = vmatprep.subr.bf16.mxu0 %v7583_v53  ;;  %vm16626_vm11 = vmmov %vm16619_vm3  ;;  %v6412_v54 = vld [vmem:[#allocation10 + $0x90] sm:$0xff] }
 0xd5e   :  { %7586 = vmatpush1.bf16.msra.mxu0 %v7585_v42  ;;  %v6284_v35 = vpop.permute.xlu1 %6283  ;;  %vm16627_vm2 = vmmov %vm16619_vm3 }
 0xd5f   :  { %v7657_v2 = vpack.c.bf16 %v6331_v62, %v6327_v4  ;;  %v6282_v52 = vpop.permute.xlu0 %6281  ;;  %v7655_v21 = vpack.c.bf16 %v6332_v12, %v6328_v58  ;;  %v6320_v6 = vsel %vm16607_vm9, %v6284_v35, %v14145_v63  ;;  %v6416_v58 = vld [vmem:[#allocation10 + $0xb0] sm:$0xff]  ;;  %vm16629_vm9 = vmmov %vm16627_vm2 }
 0xd60   :  { %v6319_v0 = vsel %vm16608_vm14, %v6282_v52, %v14147_v38  ;;  %v6337_v20 = vmul.f32 %v6320_v6, %v16597_v1  ;;  %v16628_v6 = vld [vmem:[#allocation77_spill] sm:$0xff]  ;;  %vm16631_vm14 = vmmov %vm16627_vm2 }
 0xd61   :  { %7656 = vmatprep.subr.bf16.mxu1 %v7655_v21  ;;  %v6333_v31 = vmul.f32 %v6319_v0, %v16597_v1 }
 0xd62   :  { %7658 = vmatpush1.bf16.msra.mxu1 %v7657_v2  ;;  %v6300_v24 = vpop.permute.xlu1 %6299 }
 0xd63   :  { %v6316_v50 = vsel %vm16609_vm0, %v14145_v63, %v6300_v24  ;;  %v6298_v30 = vpop.permute.xlu0 %6297  ;;  %v7589_v10 = vpack.c.bf16 %v6337_v20, %v6333_v31  ;;  %v6415_v31 = vld [vmem:[#allocation10 + $0xa8] sm:$0xff]  ;;  %vm16632_vm0 = vmmov %vm16627_vm2 }
 0xd64   :  { %v6338_v13 = vmul.f32 %v6316_v50, %v16599_v56  ;;  %v6315_v29 = vsel %vm16610_vm12, %v14147_v38, %v6298_v30  ;;  %vm16633_vm12 = vmmov %vm16632_vm0 }
 0xd65   :  { %v6334_v51 = vmul.f32 %v6315_v29, %v16599_v56 }
 0xd66   :  { %v6308_v9 = vpop.permute.xlu1 %6307 }
 0xd67   :  { %v6312_v23 = vsel %vm16611_vm15, %v6300_v24, %v6308_v9  ;;  %v6324_v28 = vsel %vm16612_vm8, %v6308_v9, %v6284_v35  ;;  %v6306_v16 = vpop.permute.xlu0 %6305  ;;  %v7587_v17 = vpack.c.bf16 %v6338_v13, %v6334_v51  ;;  %v16630_v24 = vld [vmem:[#allocation256_spill] sm:$0xff]  ;;  %vm16635_vm15 = vmmov %vm16632_vm0 }
 0xd68   :  { %v6339_v63 = vmul.f32 %v6312_v23, %v16603_v59  ;;  %v6340_v37 = vmul.f32 %v6324_v28, %v16604_v7  ;;  %v6311_v18 = vsel %vm16613_vm1, %v6298_v30, %v6306_v16  ;;  %v6323_v38 = vsel %vm16614_vm4, %v6306_v16, %v6282_v52  ;;  %vm16636_vm8 = vmmov %vm16632_vm0 }
 0xd69   :  { %v6335_v15 = vmul.f32 %v6311_v18, %v16603_v59  ;;  %v6336_v27 = vmul.f32 %v6323_v38, %v16604_v7  ;;  %7588 = vmatprep.subr.bf16.mxu0 %v7587_v17  ;;  %v16625_v59 = vld [vmem:[#allocation81_spill] sm:$0xff]  ;;  %v16634_v23 = vmov 0.0   ;;  %vm16637_vm1 = vmmov %vm16632_vm0 }
 0xd6a   :  { %7590 = vmatpush1.bf16.msra.mxu0 %v7589_v10  ;;  %v6344_v36 = vpop.permute.xlu1 %6343  ;;  %vm16638_vm4 = vmmov %vm16632_vm0 }
 0xd6b   :  { %v7661_v32 = vpack.c.bf16 %v6339_v63, %v6335_v15  ;;  %v6342_v47 = vpop.permute.xlu0 %6341  ;;  %v7659_v39 = vpack.c.bf16 %v6340_v37, %v6336_v27  ;;  %v6382_v61 = vsel %vm16615_vm7, %v6344_v36, %v14153_v57  ;;  %vm16639_vm7 = vcmask 261120  }
 0xd6c   :  { %v6381_v43 = vsel %vm16617_vm5, %v6342_v47, %v16616_v41  ;;  %v6393_v14 = vmul.f32 %v6382_v61, %v16618_v33  ;;  %vm16640_vm5 = vmmov %vm16639_vm7 }
 0xd6d   :  { %7660 = vmatprep.subr.bf16.mxu1 %v7659_v39  ;;  %6511 = vmatmul.mubr.f32.vlgmr.msra.gmra.mrb[30].mxu0 %v6406_v22  ;;  %v6389_v1 = vmul.f32 %v6381_v43, %v16618_v33  ;;  %v6408_v39 = vld [vmem:[#allocation10 + $0x70] sm:$0xff]  ;;  %v6417_v43 = vld [vmem:[#allocation10 + $0xb8] sm:$0xff] }
 0xd6e   :  { %7662 = vmatpush1.bf16.msra.mxu1 %v7661_v32  ;;  %v6360_v55 = vpop.permute.xlu1 %6359  ;;  %6516 = vmatprep.mubr.f32.mxu0 %v6410_v34 }
 0xd6f   :  { %v6378_v8 = vsel %vm16619_vm3, %v14153_v57, %v6360_v55  ;;  %v6358_v26 = vpop.permute.xlu0 %6357  ;;  %v7593_v11 = vpack.c.bf16 %v6393_v14, %v6389_v1  ;;  %vm16641_vm3 = vmmov %vm16640_vm5 }
 0xd70   :  { %v6394_v56 = vmul.f32 %v6378_v8, %v16620_v44  ;;  %v6377_v60 = vsel %vm16621_vm13, %v16616_v41, %v6358_v26  ;;  %v6411_v41 = vld [vmem:[#allocation10 + $0x88] sm:$0xff]  ;;  %vm16642_vm13 = vmmov %vm16641_vm3 }
 0xd71   :  { %v6390_v5 = vmul.f32 %v6377_v60, %v16620_v44  ;;  %6689 = vmatmul.mubr.f32.vlgmr.msra.gmra.mrb[32].mxu1 %v6406_v22  ;;  %6517 = vmatmul.mubr.f32.gmra.mrb[32].mxu0 %v6409_v40 }
 0xd72   :  { %v6368_v3 = vpop.permute.xlu1 %6367  ;;  %6694 = vmatprep.mubr.f32.mxu1 %v6410_v34  ;;  %6522 = vmatprep.mubr.f32.mxu0 %v6413_v49 }
 0xd73   :  { %v6374_v42 = vsel %vm16622_vm10, %v6360_v55, %v6368_v3  ;;  %v6386_v57 = vsel %vm16623_vm6, %v6368_v3, %v6344_v36  ;;  %v6366_v25 = vpop.permute.xlu0 %6365  ;;  %v7591_v46 = vpack.c.bf16 %v6394_v56, %v6390_v5  ;;  %vm16643_vm10 = vmmov %vm16641_vm3 }
 0xd74   :  { %v6395_v53 = vmul.f32 %v6374_v42, %v16624_v45  ;;  %v6396_v62 = vmul.f32 %v6386_v57, %v16625_v59  ;;  %v6373_v7 = vsel %vm16626_vm11, %v6358_v26, %v6366_v25  ;;  %v6385_v12 = vsel %vm16627_vm2, %v6366_v25, %v6342_v47  ;;  %vm16644_vm6 = vmmov %vm16641_vm3 }
 0xd75   :  { %v6391_v19 = vmul.f32 %v6373_v7, %v16624_v45  ;;  %v6392_v4 = vmul.f32 %v6385_v12, %v16625_v59  ;;  %7592 = vmatprep.subr.bf16.mxu0 %v7591_v46  ;;  %6695 = vmatmul.mubr.f32.gmra.mrb[34].mxu1 %v6409_v40  ;;  %vm16645_vm11 = vmmov %vm16641_vm3 }
 0xd76   :  { %7594 = vmatpush1.bf16.msra.mxu0 %v7593_v11  ;;  %v6348_v35 = vpop.permute.xlu1 %6347  ;;  %6700 = vmatprep.mubr.f32.mxu1 %v6413_v49  ;;  %vm16646_vm2 = vmmov %vm16641_vm3 }
 0xd77   :  { %v7665_v2 = vpack.c.bf16 %v6395_v53, %v6391_v19  ;;  %v6346_v52 = vpop.permute.xlu0 %6345  ;;  %v7663_v21 = vpack.c.bf16 %v6396_v62, %v6392_v4  ;;  %6523 = vmatmul.mubr.f32.gmra.mrb[34].mxu0 %v6412_v54  ;;  %v6384_v0 = vsel %vm16629_vm9, %v6348_v35, %v16628_v6 }
 0xd78   :  { %v6383_v20 = vsel %vm16631_vm14, %v6346_v52, %v16630_v24  ;;  %6528 = vmatprep.mubr.f32.mxu0 %v6416_v58  ;;  %v6401_v30 = vmul.f32 %v6384_v0, %v16618_v33 }
 0xd79   :  { %7664 = vmatprep.subr.bf16.mxu1 %v7663_v21  ;;  %6701 = vmatmul.mubr.f32.gmra.mrb[36].mxu1 %v6412_v54  ;;  %v6397_v13 = vmul.f32 %v6383_v20, %v16618_v33 }
 0xd7a   :  { %7666 = vmatpush1.bf16.msra.mxu1 %v7665_v2  ;;  %v6364_v50 = vpop.permute.xlu1 %6363  ;;  %6706 = vmatprep.mubr.f32.mxu1 %v6416_v58 }
 0xd7b   :  { %v6380_v29 = vsel %vm16632_vm0, %v16628_v6, %v6364_v50  ;;  %v6362_v51 = vpop.permute.xlu0 %6361  ;;  %6529 = vmatmul.mubr.f32.gmra.mrb[36].mxu0 %v6415_v31  ;;  %v7597_v17 = vpack.c.bf16 %v6401_v30, %v6397_v13 }
 0xd7c   :  { %v6402_v9 = vmul.f32 %v6380_v29, %v16620_v44  ;;  %v6379_v10 = vsel %vm16633_vm12, %v16630_v24, %v6362_v51  ;;  %6599 = vmatprep.mubr.f32.mxu0 %v16634_v23 }
 0xd7d   :  { %v6398_v28 = vmul.f32 %v6379_v10, %v16620_v44  ;;  %6707 = vmatmul.mubr.f32.gmra.mrb[38].mxu1 %v6415_v31 }
 0xd7e   :  { %v6372_v16 = vpop.permute.xlu1 %6371  ;;  %6777 = vmatprep.mubr.f32.mxu1 %v16634_v23 }
 0xd7f   :  { %v6376_v63 = vsel %vm16635_vm15, %v6364_v50, %v6372_v16  ;;  %v6388_v37 = vsel %vm16636_vm8, %v6372_v16, %v6348_v35  ;;  %v6370_v18 = vpop.permute.xlu0 %6369  ;;  %v7595_v38 = vpack.c.bf16 %v6402_v9, %v6398_v28 }
 0xd80   :  { %v6403_v15 = vmul.f32 %v6376_v63, %v16624_v45  ;;  %v6404_v27 = vmul.f32 %v6388_v37, %v16625_v59  ;;  %v6375_v36 = vsel %vm16637_vm1, %v6362_v51, %v6370_v18  ;;  %v6387_v22 = vsel %vm16638_vm4, %v6370_v18, %v6346_v52 }
 0xd81   :  { %v6399_v32 = vmul.f32 %v6375_v36, %v16624_v45  ;;  %v6400_v47 = vmul.f32 %v6387_v22, %v16625_v59  ;;  %7596 = vmatprep.subr.bf16.mxu0 %v7595_v38 }
 0xd82   :  { %7598 = vmatpush1.bf16.msra.mxu0 %v7597_v17 }
 0xd83   :  { %v7669_v34 = vpack.c.bf16 %v6403_v15, %v6399_v32  ;;  %v7667_v61 = vpack.c.bf16 %v6404_v27, %v6400_v47 }
 0xd85   :  { %7668 = vmatprep.subr.bf16.mxu1 %v7667_v61  ;;  %6950 = vmatmul.mubr.msk.f32.vlgmr.msra.gmra.mrb[30].mxu0 %vm16639_vm7, %v6408_v39 }
 0xd86   :  { %7670 = vmatpush1.bf16.msra.mxu1 %v7669_v34  ;;  %6605 = vmatprep.mubr.f32.mxu0 %v16634_v23 }
 0xd89   :  { %6954 = vmatmul.mubr.msk.f32.vlgmr.msra.gmra.mrb[32].mxu1 %vm16640_vm5, %v6408_v39  ;;  %6951 = vmatmul.mubr.msk.f32.gmra.mrb[32].mxu0 %vm16641_vm3, %v6411_v41 }
 0xd8a   :  { %6783 = vmatprep.mubr.f32.mxu1 %v16634_v23  ;;  %6611 = vmatprep.mubr.f32.mxu0 %v16634_v23 }
 0xd8d   :  { %6955 = vmatmul.mubr.msk.f32.gmra.mrb[34].mxu1 %vm16642_vm13, %v6411_v41  ;;  %6952 = vmatmul.mubr.msk.f32.gmra.mrb[34].mxu0 %vm16643_vm10, %v6414_v48 }
 0xd8e   :  { %6789 = vmatprep.mubr.f32.mxu1 %v16634_v23  ;;  %6617 = vmatprep.mubr.f32.mxu0 %v16634_v23 }
 0xd8f   :  { %v6424_v33 = vpop.permute.xlu1 %6423 }
 0xd90   :  { %v6420_v55 = vpop.permute.xlu0 %6419 }
 0xd91   :  { %6956 = vmatmul.mubr.msk.f32.gmra.mrb[36].mxu1 %vm16644_vm6, %v6414_v48  ;;  %6953 = vmatmul.mubr.msk.f32.gmra.mrb[36].mxu0 %vm16645_vm11, %v6417_v43 }
 0xd92   :  { %6795 = vmatprep.mubr.f32.mxu1 %v16634_v23 }
 0xd93   :  { %v6428_v42 = vpop.permute.xlu1 %6427 }
 0xd94   :  { %v6432_v12 = vpop.permute.xlu0 %6431 }
 0xd95   :  { %6957 = vmatmul.mubr.msk.f32.gmra.mrb[38].mxu1 %vm16646_vm2, %v6417_v43 }
 0xe58   :  { %v6601_v40 = vpop.f32.mrb[30].mxu0 }
 0xe59   :  { %v7717_v14 = vadd.f32 %v6601_v40, %v6420_v55  ;;  %v6603_v1 = vpop.f32.mrb[31].mxu0 }
 0xe5a   :  { %v7718_v8 = vadd.f32 %v6603_v1, %v6420_v55 }
 0xe5b   :  { %6802 = vst [vmem:[#allocation11] sm:$0xff] %v7717_v14 }
 0xe5c   :  { %6803 = vst [vmem:[#allocation11 + $0x8] sm:$0xff] %v7718_v8  ;;  %v6779_v26 = vpop.f32.mrb[32].mxu1  ;;  %v6607_v49 = vpop.f32.mrb[32].mxu0 }
 0xe5d   :  { %v7725_v44 = vadd.f32 %v6779_v26, %v6420_v55  ;;  %v6781_v56 = vpop.f32.mrb[33].mxu1  ;;  %v7719_v60 = vadd.f32 %v6607_v49, %v6424_v33  ;;  %v6609_v5 = vpop.f32.mrb[33].mxu0 }
 0xe5e   :  { %v7726_v3 = vadd.f32 %v6781_v56, %v6420_v55  ;;  %v7720_v11 = vadd.f32 %v6609_v5, %v6424_v33 }
 0xe5f   :  { %6804 = vst [vmem:[#allocation11 + $0x10] sm:$0xff] %v7725_v44  ;;  %6806 = vst [vmem:[#allocation11 + $0x20] sm:$0xff] %v7719_v60 }
 0xe60   :  { %6805 = vst [vmem:[#allocation11 + $0x18] sm:$0xff] %v7726_v3  ;;  %6807 = vst [vmem:[#allocation11 + $0x28] sm:$0xff] %v7720_v11  ;;  %v6785_v57 = vpop.f32.mrb[34].mxu1  ;;  %v6613_v25 = vpop.f32.mrb[34].mxu0 }
 0xe61   :  { %v7727_v46 = vadd.f32 %v6785_v57, %v6424_v33  ;;  %v6787_v45 = vpop.f32.mrb[35].mxu1  ;;  %v7721_v53 = vadd.f32 %v6613_v25, %v6428_v42  ;;  %v6615_v59 = vpop.f32.mrb[35].mxu0 }
 0xe62   :  { %v7728_v62 = vadd.f32 %v6787_v45, %v6424_v33  ;;  %v7722_v7 = vadd.f32 %v6615_v59, %v6428_v42 }
 0xe63   :  { %6808 = vst [vmem:[#allocation11 + $0x30] sm:$0xff] %v7727_v46  ;;  %6810 = vst [vmem:[#allocation11 + $0x40] sm:$0xff] %v7721_v53 }
 0xe64   :  { %6809 = vst [vmem:[#allocation11 + $0x38] sm:$0xff] %v7728_v62  ;;  %6811 = vst [vmem:[#allocation11 + $0x48] sm:$0xff] %v7722_v7  ;;  %v6791_v54 = vpop.f32.mrb[36].mxu1  ;;  %v6619_v19 = vpop.f32.mrb[36].mxu0 }
 0xe65   :  { %v7729_v4 = vadd.f32 %v6791_v54, %v6428_v42  ;;  %v6793_v58 = vpop.f32.mrb[37].mxu1  ;;  %v7723_v35 = vadd.f32 %v6619_v19, %v6432_v12  ;;  %v6621_v2 = vpop.f32.mrb[37].mxu0 }
 0xe66   :  { %v7730_v52 = vadd.f32 %v6793_v58, %v6428_v42  ;;  %v7724_v21 = vadd.f32 %v6621_v2, %v6432_v12 }
 0xe67   :  { %6812 = vst [vmem:[#allocation11 + $0x50] sm:$0xff] %v7729_v4  ;;  %6814 = vst [vmem:[#allocation11 + $0x60] sm:$0xff] %v7723_v35 }
 0xe68   :  { %6813 = vst [vmem:[#allocation11 + $0x58] sm:$0xff] %v7730_v52  ;;  %6815 = vst [vmem:[#allocation11 + $0x68] sm:$0xff] %v7724_v21  ;;  %v6797_v6 = vpop.f32.mrb[38].mxu1 }
 0xe69   :  { %v7731_v0 = vadd.f32 %v6797_v6, %v6432_v12  ;;  %v6799_v24 = vpop.f32.mrb[39].mxu1 }
 0xe6a   :  { %v7732_v20 = vadd.f32 %v6799_v24, %v6432_v12 }
 0xe6b   :  { %6816 = vst [vmem:[#allocation11 + $0x70] sm:$0xff] %v7731_v0 }
 0xe6c   :  { %6817 = vst [vmem:[#allocation11 + $0x78] sm:$0xff] %v7732_v20 }
 0xe6d   :  { %8173 = shalt.err (!%p8170_p2)
}
 0xe6e   :  { %s8174_s3 = scalar_lea.hbm %s14783_s17, 2048 }
 0xe6f   :  { %p8175_p3 = scmp.ne.s32.totalorder %s14783_s17, %s8174_s3  ;;  %p8178_p4 = scmp.lt.u32.totalorder %s8174_s3, %s14783_s17 }
 0xe71   :  { %p8180_p5 = pnand %p8178_p4, %p8175_p3 }
 0xe73   :  { %8183 = shalt.err (!%p8180_p5)
}
 0xe74   :  { %s16647_s9 = smov 512  }
 0xe75   :  { %6829 = dma.vmem_to_hbm [thread:$0]  %s6824_s19, 2048, %s14783_s17, [#allocation4], %s16647_s9, %s16647_s9, %s15655_s29  }
 0xe76   :  { %8190 = dma.done.wait [#allocation4], 2048  }
 0xe77   :  { %8191 = vsyncadd [#allocation4], 4294965248 }
 0xe78   :  { %6833 = vsyncpa [#allocation3], 1 }
 0xe79   :  { %6834 = vsyncpa [#allocation6], 1 }
 0xe7a   :  { %6835 = vsyncpa [#allocation9], 1 }
 0xe7b   :  { %6836 = vsyncpa [#allocation4], 1 }

</bundles_post_ra>
